<compile_context>
chip_gen: v6e
topology: v6e:2x2x1
jax: 0.10.0
libtpu: 0.0.40
codegen_flags: <defaults>
</compile_context>

<pallas_src>
import functools
import math

import jax
import jax.numpy as jnp
from jax.experimental import pallas as pl
from jax.experimental.pallas import tpu as pltpu

# ----------------------------- static config --------------------------------
N_AGENTS = 4
N_ENEMIES = 4
N_HEAD = 4                     # args.mixing_n_head
D_EMBED = 32                   # args.hypernet_embed
D_HEAD = D_EMBED // N_HEAD
IN_A, IN_E, IN_B = 4, 4, 6     # per-entity feature dims (state_component)
STATE_DIM = IN_A * N_AGENTS + IN_E * N_ENEMIES + IN_B   # 38
BT_TILE = 1024                 # max samples per grid step (multiple of 128)

_F32 = jnp.float32
_SCALE = 1.0 / math.sqrt(D_HEAD)
_S4 = _SCALE / N_HEAD
_PREC = jax.lax.Precision.HIGHEST   # host-side fusions / reference only

G = 2 * N_HEAD                 # heads of BOTH hypernets stacked -> 8 sublanes
ROWS_AE = 2 * 5 * D_EMBED      # Qa0|Qa1|Ka0|Ka1|Va0|Va1|Ke0|Ke1|Ve0|Ve1 = 320
ROWS_B = 2 * 2 * D_EMBED       # Kb0|Kb1|Vb0|Vb1 = 128
ROWS_GEN = 136                 # wgq0|wgq1|wgk0|wgk1|b1|b2|pad  (multiple of 8)
COLS_X1 = IN_A + IN_E + 2      # agent feats | enemy feats | ones | q   = 10
COLS_X2 = IN_B + 1             # ball feats | ones                      = 7


# ------------------------------- Pallas kernel -------------------------------
def ss_mixer_kernel(x1_ref, x2_ref, w_ae_ref, w_b_ref, gf_ref, out_ref, wv_ref):
    t = x2_ref.shape[-1]                      # = block_t (multiple of 128)
    nA = N_AGENTS
    x1 = x1_ref[...]                          # (10, 4t)  agent|enemy|ones|q
    x2 = x2_ref[...]                          # (7, t)    ball|ones

    # fused embedding + cross-attention Q/K/V projections, both hypernets
    ae = jnp.dot(w_ae_ref[...], x1, preferred_element_type=_F32)   # (320, 4t)
    kvb = jnp.dot(w_b_ref[...], x2, preferred_element_type=_F32)   # (128, t)

    q_all = ae[0:2 * D_EMBED]                 # rows 0..31 h0, 32..63 h1 (scaled)
    k_ag = ae[2 * D_EMBED:4 * D_EMBED]
    v_ag = ae[4 * D_EMBED:6 * D_EMBED]
    k_en = ae[6 * D_EMBED:8 * D_EMBED]
    v_en = ae[8 * D_EMBED:10 * D_EMBED]
    k_ball = kvb[0:2 * D_EMBED]               # (64, t)
    v_ball = kvb[2 * D_EMBED:4 * D_EMBED]

    def lane(arr, i):                         # i-th lane block of width t
        return arr[:, i * t:(i + 1) * t]

    def head_sum(prod):                       # (64, t) -> (8, t)
        return jnp.sum(prod.reshape(G, D_HEAD, t), axis=1)

    # per-entity K/V, hoisted out of the agent loop (layout-trivial reshapes)
    k_list = ([lane(k_ag, a) for a in range(nA)]
              + [lane(k_en, e) for e in range(N_ENEMIES)] + [k_ball])
    v_list = ([lane(v_ag, a) for a in range(nA)]
              + [lane(v_en, e) for e in range(N_ENEMIES)] + [v_ball])
    v3 = [v.reshape(G, D_HEAD, t) for v in v_list]

    # multi-head cross-attention, one query agent at a time, both hypernets
    # stacked along sublanes (scores / probs / denom are full-vreg (8, t))
    for a in range(nA):
        qa = lane(q_all, a)                                   # (64, t)
        scores = [head_sum(qa * k) for k in k_list]           # 9 x (8, t)
        m = functools.reduce(jnp.maximum, scores)
        probs = [jnp.exp(s - m) for s in scores]
        denom = functools.reduce(jnp.add, probs)              # (8, t)
        inv = pl.reciprocal(denom, approx=True)
        acc = probs[0][:, None, :] * v3[0]                    # (8, 8, t)
        for p, v in zip(probs[1:], v3[1:]):
            acc = acc + p[:, None, :] * v
        wv_ref[:, a * t:(a + 1) * t] = (acc * inv[:, None, :]
                                        ).reshape(2 * D_EMBED, t)

    # fused (Wo -> weight / bias generators): one block-diagonal matmul
    gen = jnp.dot(gf_ref[...], wv_ref[...],
                  preferred_element_type=_F32)                # (136, 4t)
    wgq = gen[0:2 * D_EMBED]                  # query side, 1/(sqrt(d)*H) folded
    wgk = gen[2 * D_EMBED:4 * D_EMBED]        # key side
    brow = gen[4 * D_EMBED:4 * D_EMBED + 2]   # (2, 4t): b1 | b2 per lane block

    qrow = x1[COLS_X1 - 1:COLS_X1]            # (1, 4t): q_n at lane block n

    # 4x4 bilinear weights + monotonic mixing via lane rolls (XLU slot)
    z = brow[0:1]                             # -> b1[m] + sum_n q_n |w1[n,m]|
    ws2 = None                                # -> sum_k |w2[m,k]|
    for s in range(nA):
        kk = wgk if s == 0 else pltpu.roll(wgk, shift=s * t, axis=1)
        w_s = jnp.abs(jnp.sum((wgq * kk).reshape(2, D_EMBED, nA * t), axis=1))
        term = w_s[0:1] * qrow                                # (1, 4t)
        if s:
            term = pltpu.roll(term, shift=(nA - s) * t, axis=1)
        z = z + term
        ws2 = w_s[1:2] if ws2 is None else ws2 + w_s[1:2]

    h1 = jnp.where(z > 0.0, z, jnp.exp(z) - 1.0)              # ELU, (1, 4t)
    fin = brow[1:2] + h1 * ws2                                # (1, 4t)
    y = (fin[:, 0:t] + fin[:, t:2 * t]
         + fin[:, 2 * t:3 * t] + fin[:, 3 * t:4 * t])         # (1, t)
    out_ref[...] = y[None]                                    # (1, 1, t)


# ------------------------- host-side packing helpers -------------------------
def _pack_params(params):
    """Fuse the 15 SSMixer linears into 3 packed tensors (hypernets stacked)."""
    (aW, ab, eW, eb, bW, bb,
     caWq, caWk, caWv, caWo,
     wgWq, wgWk, bgS, bgWq, bgWk) = params
    z_a = jnp.zeros((D_EMBED, IN_A), _F32)
    z_e = jnp.zeros((D_EMBED, IN_E), _F32)
    z_1 = jnp.zeros((D_EMBED, 1), _F32)

    def fuse(ent_w, ent_b, proj, sc=1.0):
        fw = jnp.dot(ent_w, proj, precision=_PREC).T * sc     # (32, feat)
        fb = jnp.dot(ent_b, proj, precision=_PREC).T * sc     # (32, 1)
        return fw, fb

    def ae_block(kind, h):
        if kind == "qa":
            fw, fb = fuse(aW[h], ab[h], caWq[h], _SCALE)      # 1/sqrt(d) folded
        elif kind == "ka":
            fw, fb = fuse(aW[h], ab[h], caWk[h])
        elif kind == "va":
            fw, fb = fuse(aW[h], ab[h], caWv[h])
        elif kind == "ke":
            fw, fb = fuse(eW[h], eb[h], caWk[h])
        else:  # "ve"
            fw, fb = fuse(eW[h], eb[h], caWv[h])
        if kind in ("qa", "ka", "va"):
            return jnp.concatenate([fw, z_e, fb, z_1], axis=1)   # (32, 10)
        return jnp.concatenate([z_a, fw, fb, z_1], axis=1)       # (32, 10)

    w_ae = jnp.concatenate(
        [ae_block(k, h) for k in ("qa", "ka", "va", "ke", "ve") for h in (0, 1)],
        axis=0)                                               # (320, 10)

    def b_block(kind, h):
        proj = caWk[h] if kind == "kb" else caWv[h]
        fw, fb = fuse(bW[h], bb[h], proj)
        return jnp.concatenate([fw, fb], axis=1)              # (32, 7)

    w_b = jnp.concatenate(
        [b_block(k, h) for k in ("kb", "vb") for h in (0, 1)], axis=0)  # (128, 7)

    def fold(mat, h):
        # apply Wo^T of hypernet h, placed block-diagonally over (h0 | h1) wv rows
        m = jnp.dot(mat, caWo[h].T, precision=_PREC)          # (rows, 32)
        z = jnp.zeros_like(m)
        return jnp.concatenate([m, z] if h == 0 else [z, m], axis=1)

    bias_rows = []
    for h in (0, 1):
        seed_q = jnp.dot(bgS[h], bgWq[h], precision=_PREC)                # (1, 32)
        bias_vec = jnp.dot(bgWk[h], seed_q.T, precision=_PREC).T * _S4    # (1, 32)
        bias_rows.append(fold(bias_vec, h))

    gf = jnp.concatenate(
        [fold(wgWq[0].T * _S4, 0), fold(wgWq[1].T * _S4, 1),
         fold(wgWk[0].T, 0), fold(wgWk[1].T, 1),
         bias_rows[0], bias_rows[1],
         jnp.zeros((ROWS_GEN - 4 * D_EMBED - 2, 2 * D_EMBED), _F32)],
        axis=0)                                               # (136, 64)
    return w_ae, w_b, gf


def _pack_inputs(qvals, states, block_t):
    """Pad bt to a multiple of block_t and transpose into the kernel layout."""
    assert N_ENEMIES == N_AGENTS
    b, t_len, _ = qvals.shape
    bt = b * t_len
    nt = (bt + block_t - 1) // block_t
    bt_pad = nt * block_t
    q = qvals.reshape(bt, N_AGENTS).astype(_F32)
    s = states.reshape(bt, STATE_DIM).astype(_F32)
    pad = bt_pad - bt
    if pad:
        q = jnp.pad(q, ((0, pad), (0, 0)))
        s = jnp.pad(s, ((0, pad), (0, 0)))
    af, ef = IN_A * N_AGENTS, IN_E * N_ENEMIES
    a_st = s[:, :af].reshape(bt_pad, N_AGENTS, IN_A)
    e_st = s[:, af:af + ef].reshape(bt_pad, N_ENEMIES, IN_E)
    b_st = s[:, af + ef:]

    def to_cols(x):   # (bt_pad, 4, f) -> (f, nt*4*T), column = i*4T + a*T + t
        f = x.shape[-1]
        return (x.reshape(nt, block_t, N_AGENTS, f)
                 .transpose(3, 0, 2, 1)
                 .reshape(f, nt * N_AGENTS * block_t))

    ones_a = jnp.ones((1, nt * N_AGENTS * block_t), _F32)
    x1 = jnp.concatenate(
        [to_cols(a_st), to_cols(e_st), ones_a, to_cols(q[:, :, None])], axis=0)
    x2 = jnp.concatenate([b_st.T, jnp.ones((1, bt_pad), _F32)], axis=0)
    return x1, x2, nt, bt_pad


def _auto_block_t(bt):
    # keep the grid >= 2 steps when possible (v7x has 2 TensorCores) while
    # capping the tile at BT_TILE (VMEM footprint scales linearly with it)
    half = ((bt + 1) // 2 + 127) // 128 * 128
    return max(128, min(BT_TILE, half))


@functools.partial(jax.jit, static_argnames=("block_t",))
def ss_mixer_forward(qvals, states, params, block_t=None):
    b, t_len, _ = qvals.shape
    bt = b * t_len
    if block_t is None:
        block_t = _auto_block_t(bt)
    assert block_t % 128 == 0
    x1, x2, nt, bt_pad = _pack_inputs(qvals, states, block_t)
    w_ae, w_b, gf = _pack_params(params)

    cost = pl.CostEstimate(flops=110_000 * bt_pad,
                           transcendentals=300 * bt_pad,
                           bytes_accessed=200 * bt_pad + 60_000)

    out = pl.pallas_call(
        ss_mixer_kernel,
        out_shape=jax.ShapeDtypeStruct((nt, 1, block_t), _F32),
        grid=(nt,),
        in_specs=[
            pl.BlockSpec((COLS_X1, N_AGENTS * block_t), lambda i: (0, i)),
            pl.BlockSpec((COLS_X2, block_t), lambda i: (0, i)),
            pl.BlockSpec((ROWS_AE, COLS_X1), lambda i: (0, 0)),
            pl.BlockSpec((ROWS_B, COLS_X2), lambda i: (0, 0)),
            pl.BlockSpec((ROWS_GEN, 2 * D_EMBED), lambda i: (0, 0)),
        ],
        out_specs=pl.BlockSpec((1, 1, block_t), lambda i: (i, 0, 0)),
        scratch_shapes=[pltpu.VMEM((2 * D_EMBED, N_AGENTS * block_t), _F32)],
        compiler_params=pltpu.CompilerParams(
            dimension_semantics=("parallel",),
            vmem_limit_bytes=48 * 1024 * 1024),
        cost_estimate=cost,
    )(x1, x2, w_ae, w_b, gf)
    return out.reshape(bt_pad)[:bt].reshape(b, t_len, 1)


# ------------------------------ params / reference ---------------------------
def init_params(key):
    """Deterministic synthetic params; leading dim 2 = (hyper_w1, hyper_w2)."""
    shapes = [
        (2, IN_A, D_EMBED), (2, 1, D_EMBED),        # agent_embedding W, b
        (2, IN_E, D_EMBED), (2, 1, D_EMBED),        # enemy_embedding W, b
        (2, IN_B, D_EMBED), (2, 1, D_EMBED),        # ball_embedding  W, b
        (2, D_EMBED, D_EMBED), (2, D_EMBED, D_EMBED),   # cross-attn Wq, Wk
        (2, D_EMBED, D_EMBED), (2, D_EMBED, D_EMBED),   # cross-attn Wv, Wo
        (2, D_EMBED, D_EMBED), (2, D_EMBED, D_EMBED),   # weight-gen Wq, Wk
        (2, 1, D_EMBED),                                 # bias-gen seed (k=1)
        (2, D_EMBED, D_EMBED), (2, D_EMBED, D_EMBED),   # bias-gen Wq, Wk
    ]
    keys = jax.random.split(key, len(shapes))
    return [jax.random.normal(k, s, _F32) * 0.1 for k, s in zip(keys, shapes)]


def _mm3(x, w):
    return jnp.einsum('bnd,de->bne', x, w, preferred_element_type=_F32,
                      precision=_PREC)


def _elu(x):
    return jnp.where(x > 0, x, jnp.exp(x) - 1.0)


def _cross_attention(a_emb, e_emb, b_emb, wq, wk, wv, wo):
    """MHA: queries = agent embeds, keys/values = (agents, enemies, ball)."""
    q = _mm3(a_emb, wq)
    ka, va = _mm3(a_emb, wk), _mm3(a_emb, wv)
    ke, ve = _mm3(e_emb, wk), _mm3(e_emb, wv)
    kb, vb = _mm3(b_emb, wk), _mm3(b_emb, wv)
    x = jnp.zeros(q.shape, _F32)
    for h in range(N_HEAD):
        sl = slice(h * D_HEAD, (h + 1) * D_HEAD)
        qh = q[:, :, sl]
        ein = functools.partial(jnp.einsum, preferred_element_type=_F32,
                                precision=_PREC)
        sa = ein('bnd,bmd->bnm', qh, ka[:, :, sl]) * _SCALE
        se = ein('bnd,bmd->bnm', qh, ke[:, :, sl]) * _SCALE
        sb = ein('bnd,bmd->bnm', qh, kb[:, :, sl]) * _SCALE
        m = jnp.maximum(jnp.maximum(sa.max(-1, keepdims=True),
                                    se.max(-1, keepdims=True)),
                        sb.max(-1, keepdims=True))
        ea, ee, eb = jnp.exp(sa - m), jnp.exp(se - m), jnp.exp(sb - m)
        denom = (ea.sum(-1, keepdims=True) + ee.sum(-1, keepdims=True)
                 + eb.sum(-1, keepdims=True))
        head = (ein('bnm,bmd->bnd', ea, va[:, :, sl])
                + ein('bnm,bmd->bnd', ee, ve[:, :, sl])
                + ein('bnm,bmd->bnd', eb, vb[:, :, sl]))
        head = head / denom
        x = x + _mm3(head, wo[sl, :])
    return x


def _mixer_math(q, a_st, e_st, b_st, p):
    """Full SSMixer forward, pure-JAX reference."""
    (aW, ab, eW, eb, bW, bb,
     caWq, caWk, caWv, caWo,
     wgWq, wgWk, bgS, bgWq, bgWk) = p
    ein = functools.partial(jnp.einsum, preferred_element_type=_F32,
                            precision=_PREC)

    def hypernet(i):
        a_emb = _mm3(a_st, aW[i]) + ab[i]
        e_emb = _mm3(e_st, eW[i]) + eb[i]
        b_emb = _mm3(b_st, bW[i]) + bb[i]
        x = _cross_attention(a_emb, e_emb, b_emb,
                             caWq[i], caWk[i], caWv[i], caWo[i])
        qw = _mm3(x, wgWq[i])
        kw = _mm3(x, wgWk[i])
        w = ein('bnd,bmd->bnm', qw, kw) * _S4
        sq = jnp.dot(bgS[i], bgWq[i], preferred_element_type=_F32, precision=_PREC)
        kb2 = _mm3(x, bgWk[i])
        bias = jnp.sum(kb2 * sq[None, :, :], axis=-1) * _S4
        return w, bias

    w1, b1 = hypernet(0)
    w2, b2 = hypernet(1)
    w1, w2 = jnp.abs(w1), jnp.abs(w2)            # pos_func
    q3 = q[:, None, :]
    h1 = _elu(ein('bqn,bnm->bqm', q3, w1) + b1[:, None, :])
    h2 = ein('bqm,bmk->bqk', h1, w2) + b2[:, None, :]
    return jnp.sum(h2, axis=-1)


def ss_mixer_reference(qvals, states, params):
    b, t, _ = qvals.shape
    bt = b * t
    q = qvals.reshape(bt, N_AGENTS).astype(_F32)
    s = states.reshape(bt, -1).astype(_F32)
    af, ef = IN_A * N_AGENTS, IN_E * N_ENEMIES
    a_state = s[:, :af].reshape(bt, N_AGENTS, IN_A)
    e_state = s[:, af:af + ef].reshape(bt, N_ENEMIES, IN_E)
    b_state = s[:, af + ef:].reshape(bt, 1, IN_B)
    return _mixer_math(q, a_state, e_state, b_state, list(params)).reshape(b, t, 1)


if __name__ == "__main__":
    key = jax.random.PRNGKey(0)
    kq, ks, kp = jax.random.split(key, 3)
    b, t = 2, 8
    qvals = jax.random.normal(kq, (b, t, N_AGENTS), _F32)
    states = jax.random.normal(ks, (b, t, STATE_DIM), _F32)
    params = init_params(kp)

    out = ss_mixer_forward(qvals, states, params)
    out = jax.block_until_ready(out)

    ref = ss_mixer_reference(qvals, states, params)
    assert out.shape == (b, t, 1), out.shape
    err = float(jnp.max(jnp.abs(out - ref)))
    # tolerance leaves headroom for the approximate EUP reciprocal in the
    # softmax denominator (pl.reciprocal(approx=True)); outputs are O(0.1-1).
    if not bool(jnp.allclose(out, ref, atol=2e-3, rtol=1e-2)):
        raise AssertionError(f"kernel/reference mismatch, max abs err = {err}")
    print("KERNEL_OK")
</pallas_src>

<mosaic_0001>
module attributes {stable_mosaic.version = 11 : i64} {
  func.func @ss_mixer_kernel(%arg0: i32, %arg1: memref<10x512xf32, #tpu.memory_space<vmem>>, %arg2: memref<7x128xf32, #tpu.memory_space<vmem>>, %arg3: memref<320x10xf32, #tpu.memory_space<vmem>>, %arg4: memref<128x7xf32, #tpu.memory_space<vmem>>, %arg5: memref<136x64xf32, #tpu.memory_space<vmem>>, %arg6: memref<1x1x128xf32, #tpu.memory_space<vmem>>, %arg7: memref<64x512xf32, #tpu.memory_space<vmem>>) attributes {dimension_semantics = [#tpu.dimension_semantics<parallel>], iteration_bounds = array<i64: 1>, scalar_prefetch = 0 : i64, scratch_operands = 1 : i64, tpu.core_type = #tpu.core_type<tc>, window_params = [{transform_indices = @transform_0, window_bounds = array<i64: 10, 512>}, {transform_indices = @transform_1, window_bounds = array<i64: 7, 128>}, {pipeline_mode = #tpu.pipeline_mode<synchronous>, transform_indices = @transform_2, window_bounds = array<i64: 320, 10>}, {pipeline_mode = #tpu.pipeline_mode<synchronous>, transform_indices = @transform_3, window_bounds = array<i64: 128, 7>}, {pipeline_mode = #tpu.pipeline_mode<synchronous>, transform_indices = @transform_4, window_bounds = array<i64: 136, 64>}, {transform_indices = @transform_5, window_bounds = array<i64: 1, 1, 128>}]} {
    %c0 = arith.constant 0 : index
    %c0_0 = arith.constant 0 : index
    %0 = vector.load %arg1[%c0, %c0_0] : memref<10x512xf32, #tpu.memory_space<vmem>>, vector<10x512xf32>
    %c0_1 = arith.constant 0 : index
    %c0_2 = arith.constant 0 : index
    %1 = vector.load %arg2[%c0_1, %c0_2] : memref<7x128xf32, #tpu.memory_space<vmem>>, vector<7x128xf32>
    %c0_3 = arith.constant 0 : index
    %c0_4 = arith.constant 0 : index
    %2 = vector.load %arg3[%c0_3, %c0_4] : memref<320x10xf32, #tpu.memory_space<vmem>>, vector<320x10xf32>
    %cst = arith.constant dense<0.000000e+00> : vector<320x512xf32>
    %3 = tpu.matmul %2, %0, %cst {dimension_numbers = #tpu.dot_dimension_numbers<[1], [0], [0], [1], [0, 0, 1, 1], [], []>} : vector<320x10xf32>, vector<10x512xf32>, vector<320x512xf32> -> vector<320x512xf32>
    %c0_5 = arith.constant 0 : index
    %c0_6 = arith.constant 0 : index
    %4 = vector.load %arg4[%c0_5, %c0_6] : memref<128x7xf32, #tpu.memory_space<vmem>>, vector<128x7xf32>
    %cst_7 = arith.constant dense<0.000000e+00> : vector<128x128xf32>
    %5 = tpu.matmul %4, %1, %cst_7 {dimension_numbers = #tpu.dot_dimension_numbers<[1], [0], [0], [1], [0, 0, 1, 1], [], []>} : vector<128x7xf32>, vector<7x128xf32>, vector<128x128xf32> -> vector<128x128xf32>
    %6 = vector.extract_strided_slice %3 {offsets = [0, 0], sizes = [64, 512], strides = [1, 1]} : vector<320x512xf32> to vector<64x512xf32>
    %7 = vector.extract_strided_slice %3 {offsets = [64, 0], sizes = [64, 512], strides = [1, 1]} : vector<320x512xf32> to vector<64x512xf32>
    %8 = vector.extract_strided_slice %3 {offsets = [128, 0], sizes = [64, 512], strides = [1, 1]} : vector<320x512xf32> to vector<64x512xf32>
    %9 = vector.extract_strided_slice %3 {offsets = [192, 0], sizes = [64, 512], strides = [1, 1]} : vector<320x512xf32> to vector<64x512xf32>
    %10 = vector.extract_strided_slice %3 {offsets = [256, 0], sizes = [64, 512], strides = [1, 1]} : vector<320x512xf32> to vector<64x512xf32>
    %11 = vector.extract_strided_slice %5 {offsets = [0, 0], sizes = [64, 128], strides = [1, 1]} : vector<128x128xf32> to vector<64x128xf32>
    %12 = vector.extract_strided_slice %5 {offsets = [64, 0], sizes = [64, 128], strides = [1, 1]} : vector<128x128xf32> to vector<64x128xf32>
    %13 = vector.extract_strided_slice %7 {offsets = [0, 0], sizes = [64, 128], strides = [1, 1]} : vector<64x512xf32> to vector<64x128xf32>
    %14 = vector.extract_strided_slice %7 {offsets = [0, 128], sizes = [64, 128], strides = [1, 1]} : vector<64x512xf32> to vector<64x128xf32>
    %15 = vector.extract_strided_slice %7 {offsets = [0, 256], sizes = [64, 128], strides = [1, 1]} : vector<64x512xf32> to vector<64x128xf32>
    %16 = vector.extract_strided_slice %7 {offsets = [0, 384], sizes = [64, 128], strides = [1, 1]} : vector<64x512xf32> to vector<64x128xf32>
    %17 = vector.extract_strided_slice %9 {offsets = [0, 0], sizes = [64, 128], strides = [1, 1]} : vector<64x512xf32> to vector<64x128xf32>
    %18 = vector.extract_strided_slice %9 {offsets = [0, 128], sizes = [64, 128], strides = [1, 1]} : vector<64x512xf32> to vector<64x128xf32>
    %19 = vector.extract_strided_slice %9 {offsets = [0, 256], sizes = [64, 128], strides = [1, 1]} : vector<64x512xf32> to vector<64x128xf32>
    %20 = vector.extract_strided_slice %9 {offsets = [0, 384], sizes = [64, 128], strides = [1, 1]} : vector<64x512xf32> to vector<64x128xf32>
    %21 = vector.extract_strided_slice %8 {offsets = [0, 0], sizes = [64, 128], strides = [1, 1]} : vector<64x512xf32> to vector<64x128xf32>
    %22 = vector.extract_strided_slice %8 {offsets = [0, 128], sizes = [64, 128], strides = [1, 1]} : vector<64x512xf32> to vector<64x128xf32>
    %23 = vector.extract_strided_slice %8 {offsets = [0, 256], sizes = [64, 128], strides = [1, 1]} : vector<64x512xf32> to vector<64x128xf32>
    %24 = vector.extract_strided_slice %8 {offsets = [0, 384], sizes = [64, 128], strides = [1, 1]} : vector<64x512xf32> to vector<64x128xf32>
    %25 = vector.extract_strided_slice %10 {offsets = [0, 0], sizes = [64, 128], strides = [1, 1]} : vector<64x512xf32> to vector<64x128xf32>
    %26 = vector.extract_strided_slice %10 {offsets = [0, 128], sizes = [64, 128], strides = [1, 1]} : vector<64x512xf32> to vector<64x128xf32>
    %27 = vector.extract_strided_slice %10 {offsets = [0, 256], sizes = [64, 128], strides = [1, 1]} : vector<64x512xf32> to vector<64x128xf32>
    %28 = vector.extract_strided_slice %10 {offsets = [0, 384], sizes = [64, 128], strides = [1, 1]} : vector<64x512xf32> to vector<64x128xf32>
    %29 = vector.shape_cast %21 : vector<64x128xf32> to vector<8x8x128xf32>
    %30 = vector.shape_cast %22 : vector<64x128xf32> to vector<8x8x128xf32>
    %31 = vector.shape_cast %23 : vector<64x128xf32> to vector<8x8x128xf32>
    %32 = vector.shape_cast %24 : vector<64x128xf32> to vector<8x8x128xf32>
    %33 = vector.shape_cast %25 : vector<64x128xf32> to vector<8x8x128xf32>
    %34 = vector.shape_cast %26 : vector<64x128xf32> to vector<8x8x128xf32>
    %35 = vector.shape_cast %27 : vector<64x128xf32> to vector<8x8x128xf32>
    %36 = vector.shape_cast %28 : vector<64x128xf32> to vector<8x8x128xf32>
    %37 = vector.shape_cast %12 : vector<64x128xf32> to vector<8x8x128xf32>
    %38 = vector.extract_strided_slice %6 {offsets = [0, 0], sizes = [64, 128], strides = [1, 1]} : vector<64x512xf32> to vector<64x128xf32>
    %39 = arith.mulf %38, %13 : vector<64x128xf32>
    %40 = vector.shape_cast %39 : vector<64x128xf32> to vector<8x8x128xf32>
    %cst_8 = arith.constant dense<0.000000e+00> : vector<8x128xf32>
    %41 = vector.multi_reduction <add>, %40, %cst_8 [1] : vector<8x8x128xf32> to vector<8x128xf32>
    %42 = arith.mulf %38, %14 : vector<64x128xf32>
    %43 = vector.shape_cast %42 : vector<64x128xf32> to vector<8x8x128xf32>
    %cst_9 = arith.constant dense<0.000000e+00> : vector<8x128xf32>
    %44 = vector.multi_reduction <add>, %43, %cst_9 [1] : vector<8x8x128xf32> to vector<8x128xf32>
    %45 = arith.mulf %38, %15 : vector<64x128xf32>
    %46 = vector.shape_cast %45 : vector<64x128xf32> to vector<8x8x128xf32>
    %cst_10 = arith.constant dense<0.000000e+00> : vector<8x128xf32>
    %47 = vector.multi_reduction <add>, %46, %cst_10 [1] : vector<8x8x128xf32> to vector<8x128xf32>
    %48 = arith.mulf %38, %16 : vector<64x128xf32>
    %49 = vector.shape_cast %48 : vector<64x128xf32> to vector<8x8x128xf32>
    %cst_11 = arith.constant dense<0.000000e+00> : vector<8x128xf32>
    %50 = vector.multi_reduction <add>, %49, %cst_11 [1] : vector<8x8x128xf32> to vector<8x128xf32>
    %51 = arith.mulf %38, %17 : vector<64x128xf32>
    %52 = vector.shape_cast %51 : vector<64x128xf32> to vector<8x8x128xf32>
    %cst_12 = arith.constant dense<0.000000e+00> : vector<8x128xf32>
    %53 = vector.multi_reduction <add>, %52, %cst_12 [1] : vector<8x8x128xf32> to vector<8x128xf32>
    %54 = arith.mulf %38, %18 : vector<64x128xf32>
    %55 = vector.shape_cast %54 : vector<64x128xf32> to vector<8x8x128xf32>
    %cst_13 = arith.constant dense<0.000000e+00> : vector<8x128xf32>
    %56 = vector.multi_reduction <add>, %55, %cst_13 [1] : vector<8x8x128xf32> to vector<8x128xf32>
    %57 = arith.mulf %38, %19 : vector<64x128xf32>
    %58 = vector.shape_cast %57 : vector<64x128xf32> to vector<8x8x128xf32>
    %cst_14 = arith.constant dense<0.000000e+00> : vector<8x128xf32>
    %59 = vector.multi_reduction <add>, %58, %cst_14 [1] : vector<8x8x128xf32> to vector<8x128xf32>
    %60 = arith.mulf %38, %20 : vector<64x128xf32>
    %61 = vector.shape_cast %60 : vector<64x128xf32> to vector<8x8x128xf32>
    %cst_15 = arith.constant dense<0.000000e+00> : vector<8x128xf32>
    %62 = vector.multi_reduction <add>, %61, %cst_15 [1] : vector<8x8x128xf32> to vector<8x128xf32>
    %63 = arith.mulf %38, %11 : vector<64x128xf32>
    %64 = vector.shape_cast %63 : vector<64x128xf32> to vector<8x8x128xf32>
    %cst_16 = arith.constant dense<0.000000e+00> : vector<8x128xf32>
    %65 = vector.multi_reduction <add>, %64, %cst_16 [1] : vector<8x8x128xf32> to vector<8x128xf32>
    %66 = arith.maximumf %41, %44 : vector<8x128xf32>
    %67 = arith.maximumf %66, %47 : vector<8x128xf32>
    %68 = arith.maximumf %67, %50 : vector<8x128xf32>
    %69 = arith.maximumf %68, %53 : vector<8x128xf32>
    %70 = arith.maximumf %69, %56 : vector<8x128xf32>
    %71 = arith.maximumf %70, %59 : vector<8x128xf32>
    %72 = arith.maximumf %71, %62 : vector<8x128xf32>
    %73 = arith.maximumf %72, %65 : vector<8x128xf32>
    %74 = arith.subf %41, %73 : vector<8x128xf32>
    %75 = math.exp %74 : vector<8x128xf32>
    %76 = arith.subf %44, %73 : vector<8x128xf32>
    %77 = math.exp %76 : vector<8x128xf32>
    %78 = arith.subf %47, %73 : vector<8x128xf32>
    %79 = math.exp %78 : vector<8x128xf32>
    %80 = arith.subf %50, %73 : vector<8x128xf32>
    %81 = math.exp %80 : vector<8x128xf32>
    %82 = arith.subf %53, %73 : vector<8x128xf32>
    %83 = math.exp %82 : vector<8x128xf32>
    %84 = arith.subf %56, %73 : vector<8x128xf32>
    %85 = math.exp %84 : vector<8x128xf32>
    %86 = arith.subf %59, %73 : vector<8x128xf32>
    %87 = math.exp %86 : vector<8x128xf32>
    %88 = arith.subf %62, %73 : vector<8x128xf32>
    %89 = math.exp %88 : vector<8x128xf32>
    %90 = arith.subf %65, %73 : vector<8x128xf32>
    %91 = math.exp %90 : vector<8x128xf32>
    %92 = arith.addf %75, %77 : vector<8x128xf32>
    %93 = arith.addf %92, %79 : vector<8x128xf32>
    %94 = arith.addf %93, %81 : vector<8x128xf32>
    %95 = arith.addf %94, %83 : vector<8x128xf32>
    %96 = arith.addf %95, %85 : vector<8x128xf32>
    %97 = arith.addf %96, %87 : vector<8x128xf32>
    %98 = arith.addf %97, %89 : vector<8x128xf32>
    %99 = arith.addf %98, %91 : vector<8x128xf32>
    %100 = tpu.reciprocal %99 {approx = true} : vector<8x128xf32> -> vector<8x128xf32>
    %101 = vector.shape_cast %75 : vector<8x128xf32> to vector<8x1x128xf32>
    %102 = vector.broadcast %101 : vector<8x1x128xf32> to vector<8x8x128xf32>
    %103 = arith.mulf %102, %29 : vector<8x8x128xf32>
    %104 = vector.shape_cast %77 : vector<8x128xf32> to vector<8x1x128xf32>
    %105 = vector.broadcast %104 : vector<8x1x128xf32> to vector<8x8x128xf32>
    %106 = arith.mulf %105, %30 : vector<8x8x128xf32>
    %107 = arith.addf %103, %106 : vector<8x8x128xf32>
    %108 = vector.shape_cast %79 : vector<8x128xf32> to vector<8x1x128xf32>
    %109 = vector.broadcast %108 : vector<8x1x128xf32> to vector<8x8x128xf32>
    %110 = arith.mulf %109, %31 : vector<8x8x128xf32>
    %111 = arith.addf %107, %110 : vector<8x8x128xf32>
    %112 = vector.shape_cast %81 : vector<8x128xf32> to vector<8x1x128xf32>
    %113 = vector.broadcast %112 : vector<8x1x128xf32> to vector<8x8x128xf32>
    %114 = arith.mulf %113, %32 : vector<8x8x128xf32>
    %115 = arith.addf %111, %114 : vector<8x8x128xf32>
    %116 = vector.shape_cast %83 : vector<8x128xf32> to vector<8x1x128xf32>
    %117 = vector.broadcast %116 : vector<8x1x128xf32> to vector<8x8x128xf32>
    %118 = arith.mulf %117, %33 : vector<8x8x128xf32>
    %119 = arith.addf %115, %118 : vector<8x8x128xf32>
    %120 = vector.shape_cast %85 : vector<8x128xf32> to vector<8x1x128xf32>
    %121 = vector.broadcast %120 : vector<8x1x128xf32> to vector<8x8x128xf32>
    %122 = arith.mulf %121, %34 : vector<8x8x128xf32>
    %123 = arith.addf %119, %122 : vector<8x8x128xf32>
    %124 = vector.shape_cast %87 : vector<8x128xf32> to vector<8x1x128xf32>
    %125 = vector.broadcast %124 : vector<8x1x128xf32> to vector<8x8x128xf32>
    %126 = arith.mulf %125, %35 : vector<8x8x128xf32>
    %127 = arith.addf %123, %126 : vector<8x8x128xf32>
    %128 = vector.shape_cast %89 : vector<8x128xf32> to vector<8x1x128xf32>
    %129 = vector.broadcast %128 : vector<8x1x128xf32> to vector<8x8x128xf32>
    %130 = arith.mulf %129, %36 : vector<8x8x128xf32>
    %131 = arith.addf %127, %130 : vector<8x8x128xf32>
    %132 = vector.shape_cast %91 : vector<8x128xf32> to vector<8x1x128xf32>
    %133 = vector.broadcast %132 : vector<8x1x128xf32> to vector<8x8x128xf32>
    %134 = arith.mulf %133, %37 : vector<8x8x128xf32>
    %135 = arith.addf %131, %134 : vector<8x8x128xf32>
    %136 = vector.shape_cast %100 : vector<8x128xf32> to vector<8x1x128xf32>
    %137 = vector.broadcast %136 : vector<8x1x128xf32> to vector<8x8x128xf32>
    %138 = arith.mulf %135, %137 : vector<8x8x128xf32>
    %139 = vector.shape_cast %138 : vector<8x8x128xf32> to vector<64x128xf32>
    %c0_17 = arith.constant 0 : index
    %c0_18 = arith.constant 0 : index
    %140 = vector.load %arg7[%c0_17, %c0_18] : memref<64x512xf32, #tpu.memory_space<vmem>>, vector<64x128xf32>
    tpu.vector_store %arg7[%c0_17, %c0_18], %139 {strides = array<i32>} : memref<64x512xf32, #tpu.memory_space<vmem>>, vector<64x128xf32>,
    %141 = vector.extract_strided_slice %6 {offsets = [0, 128], sizes = [64, 128], strides = [1, 1]} : vector<64x512xf32> to vector<64x128xf32>
    %142 = arith.mulf %141, %13 : vector<64x128xf32>
    %143 = vector.shape_cast %142 : vector<64x128xf32> to vector<8x8x128xf32>
    %cst_19 = arith.constant dense<0.000000e+00> : vector<8x128xf32>
    %144 = vector.multi_reduction <add>, %143, %cst_19 [1] : vector<8x8x128xf32> to vector<8x128xf32>
    %145 = arith.mulf %141, %14 : vector<64x128xf32>
    %146 = vector.shape_cast %145 : vector<64x128xf32> to vector<8x8x128xf32>
    %cst_20 = arith.constant dense<0.000000e+00> : vector<8x128xf32>
    %147 = vector.multi_reduction <add>, %146, %cst_20 [1] : vector<8x8x128xf32> to vector<8x128xf32>
    %148 = arith.mulf %141, %15 : vector<64x128xf32>
    %149 = vector.shape_cast %148 : vector<64x128xf32> to vector<8x8x128xf32>
    %cst_21 = arith.constant dense<0.000000e+00> : vector<8x128xf32>
    %150 = vector.multi_reduction <add>, %149, %cst_21 [1] : vector<8x8x128xf32> to vector<8x128xf32>
    %151 = arith.mulf %141, %16 : vector<64x128xf32>
    %152 = vector.shape_cast %151 : vector<64x128xf32> to vector<8x8x128xf32>
    %cst_22 = arith.constant dense<0.000000e+00> : vector<8x128xf32>
    %153 = vector.multi_reduction <add>, %152, %cst_22 [1] : vector<8x8x128xf32> to vector<8x128xf32>
    %154 = arith.mulf %141, %17 : vector<64x128xf32>
    %155 = vector.shape_cast %154 : vector<64x128xf32> to vector<8x8x128xf32>
    %cst_23 = arith.constant dense<0.000000e+00> : vector<8x128xf32>
    %156 = vector.multi_reduction <add>, %155, %cst_23 [1] : vector<8x8x128xf32> to vector<8x128xf32>
    %157 = arith.mulf %141, %18 : vector<64x128xf32>
    %158 = vector.shape_cast %157 : vector<64x128xf32> to vector<8x8x128xf32>
    %cst_24 = arith.constant dense<0.000000e+00> : vector<8x128xf32>
    %159 = vector.multi_reduction <add>, %158, %cst_24 [1] : vector<8x8x128xf32> to vector<8x128xf32>
    %160 = arith.mulf %141, %19 : vector<64x128xf32>
    %161 = vector.shape_cast %160 : vector<64x128xf32> to vector<8x8x128xf32>
    %cst_25 = arith.constant dense<0.000000e+00> : vector<8x128xf32>
    %162 = vector.multi_reduction <add>, %161, %cst_25 [1] : vector<8x8x128xf32> to vector<8x128xf32>
    %163 = arith.mulf %141, %20 : vector<64x128xf32>
    %164 = vector.shape_cast %163 : vector<64x128xf32> to vector<8x8x128xf32>
    %cst_26 = arith.constant dense<0.000000e+00> : vector<8x128xf32>
    %165 = vector.multi_reduction <add>, %164, %cst_26 [1] : vector<8x8x128xf32> to vector<8x128xf32>
    %166 = arith.mulf %141, %11 : vector<64x128xf32>
    %167 = vector.shape_cast %166 : vector<64x128xf32> to vector<8x8x128xf32>
    %cst_27 = arith.constant dense<0.000000e+00> : vector<8x128xf32>
    %168 = vector.multi_reduction <add>, %167, %cst_27 [1] : vector<8x8x128xf32> to vector<8x128xf32>
    %169 = arith.maximumf %144, %147 : vector<8x128xf32>
    %170 = arith.maximumf %169, %150 : vector<8x128xf32>
    %171 = arith.maximumf %170, %153 : vector<8x128xf32>
    %172 = arith.maximumf %171, %156 : vector<8x128xf32>
    %173 = arith.maximumf %172, %159 : vector<8x128xf32>
    %174 = arith.maximumf %173, %162 : vector<8x128xf32>
    %175 = arith.maximumf %174, %165 : vector<8x128xf32>
    %176 = arith.maximumf %175, %168 : vector<8x128xf32>
    %177 = arith.subf %144, %176 : vector<8x128xf32>
    %178 = math.exp %177 : vector<8x128xf32>
    %179 = arith.subf %147, %176 : vector<8x128xf32>
    %180 = math.exp %179 : vector<8x128xf32>
    %181 = arith.subf %150, %176 : vector<8x128xf32>
    %182 = math.exp %181 : vector<8x128xf32>
    %183 = arith.subf %153, %176 : vector<8x128xf32>
    %184 = math.exp %183 : vector<8x128xf32>
    %185 = arith.subf %156, %176 : vector<8x128xf32>
    %186 = math.exp %185 : vector<8x128xf32>
    %187 = arith.subf %159, %176 : vector<8x128xf32>
    %188 = math.exp %187 : vector<8x128xf32>
    %189 = arith.subf %162, %176 : vector<8x128xf32>
    %190 = math.exp %189 : vector<8x128xf32>
    %191 = arith.subf %165, %176 : vector<8x128xf32>
    %192 = math.exp %191 : vector<8x128xf32>
    %193 = arith.subf %168, %176 : vector<8x128xf32>
    %194 = math.exp %193 : vector<8x128xf32>
    %195 = arith.addf %178, %180 : vector<8x128xf32>
    %196 = arith.addf %195, %182 : vector<8x128xf32>
    %197 = arith.addf %196, %184 : vector<8x128xf32>
    %198 = arith.addf %197, %186 : vector<8x128xf32>
    %199 = arith.addf %198, %188 : vector<8x128xf32>
    %200 = arith.addf %199, %190 : vector<8x128xf32>
    %201 = arith.addf %200, %192 : vector<8x128xf32>
    %202 = arith.addf %201, %194 : vector<8x128xf32>
    %203 = tpu.reciprocal %202 {approx = true} : vector<8x128xf32> -> vector<8x128xf32>
    %204 = vector.shape_cast %178 : vector<8x128xf32> to vector<8x1x128xf32>
    %205 = vector.broadcast %204 : vector<8x1x128xf32> to vector<8x8x128xf32>
    %206 = arith.mulf %205, %29 : vector<8x8x128xf32>
    %207 = vector.shape_cast %180 : vector<8x128xf32> to vector<8x1x128xf32>
    %208 = vector.broadcast %207 : vector<8x1x128xf32> to vector<8x8x128xf32>
    %209 = arith.mulf %208, %30 : vector<8x8x128xf32>
    %210 = arith.addf %206, %209 : vector<8x8x128xf32>
    %211 = vector.shape_cast %182 : vector<8x128xf32> to vector<8x1x128xf32>
    %212 = vector.broadcast %211 : vector<8x1x128xf32> to vector<8x8x128xf32>
    %213 = arith.mulf %212, %31 : vector<8x8x128xf32>
    %214 = arith.addf %210, %213 : vector<8x8x128xf32>
    %215 = vector.shape_cast %184 : vector<8x128xf32> to vector<8x1x128xf32>
    %216 = vector.broadcast %215 : vector<8x1x128xf32> to vector<8x8x128xf32>
    %217 = arith.mulf %216, %32 : vector<8x8x128xf32>
    %218 = arith.addf %214, %217 : vector<8x8x128xf32>
    %219 = vector.shape_cast %186 : vector<8x128xf32> to vector<8x1x128xf32>
    %220 = vector.broadcast %219 : vector<8x1x128xf32> to vector<8x8x128xf32>
    %221 = arith.mulf %220, %33 : vector<8x8x128xf32>
    %222 = arith.addf %218, %221 : vector<8x8x128xf32>
    %223 = vector.shape_cast %188 : vector<8x128xf32> to vector<8x1x128xf32>
    %224 = vector.broadcast %223 : vector<8x1x128xf32> to vector<8x8x128xf32>
    %225 = arith.mulf %224, %34 : vector<8x8x128xf32>
    %226 = arith.addf %222, %225 : vector<8x8x128xf32>
    %227 = vector.shape_cast %190 : vector<8x128xf32> to vector<8x1x128xf32>
    %228 = vector.broadcast %227 : vector<8x1x128xf32> to vector<8x8x128xf32>
    %229 = arith.mulf %228, %35 : vector<8x8x128xf32>
    %230 = arith.addf %226, %229 : vector<8x8x128xf32>
    %231 = vector.shape_cast %192 : vector<8x128xf32> to vector<8x1x128xf32>
    %232 = vector.broadcast %231 : vector<8x1x128xf32> to vector<8x8x128xf32>
    %233 = arith.mulf %232, %36 : vector<8x8x128xf32>
    %234 = arith.addf %230, %233 : vector<8x8x128xf32>
    %235 = vector.shape_cast %194 : vector<8x128xf32> to vector<8x1x128xf32>
    %236 = vector.broadcast %235 : vector<8x1x128xf32> to vector<8x8x128xf32>
    %237 = arith.mulf %236, %37 : vector<8x8x128xf32>
    %238 = arith.addf %234, %237 : vector<8x8x128xf32>
    %239 = vector.shape_cast %203 : vector<8x128xf32> to vector<8x1x128xf32>
    %240 = vector.broadcast %239 : vector<8x1x128xf32> to vector<8x8x128xf32>
    %241 = arith.mulf %238, %240 : vector<8x8x128xf32>
    %242 = vector.shape_cast %241 : vector<8x8x128xf32> to vector<64x128xf32>
    %c0_28 = arith.constant 0 : index
    %c128 = arith.constant 128 : index
    %243 = vector.load %arg7[%c0_28, %c128] : memref<64x512xf32, #tpu.memory_space<vmem>>, vector<64x128xf32>
    tpu.vector_store %arg7[%c0_28, %c128], %242 {strides = array<i32>} : memref<64x512xf32, #tpu.memory_space<vmem>>, vector<64x128xf32>,
    %244 = vector.extract_strided_slice %6 {offsets = [0, 256], sizes = [64, 128], strides = [1, 1]} : vector<64x512xf32> to vector<64x128xf32>
    %245 = arith.mulf %244, %13 : vector<64x128xf32>
    %246 = vector.shape_cast %245 : vector<64x128xf32> to vector<8x8x128xf32>
    %cst_29 = arith.constant dense<0.000000e+00> : vector<8x128xf32>
    %247 = vector.multi_reduction <add>, %246, %cst_29 [1] : vector<8x8x128xf32> to vector<8x128xf32>
    %248 = arith.mulf %244, %14 : vector<64x128xf32>
    %249 = vector.shape_cast %248 : vector<64x128xf32> to vector<8x8x128xf32>
    %cst_30 = arith.constant dense<0.000000e+00> : vector<8x128xf32>
    %250 = vector.multi_reduction <add>, %249, %cst_30 [1] : vector<8x8x128xf32> to vector<8x128xf32>
    %251 = arith.mulf %244, %15 : vector<64x128xf32>
    %252 = vector.shape_cast %251 : vector<64x128xf32> to vector<8x8x128xf32>
    %cst_31 = arith.constant dense<0.000000e+00> : vector<8x128xf32>
    %253 = vector.multi_reduction <add>, %252, %cst_31 [1] : vector<8x8x128xf32> to vector<8x128xf32>
    %254 = arith.mulf %244, %16 : vector<64x128xf32>
    %255 = vector.shape_cast %254 : vector<64x128xf32> to vector<8x8x128xf32>
    %cst_32 = arith.constant dense<0.000000e+00> : vector<8x128xf32>
    %256 = vector.multi_reduction <add>, %255, %cst_32 [1] : vector<8x8x128xf32> to vector<8x128xf32>
    %257 = arith.mulf %244, %17 : vector<64x128xf32>
    %258 = vector.shape_cast %257 : vector<64x128xf32> to vector<8x8x128xf32>
    %cst_33 = arith.constant dense<0.000000e+00> : vector<8x128xf32>
    %259 = vector.multi_reduction <add>, %258, %cst_33 [1] : vector<8x8x128xf32> to vector<8x128xf32>
    %260 = arith.mulf %244, %18 : vector<64x128xf32>
    %261 = vector.shape_cast %260 : vector<64x128xf32> to vector<8x8x128xf32>
    %cst_34 = arith.constant dense<0.000000e+00> : vector<8x128xf32>
    %262 = vector.multi_reduction <add>, %261, %cst_34 [1] : vector<8x8x128xf32> to vector<8x128xf32>
    %263 = arith.mulf %244, %19 : vector<64x128xf32>
    %264 = vector.shape_cast %263 : vector<64x128xf32> to vector<8x8x128xf32>
    %cst_35 = arith.constant dense<0.000000e+00> : vector<8x128xf32>
    %265 = vector.multi_reduction <add>, %264, %cst_35 [1] : vector<8x8x128xf32> to vector<8x128xf32>
    %266 = arith.mulf %244, %20 : vector<64x128xf32>
    %267 = vector.shape_cast %266 : vector<64x128xf32> to vector<8x8x128xf32>
    %cst_36 = arith.constant dense<0.000000e+00> : vector<8x128xf32>
    %268 = vector.multi_reduction <add>, %267, %cst_36 [1] : vector<8x8x128xf32> to vector<8x128xf32>
    %269 = arith.mulf %244, %11 : vector<64x128xf32>
    %270 = vector.shape_cast %269 : vector<64x128xf32> to vector<8x8x128xf32>
    %cst_37 = arith.constant dense<0.000000e+00> : vector<8x128xf32>
    %271 = vector.multi_reduction <add>, %270, %cst_37 [1] : vector<8x8x128xf32> to vector<8x128xf32>
    %272 = arith.maximumf %247, %250 : vector<8x128xf32>
    %273 = arith.maximumf %272, %253 : vector<8x128xf32>
    %274 = arith.maximumf %273, %256 : vector<8x128xf32>
    %275 = arith.maximumf %274, %259 : vector<8x128xf32>
    %276 = arith.maximumf %275, %262 : vector<8x128xf32>
    %277 = arith.maximumf %276, %265 : vector<8x128xf32>
    %278 = arith.maximumf %277, %268 : vector<8x128xf32>
    %279 = arith.maximumf %278, %271 : vector<8x128xf32>
    %280 = arith.subf %247, %279 : vector<8x128xf32>
    %281 = math.exp %280 : vector<8x128xf32>
    %282 = arith.subf %250, %279 : vector<8x128xf32>
    %283 = math.exp %282 : vector<8x128xf32>
    %284 = arith.subf %253, %279 : vector<8x128xf32>
    %285 = math.exp %284 : vector<8x128xf32>
    %286 = arith.subf %256, %279 : vector<8x128xf32>
    %287 = math.exp %286 : vector<8x128xf32>
    %288 = arith.subf %259, %279 : vector<8x128xf32>
    %289 = math.exp %288 : vector<8x128xf32>
    %290 = arith.subf %262, %279 : vector<8x128xf32>
    %291 = math.exp %290 : vector<8x128xf32>
    %292 = arith.subf %265, %279 : vector<8x128xf32>
    %293 = math.exp %292 : vector<8x128xf32>
    %294 = arith.subf %268, %279 : vector<8x128xf32>
    %295 = math.exp %294 : vector<8x128xf32>
    %296 = arith.subf %271, %279 : vector<8x128xf32>
    %297 = math.exp %296 : vector<8x128xf32>
    %298 = arith.addf %281, %283 : vector<8x128xf32>
    %299 = arith.addf %298, %285 : vector<8x128xf32>
    %300 = arith.addf %299, %287 : vector<8x128xf32>
    %301 = arith.addf %300, %289 : vector<8x128xf32>
    %302 = arith.addf %301, %291 : vector<8x128xf32>
    %303 = arith.addf %302, %293 : vector<8x128xf32>
    %304 = arith.addf %303, %295 : vector<8x128xf32>
    %305 = arith.addf %304, %297 : vector<8x128xf32>
    %306 = tpu.reciprocal %305 {approx = true} : vector<8x128xf32> -> vector<8x128xf32>
    %307 = vector.shape_cast %281 : vector<8x128xf32> to vector<8x1x128xf32>
    %308 = vector.broadcast %307 : vector<8x1x128xf32> to vector<8x8x128xf32>
    %309 = arith.mulf %308, %29 : vector<8x8x128xf32>
    %310 = vector.shape_cast %283 : vector<8x128xf32> to vector<8x1x128xf32>
    %311 = vector.broadcast %310 : vector<8x1x128xf32> to vector<8x8x128xf32>
    %312 = arith.mulf %311, %30 : vector<8x8x128xf32>
    %313 = arith.addf %309, %312 : vector<8x8x128xf32>
    %314 = vector.shape_cast %285 : vector<8x128xf32> to vector<8x1x128xf32>
    %315 = vector.broadcast %314 : vector<8x1x128xf32> to vector<8x8x128xf32>
    %316 = arith.mulf %315, %31 : vector<8x8x128xf32>
    %317 = arith.addf %313, %316 : vector<8x8x128xf32>
    %318 = vector.shape_cast %287 : vector<8x128xf32> to vector<8x1x128xf32>
    %319 = vector.broadcast %318 : vector<8x1x128xf32> to vector<8x8x128xf32>
    %320 = arith.mulf %319, %32 : vector<8x8x128xf32>
    %321 = arith.addf %317, %320 : vector<8x8x128xf32>
    %322 = vector.shape_cast %289 : vector<8x128xf32> to vector<8x1x128xf32>
    %323 = vector.broadcast %322 : vector<8x1x128xf32> to vector<8x8x128xf32>
    %324 = arith.mulf %323, %33 : vector<8x8x128xf32>
    %325 = arith.addf %321, %324 : vector<8x8x128xf32>
    %326 = vector.shape_cast %291 : vector<8x128xf32> to vector<8x1x128xf32>
    %327 = vector.broadcast %326 : vector<8x1x128xf32> to vector<8x8x128xf32>
    %328 = arith.mulf %327, %34 : vector<8x8x128xf32>
    %329 = arith.addf %325, %328 : vector<8x8x128xf32>
    %330 = vector.shape_cast %293 : vector<8x128xf32> to vector<8x1x128xf32>
    %331 = vector.broadcast %330 : vector<8x1x128xf32> to vector<8x8x128xf32>
    %332 = arith.mulf %331, %35 : vector<8x8x128xf32>
    %333 = arith.addf %329, %332 : vector<8x8x128xf32>
    %334 = vector.shape_cast %295 : vector<8x128xf32> to vector<8x1x128xf32>
    %335 = vector.broadcast %334 : vector<8x1x128xf32> to vector<8x8x128xf32>
    %336 = arith.mulf %335, %36 : vector<8x8x128xf32>
    %337 = arith.addf %333, %336 : vector<8x8x128xf32>
    %338 = vector.shape_cast %297 : vector<8x128xf32> to vector<8x1x128xf32>
    %339 = vector.broadcast %338 : vector<8x1x128xf32> to vector<8x8x128xf32>
    %340 = arith.mulf %339, %37 : vector<8x8x128xf32>
    %341 = arith.addf %337, %340 : vector<8x8x128xf32>
    %342 = vector.shape_cast %306 : vector<8x128xf32> to vector<8x1x128xf32>
    %343 = vector.broadcast %342 : vector<8x1x128xf32> to vector<8x8x128xf32>
    %344 = arith.mulf %341, %343 : vector<8x8x128xf32>
    %345 = vector.shape_cast %344 : vector<8x8x128xf32> to vector<64x128xf32>
    %c0_38 = arith.constant 0 : index
    %c256 = arith.constant 256 : index
    %346 = vector.load %arg7[%c0_38, %c256] : memref<64x512xf32, #tpu.memory_space<vmem>>, vector<64x128xf32>
    tpu.vector_store %arg7[%c0_38, %c256], %345 {strides = array<i32>} : memref<64x512xf32, #tpu.memory_space<vmem>>, vector<64x128xf32>,
    %347 = vector.extract_strided_slice %6 {offsets = [0, 384], sizes = [64, 128], strides = [1, 1]} : vector<64x512xf32> to vector<64x128xf32>
    %348 = arith.mulf %347, %13 : vector<64x128xf32>
    %349 = vector.shape_cast %348 : vector<64x128xf32> to vector<8x8x128xf32>
    %cst_39 = arith.constant dense<0.000000e+00> : vector<8x128xf32>
    %350 = vector.multi_reduction <add>, %349, %cst_39 [1] : vector<8x8x128xf32> to vector<8x128xf32>
    %351 = arith.mulf %347, %14 : vector<64x128xf32>
    %352 = vector.shape_cast %351 : vector<64x128xf32> to vector<8x8x128xf32>
    %cst_40 = arith.constant dense<0.000000e+00> : vector<8x128xf32>
    %353 = vector.multi_reduction <add>, %352, %cst_40 [1] : vector<8x8x128xf32> to vector<8x128xf32>
    %354 = arith.mulf %347, %15 : vector<64x128xf32>
    %355 = vector.shape_cast %354 : vector<64x128xf32> to vector<8x8x128xf32>
    %cst_41 = arith.constant dense<0.000000e+00> : vector<8x128xf32>
    %356 = vector.multi_reduction <add>, %355, %cst_41 [1] : vector<8x8x128xf32> to vector<8x128xf32>
    %357 = arith.mulf %347, %16 : vector<64x128xf32>
    %358 = vector.shape_cast %357 : vector<64x128xf32> to vector<8x8x128xf32>
    %cst_42 = arith.constant dense<0.000000e+00> : vector<8x128xf32>
    %359 = vector.multi_reduction <add>, %358, %cst_42 [1] : vector<8x8x128xf32> to vector<8x128xf32>
    %360 = arith.mulf %347, %17 : vector<64x128xf32>
    %361 = vector.shape_cast %360 : vector<64x128xf32> to vector<8x8x128xf32>
    %cst_43 = arith.constant dense<0.000000e+00> : vector<8x128xf32>
    %362 = vector.multi_reduction <add>, %361, %cst_43 [1] : vector<8x8x128xf32> to vector<8x128xf32>
    %363 = arith.mulf %347, %18 : vector<64x128xf32>
    %364 = vector.shape_cast %363 : vector<64x128xf32> to vector<8x8x128xf32>
    %cst_44 = arith.constant dense<0.000000e+00> : vector<8x128xf32>
    %365 = vector.multi_reduction <add>, %364, %cst_44 [1] : vector<8x8x128xf32> to vector<8x128xf32>
    %366 = arith.mulf %347, %19 : vector<64x128xf32>
    %367 = vector.shape_cast %366 : vector<64x128xf32> to vector<8x8x128xf32>
    %cst_45 = arith.constant dense<0.000000e+00> : vector<8x128xf32>
    %368 = vector.multi_reduction <add>, %367, %cst_45 [1] : vector<8x8x128xf32> to vector<8x128xf32>
    %369 = arith.mulf %347, %20 : vector<64x128xf32>
    %370 = vector.shape_cast %369 : vector<64x128xf32> to vector<8x8x128xf32>
    %cst_46 = arith.constant dense<0.000000e+00> : vector<8x128xf32>
    %371 = vector.multi_reduction <add>, %370, %cst_46 [1] : vector<8x8x128xf32> to vector<8x128xf32>
    %372 = arith.mulf %347, %11 : vector<64x128xf32>
    %373 = vector.shape_cast %372 : vector<64x128xf32> to vector<8x8x128xf32>
    %cst_47 = arith.constant dense<0.000000e+00> : vector<8x128xf32>
    %374 = vector.multi_reduction <add>, %373, %cst_47 [1] : vector<8x8x128xf32> to vector<8x128xf32>
    %375 = arith.maximumf %350, %353 : vector<8x128xf32>
    %376 = arith.maximumf %375, %356 : vector<8x128xf32>
    %377 = arith.maximumf %376, %359 : vector<8x128xf32>
    %378 = arith.maximumf %377, %362 : vector<8x128xf32>
    %379 = arith.maximumf %378, %365 : vector<8x128xf32>
    %380 = arith.maximumf %379, %368 : vector<8x128xf32>
    %381 = arith.maximumf %380, %371 : vector<8x128xf32>
    %382 = arith.maximumf %381, %374 : vector<8x128xf32>
    %383 = arith.subf %350, %382 : vector<8x128xf32>
    %384 = math.exp %383 : vector<8x128xf32>
    %385 = arith.subf %353, %382 : vector<8x128xf32>
    %386 = math.exp %385 : vector<8x128xf32>
    %387 = arith.subf %356, %382 : vector<8x128xf32>
    %388 = math.exp %387 : vector<8x128xf32>
    %389 = arith.subf %359, %382 : vector<8x128xf32>
    %390 = math.exp %389 : vector<8x128xf32>
    %391 = arith.subf %362, %382 : vector<8x128xf32>
    %392 = math.exp %391 : vector<8x128xf32>
    %393 = arith.subf %365, %382 : vector<8x128xf32>
    %394 = math.exp %393 : vector<8x128xf32>
    %395 = arith.subf %368, %382 : vector<8x128xf32>
    %396 = math.exp %395 : vector<8x128xf32>
    %397 = arith.subf %371, %382 : vector<8x128xf32>
    %398 = math.exp %397 : vector<8x128xf32>
    %399 = arith.subf %374, %382 : vector<8x128xf32>
    %400 = math.exp %399 : vector<8x128xf32>
    %401 = arith.addf %384, %386 : vector<8x128xf32>
    %402 = arith.addf %401, %388 : vector<8x128xf32>
    %403 = arith.addf %402, %390 : vector<8x128xf32>
    %404 = arith.addf %403, %392 : vector<8x128xf32>
    %405 = arith.addf %404, %394 : vector<8x128xf32>
    %406 = arith.addf %405, %396 : vector<8x128xf32>
    %407 = arith.addf %406, %398 : vector<8x128xf32>
    %408 = arith.addf %407, %400 : vector<8x128xf32>
    %409 = tpu.reciprocal %408 {approx = true} : vector<8x128xf32> -> vector<8x128xf32>
    %410 = vector.shape_cast %384 : vector<8x128xf32> to vector<8x1x128xf32>
    %411 = vector.broadcast %410 : vector<8x1x128xf32> to vector<8x8x128xf32>
    %412 = arith.mulf %411, %29 : vector<8x8x128xf32>
    %413 = vector.shape_cast %386 : vector<8x128xf32> to vector<8x1x128xf32>
    %414 = vector.broadcast %413 : vector<8x1x128xf32> to vector<8x8x128xf32>
    %415 = arith.mulf %414, %30 : vector<8x8x128xf32>
    %416 = arith.addf %412, %415 : vector<8x8x128xf32>
    %417 = vector.shape_cast %388 : vector<8x128xf32> to vector<8x1x128xf32>
    %418 = vector.broadcast %417 : vector<8x1x128xf32> to vector<8x8x128xf32>
    %419 = arith.mulf %418, %31 : vector<8x8x128xf32>
    %420 = arith.addf %416, %419 : vector<8x8x128xf32>
    %421 = vector.shape_cast %390 : vector<8x128xf32> to vector<8x1x128xf32>
    %422 = vector.broadcast %421 : vector<8x1x128xf32> to vector<8x8x128xf32>
    %423 = arith.mulf %422, %32 : vector<8x8x128xf32>
    %424 = arith.addf %420, %423 : vector<8x8x128xf32>
    %425 = vector.shape_cast %392 : vector<8x128xf32> to vector<8x1x128xf32>
    %426 = vector.broadcast %425 : vector<8x1x128xf32> to vector<8x8x128xf32>
    %427 = arith.mulf %426, %33 : vector<8x8x128xf32>
    %428 = arith.addf %424, %427 : vector<8x8x128xf32>
    %429 = vector.shape_cast %394 : vector<8x128xf32> to vector<8x1x128xf32>
    %430 = vector.broadcast %429 : vector<8x1x128xf32> to vector<8x8x128xf32>
    %431 = arith.mulf %430, %34 : vector<8x8x128xf32>
    %432 = arith.addf %428, %431 : vector<8x8x128xf32>
    %433 = vector.shape_cast %396 : vector<8x128xf32> to vector<8x1x128xf32>
    %434 = vector.broadcast %433 : vector<8x1x128xf32> to vector<8x8x128xf32>
    %435 = arith.mulf %434, %35 : vector<8x8x128xf32>
    %436 = arith.addf %432, %435 : vector<8x8x128xf32>
    %437 = vector.shape_cast %398 : vector<8x128xf32> to vector<8x1x128xf32>
    %438 = vector.broadcast %437 : vector<8x1x128xf32> to vector<8x8x128xf32>
    %439 = arith.mulf %438, %36 : vector<8x8x128xf32>
    %440 = arith.addf %436, %439 : vector<8x8x128xf32>
    %441 = vector.shape_cast %400 : vector<8x128xf32> to vector<8x1x128xf32>
    %442 = vector.broadcast %441 : vector<8x1x128xf32> to vector<8x8x128xf32>
    %443 = arith.mulf %442, %37 : vector<8x8x128xf32>
    %444 = arith.addf %440, %443 : vector<8x8x128xf32>
    %445 = vector.shape_cast %409 : vector<8x128xf32> to vector<8x1x128xf32>
    %446 = vector.broadcast %445 : vector<8x1x128xf32> to vector<8x8x128xf32>
    %447 = arith.mulf %444, %446 : vector<8x8x128xf32>
    %448 = vector.shape_cast %447 : vector<8x8x128xf32> to vector<64x128xf32>
    %c0_48 = arith.constant 0 : index
    %c384 = arith.constant 384 : index
    %449 = vector.load %arg7[%c0_48, %c384] : memref<64x512xf32, #tpu.memory_space<vmem>>, vector<64x128xf32>
    tpu.vector_store %arg7[%c0_48, %c384], %448 {strides = array<i32>} : memref<64x512xf32, #tpu.memory_space<vmem>>, vector<64x128xf32>,
    %c0_49 = arith.constant 0 : index
    %c0_50 = arith.constant 0 : index
    %450 = vector.load %arg5[%c0_49, %c0_50] : memref<136x64xf32, #tpu.memory_space<vmem>>, vector<136x64xf32>
    %c0_51 = arith.constant 0 : index
    %c0_52 = arith.constant 0 : index
    %451 = vector.load %arg7[%c0_51, %c0_52] : memref<64x512xf32, #tpu.memory_space<vmem>>, vector<64x512xf32>
    %cst_53 = arith.constant dense<0.000000e+00> : vector<136x512xf32>
    %452 = tpu.matmul %450, %451, %cst_53 {dimension_numbers = #tpu.dot_dimension_numbers<[1], [0], [0], [1], [0, 0, 1, 1], [], []>} : vector<136x64xf32>, vector<64x512xf32>, vector<136x512xf32> -> vector<136x512xf32>
    %453 = vector.extract_strided_slice %452 {offsets = [0, 0], sizes = [64, 512], strides = [1, 1]} : vector<136x512xf32> to vector<64x512xf32>
    %454 = vector.extract_strided_slice %452 {offsets = [64, 0], sizes = [64, 512], strides = [1, 1]} : vector<136x512xf32> to vector<64x512xf32>
    %455 = vector.extract_strided_slice %452 {offsets = [128, 0], sizes = [2, 512], strides = [1, 1]} : vector<136x512xf32> to vector<2x512xf32>
    %456 = vector.extract_strided_slice %0 {offsets = [9, 0], sizes = [1, 512], strides = [1, 1]} : vector<10x512xf32> to vector<1x512xf32>
    %457 = vector.extract_strided_slice %455 {offsets = [0, 0], sizes = [1, 512], strides = [1, 1]} : vector<2x512xf32> to vector<1x512xf32>
    %458 = arith.mulf %453, %454 : vector<64x512xf32>
    %459 = vector.shape_cast %458 : vector<64x512xf32> to vector<2x32x512xf32>
    %cst_54 = arith.constant dense<0.000000e+00> : vector<2x512xf32>
    %460 = vector.multi_reduction <add>, %459, %cst_54 [1] : vector<2x32x512xf32> to vector<2x512xf32>
    %461 = math.absf %460 : vector<2x512xf32>
    %462 = vector.extract_strided_slice %461 {offsets = [0, 0], sizes = [1, 512], strides = [1, 1]} : vector<2x512xf32> to vector<1x512xf32>
    %463 = arith.mulf %462, %456 : vector<1x512xf32>
    %464 = arith.addf %457, %463 : vector<1x512xf32>
    %465 = vector.extract_strided_slice %461 {offsets = [1, 0], sizes = [1, 512], strides = [1, 1]} : vector<2x512xf32> to vector<1x512xf32>
    %c128_i32 = arith.constant 128 : i32
    %466 = tpu.dynamic_rotate %454 by %c128_i32 dim 1 : vector<64x512xf32>, i32 -> vector<64x512xf32>
    %467 = arith.mulf %453, %466 : vector<64x512xf32>
    %468 = vector.shape_cast %467 : vector<64x512xf32> to vector<2x32x512xf32>
    %cst_55 = arith.constant dense<0.000000e+00> : vector<2x512xf32>
    %469 = vector.multi_reduction <add>, %468, %cst_55 [1] : vector<2x32x512xf32> to vector<2x512xf32>
    %470 = math.absf %469 : vector<2x512xf32>
    %471 = vector.extract_strided_slice %470 {offsets = [0, 0], sizes = [1, 512], strides = [1, 1]} : vector<2x512xf32> to vector<1x512xf32>
    %472 = arith.mulf %471, %456 : vector<1x512xf32>
    %c384_i32 = arith.constant 384 : i32
    %473 = tpu.dynamic_rotate %472 by %c384_i32 dim 1 : vector<1x512xf32>, i32 -> vector<1x512xf32>
    %474 = arith.addf %464, %473 : vector<1x512xf32>
    %475 = vector.extract_strided_slice %470 {offsets = [1, 0], sizes = [1, 512], strides = [1, 1]} : vector<2x512xf32> to vector<1x512xf32>
    %476 = arith.addf %465, %475 : vector<1x512xf32>
    %c256_i32 = arith.constant 256 : i32
    %477 = tpu.dynamic_rotate %454 by %c256_i32 dim 1 : vector<64x512xf32>, i32 -> vector<64x512xf32>
    %478 = arith.mulf %453, %477 : vector<64x512xf32>
    %479 = vector.shape_cast %478 : vector<64x512xf32> to vector<2x32x512xf32>
    %cst_56 = arith.constant dense<0.000000e+00> : vector<2x512xf32>
    %480 = vector.multi_reduction <add>, %479, %cst_56 [1] : vector<2x32x512xf32> to vector<2x512xf32>
    %481 = math.absf %480 : vector<2x512xf32>
    %482 = vector.extract_strided_slice %481 {offsets = [0, 0], sizes = [1, 512], strides = [1, 1]} : vector<2x512xf32> to vector<1x512xf32>
    %483 = arith.mulf %482, %456 : vector<1x512xf32>
    %c256_i32_57 = arith.constant 256 : i32
    %484 = tpu.dynamic_rotate %483 by %c256_i32_57 dim 1 : vector<1x512xf32>, i32 -> vector<1x512xf32>
    %485 = arith.addf %474, %484 : vector<1x512xf32>
    %486 = vector.extract_strided_slice %481 {offsets = [1, 0], sizes = [1, 512], strides = [1, 1]} : vector<2x512xf32> to vector<1x512xf32>
    %487 = arith.addf %476, %486 : vector<1x512xf32>
    %c384_i32_58 = arith.constant 384 : i32
    %488 = tpu.dynamic_rotate %454 by %c384_i32_58 dim 1 : vector<64x512xf32>, i32 -> vector<64x512xf32>
    %489 = arith.mulf %453, %488 : vector<64x512xf32>
    %490 = vector.shape_cast %489 : vector<64x512xf32> to vector<2x32x512xf32>
    %cst_59 = arith.constant dense<0.000000e+00> : vector<2x512xf32>
    %491 = vector.multi_reduction <add>, %490, %cst_59 [1] : vector<2x32x512xf32> to vector<2x512xf32>
    %492 = math.absf %491 : vector<2x512xf32>
    %493 = vector.extract_strided_slice %492 {offsets = [0, 0], sizes = [1, 512], strides = [1, 1]} : vector<2x512xf32> to vector<1x512xf32>
    %494 = arith.mulf %493, %456 : vector<1x512xf32>
    %c128_i32_60 = arith.constant 128 : i32
    %495 = tpu.dynamic_rotate %494 by %c128_i32_60 dim 1 : vector<1x512xf32>, i32 -> vector<1x512xf32>
    %496 = arith.addf %485, %495 : vector<1x512xf32>
    %497 = vector.extract_strided_slice %492 {offsets = [1, 0], sizes = [1, 512], strides = [1, 1]} : vector<2x512xf32> to vector<1x512xf32>
    %498 = arith.addf %487, %497 : vector<1x512xf32>
    %cst_61 = arith.constant 0.000000e+00 : f32
    %499 = vector.broadcast %cst_61 : f32 to vector<1x512xf32>
    %500 = arith.cmpf ogt, %496, %499 : vector<1x512xf32>
    %501 = math.exp %496 : vector<1x512xf32>
    %cst_62 = arith.constant 1.000000e+00 : f32
    %502 = vector.broadcast %cst_62 : f32 to vector<1x512xf32>
    %503 = arith.subf %501, %502 : vector<1x512xf32>
    %504 = arith.select %500, %496, %503 : vector<1x512xi1>, vector<1x512xf32>
    %505 = vector.extract_strided_slice %455 {offsets = [1, 0], sizes = [1, 512], strides = [1, 1]} : vector<2x512xf32> to vector<1x512xf32>
    %506 = arith.mulf %504, %498 : vector<1x512xf32>
    %507 = arith.addf %505, %506 : vector<1x512xf32>
    %508 = vector.extract_strided_slice %507 {offsets = [0, 0], sizes = [1, 128], strides = [1, 1]} : vector<1x512xf32> to vector<1x128xf32>
    %509 = vector.extract_strided_slice %507 {offsets = [0, 128], sizes = [1, 128], strides = [1, 1]} : vector<1x512xf32> to vector<1x128xf32>
    %510 = arith.addf %508, %509 : vector<1x128xf32>
    %511 = vector.extract_strided_slice %507 {offsets = [0, 256], sizes = [1, 128], strides = [1, 1]} : vector<1x512xf32> to vector<1x128xf32>
    %512 = arith.addf %510, %511 : vector<1x128xf32>
    %513 = vector.extract_strided_slice %507 {offsets = [0, 384], sizes = [1, 128], strides = [1, 1]} : vector<1x512xf32> to vector<1x128xf32>
    %514 = arith.addf %512, %513 : vector<1x128xf32>
    %515 = vector.shape_cast %514 : vector<1x128xf32> to vector<1x1x128xf32>
    %c0_63 = arith.constant 0 : index
    %c0_64 = arith.constant 0 : index
    %c0_65 = arith.constant 0 : index
    %516 = vector.load %arg6[%c0_63, %c0_64, %c0_65] : memref<1x1x128xf32, #tpu.memory_space<vmem>>, vector<1x1x128xf32>
    tpu.vector_store %arg6[%c0_63, %c0_64, %c0_65], %515 {strides = array<i32>} : memref<1x1x128xf32, #tpu.memory_space<vmem>>, vector<1x1x128xf32>,
    return
  }
  func.func @transform_0(%arg0: i32) -> (i32, i32) {
    %c0_i32 = arith.constant 0 : i32
    %c0_i32_0 = arith.constant 0 : i32
    return %c0_i32, %arg0 : i32, i32
  }
  func.func @transform_1(%arg0: i32) -> (i32, i32) {
    %c0_i32 = arith.constant 0 : i32
    %c0_i32_0 = arith.constant 0 : i32
    return %c0_i32, %arg0 : i32, i32
  }
  func.func @transform_2(%arg0: i32) -> (i32, i32) {
    %c0_i32 = arith.constant 0 : i32
    %c0_i32_0 = arith.constant 0 : i32
    %c0_i32_1 = arith.constant 0 : i32
    return %c0_i32, %c0_i32_0 : i32, i32
  }
  func.func @transform_3(%arg0: i32) -> (i32, i32) {
    %c0_i32 = arith.constant 0 : i32
    %c0_i32_0 = arith.constant 0 : i32
    %c0_i32_1 = arith.constant 0 : i32
    return %c0_i32, %c0_i32_0 : i32, i32
  }
  func.func @transform_4(%arg0: i32) -> (i32, i32) {
    %c0_i32 = arith.constant 0 : i32
    %c0_i32_0 = arith.constant 0 : i32
    %c0_i32_1 = arith.constant 0 : i32
    return %c0_i32, %c0_i32_0 : i32, i32
  }
  func.func @transform_5(%arg0: i32) -> (i32, i32, i32) {
    %c0_i32 = arith.constant 0 : i32
    %c0_i32_0 = arith.constant 0 : i32
    %c0_i32_1 = arith.constant 0 : i32
    return %arg0, %c0_i32, %c0_i32_0 : i32, i32, i32
  }
}

</mosaic_0001>

<bundles_post_ra>
// kernel: ss_mixer_forward.1
= control target key start
LH: loop header
LB: loop body
LE: loop exit
PB: predicated region body
PF: predicated region fallthrough
CT: control target
= control target key end

     0   :  { %vm190_vm0 = vcmask 1041408   ;;  %v12031_v3 = vmov 0.0   ;;  %vm69_vm1 = vcmask 80896   ;;  %vm878_vm2 = vcmask 1046528   ;;  %s12025_s0 = inlined_call_operand.vmem [shape: f32[10,512], index: 0, kind: input, shape index: {}]   ;;  %s12026_s2 = inlined_call_operand.vmem [shape: f32[320,10], index: 2, kind: input, shape index: {}]   ;;  %s12027_s1 = inlined_call_operand.vmem [shape: f32[7,128], index: 1, kind: input, shape index: {}]   ;;  %s12028_s3 = inlined_call_operand.vmem [shape: f32[128,7], index: 3, kind: input, shape index: {}]   ;;  %s12029_s4 = inlined_call_operand.vmem [shape: f32[136,64], index: 4, kind: input, shape index: {}]   ;;  %s12030_s5 = inlined_call_operand.vmem [shape: f32[1,1,128], index: 5, kind: output, shape index: {}]  }
   0x1   :  { %v25_v0 = vld [vmem:[%s12025_s0 + $0x28] sm:$0x3]  ;;  %v24_v1 = vld [vmem:[%s12025_s0 + $0x20] sm:$0x3]  ;;  %267 = vmatprep.mubr.f32.mxu0 %v12031_v3  ;;  %483 = vmatprep.mubr.f32.mxu1 %v12031_v3  ;;  %v27_v7 = vld [vmem:[%s12025_s0 + $0x38] sm:$0x3] }
   0x2   :  { %v21_v2 = vld [vmem:[%s12025_s0 + $0x8] sm:$0xff]  ;;  %6082 = vmatprep.subr.msk.mxu0 %vm190_vm0, %v25_v0  ;;  %6264 = vmatprep.subr.msk.mxu1 %vm190_vm0, %v25_v0  ;;  %v20_v4 = vld [vmem:[%s12025_s0] sm:$0xff]  ;;  %v26_v8 = vld [vmem:[%s12025_s0 + $0x30] sm:$0x3]  ;;  %vm829_vm3 = vcmask 56320   ;;  %vm5108_vm4 = vcmask 523264  }
   0x3   :  { %6083 = vmatpush1.msk.msra.mxu0 %vm190_vm0, %v24_v1  ;;  %6266 = vmatpush1.msk.msra.mxu1 %vm190_vm0, %v24_v1  ;;  %v29_v5 = vld [vmem:[%s12026_s2] sm:$0xff]  ;;  %v30_v9 = vld [vmem:[%s12026_s2 + $0x8] sm:$0xff]  ;;  %v23_v11 = vld [vmem:[%s12025_s0 + $0x18] sm:$0xff] }
   0x4   :  { %v6976_v6 = vld [vmem:[%s12026_s2 + $0x120] sm:$0xff]  ;;  %233 = vmatprep.subr.mxu0 %v21_v2  ;;  %6265 = vmatprep.subr.mxu1 %v21_v2  ;;  %v6995_v10 = vld [vmem:[%s12026_s2 + $0x128] sm:$0xff]  ;;  %v22_v12 = vld [vmem:[%s12025_s0 + $0x10] sm:$0xff] }
   0x5   :  { %234 = vmatpush1.msra.mxu0 %v20_v4  ;;  %6267 = vmatpush1.msra.mxu1 %v20_v4  ;;  %v31_v13 = vld [vmem:[%s12026_s2 + $0x10] sm:$0xff]  ;;  %v32_v15 = vld [vmem:[%s12026_s2 + $0x18] sm:$0xff]  ;;  %v33_v17 = vld [vmem:[%s12026_s2 + $0x20] sm:$0xff] }
   0x6   :  { %6084 = vmatmul.mubr.msk.f32.vlgmr.msra.gmra.mxu0 %vm69_vm1, %v29_v5  ;;  %6120 = vmatmul.mubr.msk.f32.vlgmr.msra.gmra.mxu1 %vm69_vm1, %v6976_v6  ;;  %v7016_v14 = vld [vmem:[%s12026_s2 + $0x130] sm:$0xff]  ;;  %v7029_v16 = vld [vmem:[%s12026_s2 + $0x138] sm:$0xff]  ;;  %v28_v18 = vld [vmem:[%s12027_s1] sm:$0x7f] }
   0x7   :  { %273 = vmatprep.mubr.f32.mxu0 %v12031_v3  ;;  %489 = vmatprep.mubr.f32.mxu1 %v12031_v3  ;;  %v34_v19 = vld [vmem:[%s12026_s2 + $0x28] sm:$0xff]  ;;  %v35_v20 = vld [vmem:[%s12026_s2 + $0x30] sm:$0xff]  ;;  %v36_v21 = vld [vmem:[%s12026_s2 + $0x38] sm:$0xff] }
   0x8   :  { %6124 = vmatprep.subr.msk.mxu1 %vm190_vm0, %v27_v7  ;;  %6238 = vmatprep.subr.msk.mxu0 %vm878_vm2, %v28_v18  ;;  %v37_v22 = vld [vmem:[%s12026_s2 + $0x40] sm:$0xff]  ;;  %v38_v23 = vld [vmem:[%s12026_s2 + $0x48] sm:$0xff]  ;;  %v39_v24 = vld [vmem:[%s12026_s2 + $0x50] sm:$0xff] }
   0x9   :  { %6125 = vmatpush1.msk.msra.mxu1 %vm190_vm0, %v26_v8  ;;  %6239 = vmatpush3.msk.msra.mxu0 %vm878_vm2, %v28_v18  ;;  %v40_v25 = vld [vmem:[%s12026_s2 + $0x58] sm:$0xff]  ;;  %v41_v26 = vld [vmem:[%s12026_s2 + $0x60] sm:$0xff]  ;;  %v42_v27 = vld [vmem:[%s12026_s2 + $0x68] sm:$0xff] }
   0xa   :  { %6085 = vmatmul.mubr.msk.f32.gmra.mxu0 %vm69_vm1, %v30_v9  ;;  %6121 = vmatmul.mubr.msk.f32.gmra.mxu1 %vm69_vm1, %v6995_v10  ;;  %v43_v28 = vld [vmem:[%s12026_s2 + $0x70] sm:$0xff]  ;;  %v44_v29 = vld [vmem:[%s12026_s2 + $0x78] sm:$0xff]  ;;  %v45_v30 = vld [vmem:[%s12026_s2 + $0x80] sm:$0xff] }
   0xb   :  { %279 = vmatprep.mubr.f32.mxu0 %v12031_v3  ;;  %495 = vmatprep.mubr.f32.mxu1 %v12031_v3  ;;  %v46_v31 = vld [vmem:[%s12026_s2 + $0x88] sm:$0xff]  ;;  %v47_v32 = vld [vmem:[%s12026_s2 + $0x90] sm:$0xff]  ;;  %v48_v33 = vld [vmem:[%s12026_s2 + $0x98] sm:$0xff] }
   0xc   :  { %538 = vmatprep.subr.mxu1 %v23_v11  ;;  %v49_v34 = vld [vmem:[%s12026_s2 + $0xa0] sm:$0xff]  ;;  %v50_v35 = vld [vmem:[%s12026_s2 + $0xa8] sm:$0xff]  ;;  %v51_v36 = vld [vmem:[%s12026_s2 + $0xb0] sm:$0xff] }
   0xd   :  { %539 = vmatpush1.msra.mxu1 %v22_v12  ;;  %v52_v37 = vld [vmem:[%s12026_s2 + $0xb8] sm:$0xff]  ;;  %v53_v38 = vld [vmem:[%s12026_s2 + $0xc0] sm:$0xff]  ;;  %v54_v39 = vld [vmem:[%s12026_s2 + $0xc8] sm:$0xff] }
   0xe   :  { %6086 = vmatmul.mubr.msk.f32.gmra.mxu0 %vm69_vm1, %v31_v13  ;;  %6122 = vmatmul.mubr.msk.f32.gmra.mxu1 %vm69_vm1, %v7016_v14  ;;  %v55_v40 = vld [vmem:[%s12026_s2 + $0xd0] sm:$0xff]  ;;  %v56_v41 = vld [vmem:[%s12026_s2 + $0xd8] sm:$0xff]  ;;  %v57_v42 = vld [vmem:[%s12026_s2 + $0xe0] sm:$0xff] }
   0xf   :  { %285 = vmatprep.mubr.f32.mxu0 %v12031_v3  ;;  %501 = vmatprep.mubr.f32.mxu1 %v12031_v3  ;;  %v58_v43 = vld [vmem:[%s12026_s2 + $0xe8] sm:$0xff]  ;;  %v59_v44 = vld [vmem:[%s12026_s2 + $0xf0] sm:$0xff]  ;;  %v60_v45 = vld [vmem:[%s12026_s2 + $0xf8] sm:$0xff] }
  0x10   :  { %v61_v46 = vld [vmem:[%s12026_s2 + $0x100] sm:$0xff]  ;;  %v62_v47 = vld [vmem:[%s12026_s2 + $0x108] sm:$0xff]  ;;  %v63_v48 = vld [vmem:[%s12026_s2 + $0x110] sm:$0xff] }
  0x11   :  { %v64_v49 = vld [vmem:[%s12026_s2 + $0x118] sm:$0xff]  ;;  %v813_v50 = vld [vmem:[%s12028_s3] sm:$0xff]  ;;  %v814_v51 = vld [vmem:[%s12028_s3 + $0x8] sm:$0xff] }
  0x12   :  { %6087 = vmatmul.mubr.msk.f32.gmra.mxu0 %vm69_vm1, %v32_v15  ;;  %6123 = vmatmul.mubr.msk.f32.gmra.mxu1 %vm69_vm1, %v7029_v16  ;;  %v815_v52 = vld [vmem:[%s12028_s3 + $0x10] sm:$0xff]  ;;  %v816_v53 = vld [vmem:[%s12028_s3 + $0x18] sm:$0xff]  ;;  %v817_v54 = vld [vmem:[%s12028_s3 + $0x20] sm:$0xff] }
  0x13   :  { %291 = vmatprep.mubr.f32.mxu0 %v12031_v3  ;;  %572 = vmatprep.mubr.f32.mxu1 %v12031_v3  ;;  %v818_v55 = vld [vmem:[%s12028_s3 + $0x28] sm:$0xff]  ;;  %v819_v56 = vld [vmem:[%s12028_s3 + $0x30] sm:$0xff]  ;;  %v820_v57 = vld [vmem:[%s12028_s3 + $0x38] sm:$0xff] }
  0x14   :  { %v821_v58 = vld [vmem:[%s12028_s3 + $0x40] sm:$0xff]  ;;  %v822_v59 = vld [vmem:[%s12028_s3 + $0x48] sm:$0xff]  ;;  %v823_v60 = vld [vmem:[%s12028_s3 + $0x50] sm:$0xff] }
  0x15   :  { %v824_v61 = vld [vmem:[%s12028_s3 + $0x58] sm:$0xff]  ;;  %v825_v62 = vld [vmem:[%s12028_s3 + $0x60] sm:$0xff]  ;;  %v826_v63 = vld [vmem:[%s12028_s3 + $0x68] sm:$0xff] }
  0x16   :  { %6088 = vmatmul.mubr.msk.f32.gmra.mxu0 %vm69_vm1, %v33_v17  ;;  %6126 = vmatmul.mubr.msk.f32.vlgmr.msra.gmra.mxu1 %vm69_vm1, %v29_v5  ;;  %v827_v0 = vld [vmem:[%s12028_s3 + $0x70] sm:$0xff]  ;;  %v828_v1 = vld [vmem:[%s12028_s3 + $0x78] sm:$0xff] }
  0x17   :  { %297 = vmatprep.mubr.f32.mxu0 %v12031_v3  ;;  %578 = vmatprep.mubr.f32.mxu1 %v12031_v3 }
  0x1a   :  { %6089 = vmatmul.mubr.msk.f32.gmra.mxu0 %vm69_vm1, %v34_v19  ;;  %6127 = vmatmul.mubr.msk.f32.gmra.mxu1 %vm69_vm1, %v30_v9 }
  0x1b   :  { %303 = vmatprep.mubr.f32.mxu0 %v12031_v3  ;;  %584 = vmatprep.mubr.f32.mxu1 %v12031_v3 }
  0x1e   :  { %6090 = vmatmul.mubr.msk.f32.gmra.mxu0 %vm69_vm1, %v35_v20  ;;  %6128 = vmatmul.mubr.msk.f32.gmra.mxu1 %vm69_vm1, %v31_v13 }
  0x1f   :  { %309 = vmatprep.mubr.f32.mxu0 %v12031_v3  ;;  %590 = vmatprep.mubr.f32.mxu1 %v12031_v3 }
  0x22   :  { %6091 = vmatmul.mubr.msk.f32.gmra.mxu0 %vm69_vm1, %v36_v21  ;;  %6129 = vmatmul.mubr.msk.f32.gmra.mxu1 %vm69_vm1, %v32_v15 }
  0x23   :  { %315 = vmatprep.mubr.f32.mxu0 %v12031_v3  ;;  %596 = vmatprep.mubr.f32.mxu1 %v12031_v3 }
  0x26   :  { %6092 = vmatmul.mubr.msk.f32.gmra.mxu0 %vm69_vm1, %v37_v22  ;;  %6130 = vmatmul.mubr.msk.f32.gmra.mxu1 %vm69_vm1, %v33_v17 }
  0x27   :  { %321 = vmatprep.mubr.f32.mxu0 %v12031_v3  ;;  %602 = vmatprep.mubr.f32.mxu1 %v12031_v3 }
  0x2a   :  { %6093 = vmatmul.mubr.msk.f32.gmra.mxu0 %vm69_vm1, %v38_v23  ;;  %6131 = vmatmul.mubr.msk.f32.gmra.mxu1 %vm69_vm1, %v34_v19 }
  0x2b   :  { %327 = vmatprep.mubr.f32.mxu0 %v12031_v3  ;;  %608 = vmatprep.mubr.f32.mxu1 %v12031_v3 }
  0x2e   :  { %6094 = vmatmul.mubr.msk.f32.gmra.mxu0 %vm69_vm1, %v39_v24  ;;  %6132 = vmatmul.mubr.msk.f32.gmra.mxu1 %vm69_vm1, %v35_v20 }
  0x2f   :  { %333 = vmatprep.mubr.f32.mxu0 %v12031_v3  ;;  %614 = vmatprep.mubr.f32.mxu1 %v12031_v3 }
  0x32   :  { %6095 = vmatmul.mubr.msk.f32.gmra.mxu0 %vm69_vm1, %v40_v25  ;;  %6133 = vmatmul.mubr.msk.f32.gmra.mxu1 %vm69_vm1, %v36_v21 }
  0x33   :  { %339 = vmatprep.mubr.f32.mxu0 %v12031_v3  ;;  %620 = vmatprep.mubr.f32.mxu1 %v12031_v3 }
  0x36   :  { %6096 = vmatmul.mubr.msk.f32.gmra.mxu0 %vm69_vm1, %v41_v26  ;;  %6134 = vmatmul.mubr.msk.f32.gmra.mxu1 %vm69_vm1, %v37_v22 }
  0x37   :  { %345 = vmatprep.mubr.f32.mxu0 %v12031_v3  ;;  %626 = vmatprep.mubr.f32.mxu1 %v12031_v3 }
  0x3a   :  { %6097 = vmatmul.mubr.msk.f32.gmra.mxu0 %vm69_vm1, %v42_v27  ;;  %6135 = vmatmul.mubr.msk.f32.gmra.mxu1 %vm69_vm1, %v38_v23 }
  0x3b   :  { %351 = vmatprep.mubr.f32.mxu0 %v12031_v3  ;;  %632 = vmatprep.mubr.f32.mxu1 %v12031_v3 }
  0x3e   :  { %6098 = vmatmul.mubr.msk.f32.gmra.mxu0 %vm69_vm1, %v43_v28  ;;  %6136 = vmatmul.mubr.msk.f32.gmra.mxu1 %vm69_vm1, %v39_v24 }
  0x3f   :  { %357 = vmatprep.mubr.f32.mxu0 %v12031_v3  ;;  %638 = vmatprep.mubr.f32.mxu1 %v12031_v3 }
  0x42   :  { %6099 = vmatmul.mubr.msk.f32.gmra.mxu0 %vm69_vm1, %v44_v29  ;;  %6137 = vmatmul.mubr.msk.f32.gmra.mxu1 %vm69_vm1, %v40_v25 }
  0x43   :  { %363 = vmatprep.mubr.f32.mxu0 %v12031_v3  ;;  %644 = vmatprep.mubr.f32.mxu1 %v12031_v3 }
  0x46   :  { %6100 = vmatmul.mubr.msk.f32.gmra.mxu0 %vm69_vm1, %v45_v30  ;;  %6138 = vmatmul.mubr.msk.f32.gmra.mxu1 %vm69_vm1, %v41_v26 }
  0x47   :  { %369 = vmatprep.mubr.f32.mxu0 %v12031_v3  ;;  %650 = vmatprep.mubr.f32.mxu1 %v12031_v3 }
  0x4a   :  { %6101 = vmatmul.mubr.msk.f32.gmra.mxu0 %vm69_vm1, %v46_v31  ;;  %6139 = vmatmul.mubr.msk.f32.gmra.mxu1 %vm69_vm1, %v42_v27 }
  0x4b   :  { %375 = vmatprep.mubr.f32.mxu0 %v12031_v3  ;;  %656 = vmatprep.mubr.f32.mxu1 %v12031_v3 }
  0x4e   :  { %6102 = vmatmul.mubr.msk.f32.gmra.mxu0 %vm69_vm1, %v47_v32  ;;  %6140 = vmatmul.mubr.msk.f32.gmra.mxu1 %vm69_vm1, %v43_v28 }
  0x4f   :  { %381 = vmatprep.mubr.f32.mxu0 %v12031_v3  ;;  %662 = vmatprep.mubr.f32.mxu1 %v12031_v3 }
  0x52   :  { %6103 = vmatmul.mubr.msk.f32.gmra.mxu0 %vm69_vm1, %v48_v33  ;;  %6141 = vmatmul.mubr.msk.f32.gmra.mxu1 %vm69_vm1, %v44_v29 }
  0x53   :  { %387 = vmatprep.mubr.f32.mxu0 %v12031_v3  ;;  %668 = vmatprep.mubr.f32.mxu1 %v12031_v3 }
  0x56   :  { %6104 = vmatmul.mubr.msk.f32.gmra.mxu0 %vm69_vm1, %v49_v34  ;;  %6142 = vmatmul.mubr.msk.f32.gmra.mxu1 %vm69_vm1, %v45_v30 }
  0x57   :  { %393 = vmatprep.mubr.f32.mxu0 %v12031_v3  ;;  %674 = vmatprep.mubr.f32.mxu1 %v12031_v3 }
  0x5a   :  { %6105 = vmatmul.mubr.msk.f32.gmra.mxu0 %vm69_vm1, %v50_v35  ;;  %6143 = vmatmul.mubr.msk.f32.gmra.mxu1 %vm69_vm1, %v46_v31 }
  0x5b   :  { %399 = vmatprep.mubr.f32.mxu0 %v12031_v3  ;;  %680 = vmatprep.mubr.f32.mxu1 %v12031_v3 }
  0x5e   :  { %6106 = vmatmul.mubr.msk.f32.gmra.mxu0 %vm69_vm1, %v51_v36  ;;  %6144 = vmatmul.mubr.msk.f32.gmra.mxu1 %vm69_vm1, %v47_v32 }
  0x5f   :  { %405 = vmatprep.mubr.f32.mxu0 %v12031_v3  ;;  %686 = vmatprep.mubr.f32.mxu1 %v12031_v3 }
  0x62   :  { %6107 = vmatmul.mubr.msk.f32.gmra.mxu0 %vm69_vm1, %v52_v37  ;;  %6145 = vmatmul.mubr.msk.f32.gmra.mxu1 %vm69_vm1, %v48_v33 }
  0x63   :  { %411 = vmatprep.mubr.f32.mxu0 %v12031_v3  ;;  %692 = vmatprep.mubr.f32.mxu1 %v12031_v3 }
  0x66   :  { %6108 = vmatmul.mubr.msk.f32.gmra.mxu0 %vm69_vm1, %v53_v38  ;;  %6146 = vmatmul.mubr.msk.f32.gmra.mxu1 %vm69_vm1, %v49_v34 }
  0x67   :  { %417 = vmatprep.mubr.f32.mxu0 %v12031_v3  ;;  %698 = vmatprep.mubr.f32.mxu1 %v12031_v3 }
  0x6a   :  { %6109 = vmatmul.mubr.msk.f32.gmra.mxu0 %vm69_vm1, %v54_v39  ;;  %6147 = vmatmul.mubr.msk.f32.gmra.mxu1 %vm69_vm1, %v50_v35 }
  0x6b   :  { %423 = vmatprep.mubr.f32.mxu0 %v12031_v3  ;;  %704 = vmatprep.mubr.f32.mxu1 %v12031_v3 }
  0x6e   :  { %6110 = vmatmul.mubr.msk.f32.gmra.mxu0 %vm69_vm1, %v55_v40  ;;  %6148 = vmatmul.mubr.msk.f32.gmra.mxu1 %vm69_vm1, %v51_v36 }
  0x6f   :  { %429 = vmatprep.mubr.f32.mxu0 %v12031_v3  ;;  %710 = vmatprep.mubr.f32.mxu1 %v12031_v3 }
  0x72   :  { %6111 = vmatmul.mubr.msk.f32.gmra.mxu0 %vm69_vm1, %v56_v41  ;;  %6149 = vmatmul.mubr.msk.f32.gmra.mxu1 %vm69_vm1, %v52_v37 }
  0x73   :  { %435 = vmatprep.mubr.f32.mxu0 %v12031_v3  ;;  %716 = vmatprep.mubr.f32.mxu1 %v12031_v3 }
  0x76   :  { %6112 = vmatmul.mubr.msk.f32.gmra.mxu0 %vm69_vm1, %v57_v42  ;;  %6150 = vmatmul.mubr.msk.f32.gmra.mxu1 %vm69_vm1, %v53_v38 }
  0x77   :  { %441 = vmatprep.mubr.f32.mxu0 %v12031_v3  ;;  %722 = vmatprep.mubr.f32.mxu1 %v12031_v3 }
  0x7a   :  { %6113 = vmatmul.mubr.msk.f32.gmra.mxu0 %vm69_vm1, %v58_v43  ;;  %6151 = vmatmul.mubr.msk.f32.gmra.mxu1 %vm69_vm1, %v54_v39 }
  0x7b   :  { %447 = vmatprep.mubr.f32.mxu0 %v12031_v3  ;;  %728 = vmatprep.mubr.f32.mxu1 %v12031_v3 }
  0x7e   :  { %6114 = vmatmul.mubr.msk.f32.gmra.mxu0 %vm69_vm1, %v59_v44  ;;  %6152 = vmatmul.mubr.msk.f32.gmra.mxu1 %vm69_vm1, %v55_v40 }
  0x7f   :  { %453 = vmatprep.mubr.f32.mxu0 %v12031_v3  ;;  %734 = vmatprep.mubr.f32.mxu1 %v12031_v3 }
  0x82   :  { %6115 = vmatmul.mubr.msk.f32.gmra.mxu0 %vm69_vm1, %v60_v45  ;;  %6153 = vmatmul.mubr.msk.f32.gmra.mxu1 %vm69_vm1, %v56_v41 }
  0x83   :  { %459 = vmatprep.mubr.f32.mxu0 %v12031_v3  ;;  %740 = vmatprep.mubr.f32.mxu1 %v12031_v3 }
  0x86   :  { %6116 = vmatmul.mubr.msk.f32.gmra.mxu0 %vm69_vm1, %v61_v46  ;;  %6154 = vmatmul.mubr.msk.f32.gmra.mxu1 %vm69_vm1, %v57_v42 }
  0x87   :  { %465 = vmatprep.mubr.f32.mxu0 %v12031_v3  ;;  %746 = vmatprep.mubr.f32.mxu1 %v12031_v3 }
  0x8a   :  { %6117 = vmatmul.mubr.msk.f32.gmra.mxu0 %vm69_vm1, %v62_v47  ;;  %6155 = vmatmul.mubr.msk.f32.gmra.mxu1 %vm69_vm1, %v58_v43 }
  0x8b   :  { %471 = vmatprep.mubr.f32.mxu0 %v12031_v3  ;;  %752 = vmatprep.mubr.f32.mxu1 %v12031_v3 }
  0x8e   :  { %6118 = vmatmul.mubr.msk.f32.gmra.mxu0 %vm69_vm1, %v63_v48  ;;  %6156 = vmatmul.mubr.msk.f32.gmra.mxu1 %vm69_vm1, %v59_v44 }
  0x8f   :  { %477 = vmatprep.mubr.f32.mxu0 %v12031_v3  ;;  %758 = vmatprep.mubr.f32.mxu1 %v12031_v3 }
  0x92   :  { %6119 = vmatmul.mubr.msk.f32.gmra.mxu0 %vm69_vm1, %v64_v49  ;;  %6157 = vmatmul.mubr.msk.f32.gmra.mxu1 %vm69_vm1, %v60_v45 }
  0x93   :  { %6240 = vmatprep.mubr.msk.f32.mxu0 %vm829_vm3, %v813_v50  ;;  %764 = vmatprep.mubr.f32.mxu1 %v12031_v3 }
  0x96   :  { %6241 = vmatmul.mubr.msk.f32.vlgmr.msra.gmra.mxu0 %vm829_vm3, %v814_v51  ;;  %6158 = vmatmul.mubr.msk.f32.gmra.mxu1 %vm69_vm1, %v61_v46 }
  0x97   :  { %6243 = vmatprep.mubr.msk.f32.mxu0 %vm829_vm3, %v815_v52  ;;  %770 = vmatprep.mubr.f32.mxu1 %v12031_v3 }
  0x9a   :  { %6244 = vmatmul.mubr.msk.f32.gmra.mxu0 %vm829_vm3, %v816_v53  ;;  %6159 = vmatmul.mubr.msk.f32.gmra.mxu1 %vm69_vm1, %v62_v47 }
  0x9b   :  { %6246 = vmatprep.mubr.msk.f32.mxu0 %vm829_vm3, %v817_v54  ;;  %776 = vmatprep.mubr.f32.mxu1 %v12031_v3 }
  0x9e   :  { %6247 = vmatmul.mubr.msk.f32.gmra.mxu0 %vm829_vm3, %v818_v55  ;;  %6160 = vmatmul.mubr.msk.f32.gmra.mxu1 %vm69_vm1, %v63_v48 }
  0x9f   :  { %6249 = vmatprep.mubr.msk.f32.mxu0 %vm829_vm3, %v819_v56  ;;  %782 = vmatprep.mubr.f32.mxu1 %v12031_v3 }
  0xa2   :  { %6250 = vmatmul.mubr.msk.f32.gmra.mxu0 %vm829_vm3, %v820_v57  ;;  %6161 = vmatmul.mubr.msk.f32.gmra.mxu1 %vm69_vm1, %v64_v49 }
  0xa3   :  { %788 = vmatprep.mubr.f32.mxu1 %v12031_v3  ;;  %6252 = vmatprep.mubr.msk.f32.mxu0 %vm829_vm3, %v821_v58 }
  0xa6   :  { %6162 = vmatmul.mubr.msk.f32.gmra.mxu1 %vm69_vm1, %v6976_v6  ;;  %6253 = vmatmul.mubr.msk.f32.gmra.mxu0 %vm829_vm3, %v822_v59 }
  0xa7   :  { %794 = vmatprep.mubr.f32.mxu1 %v12031_v3  ;;  %6255 = vmatprep.mubr.msk.f32.mxu0 %vm829_vm3, %v823_v60 }
  0xaa   :  { %6163 = vmatmul.mubr.msk.f32.gmra.mxu1 %vm69_vm1, %v6995_v10  ;;  %6256 = vmatmul.mubr.msk.f32.gmra.mxu0 %vm829_vm3, %v824_v61 }
  0xab   :  { %800 = vmatprep.mubr.f32.mxu1 %v12031_v3  ;;  %6258 = vmatprep.mubr.msk.f32.mxu0 %vm829_vm3, %v825_v62 }
  0xae   :  { %6164 = vmatmul.mubr.msk.f32.gmra.mxu1 %vm69_vm1, %v7016_v14  ;;  %6259 = vmatmul.mubr.msk.f32.gmra.mxu0 %vm829_vm3, %v826_v63 }
  0xaf   :  { %806 = vmatprep.mubr.f32.mxu1 %v12031_v3  ;;  %6261 = vmatprep.mubr.msk.f32.mxu0 %vm829_vm3, %v827_v0 }
  0xb2   :  { %6165 = vmatmul.mubr.msk.f32.gmra.mxu1 %vm69_vm1, %v7029_v16  ;;  %6262 = vmatmul.mubr.msk.f32.gmra.mxu0 %vm829_vm3, %v828_v1 }
  0xb3   :  { %5224 = vmatprep.mubr.f32.mxu1 %v12031_v3  ;;  %5391 = vmatprep.mubr.f32.mxu0 %v12031_v3 }
  0xc6   :  { %v7347_v2 = vpop.f32.mrf.mxu0  ;;  %v7349_v4 = vpop.f32.mrf.mxu1 }
  0xc7   :  { %12925 = vst [vmem:[#allocation3_spill] sm:$0xff] %v7347_v2  ;;  %12926 = vst [vmem:[#allocation4_spill] sm:$0xff] %v7349_v4 }
  0xc8   :  { %v7351_v5 = vpop.f32.mrf.mxu0  ;;  %v7353_v6 = vpop.f32.mrf.mxu1 }
  0xc9   :  { %12927 = vst [vmem:[#allocation5_spill] sm:$0xff] %v7351_v5  ;;  %12928 = vst [vmem:[#allocation6_spill] sm:$0xff] %v7353_v6 }
  0xca   :  { %v7355_v7 = vpop.f32.mrf.mxu0  ;;  %v7357_v8 = vpop.f32.mrf.mxu1 }
  0xcb   :  { %12929 = vst [vmem:[#allocation7_spill] sm:$0xff] %v7355_v7  ;;  %12930 = vst [vmem:[#allocation8_spill] sm:$0xff] %v7357_v8 }
  0xcc   :  { %v7359_v9 = vpop.f32.mrf.mxu0  ;;  %v7361_v10 = vpop.f32.mrf.mxu1 }
  0xcd   :  { %12931 = vst [vmem:[#allocation9_spill] sm:$0xff] %v7359_v9  ;;  %12932 = vst [vmem:[#allocation10_spill] sm:$0xff] %v7361_v10 }
  0xce   :  { %v7363_v11 = vpop.f32.mrf.mxu0  ;;  %v7367_v13 = vpop.f32.mrf.mxu1 }
  0xcf   :  { %12933 = vst [vmem:[#allocation11_spill] sm:$0xff] %v7363_v11  ;;  %12935 = vst [vmem:[#allocation13_spill] sm:$0xff] %v7367_v13 }
  0xd0   :  { %v7365_v12 = vpop.f32.mrf.mxu0  ;;  %v7373_v16 = vpop.f32.mrf.mxu1 }
  0xd1   :  { %12934 = vst [vmem:[#allocation12_spill] sm:$0xff] %v7365_v12  ;;  %12938 = vst [vmem:[#allocation16_spill] sm:$0xff] %v7373_v16 }
  0xd2   :  { %v7369_v14 = vpop.f32.mrf.mxu0  ;;  %v7379_v19 = vpop.f32.mrf.mxu1 }
  0xd3   :  { %12936 = vst [vmem:[#allocation14_spill] sm:$0xff] %v7369_v14  ;;  %12941 = vst [vmem:[#allocation19_spill] sm:$0xff] %v7379_v19 }
  0xd4   :  { %v7371_v15 = vpop.f32.mrf.mxu0  ;;  %v7385_v22 = vpop.f32.mrf.mxu1 }
  0xd5   :  { %12937 = vst [vmem:[#allocation15_spill] sm:$0xff] %v7371_v15  ;;  %12944 = vst [vmem:[#allocation22_spill] sm:$0xff] %v7385_v22 }
  0xd6   :  { %v7375_v17 = vpop.f32.mrf.mxu0  ;;  %v7391_v25 = vpop.f32.mrf.mxu1 }
  0xd7   :  { %12939 = vst [vmem:[#allocation17_spill] sm:$0xff] %v7375_v17  ;;  %12947 = vst [vmem:[#allocation25_spill] sm:$0xff] %v7391_v25 }
  0xd8   :  { %v7377_v18 = vpop.f32.mrf.mxu0  ;;  %v7397_v28 = vpop.f32.mrf.mxu1 }
  0xd9   :  { %12940 = vst [vmem:[#allocation18_spill] sm:$0xff] %v7377_v18  ;;  %12950 = vst [vmem:[#allocation28_spill] sm:$0xff] %v7397_v28 }
  0xda   :  { %v7381_v20 = vpop.f32.mrf.mxu0  ;;  %v7407_v59 = vpop.f32.mrf.mxu1 }
  0xdb   :  { %12942 = vst [vmem:[#allocation20_spill] sm:$0xff] %v7381_v20  ;;  %12951 = vst [vmem:[#allocation29_spill] sm:$0xff] %v7407_v59 }
  0xdc   :  { %v7383_v21 = vpop.f32.mrf.mxu0 }
  0xdd   :  { %12943 = vst [vmem:[#allocation21_spill] sm:$0xff] %v7383_v21 }
  0xde   :  { %v7387_v23 = vpop.f32.mrf.mxu0 }
  0xdf   :  { %12945 = vst [vmem:[#allocation23_spill] sm:$0xff] %v7387_v23 }
  0xe0   :  { %v7389_v24 = vpop.f32.mrf.mxu0 }
  0xe1   :  { %12946 = vst [vmem:[#allocation24_spill] sm:$0xff] %v7389_v24 }
  0xe2   :  { %v7393_v26 = vpop.f32.mrf.mxu0 }
  0xe3   :  { %12948 = vst [vmem:[#allocation26_spill] sm:$0xff] %v7393_v26 }
  0xe4   :  { %v7395_v27 = vpop.f32.mrf.mxu0 }
  0xe5   :  { %12949 = vst [vmem:[#allocation27_spill] sm:$0xff] %v7395_v27 }
  0xe6   :  { %v317_v29 = vpop.f32.mrf.mxu0 }
  0xe7   :  { %v1027_v30 = vmul.f32 %v317_v29, %v7347_v2  ;;  %v2035_v31 = vmul.f32 %v317_v29, %v7351_v5  ;;  %v3043_v32 = vmul.f32 %v7391_v25, %v317_v29  ;;  %v4051_v33 = vmul.f32 %v7397_v28, %v317_v29 }
  0xe8   :  { %v319_v34 = vpop.f32.mrf.mxu0 }
  0xe9   :  { %v1035_v35 = vrot.slane %v1027_v30, 4  ;;  %v2043_v36 = vrot.slane %v2035_v31, 4  ;;  %v3051_v37 = vrot.slane %v3043_v32, 4  ;;  %v4059_v38 = vrot.slane %v4051_v33, 4 }
  0xea   :  { %v1083_v39 = vmul.f32 %v319_v34, %v7347_v2  ;;  %v2091_v40 = vmul.f32 %v319_v34, %v7351_v5  ;;  %v3099_v41 = vmul.f32 %v7391_v25, %v319_v34  ;;  %v4107_v42 = vmul.f32 %v7397_v28, %v319_v34 }
  0xeb   :  { %v1036_v43 = vadd.f32 %v1035_v35, %v1027_v30  ;;  %v2044_v44 = vadd.f32 %v2043_v36, %v2035_v31  ;;  %v3052_v45 = vadd.f32 %v3051_v37, %v3043_v32  ;;  %v4060_v46 = vadd.f32 %v4059_v38, %v4051_v33 }
  0xec   :  { %v1091_v47 = vrot.slane %v1083_v39, 4  ;;  %v2099_v48 = vrot.slane %v2091_v40, 4  ;;  %v3107_v49 = vrot.slane %v3099_v41, 4  ;;  %v4115_v50 = vrot.slane %v4107_v42, 4 }
  0xed   :  { %v1037_v51 = vrot.slane %v1036_v43, 2  ;;  %v2045_v52 = vrot.slane %v2044_v44, 2  ;;  %v3053_v53 = vrot.slane %v3052_v45, 2  ;;  %v4061_v54 = vrot.slane %v4060_v46, 2 }
  0xee   :  { %v1092_v55 = vadd.f32 %v1091_v47, %v1083_v39  ;;  %v2100_v56 = vadd.f32 %v2099_v48, %v2091_v40  ;;  %v3108_v57 = vadd.f32 %v3107_v49, %v3099_v41  ;;  %v4116_v58 = vadd.f32 %v4115_v50, %v4107_v42  ;;  %v323_v39 = vpop.f32.mrf.mxu0  ;;  %v7409_v40 = vpop.f32.mrf.mxu1 }
  0xef   :  { %v1038_v60 = vadd.f32 %v1037_v51, %v1036_v43  ;;  %v2046_v61 = vadd.f32 %v2045_v52, %v2044_v44  ;;  %v3054_v62 = vadd.f32 %v3053_v53, %v3052_v45  ;;  %v4062_v63 = vadd.f32 %v4061_v54, %v4060_v46  ;;  %12952 = vst [vmem:[#allocation30_spill] sm:$0xff] %v7409_v40 }
  0xf0   :  { %v1093_v0 = vrot.slane %v1092_v55, 2  ;;  %v2101_v1 = vrot.slane %v2100_v56, 2  ;;  %v3109_v29 = vrot.slane %v3108_v57, 2  ;;  %v4117_v30 = vrot.slane %v4116_v58, 2 }
  0xf1   :  { %v1039_v31 = vrot.slane %v1038_v60, 1  ;;  %v2047_v32 = vrot.slane %v2046_v61, 1  ;;  %v3055_v33 = vrot.slane %v3054_v62, 1  ;;  %v4063_v34 = vrot.slane %v4062_v63, 1 }
  0xf2   :  { %v1094_v35 = vadd.f32 %v1093_v0, %v1092_v55  ;;  %v2102_v36 = vadd.f32 %v2101_v1, %v2100_v56  ;;  %v3110_v37 = vadd.f32 %v3109_v29, %v3108_v57  ;;  %v4118_v38 = vadd.f32 %v4117_v30, %v4116_v58  ;;  %v7431_v57 = vpop.f32.mrf.mxu1 }
  0xf3   :  { %v7411_v41 = vadd.f32 %v1039_v31, %v1038_v60  ;;  %v7413_v42 = vadd.f32 %v2047_v32, %v2046_v61  ;;  %v7415_v43 = vadd.f32 %v3055_v33, %v3054_v62  ;;  %v7417_v44 = vadd.f32 %v4063_v34, %v4062_v63  ;;  %12961 = vst [vmem:[#allocation39_spill] sm:$0xff] %v7431_v57  ;;  %v325_v63 = vpop.f32.mrf.mxu0 }
  0xf4   :  { %v1095_v45 = vrot.slane %v1094_v35, 1  ;;  %v2103_v46 = vrot.slane %v2102_v36, 1  ;;  %v3111_v47 = vrot.slane %v3110_v37, 1  ;;  %v4119_v48 = vrot.slane %v4118_v38, 1 }
  0xf5   :  { %12953 = vst [vmem:[#allocation31_spill] sm:$0xff] %v7411_v41  ;;  %12954 = vst [vmem:[#allocation32_spill] sm:$0xff] %v7413_v42  ;;  %v1028_v49 = vmul.f32 %v323_v39, %v7355_v7  ;;  %v2036_v50 = vmul.f32 %v323_v39, %v7359_v9  ;;  %v3044_v51 = vmul.f32 %v7407_v59, %v323_v39  ;;  %v329_v4 = vpop.f32.mrf.mxu0 }
  0xf6   :  { %12955 = vst [vmem:[#allocation33_spill] sm:$0xff] %v7415_v43  ;;  %12956 = vst [vmem:[#allocation34_spill] sm:$0xff] %v7417_v44  ;;  %v4052_v52 = vmul.f32 %v7409_v40, %v323_v39  ;;  %v7423_v53 = vadd.f32 %v1095_v45, %v1094_v35  ;;  %v7425_v54 = vadd.f32 %v2103_v46, %v2102_v36  ;;  %v7445_v39 = vpop.f32.mrf.mxu1 }
  0xf7   :  { %v7427_v55 = vadd.f32 %v3111_v47, %v3110_v37  ;;  %v7429_v56 = vadd.f32 %v4119_v48, %v4118_v38  ;;  %v1041_v58 = vrot.slane %v1028_v49, 4  ;;  %v2049_v60 = vrot.slane %v2036_v50, 4  ;;  %12962 = vst [vmem:[#allocation40_spill] sm:$0xff] %v7445_v39 }
  0xf8   :  { %12957 = vst [vmem:[#allocation35_spill] sm:$0xff] %v7423_v53  ;;  %12958 = vst [vmem:[#allocation36_spill] sm:$0xff] %v7425_v54  ;;  %v3057_v61 = vrot.slane %v3044_v51, 4  ;;  %v4065_v62 = vrot.slane %v4052_v52, 4  ;;  %v1084_v35 = vmul.f32 %v325_v63, %v7355_v7  ;;  %v2092_v36 = vmul.f32 %v325_v63, %v7359_v9  ;;  %v7447_v0 = vpop.f32.mrf.mxu1 }
  0xf9   :  { %12959 = vst [vmem:[#allocation37_spill] sm:$0xff] %v7427_v55  ;;  %12960 = vst [vmem:[#allocation38_spill] sm:$0xff] %v7429_v56  ;;  %v1042_v31 = vadd.f32 %v1041_v58, %v1028_v49  ;;  %v2050_v32 = vadd.f32 %v2049_v60, %v2036_v50  ;;  %v3100_v37 = vmul.f32 %v7407_v59, %v325_v63 }
  0xfa   :  { %v3058_v33 = vadd.f32 %v3057_v61, %v3044_v51  ;;  %v4066_v34 = vadd.f32 %v4065_v62, %v4052_v52  ;;  %v4108_v38 = vmul.f32 %v7409_v40, %v325_v63  ;;  %v1097_v3 = vrot.slane %v1084_v35, 4  ;;  %12963 = vst [vmem:[#allocation41_spill] sm:$0xff] %v7447_v0 }
  0xfb   :  { %v1043_v45 = vrot.slane %v1042_v31, 2  ;;  %v2051_v46 = vrot.slane %v2050_v32, 2  ;;  %v2105_v30 = vrot.slane %v2092_v36, 4  ;;  %v3113_v49 = vrot.slane %v3100_v37, 4 }
  0xfc   :  { %v3059_v47 = vrot.slane %v3058_v33, 2  ;;  %v4067_v48 = vrot.slane %v4066_v34, 2  ;;  %v4121_v50 = vrot.slane %v4108_v38, 4  ;;  %v1098_v61 = vadd.f32 %v1097_v3, %v1084_v35 }
  0xfd   :  { %v1044_v51 = vadd.f32 %v1043_v45, %v1042_v31  ;;  %v2052_v52 = vadd.f32 %v2051_v46, %v2050_v32  ;;  %v2106_v62 = vadd.f32 %v2105_v30, %v2092_v36  ;;  %v3114_v29 = vadd.f32 %v3113_v49, %v3100_v37  ;;  %v7457_v36 = vpop.f32.mrf.mxu1 }
  0xfe   :  { %v3060_v58 = vadd.f32 %v3059_v47, %v3058_v33  ;;  %v4068_v60 = vadd.f32 %v4067_v48, %v4066_v34  ;;  %v4122_v1 = vadd.f32 %v4121_v50, %v4108_v38  ;;  %v1099_v13 = vrot.slane %v1098_v61, 2  ;;  %12968 = vst [vmem:[#allocation46_spill] sm:$0xff] %v7457_v36 }
  0xff   :  { %v1045_v63 = vrot.slane %v1044_v51, 1  ;;  %v2053_v22 = vrot.slane %v2052_v52, 1  ;;  %v2107_v10 = vrot.slane %v2106_v62, 2  ;;  %v3115_v8 = vrot.slane %v3114_v29, 2  ;;  %v7471_v50 = vpop.f32.mrf.mxu1 }
 0x100   :  { %v3061_v19 = vrot.slane %v3060_v58, 1  ;;  %v4069_v16 = vrot.slane %v4068_v60, 1  ;;  %v4123_v6 = vrot.slane %v4122_v1, 2  ;;  %v1100_v30 = vadd.f32 %v1099_v13, %v1098_v61  ;;  %12973 = vst [vmem:[#allocation51_spill] sm:$0xff] %v7471_v50 }
 0x101   :  { %v7449_v27 = vadd.f32 %v1045_v63, %v1044_v51  ;;  %v7451_v31 = vadd.f32 %v2053_v22, %v2052_v52  ;;  %v2108_v33 = vadd.f32 %v2107_v10, %v2106_v62  ;;  %v3116_v34 = vadd.f32 %v3115_v8, %v3114_v29 }
 0x102   :  { %v7453_v32 = vadd.f32 %v3061_v19, %v3060_v58  ;;  %v7455_v3 = vadd.f32 %v4069_v16, %v4068_v60  ;;  %v4124_v35 = vadd.f32 %v4123_v6, %v4122_v1  ;;  %v1029_v37 = vmul.f32 %v329_v4, %v7363_v11  ;;  %v331_v60 = vpop.f32.mrf.mxu0 }
 0x103   :  { %12964 = vst [vmem:[#allocation42_spill] sm:$0xff] %v7449_v27  ;;  %12965 = vst [vmem:[#allocation43_spill] sm:$0xff] %v7451_v31  ;;  %v2037_v38 = vmul.f32 %v329_v4, %v7365_v12  ;;  %v3045_v45 = vmul.f32 %v7431_v57, %v329_v4  ;;  %v4053_v46 = vmul.f32 %v7445_v39, %v329_v4  ;;  %v1101_v22 = vrot.slane %v1100_v30, 1 }
 0x104   :  { %12966 = vst [vmem:[#allocation44_spill] sm:$0xff] %v7453_v32  ;;  %12967 = vst [vmem:[#allocation45_spill] sm:$0xff] %v7455_v3  ;;  %v2109_v47 = vrot.slane %v2108_v33, 1  ;;  %v3117_v19 = vrot.slane %v3116_v34, 1  ;;  %v4125_v48 = vrot.slane %v4124_v35, 1  ;;  %v1047_v16 = vrot.slane %v1029_v37, 4 }
 0x105   :  { %v2055_v49 = vrot.slane %v2037_v38, 4  ;;  %v3063_v13 = vrot.slane %v3045_v45, 4  ;;  %v4071_v10 = vrot.slane %v4053_v46, 4  ;;  %v7463_v8 = vadd.f32 %v1101_v22, %v1100_v30 }
 0x106   :  { %v7465_v6 = vadd.f32 %v2109_v47, %v2108_v33  ;;  %v7467_v1 = vadd.f32 %v3117_v19, %v3116_v34  ;;  %v7469_v29 = vadd.f32 %v4125_v48, %v4124_v35  ;;  %v1048_v51 = vadd.f32 %v1047_v16, %v1029_v37  ;;  %v7485_v47 = vpop.f32.mrf.mxu1 }
 0x107   :  { %12969 = vst [vmem:[#allocation47_spill] sm:$0xff] %v7463_v8  ;;  %v2056_v4 = vadd.f32 %v2055_v49, %v2037_v38  ;;  %v3064_v52 = vadd.f32 %v3063_v13, %v3045_v45  ;;  %v4072_v58 = vadd.f32 %v4071_v10, %v4053_v46  ;;  %v1085_v38 = vmul.f32 %v331_v60, %v7363_v11 }
 0x108   :  { %12970 = vst [vmem:[#allocation48_spill] sm:$0xff] %v7465_v6  ;;  %12971 = vst [vmem:[#allocation49_spill] sm:$0xff] %v7467_v1  ;;  %v1049_v33 = vrot.slane %v1048_v51, 2  ;;  %v2093_v45 = vmul.f32 %v331_v60, %v7365_v12  ;;  %v3101_v46 = vmul.f32 %v7431_v57, %v331_v60  ;;  %v4109_v22 = vmul.f32 %v7445_v39, %v331_v60  ;;  %v7487_v60 = vpop.f32.mrf.mxu1 }
 0x109   :  { %12972 = vst [vmem:[#allocation50_spill] sm:$0xff] %v7469_v29  ;;  %v2057_v34 = vrot.slane %v2056_v4, 2  ;;  %v3065_v35 = vrot.slane %v3064_v52, 2  ;;  %v4073_v37 = vrot.slane %v4072_v58, 2  ;;  %12974 = vst [vmem:[#allocation52_spill] sm:$0xff] %v7485_v47  ;;  %v1103_v13 = vrot.slane %v1085_v38, 4  ;;  %v335_v29 = vpop.f32.mrf.mxu0 }
 0x10a   :  { %v1050_v19 = vadd.f32 %v1049_v33, %v1048_v51  ;;  %v2111_v10 = vrot.slane %v2093_v45, 4  ;;  %v3119_v30 = vrot.slane %v3101_v46, 4  ;;  %v4127_v63 = vrot.slane %v4109_v22, 4  ;;  %12975 = vst [vmem:[#allocation53_spill] sm:$0xff] %v7487_v60 }
 0x10b   :  { %v2058_v48 = vadd.f32 %v2057_v34, %v2056_v4  ;;  %v3066_v16 = vadd.f32 %v3065_v35, %v3064_v52  ;;  %v4074_v49 = vadd.f32 %v4073_v37, %v4072_v58  ;;  %v1104_v24 = vadd.f32 %v1103_v13, %v1085_v38 }
 0x10c   :  { %v1051_v62 = vrot.slane %v1050_v19, 1  ;;  %v2112_v12 = vadd.f32 %v2111_v10, %v2093_v45  ;;  %v3120_v23 = vadd.f32 %v3119_v30, %v3101_v46  ;;  %v4128_v57 = vadd.f32 %v4127_v63, %v4109_v22 }
 0x10d   :  { %v2059_v61 = vrot.slane %v2058_v48, 1  ;;  %v3067_v26 = vrot.slane %v3066_v16, 1  ;;  %v4075_v11 = vrot.slane %v4074_v49, 1  ;;  %v1105_v58 = vrot.slane %v1104_v24, 2 }
 0x10e   :  { %v7489_v39 = vadd.f32 %v1051_v62, %v1050_v19  ;;  %v2113_v33 = vrot.slane %v2112_v12, 2  ;;  %v3121_v34 = vrot.slane %v3120_v23, 2  ;;  %v4129_v35 = vrot.slane %v4128_v57, 2 }
 0x10f   :  { %v7491_v51 = vadd.f32 %v2059_v61, %v2058_v48  ;;  %v7493_v4 = vadd.f32 %v3067_v26, %v3066_v16  ;;  %v7495_v52 = vadd.f32 %v4075_v11, %v4074_v49  ;;  %v1030_v37 = vmul.f32 %v335_v29, %v7369_v14  ;;  %v7501_v26 = vpop.f32.mrf.mxu1 }
 0x110   :  { %12976 = vst [vmem:[#allocation54_spill] sm:$0xff] %v7489_v39  ;;  %v2038_v30 = vmul.f32 %v335_v29, %v7371_v15  ;;  %v3046_v63 = vmul.f32 %v7447_v0, %v335_v29  ;;  %v4054_v38 = vmul.f32 %v7457_v36, %v335_v29  ;;  %v1106_v62 = vadd.f32 %v1105_v58, %v1104_v24 }
 0x111   :  { %12977 = vst [vmem:[#allocation55_spill] sm:$0xff] %v7491_v51  ;;  %12978 = vst [vmem:[#allocation56_spill] sm:$0xff] %v7493_v4  ;;  %v2114_v45 = vadd.f32 %v2113_v33, %v2112_v12  ;;  %v3122_v61 = vadd.f32 %v3121_v34, %v3120_v23  ;;  %v4130_v46 = vadd.f32 %v4129_v35, %v4128_v57  ;;  %v1053_v11 = vrot.slane %v1030_v37, 4  ;;  %v7511_v57 = vpop.f32.mrf.mxu1  ;;  %v337_v35 = vpop.f32.mrf.mxu0 }
 0x112   :  { %12979 = vst [vmem:[#allocation57_spill] sm:$0xff] %v7495_v52  ;;  %12980 = vst [vmem:[#allocation58_spill] sm:$0xff] %v7501_v26  ;;  %v2061_v22 = vrot.slane %v2038_v30, 4  ;;  %v3069_v19 = vrot.slane %v3046_v63, 4  ;;  %v4077_v48 = vrot.slane %v4054_v38, 4  ;;  %v1107_v16 = vrot.slane %v1106_v62, 1 }
 0x113   :  { %v2115_v49 = vrot.slane %v2114_v45, 1  ;;  %v3123_v13 = vrot.slane %v3122_v61, 1  ;;  %v4131_v10 = vrot.slane %v4130_v46, 1  ;;  %v1054_v3 = vadd.f32 %v1053_v11, %v1030_v37  ;;  %12985 = vst [vmem:[#allocation63_spill] sm:$0xff] %v7511_v57 }
 0x114   :  { %v2062_v1 = vadd.f32 %v2061_v22, %v2038_v30  ;;  %v3070_v32 = vadd.f32 %v3069_v19, %v3046_v63  ;;  %v4078_v6 = vadd.f32 %v4077_v48, %v4054_v38  ;;  %v7503_v31 = vadd.f32 %v1107_v16, %v1106_v62  ;;  %v7525_v16 = vpop.f32.mrf.mxu1 }
 0x115   :  { %v7505_v24 = vadd.f32 %v2115_v49, %v2114_v45  ;;  %v7507_v12 = vadd.f32 %v3123_v13, %v3122_v61  ;;  %v7509_v23 = vadd.f32 %v4131_v10, %v4130_v46  ;;  %v1055_v29 = vrot.slane %v1054_v3, 2  ;;  %12986 = vst [vmem:[#allocation64_spill] sm:$0xff] %v7525_v16 }
 0x116   :  { %12981 = vst [vmem:[#allocation59_spill] sm:$0xff] %v7503_v31  ;;  %v2063_v58 = vrot.slane %v2062_v1, 2  ;;  %v3071_v33 = vrot.slane %v3070_v32, 2  ;;  %v4079_v34 = vrot.slane %v4078_v6, 2  ;;  %v1086_v11 = vmul.f32 %v337_v35, %v7369_v14 }
 0x117   :  { %12982 = vst [vmem:[#allocation60_spill] sm:$0xff] %v7505_v24  ;;  %12983 = vst [vmem:[#allocation61_spill] sm:$0xff] %v7507_v12  ;;  %v1056_v62 = vadd.f32 %v1055_v29, %v1054_v3  ;;  %v2094_v22 = vmul.f32 %v337_v35, %v7371_v15  ;;  %v3102_v19 = vmul.f32 %v7447_v0, %v337_v35  ;;  %v7535_v0 = vpop.f32.mrf.mxu1 }
 0x118   :  { %12984 = vst [vmem:[#allocation62_spill] sm:$0xff] %v7509_v23  ;;  %v2064_v45 = vadd.f32 %v2063_v58, %v2062_v1  ;;  %v3072_v61 = vadd.f32 %v3071_v33, %v3070_v32  ;;  %v4080_v46 = vadd.f32 %v4079_v34, %v4078_v6  ;;  %v4110_v48 = vmul.f32 %v7457_v36, %v337_v35  ;;  %v341_v32 = vpop.f32.mrf.mxu0 }
 0x119   :  { %v1057_v49 = vrot.slane %v1056_v62, 1  ;;  %v1109_v30 = vrot.slane %v1086_v11, 4  ;;  %v2117_v38 = vrot.slane %v2094_v22, 4  ;;  %v3125_v3 = vrot.slane %v3102_v19, 4  ;;  %12991 = vst [vmem:[#allocation69_spill] sm:$0xff] %v7535_v0 }
 0x11a   :  { %v2065_v13 = vrot.slane %v2064_v45, 1  ;;  %v3073_v10 = vrot.slane %v3072_v61, 1  ;;  %v4081_v63 = vrot.slane %v4080_v46, 1  ;;  %v4133_v1 = vrot.slane %v4110_v48, 4 }
 0x11b   :  { %v7527_v6 = vadd.f32 %v1057_v49, %v1056_v62  ;;  %v1110_v34 = vadd.f32 %v1109_v30, %v1086_v11  ;;  %v2118_v35 = vadd.f32 %v2117_v38, %v2094_v22  ;;  %v3126_v37 = vadd.f32 %v3125_v3, %v3102_v19 }
 0x11c   :  { %v7529_v29 = vadd.f32 %v2065_v13, %v2064_v45  ;;  %v7531_v58 = vadd.f32 %v3073_v10, %v3072_v61  ;;  %v7533_v33 = vadd.f32 %v4081_v63, %v4080_v46  ;;  %v4134_v36 = vadd.f32 %v4133_v1, %v4110_v48  ;;  %v7541_v10 = vpop.f32.mrf.mxu1 }
 0x11d   :  { %12987 = vst [vmem:[#allocation65_spill] sm:$0xff] %v7527_v6  ;;  %v1031_v15 = vmul.f32 %v341_v32, %v7375_v17  ;;  %v2039_v14 = vmul.f32 %v341_v32, %v7377_v18  ;;  %v3047_v23 = vmul.f32 %v7471_v50, %v341_v32  ;;  %v4055_v62 = vmul.f32 %v7485_v47, %v341_v32 }
 0x11e   :  { %12988 = vst [vmem:[#allocation66_spill] sm:$0xff] %v7529_v29  ;;  %12989 = vst [vmem:[#allocation67_spill] sm:$0xff] %v7531_v58  ;;  %v1111_v45 = vrot.slane %v1110_v34, 2  ;;  %v2119_v49 = vrot.slane %v2118_v35, 2  ;;  %v3127_v61 = vrot.slane %v3126_v37, 2  ;;  %v4135_v13 = vrot.slane %v4134_v36, 2 }
 0x11f   :  { %12990 = vst [vmem:[#allocation68_spill] sm:$0xff] %v7533_v33  ;;  %v1059_v63 = vrot.slane %v1031_v15, 4  ;;  %v2067_v46 = vrot.slane %v2039_v14, 4  ;;  %v3075_v30 = vrot.slane %v3047_v23, 4  ;;  %v4083_v38 = vrot.slane %v4055_v62, 4  ;;  %12992 = vst [vmem:[#allocation70_spill] sm:$0xff] %v7541_v10 }
 0x120   :  { %v1112_v11 = vadd.f32 %v1111_v45, %v1110_v34  ;;  %v2120_v22 = vadd.f32 %v2119_v49, %v2118_v35  ;;  %v3128_v19 = vadd.f32 %v3127_v61, %v3126_v37  ;;  %v4136_v48 = vadd.f32 %v4135_v13, %v4134_v36 }
 0x121   :  { %v1060_v3 = vadd.f32 %v1059_v63, %v1031_v15  ;;  %v2068_v1 = vadd.f32 %v2067_v46, %v2039_v14  ;;  %v3076_v0 = vadd.f32 %v3075_v30, %v3047_v23  ;;  %v4084_v52 = vadd.f32 %v4083_v38, %v4055_v62  ;;  %v622_v62 = vpop.f32.mrf.mxu1 }
 0x122   :  { %v1113_v12 = vrot.slane %v1112_v11, 1  ;;  %v2121_v32 = vrot.slane %v2120_v22, 1  ;;  %v3129_v4 = vrot.slane %v3128_v19, 1  ;;  %v4137_v24 = vrot.slane %v4136_v48, 1 }
 0x123   :  { %v1061_v51 = vrot.slane %v1060_v3, 2  ;;  %v2069_v31 = vrot.slane %v2068_v1, 2  ;;  %v3077_v39 = vrot.slane %v3076_v0, 2  ;;  %v4085_v16 = vrot.slane %v4084_v52, 2 }
 0x124   :  { %v7543_v57 = vadd.f32 %v1113_v12, %v1112_v11  ;;  %v7545_v34 = vadd.f32 %v2121_v32, %v2120_v22  ;;  %v7547_v37 = vadd.f32 %v3129_v4, %v3128_v19  ;;  %v7549_v36 = vadd.f32 %v4137_v24, %v4136_v48 }
 0x125   :  { %v1062_v15 = vadd.f32 %v1061_v51, %v1060_v3  ;;  %v2070_v14 = vadd.f32 %v2069_v31, %v2068_v1  ;;  %v3078_v23 = vadd.f32 %v3077_v39, %v3076_v0  ;;  %v4086_v35 = vadd.f32 %v4085_v16, %v4084_v52  ;;  %v343_v16 = vpop.f32.mrf.mxu0 }
 0x126   :  { %12993 = vst [vmem:[#allocation71_spill] sm:$0xff] %v7543_v57  ;;  %12994 = vst [vmem:[#allocation72_spill] sm:$0xff] %v7545_v34  ;;  %v1139_v0 = vmul.f32 %v622_v62, %v7347_v2  ;;  %v2147_v39 = vmul.f32 %v622_v62, %v7351_v5  ;;  %v3155_v31 = vmul.f32 %v622_v62, %v7391_v25 }
 0x127   :  { %12995 = vst [vmem:[#allocation73_spill] sm:$0xff] %v7547_v37  ;;  %12996 = vst [vmem:[#allocation74_spill] sm:$0xff] %v7549_v36  ;;  %v1063_v61 = vrot.slane %v1062_v15, 1  ;;  %v2071_v24 = vrot.slane %v2070_v14, 1  ;;  %v3079_v13 = vrot.slane %v3078_v23, 1  ;;  %v4087_v51 = vrot.slane %v4086_v35, 1 }
 0x128   :  { %v4163_v52 = vmul.f32 %v622_v62, %v7397_v28  ;;  %v1147_v11 = vrot.slane %v1139_v0, 4  ;;  %v2155_v22 = vrot.slane %v2147_v39, 4  ;;  %v3163_v19 = vrot.slane %v3155_v31, 4 }
 0x129   :  { %v7563_v63 = vadd.f32 %v1063_v61, %v1062_v15  ;;  %v7565_v46 = vadd.f32 %v2071_v24, %v2070_v14  ;;  %v7567_v30 = vadd.f32 %v3079_v13, %v3078_v23  ;;  %v7569_v38 = vadd.f32 %v4087_v51, %v4086_v35 }
 0x12a   :  { %v4171_v48 = vrot.slane %v4163_v52, 4  ;;  %v1087_v3 = vmul.f32 %v343_v16, %v7375_v17  ;;  %v2095_v1 = vmul.f32 %v343_v16, %v7377_v18  ;;  %v3103_v32 = vmul.f32 %v7471_v50, %v343_v16 }
 0x12b   :  { %12997 = vst [vmem:[#allocation75_spill] sm:$0xff] %v7563_v63  ;;  %12998 = vst [vmem:[#allocation76_spill] sm:$0xff] %v7565_v46  ;;  %v4111_v62 = vmul.f32 %v7485_v47, %v343_v16  ;;  %v1148_v15 = vadd.f32 %v1147_v11, %v1139_v0  ;;  %v2156_v61 = vadd.f32 %v2155_v22, %v2147_v39 }
 0x12c   :  { %12999 = vst [vmem:[#allocation77_spill] sm:$0xff] %v7567_v30  ;;  %13000 = vst [vmem:[#allocation78_spill] sm:$0xff] %v7569_v38  ;;  %v3164_v14 = vadd.f32 %v3163_v19, %v3155_v31  ;;  %v4172_v24 = vadd.f32 %v4171_v48, %v4163_v52  ;;  %v1115_v23 = vrot.slane %v1087_v3, 4  ;;  %v2123_v13 = vrot.slane %v2095_v1, 4 }
 0x12d   :  { %v3131_v35 = vrot.slane %v3103_v32, 4  ;;  %v4139_v51 = vrot.slane %v4111_v62, 4  ;;  %v1149_v4 = vrot.slane %v1148_v15, 2  ;;  %v2157_v12 = vrot.slane %v2156_v61, 2 }
 0x12e   :  { %v3165_v49 = vrot.slane %v3164_v14, 2  ;;  %v4173_v45 = vrot.slane %v4172_v24, 2  ;;  %v1116_v36 = vadd.f32 %v1115_v23, %v1087_v3  ;;  %v2124_v17 = vadd.f32 %v2123_v13, %v2095_v1 }
 0x12f   :  { %v3132_v33 = vadd.f32 %v3131_v35, %v3103_v32  ;;  %v4140_v18 = vadd.f32 %v4139_v51, %v4111_v62  ;;  %v1150_v37 = vadd.f32 %v1149_v4, %v1148_v15  ;;  %v2158_v50 = vadd.f32 %v2157_v12, %v2156_v61  ;;  %v624_v15 = vpop.f32.mrf.mxu1 }
 0x130   :  { %v3166_v58 = vadd.f32 %v3165_v49, %v3164_v14  ;;  %v4174_v16 = vadd.f32 %v4173_v45, %v4172_v24  ;;  %v1117_v0 = vrot.slane %v1116_v36, 2  ;;  %v2125_v39 = vrot.slane %v2124_v17, 2 }
 0x131   :  { %v3133_v31 = vrot.slane %v3132_v33, 2  ;;  %v4141_v52 = vrot.slane %v4140_v18, 2  ;;  %v1151_v11 = vrot.slane %v1150_v37, 1  ;;  %v2159_v22 = vrot.slane %v2158_v50, 1 }
 0x132   :  { %v3167_v19 = vrot.slane %v3166_v58, 1  ;;  %v4175_v48 = vrot.slane %v4174_v16, 1  ;;  %v1118_v47 = vadd.f32 %v1117_v0, %v1116_v36  ;;  %v2126_v34 = vadd.f32 %v2125_v39, %v2124_v17  ;;  %v347_v39 = vpop.f32.mrf.mxu0 }
 0x133   :  { %v3134_v29 = vadd.f32 %v3133_v31, %v3132_v33  ;;  %v4142_v57 = vadd.f32 %v4141_v52, %v4140_v18  ;;  %v7575_v3 = vadd.f32 %v1151_v11, %v1150_v37  ;;  %v7577_v1 = vadd.f32 %v2159_v22, %v2158_v50 }
 0x134   :  { %v7579_v4 = vadd.f32 %v3167_v19, %v3166_v58  ;;  %v7581_v49 = vadd.f32 %v4175_v48, %v4174_v16  ;;  %v1119_v45 = vrot.slane %v1118_v47, 1  ;;  %v2127_v12 = vrot.slane %v2126_v34, 1 }
 0x135   :  { %13001 = vst [vmem:[#allocation79_spill] sm:$0xff] %v7575_v3  ;;  %13002 = vst [vmem:[#allocation80_spill] sm:$0xff] %v7577_v1  ;;  %v3135_v32 = vrot.slane %v3134_v29, 1  ;;  %v4143_v62 = vrot.slane %v4142_v57, 1  ;;  %v13005_v36 = vmax.f32 %v7411_v41, %v7423_v53  ;;  %v13007_v18 = vmax.f32 %v7413_v42, %v7425_v54 }
 0x136   :  { %13003 = vst [vmem:[#allocation81_spill] sm:$0xff] %v7579_v4  ;;  %13004 = vst [vmem:[#allocation82_spill] sm:$0xff] %v7581_v49  ;;  %v13009_v58 = vmax.f32 %v7415_v43, %v7427_v55  ;;  %v13011_v37 = vmax.f32 %v7417_v44, %v7429_v56  ;;  %v7607_v14 = vadd.f32 %v1119_v45, %v1118_v47 }
 0x137   :  { %v7587_v17 = vmax.f32 %v13005_v36, %v7575_v3  ;;  %v7593_v50 = vmax.f32 %v13007_v18, %v7577_v1  ;;  %v7609_v24 = vadd.f32 %v2127_v12, %v2126_v34  ;;  %v7611_v23 = vadd.f32 %v3135_v32, %v3134_v29 }
 0x138   :  { %v7599_v33 = vmax.f32 %v13009_v58, %v7579_v4  ;;  %v7605_v61 = vmax.f32 %v13011_v37, %v7581_v49  ;;  %13013 = vst [vmem:[#allocation87_spill] sm:$0xff] %v7607_v14  ;;  %v7613_v13 = vadd.f32 %v4143_v62, %v4142_v57  ;;  %v1195_v35 = vmul.f32 %v624_v15, %v7347_v2 }
 0x139   :  { %13006 = vst [vmem:[#allocation83_spill] sm:$0xff] %v7587_v17  ;;  %13008 = vst [vmem:[#allocation84_spill] sm:$0xff] %v7593_v50  ;;  %v2203_v51 = vmul.f32 %v624_v15, %v7351_v5  ;;  %v3211_v16 = vmul.f32 %v624_v15, %v7391_v25  ;;  %v4219_v0 = vmul.f32 %v624_v15, %v7397_v28 }
 0x13a   :  { %13010 = vst [vmem:[#allocation85_spill] sm:$0xff] %v7599_v33  ;;  %13012 = vst [vmem:[#allocation86_spill] sm:$0xff] %v7605_v61  ;;  %v1203_v34 = vrot.slane %v1195_v35, 4  ;;  %v1032_v19 = vmul.f32 %v347_v39, %v7381_v20  ;;  %v2040_v48 = vmul.f32 %v347_v39, %v7383_v21  ;;  %v3048_v45 = vmul.f32 %v7487_v60, %v347_v39 }
 0x13b   :  { %13014 = vst [vmem:[#allocation88_spill] sm:$0xff] %v7609_v24  ;;  %13015 = vst [vmem:[#allocation89_spill] sm:$0xff] %v7611_v23  ;;  %v2211_v52 = vrot.slane %v2203_v51, 4  ;;  %v3219_v11 = vrot.slane %v3211_v16, 4  ;;  %v4227_v22 = vrot.slane %v4219_v0, 4  ;;  %v4056_v12 = vmul.f32 %v7501_v26, %v347_v39 }
 0x13c   :  { %13016 = vst [vmem:[#allocation90_spill] sm:$0xff] %v7613_v13  ;;  %v1204_v32 = vadd.f32 %v1203_v34, %v1195_v35  ;;  %v1065_v18 = vrot.slane %v1032_v19, 4  ;;  %v2073_v58 = vrot.slane %v2040_v48, 4  ;;  %v3081_v37 = vrot.slane %v3048_v45, 4 }
 0x13d   :  { %v2212_v62 = vadd.f32 %v2211_v52, %v2203_v51  ;;  %v3220_v15 = vadd.f32 %v3219_v11, %v3211_v16  ;;  %v4228_v36 = vadd.f32 %v4227_v22, %v4219_v0  ;;  %v4089_v57 = vrot.slane %v4056_v12, 4 }
 0x13e   :  { %v1205_v29 = vrot.slane %v1204_v32, 2  ;;  %v1066_v56 = vadd.f32 %v1065_v18, %v1032_v19  ;;  %v2074_v44 = vadd.f32 %v2073_v58, %v2040_v48  ;;  %v3082_v4 = vadd.f32 %v3081_v37, %v3048_v45 }
 0x13f   :  { %v2213_v47 = vrot.slane %v2212_v62, 2  ;;  %v3221_v31 = vrot.slane %v3220_v15, 2  ;;  %v4229_v49 = vrot.slane %v4228_v36, 2  ;;  %v4090_v55 = vadd.f32 %v4089_v57, %v4056_v12  ;;  %v628_v12 = vpop.f32.mrf.mxu1 }
 0x140   :  { %v1206_v43 = vadd.f32 %v1205_v29, %v1204_v32  ;;  %v1067_v35 = vrot.slane %v1066_v56, 2  ;;  %v2075_v51 = vrot.slane %v2074_v44, 2  ;;  %v3083_v16 = vrot.slane %v3082_v4, 2 }
 0x141   :  { %v2214_v1 = vadd.f32 %v2213_v47, %v2212_v62  ;;  %v3222_v54 = vadd.f32 %v3221_v31, %v3220_v15  ;;  %v4230_v39 = vadd.f32 %v4229_v49, %v4228_v36  ;;  %v4091_v0 = vrot.slane %v4090_v55, 2 }
 0x142   :  { %v1207_v34 = vrot.slane %v1206_v43, 1  ;;  %v1068_v42 = vadd.f32 %v1067_v35, %v1066_v56  ;;  %v2076_v3 = vadd.f32 %v2075_v51, %v2074_v44  ;;  %v3084_v53 = vadd.f32 %v3083_v16, %v3082_v4 }
 0x143   :  { %v2215_v52 = vrot.slane %v2214_v1, 1  ;;  %v3223_v11 = vrot.slane %v3222_v54, 1  ;;  %v4231_v22 = vrot.slane %v4230_v39, 1  ;;  %v4092_v41 = vadd.f32 %v4091_v0, %v4090_v55  ;;  %v349_v55 = vpop.f32.mrf.mxu0 }
 0x144   :  { %v7631_v19 = vadd.f32 %v1207_v34, %v1206_v43  ;;  %v1069_v49 = vrot.slane %v1068_v42, 1  ;;  %v2077_v47 = vrot.slane %v2076_v3, 1  ;;  %v3085_v57 = vrot.slane %v3084_v53, 1 }
 0x145   :  { %v7633_v48 = vadd.f32 %v2215_v52, %v2214_v1  ;;  %v7635_v29 = vadd.f32 %v3223_v11, %v3222_v54  ;;  %v7637_v31 = vadd.f32 %v4231_v22, %v4230_v39  ;;  %v4093_v45 = vrot.slane %v4092_v41, 1 }
 0x146   :  { %13017 = vst [vmem:[#allocation91_spill] sm:$0xff] %v7631_v19  ;;  %v7647_v56 = vadd.f32 %v1069_v49, %v1068_v42  ;;  %v7649_v1 = vadd.f32 %v2077_v47, %v2076_v3  ;;  %v7651_v4 = vadd.f32 %v3085_v57, %v3084_v53  ;;  %v1140_v15 = vmul.f32 %v628_v12, %v7355_v7 }
 0x147   :  { %13018 = vst [vmem:[#allocation92_spill] sm:$0xff] %v7633_v48  ;;  %13019 = vst [vmem:[#allocation93_spill] sm:$0xff] %v7635_v29  ;;  %v7653_v62 = vadd.f32 %v4093_v45, %v4092_v41  ;;  %v2148_v36 = vmul.f32 %v628_v12, %v7359_v9  ;;  %v3156_v18 = vmul.f32 %v628_v12, %v7407_v59 }
 0x148   :  { %13020 = vst [vmem:[#allocation94_spill] sm:$0xff] %v7637_v31  ;;  %13021 = vst [vmem:[#allocation95_spill] sm:$0xff] %v7647_v56  ;;  %v4164_v58 = vmul.f32 %v628_v12, %v7409_v40  ;;  %v1088_v37 = vmul.f32 %v349_v55, %v7381_v20  ;;  %v2096_v39 = vmul.f32 %v349_v55, %v7383_v21  ;;  %v1153_v53 = vrot.slane %v1140_v15, 4 }
 0x149   :  { %13022 = vst [vmem:[#allocation96_spill] sm:$0xff] %v7649_v1  ;;  %13023 = vst [vmem:[#allocation97_spill] sm:$0xff] %v7651_v4  ;;  %v3104_v42 = vmul.f32 %v7487_v60, %v349_v55  ;;  %v4112_v3 = vmul.f32 %v7501_v26, %v349_v55  ;;  %v2161_v35 = vrot.slane %v2148_v36, 4  ;;  %v3169_v41 = vrot.slane %v3156_v18, 4 }
 0x14a   :  { %13024 = vst [vmem:[#allocation98_spill] sm:$0xff] %v7653_v62  ;;  %v4177_v51 = vrot.slane %v4164_v58, 4  ;;  %v1121_v16 = vrot.slane %v1088_v37, 4  ;;  %v2129_v0 = vrot.slane %v2096_v39, 4  ;;  %v1154_v11 = vadd.f32 %v1153_v53, %v1140_v15 }
 0x14b   :  { %v3137_v34 = vrot.slane %v3104_v42, 4  ;;  %v4145_v52 = vrot.slane %v4112_v3, 4  ;;  %v2162_v22 = vadd.f32 %v2161_v35, %v2148_v36  ;;  %v3170_v49 = vadd.f32 %v3169_v41, %v3156_v18 }
 0x14c   :  { %v4178_v47 = vadd.f32 %v4177_v51, %v4164_v58  ;;  %v1122_v57 = vadd.f32 %v1121_v16, %v1088_v37  ;;  %v2130_v45 = vadd.f32 %v2129_v0, %v2096_v39  ;;  %v1155_v43 = vrot.slane %v1154_v11, 2 }
 0x14d   :  { %v3138_v12 = vadd.f32 %v3137_v34, %v3104_v42  ;;  %v4146_v54 = vadd.f32 %v4145_v52, %v4112_v3  ;;  %v2163_v44 = vrot.slane %v2162_v22, 2  ;;  %v3171_v32 = vrot.slane %v3170_v49, 2  ;;  %v13039_v52 = vld [vmem:[#allocation44_spill] sm:$0xff] }
 0x14e   :  { %v4179_v55 = vrot.slane %v4178_v47, 2  ;;  %v1123_v31 = vrot.slane %v1122_v57, 2  ;;  %v2131_v61 = vrot.slane %v2130_v45, 2  ;;  %v1156_v48 = vadd.f32 %v1155_v43, %v1154_v11  ;;  %v13040_v11 = vld [vmem:[#allocation49_spill] sm:$0xff] }
 0x14f   :  { %v3139_v29 = vrot.slane %v3138_v12, 2  ;;  %v4147_v33 = vrot.slane %v4146_v54, 2  ;;  %v2164_v50 = vadd.f32 %v2163_v44, %v2162_v22  ;;  %v3172_v19 = vadd.f32 %v3171_v32, %v3170_v49  ;;  %v630_v44 = vpop.f32.mrf.mxu1 }
 0x150   :  { %v4180_v17 = vadd.f32 %v4179_v55, %v4178_v47  ;;  %v1124_v15 = vadd.f32 %v1123_v31, %v1122_v57  ;;  %v2132_v36 = vadd.f32 %v2131_v61, %v2130_v45  ;;  %v1157_v37 = vrot.slane %v1156_v48, 1  ;;  %v13043_v47 = vld [vmem:[#allocation45_spill] sm:$0xff]  ;;  %v13044_v57 = vld [vmem:[#allocation50_spill] sm:$0xff]  ;;  %v353_v55 = vpop.f32.mrf.mxu0 }
 0x151   :  { %v3140_v18 = vadd.f32 %v3139_v29, %v3138_v12  ;;  %v4148_v58 = vadd.f32 %v4147_v33, %v4146_v54  ;;  %v2165_v39 = vrot.slane %v2164_v50, 1  ;;  %v3173_v42 = vrot.slane %v3172_v19, 1 }
 0x152   :  { %v4181_v3 = vrot.slane %v4180_v17, 1  ;;  %v1125_v53 = vrot.slane %v1124_v15, 1  ;;  %v2133_v35 = vrot.slane %v2132_v36, 1  ;;  %v7663_v16 = vadd.f32 %v1157_v37, %v1156_v48 }
 0x153   :  { %v3141_v41 = vrot.slane %v3140_v18, 1  ;;  %v4149_v51 = vrot.slane %v4148_v58, 1  ;;  %v7665_v0 = vadd.f32 %v2165_v39, %v2164_v50  ;;  %v7667_v43 = vadd.f32 %v3173_v42, %v3172_v19  ;;  %v13035_v50 = vld [vmem:[#allocation43_spill] sm:$0xff]  ;;  %v13036_v19 = vld [vmem:[#allocation48_spill] sm:$0xff] }
 0x154   :  { %13025 = vst [vmem:[#allocation99_spill] sm:$0xff] %v7663_v16  ;;  %v7669_v32 = vadd.f32 %v4181_v3, %v4180_v17  ;;  %v7671_v31 = vadd.f32 %v1125_v53, %v1124_v15  ;;  %v7673_v61 = vadd.f32 %v2133_v35, %v2132_v36  ;;  %v13033_v48 = vmax.f32 %v7449_v27, %v7463_v8  ;;  %v13047_v53 = vld [vmem:[#allocation23_spill] sm:$0xff] }
 0x155   :  { %13026 = vst [vmem:[#allocation100_spill] sm:$0xff] %v7665_v0  ;;  %13027 = vst [vmem:[#allocation101_spill] sm:$0xff] %v7667_v43  ;;  %v7675_v33 = vadd.f32 %v3141_v41, %v3140_v18  ;;  %v7677_v29 = vadd.f32 %v4149_v51, %v4148_v58  ;;  %v13037_v17 = vmax.f32 %v13035_v50, %v13036_v19  ;;  %v13048_v41 = vld [vmem:[#allocation24_spill] sm:$0xff] }
 0x156   :  { %13028 = vst [vmem:[#allocation102_spill] sm:$0xff] %v7669_v32  ;;  %13029 = vst [vmem:[#allocation103_spill] sm:$0xff] %v7671_v31  ;;  %v7683_v54 = vmax.f32 %v13033_v48, %v7663_v16  ;;  %v13041_v22 = vmax.f32 %v13039_v52, %v13040_v11  ;;  %v13045_v45 = vmax.f32 %v13043_v47, %v13044_v57  ;;  %v13049_v48 = vld [vmem:[#allocation63_spill] sm:$0xff] }
 0x157   :  { %13030 = vst [vmem:[#allocation104_spill] sm:$0xff] %v7673_v61  ;;  %13031 = vst [vmem:[#allocation105_spill] sm:$0xff] %v7675_v33  ;;  %v7689_v34 = vmax.f32 %v13037_v17, %v7665_v0  ;;  %v1196_v37 = vmul.f32 %v630_v44, %v7355_v7  ;;  %v2204_v39 = vmul.f32 %v630_v44, %v7359_v9 }
 0x158   :  { %13032 = vst [vmem:[#allocation106_spill] sm:$0xff] %v7677_v29  ;;  %13034 = vst [vmem:[#allocation107_spill] sm:$0xff] %v7683_v54  ;;  %v7695_v49 = vmax.f32 %v13041_v22, %v7667_v43  ;;  %v7701_v12 = vmax.f32 %v13045_v45, %v7669_v32  ;;  %v3212_v42 = vmul.f32 %v630_v44, %v7407_v59  ;;  %v13050_v22 = vld [vmem:[#allocation64_spill] sm:$0xff] }
 0x159   :  { %13038 = vst [vmem:[#allocation108_spill] sm:$0xff] %v7689_v34  ;;  %v4220_v3 = vmul.f32 %v630_v44, %v7409_v40  ;;  %v1033_v35 = vmul.f32 %v353_v55, %v13047_v53  ;;  %v2041_v51 = vmul.f32 %v353_v55, %v13048_v41  ;;  %v3049_v17 = vmul.f32 %v13049_v48, %v353_v55 }
 0x15a   :  { %13042 = vst [vmem:[#allocation109_spill] sm:$0xff] %v7695_v49  ;;  %13046 = vst [vmem:[#allocation110_spill] sm:$0xff] %v7701_v12  ;;  %v4057_v45 = vmul.f32 %v13050_v22, %v353_v55  ;;  %v1209_v18 = vrot.slane %v1196_v37, 4  ;;  %v2217_v36 = vrot.slane %v2204_v39, 4  ;;  %v3225_v15 = vrot.slane %v3212_v42, 4 }
 0x15b   :  { %v4233_v58 = vrot.slane %v4220_v3, 4  ;;  %v1071_v32 = vrot.slane %v1033_v35, 4  ;;  %v2079_v57 = vrot.slane %v2041_v51, 4  ;;  %v3087_v47 = vrot.slane %v3049_v17, 4 }
 0x15c   :  { %v4095_v43 = vrot.slane %v4057_v45, 4  ;;  %v1210_v11 = vadd.f32 %v1209_v18, %v1196_v37  ;;  %v2218_v52 = vadd.f32 %v2217_v36, %v2204_v39  ;;  %v3226_v0 = vadd.f32 %v3225_v15, %v3212_v42 }
 0x15d   :  { %v4234_v44 = vadd.f32 %v4233_v58, %v4220_v3  ;;  %v1072_v19 = vadd.f32 %v1071_v32, %v1033_v35  ;;  %v2080_v50 = vadd.f32 %v2079_v57, %v2041_v51  ;;  %v3088_v16 = vadd.f32 %v3087_v47, %v3049_v17  ;;  %v13062_v17 = vld [vmem:[#allocation40_spill] sm:$0xff] }
 0x15e   :  { %v4096_v8 = vadd.f32 %v4095_v43, %v4057_v45  ;;  %v1211_v27 = vrot.slane %v1210_v11, 2  ;;  %v2219_v40 = vrot.slane %v2218_v52, 2  ;;  %v3227_v59 = vrot.slane %v3226_v0, 2 }
 0x15f   :  { %v4235_v55 = vrot.slane %v4234_v44, 2  ;;  %v1073_v9 = vrot.slane %v1072_v19, 2  ;;  %v2081_v7 = vrot.slane %v2080_v50, 2  ;;  %v3089_v28 = vrot.slane %v3088_v16, 2 }
 0x160   :  { %v4097_v25 = vrot.slane %v4096_v8, 2  ;;  %v1212_v5 = vadd.f32 %v1211_v27, %v1210_v11  ;;  %v2220_v2 = vadd.f32 %v2219_v40, %v2218_v52  ;;  %v3228_v29 = vadd.f32 %v3227_v59, %v3226_v0  ;;  %v13059_v0 = vld [vmem:[#allocation11_spill] sm:$0xff] }
 0x161   :  { %v4236_v62 = vadd.f32 %v4235_v55, %v4234_v44  ;;  %v1074_v18 = vadd.f32 %v1073_v9, %v1072_v19  ;;  %v2082_v36 = vadd.f32 %v2081_v7, %v2080_v50  ;;  %v3090_v15 = vadd.f32 %v3089_v28, %v3088_v16  ;;  %v634_v9 = vpop.f32.mrf.mxu1  ;;  %v13060_v50 = vld [vmem:[#allocation12_spill] sm:$0xff]  ;;  %v13061_v52 = vld [vmem:[#allocation39_spill] sm:$0xff] }
 0x162   :  { %v4098_v58 = vadd.f32 %v4097_v25, %v4096_v8  ;;  %v1213_v32 = vrot.slane %v1212_v5, 1  ;;  %v2221_v57 = vrot.slane %v2220_v2, 1  ;;  %v3229_v47 = vrot.slane %v3228_v29, 1  ;;  %v355_v8 = vpop.f32.mrf.mxu0 }
 0x163   :  { %v4237_v43 = vrot.slane %v4236_v62, 1  ;;  %v1075_v37 = vrot.slane %v1074_v18, 1  ;;  %v2083_v39 = vrot.slane %v2082_v36, 1  ;;  %v3091_v42 = vrot.slane %v3090_v15, 1 }
 0x164   :  { %v4099_v3 = vrot.slane %v4098_v58, 1  ;;  %v7719_v35 = vadd.f32 %v1213_v32, %v1212_v5  ;;  %v7721_v51 = vadd.f32 %v2221_v57, %v2220_v2  ;;  %v7723_v27 = vadd.f32 %v3229_v47, %v3228_v29 }
 0x165   :  { %v7725_v59 = vadd.f32 %v4237_v43, %v4236_v62  ;;  %v7727_v7 = vadd.f32 %v1075_v37, %v1074_v18  ;;  %v7729_v25 = vadd.f32 %v2083_v39, %v2082_v36  ;;  %v7731_v28 = vadd.f32 %v3091_v42, %v3090_v15 }
 0x166   :  { %13051 = vst [vmem:[#allocation111_spill] sm:$0xff] %v7719_v35  ;;  %13052 = vst [vmem:[#allocation112_spill] sm:$0xff] %v7721_v51  ;;  %v7733_v40 = vadd.f32 %v4099_v3, %v4098_v58  ;;  %v1141_v29 = vmul.f32 %v634_v9, %v13059_v0  ;;  %v2149_v19 = vmul.f32 %v634_v9, %v13060_v50 }
 0x167   :  { %13053 = vst [vmem:[#allocation113_spill] sm:$0xff] %v7723_v27  ;;  %13054 = vst [vmem:[#allocation114_spill] sm:$0xff] %v7725_v59  ;;  %v3157_v11 = vmul.f32 %v634_v9, %v13061_v52  ;;  %v4165_v45 = vmul.f32 %v634_v9, %v13062_v17  ;;  %v1089_v44 = vmul.f32 %v355_v8, %v13047_v53 }
 0x168   :  { %13055 = vst [vmem:[#allocation115_spill] sm:$0xff] %v7727_v7  ;;  %13056 = vst [vmem:[#allocation116_spill] sm:$0xff] %v7729_v25  ;;  %v2097_v55 = vmul.f32 %v355_v8, %v13048_v41  ;;  %v3105_v18 = vmul.f32 %v13049_v48, %v355_v8  ;;  %v4113_v36 = vmul.f32 %v13050_v22, %v355_v8  ;;  %v1159_v15 = vrot.slane %v1141_v29, 4 }
 0x169   :  { %13057 = vst [vmem:[#allocation117_spill] sm:$0xff] %v7731_v28  ;;  %13058 = vst [vmem:[#allocation118_spill] sm:$0xff] %v7733_v40  ;;  %v2167_v58 = vrot.slane %v2149_v19, 4  ;;  %v3175_v32 = vrot.slane %v3157_v11, 4  ;;  %v4183_v57 = vrot.slane %v4165_v45, 4  ;;  %v1127_v47 = vrot.slane %v1089_v44, 4 }
 0x16a   :  { %v2135_v43 = vrot.slane %v2097_v55, 4  ;;  %v3143_v37 = vrot.slane %v3105_v18, 4  ;;  %v4151_v39 = vrot.slane %v4113_v36, 4  ;;  %v1160_v42 = vadd.f32 %v1159_v15, %v1141_v29 }
 0x16b   :  { %v2168_v3 = vadd.f32 %v2167_v58, %v2149_v19  ;;  %v3176_v16 = vadd.f32 %v3175_v32, %v3157_v11  ;;  %v4184_v9 = vadd.f32 %v4183_v57, %v4165_v45  ;;  %v1128_v62 = vadd.f32 %v1127_v47, %v1089_v44 }
 0x16c   :  { %v2136_v2 = vadd.f32 %v2135_v43, %v2097_v55  ;;  %v3144_v5 = vadd.f32 %v3143_v37, %v3105_v18  ;;  %v4152_v59 = vadd.f32 %v4151_v39, %v4113_v36  ;;  %v1161_v12 = vrot.slane %v1160_v42, 2  ;;  %v13080_v37 = vld [vmem:[#allocation61_spill] sm:$0xff] }
 0x16d   :  { %v2169_v27 = vrot.slane %v2168_v3, 2  ;;  %v3177_v49 = vrot.slane %v3176_v16, 2  ;;  %v4185_v8 = vrot.slane %v4184_v9, 2  ;;  %v1129_v51 = vrot.slane %v1128_v62, 2 }
 0x16e   :  { %v2137_v34 = vrot.slane %v2136_v2, 2  ;;  %v3145_v35 = vrot.slane %v3144_v5, 2  ;;  %v4153_v54 = vrot.slane %v4152_v59, 2  ;;  %v1162_v22 = vadd.f32 %v1161_v12, %v1160_v42 }
 0x16f   :  { %v2170_v48 = vadd.f32 %v2169_v27, %v2168_v3  ;;  %v3178_v41 = vadd.f32 %v3177_v49, %v3176_v16  ;;  %v4186_v53 = vadd.f32 %v4185_v8, %v4184_v9  ;;  %v1130_v29 = vadd.f32 %v1129_v51, %v1128_v62  ;;  %v636_v27 = vpop.f32.mrf.mxu1  ;;  %v13079_v16 = vld [vmem:[#allocation56_spill] sm:$0xff]  ;;  %v13083_v3 = vld [vmem:[#allocation57_spill] sm:$0xff]  ;;  %v13084_v9 = vld [vmem:[#allocation62_spill] sm:$0xff] }
 0x170   :  { %v2138_v19 = vadd.f32 %v2137_v34, %v2136_v2  ;;  %v3146_v11 = vadd.f32 %v3145_v35, %v3144_v5  ;;  %v4154_v45 = vadd.f32 %v4153_v54, %v4152_v59  ;;  %v1163_v44 = vrot.slane %v1162_v22, 1  ;;  %v13071_v59 = vld [vmem:[#allocation54_spill] sm:$0xff]  ;;  %v13072_v5 = vld [vmem:[#allocation59_spill] sm:$0xff] }
 0x171   :  { %v2171_v55 = vrot.slane %v2170_v48, 1  ;;  %v3179_v18 = vrot.slane %v3178_v41, 1  ;;  %v4187_v36 = vrot.slane %v4186_v53, 1  ;;  %v1131_v15 = vrot.slane %v1130_v29, 1 }
 0x172   :  { %v2139_v58 = vrot.slane %v2138_v19, 1  ;;  %v3147_v32 = vrot.slane %v3146_v11, 1  ;;  %v4155_v57 = vrot.slane %v4154_v45, 1  ;;  %v7751_v47 = vadd.f32 %v1163_v44, %v1162_v22 }
 0x173   :  { %v7753_v43 = vadd.f32 %v2171_v55, %v2170_v48  ;;  %v7755_v12 = vadd.f32 %v3179_v18, %v3178_v41  ;;  %v7757_v49 = vadd.f32 %v4187_v36, %v4186_v53  ;;  %v7759_v51 = vadd.f32 %v1131_v15, %v1130_v29  ;;  %v13075_v41 = vld [vmem:[#allocation55_spill] sm:$0xff]  ;;  %v13076_v48 = vld [vmem:[#allocation60_spill] sm:$0xff] }
 0x174   :  { %13063 = vst [vmem:[#allocation119_spill] sm:$0xff] %v7751_v47  ;;  %v7761_v34 = vadd.f32 %v2139_v58, %v2138_v19  ;;  %v7763_v54 = vadd.f32 %v3147_v32, %v3146_v11  ;;  %v7765_v35 = vadd.f32 %v4155_v57, %v4154_v45  ;;  %v13073_v22 = vmax.f32 %v13071_v59, %v13072_v5  ;;  %v359_v19 = vpop.f32.mrf.mxu0  ;;  %v13087_v32 = vld [vmem:[#allocation26_spill] sm:$0xff] }
 0x175   :  { %13064 = vst [vmem:[#allocation120_spill] sm:$0xff] %v7753_v43  ;;  %13065 = vst [vmem:[#allocation121_spill] sm:$0xff] %v7755_v12  ;;  %v13077_v53 = vmax.f32 %v13075_v41, %v13076_v48  ;;  %v13081_v39 = vmax.f32 %v13079_v16, %v13080_v37  ;;  %v13085_v8 = vmax.f32 %v13083_v3, %v13084_v9 }
 0x176   :  { %13066 = vst [vmem:[#allocation122_spill] sm:$0xff] %v7757_v49  ;;  %13067 = vst [vmem:[#allocation123_spill] sm:$0xff] %v7759_v51  ;;  %v7771_v2 = vmax.f32 %v13073_v22, %v7751_v47  ;;  %v1197_v18 = vmul.f32 %v636_v27, %v13059_v0  ;;  %v2205_v36 = vmul.f32 %v636_v27, %v13060_v50  ;;  %v13088_v22 = vld [vmem:[#allocation27_spill] sm:$0xff] }
 0x177   :  { %13068 = vst [vmem:[#allocation124_spill] sm:$0xff] %v7761_v34  ;;  %13069 = vst [vmem:[#allocation125_spill] sm:$0xff] %v7763_v54  ;;  %v7777_v62 = vmax.f32 %v13077_v53, %v7753_v43  ;;  %v7783_v42 = vmax.f32 %v13081_v39, %v7755_v12  ;;  %v7789_v29 = vmax.f32 %v13085_v8, %v7757_v49  ;;  %v13089_v39 = vld [vmem:[#allocation69_spill] sm:$0xff] }
 0x178   :  { %13070 = vst [vmem:[#allocation126_spill] sm:$0xff] %v7765_v35  ;;  %13074 = vst [vmem:[#allocation127_spill] sm:$0xff] %v7771_v2  ;;  %v3213_v15 = vmul.f32 %v636_v27, %v13061_v52  ;;  %v4221_v58 = vmul.f32 %v636_v27, %v13062_v17  ;;  %v1034_v57 = vmul.f32 %v359_v19, %v13087_v32  ;;  %v1215_v44 = vrot.slane %v1197_v18, 4 }
 0x179   :  { %13078 = vst [vmem:[#allocation128_spill] sm:$0xff] %v7777_v62  ;;  %13082 = vst [vmem:[#allocation129_spill] sm:$0xff] %v7783_v42  ;;  %v2042_v53 = vmul.f32 %v359_v19, %v13088_v22  ;;  %v3050_v8 = vmul.f32 %v13089_v39, %v359_v19  ;;  %v4058_v45 = vmul.f32 %v7541_v10, %v359_v19  ;;  %v2223_v11 = vrot.slane %v2205_v36, 4 }
 0x17a   :  { %13086 = vst [vmem:[#allocation130_spill] sm:$0xff] %v7789_v29  ;;  %v3231_v49 = vrot.slane %v3213_v15, 4  ;;  %v4239_v55 = vrot.slane %v4221_v58, 4  ;;  %v1077_v9 = vrot.slane %v1034_v57, 4  ;;  %v1216_v16 = vadd.f32 %v1215_v44, %v1197_v18 }
 0x17b   :  { %v2085_v3 = vrot.slane %v2042_v53, 4  ;;  %v3093_v12 = vrot.slane %v3050_v8, 4  ;;  %v4101_v37 = vrot.slane %v4058_v45, 4  ;;  %v2224_v43 = vadd.f32 %v2223_v11, %v2205_v36 }
 0x17c   :  { %v3232_v48 = vadd.f32 %v3231_v49, %v3213_v15  ;;  %v4240_v27 = vadd.f32 %v4239_v55, %v4221_v58  ;;  %v1078_v41 = vadd.f32 %v1077_v9, %v1034_v57  ;;  %v1217_v17 = vrot.slane %v1216_v16, 2 }
 0x17d   :  { %v2086_v47 = vadd.f32 %v2085_v3, %v2042_v53  ;;  %v3094_v5 = vadd.f32 %v3093_v12, %v3050_v8  ;;  %v4102_v59 = vadd.f32 %v4101_v37, %v4058_v45  ;;  %v2225_v52 = vrot.slane %v2224_v43, 2  ;;  %v13101_v53 = vld [vmem:[#allocation46_spill] sm:$0xff] }
 0x17e   :  { %v3233_v50 = vrot.slane %v3232_v48, 2  ;;  %v4241_v19 = vrot.slane %v4240_v27, 2  ;;  %v1079_v0 = vrot.slane %v1078_v41, 2  ;;  %v1218_v28 = vadd.f32 %v1217_v17, %v1216_v16 }
 0x17f   :  { %v2087_v35 = vrot.slane %v2086_v47, 2  ;;  %v3095_v40 = vrot.slane %v3094_v5, 2  ;;  %v4103_v54 = vrot.slane %v4102_v59, 2  ;;  %v2226_v34 = vadd.f32 %v2225_v52, %v2224_v43 }
 0x180   :  { %v3234_v25 = vadd.f32 %v3233_v50, %v3232_v48  ;;  %v4242_v51 = vadd.f32 %v4241_v19, %v4240_v27  ;;  %v1080_v44 = vadd.f32 %v1079_v0, %v1078_v41  ;;  %v1219_v9 = vrot.slane %v1218_v28, 1  ;;  %v640_v0 = vpop.f32.mrf.mxu1  ;;  %v13100_v48 = vld [vmem:[#allocation41_spill] sm:$0xff] }
 0x181   :  { %v2088_v11 = vadd.f32 %v2087_v35, %v2086_v47  ;;  %v3096_v49 = vadd.f32 %v3095_v40, %v3094_v5  ;;  %v4104_v55 = vadd.f32 %v4103_v54, %v4102_v59  ;;  %v2227_v3 = vrot.slane %v2226_v34, 1  ;;  %v361_v54 = vpop.f32.mrf.mxu0  ;;  %v13098_v35 = vld [vmem:[#allocation14_spill] sm:$0xff]  ;;  %v13099_v5 = vld [vmem:[#allocation15_spill] sm:$0xff] }
 0x182   :  { %v3235_v12 = vrot.slane %v3234_v25, 1  ;;  %v4243_v37 = vrot.slane %v4242_v51, 1  ;;  %v1081_v45 = vrot.slane %v1080_v44, 1  ;;  %v7807_v58 = vadd.f32 %v1219_v9, %v1218_v28 }
 0x183   :  { %v2089_v18 = vrot.slane %v2088_v11, 1  ;;  %v3097_v36 = vrot.slane %v3096_v49, 1  ;;  %v4105_v15 = vrot.slane %v4104_v55, 1  ;;  %v7809_v57 = vadd.f32 %v2227_v3, %v2226_v34 }
 0x184   :  { %13090 = vst [vmem:[#allocation131_spill] sm:$0xff] %v7807_v58  ;;  %v7811_v17 = vadd.f32 %v3235_v12, %v3234_v25  ;;  %v7813_v50 = vadd.f32 %v4243_v37, %v4242_v51  ;;  %v7815_v52 = vadd.f32 %v1081_v45, %v1080_v44  ;;  %v1142_v59 = vmul.f32 %v640_v0, %v13098_v35 }
 0x185   :  { %13091 = vst [vmem:[#allocation132_spill] sm:$0xff] %v7809_v57  ;;  %v7817_v40 = vadd.f32 %v2089_v18, %v2088_v11  ;;  %v7819_v47 = vadd.f32 %v3097_v36, %v3096_v49  ;;  %v7821_v43 = vadd.f32 %v4105_v15, %v4104_v55  ;;  %v2150_v41 = vmul.f32 %v640_v0, %v13099_v5 }
 0x186   :  { %13092 = vst [vmem:[#allocation133_spill] sm:$0xff] %v7811_v17  ;;  %13093 = vst [vmem:[#allocation134_spill] sm:$0xff] %v7813_v50  ;;  %v3158_v16 = vmul.f32 %v640_v0, %v13100_v48  ;;  %v4166_v8 = vmul.f32 %v640_v0, %v13101_v53  ;;  %v1090_v27 = vmul.f32 %v361_v54, %v13087_v32  ;;  %v1165_v49 = vrot.slane %v1142_v59, 4 }
 0x187   :  { %13094 = vst [vmem:[#allocation135_spill] sm:$0xff] %v7815_v52  ;;  %13095 = vst [vmem:[#allocation136_spill] sm:$0xff] %v7817_v40  ;;  %v2098_v19 = vmul.f32 %v361_v54, %v13088_v22  ;;  %v3106_v44 = vmul.f32 %v13089_v39, %v361_v54  ;;  %v4114_v11 = vmul.f32 %v7541_v10, %v361_v54  ;;  %v2173_v55 = vrot.slane %v2150_v41, 4 }
 0x188   :  { %13096 = vst [vmem:[#allocation137_spill] sm:$0xff] %v7819_v47  ;;  %13097 = vst [vmem:[#allocation138_spill] sm:$0xff] %v7821_v43  ;;  %v3181_v9 = vrot.slane %v3158_v16, 4  ;;  %v4189_v3 = vrot.slane %v4166_v8, 4  ;;  %v1133_v12 = vrot.slane %v1090_v27, 4  ;;  %v1166_v36 = vadd.f32 %v1165_v49, %v1142_v59  ;;  %v642_v49 = vpop.f32.mrf.mxu1 }
 0x189   :  { %v2141_v37 = vrot.slane %v2098_v19, 4  ;;  %v3149_v45 = vrot.slane %v3106_v44, 4  ;;  %v4157_v18 = vrot.slane %v4114_v11, 4  ;;  %v2174_v15 = vadd.f32 %v2173_v55, %v2150_v41 }
 0x18a   :  { %v3182_v51 = vadd.f32 %v3181_v9, %v3158_v16  ;;  %v4190_v0 = vadd.f32 %v4189_v3, %v4166_v8  ;;  %v1134_v25 = vadd.f32 %v1133_v12, %v1090_v27  ;;  %v1167_v29 = vrot.slane %v1166_v36, 2 }
 0x18b   :  { %v2142_v34 = vadd.f32 %v2141_v37, %v2098_v19  ;;  %v3150_v28 = vadd.f32 %v3149_v45, %v3106_v44  ;;  %v4158_v50 = vadd.f32 %v4157_v18, %v4114_v11  ;;  %v2175_v17 = vrot.slane %v2174_v15, 2 }
 0x18c   :  { %v3183_v42 = vrot.slane %v3182_v51, 2  ;;  %v4191_v54 = vrot.slane %v4190_v0, 2  ;;  %v1135_v57 = vrot.slane %v1134_v25, 2  ;;  %v1168_v10 = vadd.f32 %v1167_v29, %v1166_v36  ;;  %v13118_v36 = vld [vmem:[#allocation68_spill] sm:$0xff] }
 0x18d   :  { %v2143_v62 = vrot.slane %v2142_v34, 2  ;;  %v3151_v58 = vrot.slane %v3150_v28, 2  ;;  %v4159_v2 = vrot.slane %v4158_v50, 2  ;;  %v2176_v39 = vadd.f32 %v2175_v17, %v2174_v15  ;;  %v13110_v17 = vld [vmem:[#allocation71_spill] sm:$0xff]  ;;  %v13119_v15 = vld [vmem:[#allocation74_spill] sm:$0xff] }
 0x18e   :  { %v3184_v22 = vadd.f32 %v3183_v42, %v3182_v51  ;;  %v4192_v32 = vadd.f32 %v4191_v54, %v4190_v0  ;;  %v1136_v59 = vadd.f32 %v1135_v57, %v1134_v25  ;;  %v1169_v27 = vrot.slane %v1168_v10, 1  ;;  %v13116_v25 = vld [vmem:[#allocation73_spill] sm:$0xff] }
 0x18f   :  { %v2144_v41 = vadd.f32 %v2143_v62, %v2142_v34  ;;  %v3152_v16 = vadd.f32 %v3151_v58, %v3150_v28  ;;  %v4160_v8 = vadd.f32 %v4159_v2, %v4158_v50  ;;  %v2177_v19 = vrot.slane %v2176_v39, 1  ;;  %v13115_v34 = vld [vmem:[#allocation67_spill] sm:$0xff] }
 0x190   :  { %v3185_v44 = vrot.slane %v3184_v22, 1  ;;  %v4193_v11 = vrot.slane %v4192_v32, 1  ;;  %v1137_v55 = vrot.slane %v1136_v59, 1  ;;  %v7839_v37 = vadd.f32 %v1169_v27, %v1168_v10 }
 0x191   :  { %v2145_v9 = vrot.slane %v2144_v41, 1  ;;  %v3153_v3 = vrot.slane %v3152_v16, 1  ;;  %v4161_v12 = vrot.slane %v4160_v8, 1  ;;  %v7841_v45 = vadd.f32 %v2177_v19, %v2176_v39  ;;  %v13112_v39 = vld [vmem:[#allocation66_spill] sm:$0xff] }
 0x192   :  { %13102 = vst [vmem:[#allocation139_spill] sm:$0xff] %v7839_v37  ;;  %v7843_v29 = vadd.f32 %v3185_v44, %v3184_v22  ;;  %v7845_v42 = vadd.f32 %v4193_v11, %v4192_v32  ;;  %v7847_v62 = vadd.f32 %v1137_v55, %v1136_v59  ;;  %v13111_v50 = vmax.f32 %v7527_v6, %v13110_v17  ;;  %v13113_v22 = vld [vmem:[#allocation72_spill] sm:$0xff]  ;;  %v7879_v59 = vpop.f32.mrf.mxu0 }
 0x193   :  { %13103 = vst [vmem:[#allocation140_spill] sm:$0xff] %v7841_v45  ;;  %v7849_v2 = vadd.f32 %v2145_v9, %v2144_v41  ;;  %v7851_v58 = vadd.f32 %v3153_v3, %v3152_v16  ;;  %v7853_v57 = vadd.f32 %v4161_v12, %v4160_v8  ;;  %v13114_v28 = vmax.f32 %v13112_v39, %v13113_v22  ;;  %v646_v41 = vpop.f32.mrf.mxu1  ;;  %v13122_v3 = vld [vmem:[#allocation17_spill] sm:$0xff]  ;;  %v13125_v8 = vld [vmem:[#allocation52_spill] sm:$0xff] }
 0x194   :  { %13104 = vst [vmem:[#allocation141_spill] sm:$0xff] %v7843_v29  ;;  %13105 = vst [vmem:[#allocation142_spill] sm:$0xff] %v7845_v42  ;;  %v7859_v10 = vmax.f32 %v13111_v50, %v7839_v37  ;;  %v13117_v51 = vmax.f32 %v13115_v34, %v13116_v25  ;;  %v13120_v0 = vmax.f32 %v13118_v36, %v13119_v15  ;;  %v13123_v50 = vld [vmem:[#allocation18_spill] sm:$0xff]  ;;  %v7897_v36 = vpop.f32.mrf.mxu0 }
 0x195   :  { %13106 = vst [vmem:[#allocation143_spill] sm:$0xff] %v7847_v62  ;;  %13107 = vst [vmem:[#allocation144_spill] sm:$0xff] %v7849_v2  ;;  %v7865_v32 = vmax.f32 %v13114_v28, %v7841_v45  ;;  %v1198_v44 = vmul.f32 %v642_v49, %v13098_v35  ;;  %v2206_v11 = vmul.f32 %v642_v49, %v13099_v5 }
 0x196   :  { %13108 = vst [vmem:[#allocation145_spill] sm:$0xff] %v7851_v58  ;;  %13109 = vst [vmem:[#allocation146_spill] sm:$0xff] %v7853_v57  ;;  %v7871_v18 = vmax.f32 %v13117_v51, %v7843_v29  ;;  %v7877_v54 = vmax.f32 %v13120_v0, %v7845_v42  ;;  %v3214_v55 = vmul.f32 %v642_v49, %v13100_v48  ;;  %v13124_v51 = vld [vmem:[#allocation51_spill] sm:$0xff]  ;;  %v7899_v57 = vpop.f32.mrf.mxu0 }
 0x197   :  { %13121 = vst [vmem:[#allocation147_spill] sm:$0xff] %v7879_v59  ;;  %v4222_v9 = vmul.f32 %v642_v49, %v13101_v53  ;;  %v1143_v12 = vmul.f32 %v646_v41, %v13122_v3  ;;  %v2151_v28 = vmul.f32 %v646_v41, %v13123_v50  ;;  %v3159_v0 = vmul.f32 %v646_v41, %v13124_v51 }
 0x198   :  { %v4167_v16 = vmul.f32 %v646_v41, %v13125_v8  ;;  %v1221_v27 = vrot.slane %v1198_v44, 4  ;;  %v2229_v42 = vrot.slane %v2206_v11, 4  ;;  %v3237_v15 = vrot.slane %v3214_v55, 4  ;;  %13126 = vst [vmem:[#allocation148_spill] sm:$0xff] %v7897_v36  ;;  %13127 = vst [vmem:[#allocation149_spill] sm:$0xff] %v7899_v57 }
 0x199   :  { %v4245_v19 = vrot.slane %v4222_v9, 4  ;;  %v1171_v29 = vrot.slane %v1143_v12, 4  ;;  %v2179_v25 = vrot.slane %v2151_v28, 4  ;;  %v3187_v34 = vrot.slane %v3159_v0, 4 }
 0x19a   :  { %v4195_v45 = vrot.slane %v4167_v16, 4  ;;  %v1222_v22 = vadd.f32 %v1221_v27, %v1198_v44  ;;  %v2230_v49 = vadd.f32 %v2229_v42, %v2206_v11  ;;  %v3238_v39 = vadd.f32 %v3237_v15, %v3214_v55  ;;  %v648_v11 = vpop.f32.mrf.mxu1  ;;  %v7901_v55 = vpop.f32.mrf.mxu0 }
 0x19b   :  { %v4246_v37 = vadd.f32 %v4245_v19, %v4222_v9  ;;  %v1172_v17 = vadd.f32 %v1171_v29, %v1143_v12  ;;  %v2180_v6 = vadd.f32 %v2179_v25, %v2151_v28  ;;  %v3188_v59 = vadd.f32 %v3187_v34, %v3159_v0  ;;  %13128 = vst [vmem:[#allocation150_spill] sm:$0xff] %v7901_v55 }
 0x19c   :  { %v4196_v53 = vadd.f32 %v4195_v45, %v4167_v16  ;;  %v1223_v48 = vrot.slane %v1222_v22, 2  ;;  %v2231_v41 = vrot.slane %v2230_v49, 2  ;;  %v3239_v5 = vrot.slane %v3238_v39, 2 }
 0x19d   :  { %v4247_v35 = vrot.slane %v4246_v37, 2  ;;  %v1173_v43 = vrot.slane %v1172_v17, 2  ;;  %v2181_v36 = vrot.slane %v2180_v6, 2  ;;  %v3189_v58 = vrot.slane %v3188_v59, 2 }
 0x19e   :  { %v4197_v47 = vrot.slane %v4196_v53, 2  ;;  %v1224_v2 = vadd.f32 %v1223_v48, %v1222_v22  ;;  %v2232_v40 = vadd.f32 %v2231_v41, %v2230_v49  ;;  %v3240_v27 = vadd.f32 %v3239_v5, %v3238_v39  ;;  %v7927_v39 = vpop.f32.mrf.mxu0 }
 0x19f   :  { %v4248_v42 = vadd.f32 %v4247_v35, %v4246_v37  ;;  %v1174_v15 = vadd.f32 %v1173_v43, %v1172_v17  ;;  %v2182_v19 = vadd.f32 %v2181_v36, %v2180_v6  ;;  %v3190_v29 = vadd.f32 %v3189_v58, %v3188_v59  ;;  %v652_v17 = vpop.f32.mrf.mxu1  ;;  %13137 = vst [vmem:[#allocation159_spill] sm:$0xff] %v7927_v39 }
 0x1a0   :  { %v4198_v25 = vadd.f32 %v4197_v47, %v4196_v53  ;;  %v1225_v34 = vrot.slane %v1224_v2, 1  ;;  %v2233_v45 = vrot.slane %v2232_v40, 1  ;;  %v3241_v16 = vrot.slane %v3240_v27, 1 }
 0x1a1   :  { %v4249_v44 = vrot.slane %v4248_v42, 1  ;;  %v1175_v9 = vrot.slane %v1174_v15, 1  ;;  %v2183_v12 = vrot.slane %v2182_v19, 1  ;;  %v3191_v28 = vrot.slane %v3190_v29, 1 }
 0x1a2   :  { %v4199_v0 = vrot.slane %v4198_v25, 1  ;;  %v7903_v57 = vadd.f32 %v1225_v34, %v1224_v2  ;;  %v7905_v48 = vadd.f32 %v2233_v45, %v2232_v40  ;;  %v7907_v35 = vadd.f32 %v3241_v16, %v3240_v27 }
 0x1a3   :  { %v7909_v6 = vadd.f32 %v4249_v44, %v4248_v42  ;;  %v7911_v47 = vadd.f32 %v1175_v9, %v1174_v15  ;;  %v7913_v43 = vadd.f32 %v2183_v12, %v2182_v19  ;;  %v7915_v5 = vadd.f32 %v3191_v28, %v3190_v29 }
 0x1a4   :  { %13129 = vst [vmem:[#allocation151_spill] sm:$0xff] %v7903_v57  ;;  %13130 = vst [vmem:[#allocation152_spill] sm:$0xff] %v7905_v48  ;;  %v7917_v53 = vadd.f32 %v4199_v0, %v4198_v25  ;;  %v13138_v22 = vmax.f32 %v7563_v63, %v7607_v14  ;;  %v13139_v59 = vmax.f32 %v7565_v46, %v7609_v24 }
 0x1a5   :  { %13131 = vst [vmem:[#allocation153_spill] sm:$0xff] %v7907_v35  ;;  %13132 = vst [vmem:[#allocation154_spill] sm:$0xff] %v7909_v6  ;;  %v13140_v41 = vmax.f32 %v7567_v30, %v7611_v23  ;;  %v13141_v42 = vmax.f32 %v7569_v38, %v7613_v13  ;;  %v1199_v19 = vmul.f32 %v648_v11, %v13122_v3 }
 0x1a6   :  { %13133 = vst [vmem:[#allocation155_spill] sm:$0xff] %v7911_v47  ;;  %13134 = vst [vmem:[#allocation156_spill] sm:$0xff] %v7913_v43  ;;  %v7933_v36 = vmax.f32 %v13138_v22, %v7911_v47  ;;  %v7939_v49 = vmax.f32 %v13139_v59, %v7913_v43  ;;  %v2207_v29 = vmul.f32 %v648_v11, %v13123_v50  ;;  %v7961_v59 = vpop.f32.mrf.mxu0 }
 0x1a7   :  { %13135 = vst [vmem:[#allocation157_spill] sm:$0xff] %v7915_v5  ;;  %13136 = vst [vmem:[#allocation158_spill] sm:$0xff] %v7917_v53  ;;  %v7945_v27 = vmax.f32 %v13140_v41, %v7915_v5  ;;  %v7951_v15 = vmax.f32 %v13141_v42, %v7917_v53  ;;  %v3215_v25 = vmul.f32 %v648_v11, %v13124_v51  ;;  %v1227_v12 = vrot.slane %v1199_v19, 4 }
 0x1a8   :  { %v4223_v34 = vmul.f32 %v648_v11, %v13125_v8  ;;  %v1144_v45 = vmul.f32 %v652_v17, %v7381_v20  ;;  %v2152_v16 = vmul.f32 %v652_v17, %v7383_v21  ;;  %v3160_v44 = vmul.f32 %v652_v17, %v7487_v60  ;;  %13143 = vst [vmem:[#allocation161_spill] sm:$0xff] %v7961_v59  ;;  %v7963_v46 = vpop.f32.mrf.mxu0 }
 0x1a9   :  { %13142 = vst [vmem:[#allocation160_spill] sm:$0xff] %v7951_v15  ;;  %v4168_v9 = vmul.f32 %v652_v17, %v7501_v26  ;;  %v2235_v28 = vrot.slane %v2207_v29, 4  ;;  %v3243_v0 = vrot.slane %v3215_v25, 4  ;;  %v1228_v2 = vadd.f32 %v1227_v12, %v1199_v19  ;;  %13144 = vst [vmem:[#allocation162_spill] sm:$0xff] %v7963_v46  ;;  %v654_v12 = vpop.f32.mrf.mxu1 }
 0x1aa   :  { %v4251_v22 = vrot.slane %v4223_v34, 4  ;;  %v1177_v41 = vrot.slane %v1144_v45, 4  ;;  %v2185_v42 = vrot.slane %v2152_v16, 4  ;;  %v3193_v58 = vrot.slane %v3160_v44, 4 }
 0x1ab   :  { %v4201_v40 = vrot.slane %v4168_v9, 4  ;;  %v2236_v11 = vadd.f32 %v2235_v28, %v2207_v29  ;;  %v3244_v37 = vadd.f32 %v3243_v0, %v3215_v25  ;;  %v1229_v30 = vrot.slane %v1228_v2, 2  ;;  %v7965_v28 = vpop.f32.mrf.mxu0 }
 0x1ac   :  { %v4252_v53 = vadd.f32 %v4251_v22, %v4223_v34  ;;  %v1178_v13 = vadd.f32 %v1177_v41, %v1144_v45  ;;  %v2186_v38 = vadd.f32 %v2185_v42, %v2152_v16  ;;  %v3194_v5 = vadd.f32 %v3193_v58, %v3160_v44  ;;  %13145 = vst [vmem:[#allocation163_spill] sm:$0xff] %v7965_v28 }
 0x1ad   :  { %v4202_v23 = vadd.f32 %v4201_v40, %v4168_v9  ;;  %v2237_v17 = vrot.slane %v2236_v11, 2  ;;  %v3245_v43 = vrot.slane %v3244_v37, 2  ;;  %v1230_v39 = vadd.f32 %v1229_v30, %v1228_v2 }
 0x1ae   :  { %v4253_v24 = vrot.slane %v4252_v53, 2  ;;  %v1179_v47 = vrot.slane %v1178_v13, 2  ;;  %v2187_v14 = vrot.slane %v2186_v38, 2  ;;  %v3195_v63 = vrot.slane %v3194_v5, 2 }
 0x1af   :  { %v4203_v59 = vrot.slane %v4202_v23, 2  ;;  %v2238_v55 = vadd.f32 %v2237_v17, %v2236_v11  ;;  %v3246_v19 = vadd.f32 %v3245_v43, %v3244_v37  ;;  %v1231_v58 = vrot.slane %v1230_v39, 1  ;;  %v7991_v37 = vpop.f32.mrf.mxu0 }
 0x1b0   :  { %v4254_v29 = vadd.f32 %v4253_v24, %v4252_v53  ;;  %v1180_v25 = vadd.f32 %v1179_v47, %v1178_v13  ;;  %v2188_v34 = vadd.f32 %v2187_v14, %v2186_v38  ;;  %v3196_v45 = vadd.f32 %v3195_v63, %v3194_v5  ;;  %v658_v53 = vpop.f32.mrf.mxu1  ;;  %13154 = vst [vmem:[#allocation172_spill] sm:$0xff] %v7991_v37 }
 0x1b1   :  { %v4204_v16 = vadd.f32 %v4203_v59, %v4202_v23  ;;  %v2239_v40 = vrot.slane %v2238_v55, 1  ;;  %v3247_v44 = vrot.slane %v3246_v19, 1  ;;  %v7967_v46 = vadd.f32 %v1231_v58, %v1230_v39  ;;  %v8025_v47 = vpop.f32.mrf.mxu0 }
 0x1b2   :  { %v4255_v9 = vrot.slane %v4254_v29, 1  ;;  %v1181_v0 = vrot.slane %v1180_v25, 1  ;;  %v2189_v22 = vrot.slane %v2188_v34, 1  ;;  %v3197_v41 = vrot.slane %v3196_v45, 1  ;;  %13169 = vst [vmem:[#allocation177_spill] sm:$0xff] %v8025_v47 }
 0x1b3   :  { %v4205_v42 = vrot.slane %v4204_v16, 1  ;;  %13146 = vst [vmem:[#allocation164_spill] sm:$0xff] %v7967_v46  ;;  %v7969_v30 = vadd.f32 %v2239_v40, %v2238_v55  ;;  %v7971_v24 = vadd.f32 %v3247_v44, %v3246_v19  ;;  %v13155_v2 = vmax.f32 %v7647_v56, %v7671_v31 }
 0x1b4   :  { %v7973_v38 = vadd.f32 %v4255_v9, %v4254_v29  ;;  %v7975_v63 = vadd.f32 %v1181_v0, %v1180_v25  ;;  %v7977_v14 = vadd.f32 %v2189_v22, %v2188_v34  ;;  %v7979_v23 = vadd.f32 %v3197_v41, %v3196_v45  ;;  %v13161_v29 = vld [vmem:[#allocation98_spill] sm:$0xff]  ;;  %v13165_v9 = vld [vmem:[#allocation23_spill] sm:$0xff]  ;;  %v13166_v22 = vld [vmem:[#allocation24_spill] sm:$0xff] }
 0x1b5   :  { %13147 = vst [vmem:[#allocation165_spill] sm:$0xff] %v7969_v30  ;;  %13148 = vst [vmem:[#allocation166_spill] sm:$0xff] %v7971_v24  ;;  %v7981_v13 = vadd.f32 %v4205_v42, %v4204_v16  ;;  %v13157_v59 = vmax.f32 %v7649_v1, %v7673_v61  ;;  %v13159_v17 = vmax.f32 %v7651_v4, %v7675_v33  ;;  %v13162_v25 = vld [vmem:[#allocation106_spill] sm:$0xff]  ;;  %v13167_v42 = vld [vmem:[#allocation63_spill] sm:$0xff] }
 0x1b6   :  { %13149 = vst [vmem:[#allocation167_spill] sm:$0xff] %v7973_v38  ;;  %13150 = vst [vmem:[#allocation168_spill] sm:$0xff] %v7975_v63  ;;  %v7997_v39 = vmax.f32 %v13155_v2, %v7975_v63  ;;  %v13163_v34 = vmax.f32 %v13161_v29, %v13162_v25  ;;  %v1200_v16 = vmul.f32 %v654_v12, %v7381_v20 }
 0x1b7   :  { %13151 = vst [vmem:[#allocation169_spill] sm:$0xff] %v7977_v14  ;;  %13152 = vst [vmem:[#allocation170_spill] sm:$0xff] %v7979_v23  ;;  %v8003_v11 = vmax.f32 %v13157_v59, %v7977_v14  ;;  %v8009_v19 = vmax.f32 %v13159_v17, %v7979_v23  ;;  %v2208_v58 = vmul.f32 %v654_v12, %v7383_v21  ;;  %v13168_v59 = vld [vmem:[#allocation64_spill] sm:$0xff] }
 0x1b8   :  { %13153 = vst [vmem:[#allocation171_spill] sm:$0xff] %v7981_v13  ;;  %13156 = vst [vmem:[#allocation173_spill] sm:$0xff] %v7997_v39  ;;  %v8015_v45 = vmax.f32 %v13163_v34, %v7981_v13  ;;  %v3216_v40 = vmul.f32 %v654_v12, %v7487_v60  ;;  %v4224_v44 = vmul.f32 %v654_v12, %v7501_v26  ;;  %v1233_v5 = vrot.slane %v1200_v16, 4  ;;  %v8027_v26 = vpop.f32.mrf.mxu0 }
 0x1b9   :  { %13158 = vst [vmem:[#allocation174_spill] sm:$0xff] %v8003_v11  ;;  %13160 = vst [vmem:[#allocation175_spill] sm:$0xff] %v8009_v19  ;;  %v1145_v0 = vmul.f32 %v658_v53, %v13165_v9  ;;  %v2153_v41 = vmul.f32 %v658_v53, %v13166_v22  ;;  %v3161_v2 = vmul.f32 %v658_v53, %v13167_v42  ;;  %v2241_v55 = vrot.slane %v2208_v58, 4 }
 0x1ba   :  { %13164 = vst [vmem:[#allocation176_spill] sm:$0xff] %v8015_v45  ;;  %v4169_v17 = vmul.f32 %v658_v53, %v13168_v59  ;;  %v3249_v34 = vrot.slane %v3216_v40, 4  ;;  %v4257_v43 = vrot.slane %v4224_v44, 4  ;;  %v1234_v33 = vadd.f32 %v1233_v5, %v1200_v16  ;;  %13170 = vst [vmem:[#allocation178_spill] sm:$0xff] %v8027_v26 }
 0x1bb   :  { %v1183_v13 = vrot.slane %v1145_v0, 4  ;;  %v2191_v25 = vrot.slane %v2153_v41, 4  ;;  %v3199_v29 = vrot.slane %v3161_v2, 4  ;;  %v2242_v12 = vadd.f32 %v2241_v55, %v2208_v58 }
 0x1bc   :  { %v4207_v23 = vrot.slane %v4169_v17, 4  ;;  %v3250_v4 = vadd.f32 %v3249_v34, %v3216_v40  ;;  %v4258_v14 = vadd.f32 %v4257_v43, %v4224_v44  ;;  %v1235_v56 = vrot.slane %v1234_v33, 2  ;;  %v660_v44 = vpop.f32.mrf.mxu1 }
 0x1bd   :  { %v1184_v61 = vadd.f32 %v1183_v13, %v1145_v0  ;;  %v2192_v1 = vadd.f32 %v2191_v25, %v2153_v41  ;;  %v3200_v63 = vadd.f32 %v3199_v29, %v3161_v2  ;;  %v2243_v53 = vrot.slane %v2242_v12, 2  ;;  %v8029_v0 = vpop.f32.mrf.mxu0 }
 0x1be   :  { %v4208_v31 = vadd.f32 %v4207_v23, %v4169_v17  ;;  %v3251_v37 = vrot.slane %v3250_v4, 2  ;;  %v4259_v28 = vrot.slane %v4258_v14, 2  ;;  %v1236_v38 = vadd.f32 %v1235_v56, %v1234_v33  ;;  %13171 = vst [vmem:[#allocation179_spill] sm:$0xff] %v8029_v0 }
 0x1bf   :  { %v1185_v60 = vrot.slane %v1184_v61, 2  ;;  %v2193_v47 = vrot.slane %v2192_v1, 2  ;;  %v3201_v21 = vrot.slane %v3200_v63, 2  ;;  %v2244_v15 = vadd.f32 %v2243_v53, %v2242_v12  ;;  %v13184_v12 = vld [vmem:[#allocation116_spill] sm:$0xff] }
 0x1c0   :  { %v4209_v20 = vrot.slane %v4208_v31, 2  ;;  %v3252_v5 = vadd.f32 %v3251_v37, %v3250_v4  ;;  %v4260_v55 = vadd.f32 %v4259_v28, %v4258_v14  ;;  %v1237_v29 = vrot.slane %v1236_v38, 1  ;;  %v13181_v14 = vld [vmem:[#allocation123_spill] sm:$0xff]  ;;  %v13185_v53 = vld [vmem:[#allocation124_spill] sm:$0xff] }
 0x1c1   :  { %v1186_v16 = vadd.f32 %v1185_v60, %v1184_v61  ;;  %v2194_v43 = vadd.f32 %v2193_v47, %v2192_v1  ;;  %v3202_v13 = vadd.f32 %v3201_v21, %v3200_v63  ;;  %v2245_v23 = vrot.slane %v2244_v15, 1  ;;  %v8055_v63 = vpop.f32.mrf.mxu0  ;;  %v13197_v28 = vld [vmem:[#allocation27_spill] sm:$0xff]  ;;  %v13199_v61 = vld [vmem:[#allocation70_spill] sm:$0xff] }
 0x1c2   :  { %v4210_v25 = vadd.f32 %v4209_v20, %v4208_v31  ;;  %v3253_v58 = vrot.slane %v3252_v5, 1  ;;  %v4261_v40 = vrot.slane %v4260_v55, 1  ;;  %v8031_v26 = vadd.f32 %v1237_v29, %v1236_v38  ;;  %v664_v38 = vpop.f32.mrf.mxu1  ;;  %13180 = vst [vmem:[#allocation188_spill] sm:$0xff] %v8055_v63  ;;  %v13192_v29 = vld [vmem:[#allocation118_spill] sm:$0xff] }
 0x1c3   :  { %v1187_v41 = vrot.slane %v1186_v16, 1  ;;  %v2195_v2 = vrot.slane %v2194_v43, 1  ;;  %v3203_v17 = vrot.slane %v3202_v13, 1  ;;  %v8033_v56 = vadd.f32 %v2245_v23, %v2244_v15  ;;  %v13193_v23 = vld [vmem:[#allocation126_spill] sm:$0xff] }
 0x1c4   :  { %v4211_v34 = vrot.slane %v4210_v25, 1  ;;  %13172 = vst [vmem:[#allocation180_spill] sm:$0xff] %v8031_v26  ;;  %v8035_v4 = vadd.f32 %v3253_v58, %v3252_v5  ;;  %v8037_v60 = vadd.f32 %v4261_v40, %v4260_v55  ;;  %v13182_v47 = vmax.f32 %v7727_v7, %v13181_v14 }
 0x1c5   :  { %13173 = vst [vmem:[#allocation181_spill] sm:$0xff] %v8033_v56  ;;  %v8039_v20 = vadd.f32 %v1187_v41, %v1186_v16  ;;  %v8041_v21 = vadd.f32 %v2195_v2, %v2194_v43  ;;  %v8043_v1 = vadd.f32 %v3203_v17, %v3202_v13  ;;  %v13186_v5 = vmax.f32 %v13184_v12, %v13185_v53  ;;  %v13188_v16 = vld [vmem:[#allocation117_spill] sm:$0xff] }
 0x1c6   :  { %13174 = vst [vmem:[#allocation182_spill] sm:$0xff] %v8035_v4  ;;  %13175 = vst [vmem:[#allocation183_spill] sm:$0xff] %v8037_v60  ;;  %v8045_v31 = vadd.f32 %v4211_v34, %v4210_v25  ;;  %v13189_v43 = vld [vmem:[#allocation125_spill] sm:$0xff]  ;;  %v13194_v58 = vmax.f32 %v13192_v29, %v13193_v23  ;;  %v1201_v41 = vmul.f32 %v660_v44, %v13165_v9  ;;  %v8089_v29 = vpop.f32.mrf.mxu0 }
 0x1c7   :  { %13176 = vst [vmem:[#allocation184_spill] sm:$0xff] %v8039_v20  ;;  %13177 = vst [vmem:[#allocation185_spill] sm:$0xff] %v8041_v21  ;;  %v8061_v37 = vmax.f32 %v13182_v47, %v8039_v20  ;;  %v8067_v55 = vmax.f32 %v13186_v5, %v8041_v21  ;;  %v13190_v13 = vmax.f32 %v13188_v16, %v13189_v43  ;;  %v13196_v47 = vld [vmem:[#allocation26_spill] sm:$0xff] }
 0x1c8   :  { %13178 = vst [vmem:[#allocation186_spill] sm:$0xff] %v8043_v1  ;;  %13179 = vst [vmem:[#allocation187_spill] sm:$0xff] %v8045_v31  ;;  %v8079_v40 = vmax.f32 %v13194_v58, %v8045_v31  ;;  %v2209_v2 = vmul.f32 %v660_v44, %v13166_v22  ;;  %v3217_v17 = vmul.f32 %v660_v44, %v13167_v42  ;;  %v8091_v45 = vpop.f32.mrf.mxu0 }
 0x1c9   :  { %13183 = vst [vmem:[#allocation189_spill] sm:$0xff] %v8061_v37  ;;  %13187 = vst [vmem:[#allocation190_spill] sm:$0xff] %v8067_v55  ;;  %v8073_v25 = vmax.f32 %v13190_v13, %v8043_v1  ;;  %v4225_v34 = vmul.f32 %v660_v44, %v13168_v59  ;;  %v1146_v5 = vmul.f32 %v664_v38, %v13196_v47  ;;  %v13198_v13 = vld [vmem:[#allocation69_spill] sm:$0xff]  ;;  %v1239_v1 = vrot.slane %v1201_v41, 4 }
 0x1ca   :  { %13195 = vst [vmem:[#allocation192_spill] sm:$0xff] %v8079_v40  ;;  %v2154_v15 = vmul.f32 %v664_v38, %v13197_v28  ;;  %v3162_v33 = vmul.f32 %v664_v38, %v13198_v13  ;;  %v4170_v63 = vmul.f32 %v664_v38, %v13199_v61  ;;  %v2247_v23 = vrot.slane %v2209_v2, 4  ;;  %13200 = vst [vmem:[#allocation193_spill] sm:$0xff] %v8089_v29 }
 0x1cb   :  { %13191 = vst [vmem:[#allocation191_spill] sm:$0xff] %v8073_v25  ;;  %v3255_v58 = vrot.slane %v3217_v17, 4  ;;  %v4263_v31 = vrot.slane %v4225_v34, 4  ;;  %v1189_v43 = vrot.slane %v1146_v5, 4  ;;  %v1240_v12 = vadd.f32 %v1239_v1, %v1201_v41  ;;  %13201 = vst [vmem:[#allocation194_spill] sm:$0xff] %v8091_v45 }
 0x1cc   :  { %v2197_v16 = vrot.slane %v2154_v15, 4  ;;  %v3205_v21 = vrot.slane %v3162_v33, 4  ;;  %v4213_v53 = vrot.slane %v4170_v63, 4  ;;  %v2248_v44 = vadd.f32 %v2247_v23, %v2209_v2 }
 0x1cd   :  { %v3256_v20 = vadd.f32 %v3255_v58, %v3217_v17  ;;  %v4264_v14 = vadd.f32 %v4263_v31, %v4225_v34  ;;  %v1190_v7 = vadd.f32 %v1189_v43, %v1146_v5  ;;  %v1241_v22 = vrot.slane %v1240_v12, 2 }
 0x1ce   :  { %v2198_v0 = vadd.f32 %v2197_v16, %v2154_v15  ;;  %v3206_v59 = vadd.f32 %v3205_v21, %v3162_v33  ;;  %v4214_v42 = vadd.f32 %v4213_v53, %v4170_v63  ;;  %v2249_v38 = vrot.slane %v2248_v44, 2  ;;  %v8093_v16 = vpop.f32.mrf.mxu0 }
 0x1cf   :  { %v3257_v9 = vrot.slane %v3256_v20, 2  ;;  %v4265_v60 = vrot.slane %v4264_v14, 2  ;;  %v1191_v4 = vrot.slane %v1190_v7, 2  ;;  %v1242_v11 = vadd.f32 %v1241_v22, %v1240_v12  ;;  %13202 = vst [vmem:[#allocation195_spill] sm:$0xff] %v8093_v16 }
 0x1d0   :  { %v2199_v29 = vrot.slane %v2198_v0, 2  ;;  %v3207_v19 = vrot.slane %v3206_v59, 2  ;;  %v4215_v56 = vrot.slane %v4214_v42, 2  ;;  %v2250_v26 = vadd.f32 %v2249_v38, %v2248_v44  ;;  %v13214_v44 = vld [vmem:[#allocation144_spill] sm:$0xff] }
 0x1d1   :  { %v3258_v1 = vadd.f32 %v3257_v9, %v3256_v20  ;;  %v4266_v23 = vadd.f32 %v4265_v60, %v4264_v14  ;;  %v1192_v41 = vadd.f32 %v1191_v4, %v1190_v7  ;;  %v1243_v21 = vrot.slane %v1242_v11, 1  ;;  %v413_v20 = vpop.f32.mrf.mxu0 }
 0x1d2   :  { %v2200_v31 = vadd.f32 %v2199_v29, %v2198_v0  ;;  %v3208_v43 = vadd.f32 %v3207_v19, %v3206_v59  ;;  %v4216_v15 = vadd.f32 %v4215_v56, %v4214_v42  ;;  %v2251_v33 = vrot.slane %v2250_v26, 1  ;;  %v666_v56 = vpop.f32.mrf.mxu1  ;;  %v13213_v29 = vld [vmem:[#allocation136_spill] sm:$0xff] }
 0x1d3   :  { %v3259_v63 = vrot.slane %v3258_v1, 1  ;;  %v4267_v53 = vrot.slane %v4266_v23, 1  ;;  %v1193_v2 = vrot.slane %v1192_v41, 1  ;;  %v8095_v58 = vadd.f32 %v1243_v21, %v1242_v11  ;;  %v13222_v21 = vld [vmem:[#allocation146_spill] sm:$0xff] }
 0x1d4   :  { %v2201_v17 = vrot.slane %v2200_v31, 1  ;;  %v3209_v34 = vrot.slane %v3208_v43, 1  ;;  %v4217_v5 = vrot.slane %v4216_v15, 1  ;;  %v8097_v22 = vadd.f32 %v2251_v33, %v2250_v26  ;;  %v13228_v26 = vld [vmem:[#allocation28_spill] sm:$0xff] }
 0x1d5   :  { %13203 = vst [vmem:[#allocation196_spill] sm:$0xff] %v8095_v58  ;;  %v8099_v9 = vadd.f32 %v3259_v63, %v3258_v1  ;;  %v8101_v7 = vadd.f32 %v4267_v53, %v4266_v23  ;;  %v8103_v19 = vadd.f32 %v1193_v2, %v1192_v41  ;;  %v13211_v14 = vmax.f32 %v7815_v52, %v7847_v62  ;;  %v13217_v23 = vld [vmem:[#allocation137_spill] sm:$0xff] }
 0x1d6   :  { %13204 = vst [vmem:[#allocation197_spill] sm:$0xff] %v8097_v22  ;;  %v8105_v42 = vadd.f32 %v2201_v17, %v2200_v31  ;;  %v8107_v59 = vadd.f32 %v3209_v34, %v3208_v43  ;;  %v8109_v0 = vadd.f32 %v4217_v5, %v4216_v15  ;;  %v13215_v38 = vmax.f32 %v13213_v29, %v13214_v44  ;;  %v13218_v41 = vld [vmem:[#allocation145_spill] sm:$0xff]  ;;  %v13221_v15 = vld [vmem:[#allocation138_spill] sm:$0xff]  ;;  %v13225_v5 = vld [vmem:[#allocation3_spill] sm:$0xff] }
 0x1d7   :  { %13205 = vst [vmem:[#allocation198_spill] sm:$0xff] %v8099_v9  ;;  %13206 = vst [vmem:[#allocation199_spill] sm:$0xff] %v8101_v7  ;;  %v8123_v12 = vmax.f32 %v13211_v14, %v8103_v19  ;;  %v13219_v31 = vmax.f32 %v13217_v23, %v13218_v41  ;;  %v13223_v33 = vmax.f32 %v13221_v15, %v13222_v21 }
 0x1d8   :  { %13207 = vst [vmem:[#allocation200_spill] sm:$0xff] %v8103_v19  ;;  %13208 = vst [vmem:[#allocation201_spill] sm:$0xff] %v8105_v42  ;;  %v8129_v1 = vmax.f32 %v13215_v38, %v8105_v42  ;;  %v1202_v53 = vmul.f32 %v666_v56, %v13196_v47  ;;  %v2210_v2 = vmul.f32 %v666_v56, %v13197_v28  ;;  %v13226_v38 = vld [vmem:[#allocation5_spill] sm:$0xff] }
 0x1d9   :  { %13209 = vst [vmem:[#allocation202_spill] sm:$0xff] %v8107_v59  ;;  %13210 = vst [vmem:[#allocation203_spill] sm:$0xff] %v8109_v0  ;;  %v8135_v43 = vmax.f32 %v13219_v31, %v8107_v59  ;;  %v8141_v63 = vmax.f32 %v13223_v33, %v8109_v0  ;;  %v3218_v17 = vmul.f32 %v666_v56, %v13198_v13  ;;  %v13227_v31 = vld [vmem:[#allocation25_spill] sm:$0xff] }
 0x1da   :  { %13212 = vst [vmem:[#allocation204_spill] sm:$0xff] %v8123_v12  ;;  %13216 = vst [vmem:[#allocation205_spill] sm:$0xff] %v8129_v1  ;;  %v4226_v34 = vmul.f32 %v666_v56, %v13199_v61  ;;  %v1251_v14 = vmul.f32 %v413_v20, %v13225_v5  ;;  %v2259_v60 = vmul.f32 %v413_v20, %v13226_v38  ;;  %v1245_v16 = vrot.slane %v1202_v53, 4 }
 0x1db   :  { %13220 = vst [vmem:[#allocation206_spill] sm:$0xff] %v8135_v43  ;;  %13224 = vst [vmem:[#allocation207_spill] sm:$0xff] %v8141_v63  ;;  %v3267_v11 = vmul.f32 %v13227_v31, %v413_v20  ;;  %v4275_v4 = vmul.f32 %v13228_v26, %v413_v20  ;;  %v2253_v21 = vrot.slane %v2210_v2, 4  ;;  %v3261_v33 = vrot.slane %v3218_v17, 4 }
 0x1dc   :  { %v4269_v0 = vrot.slane %v4226_v34, 4  ;;  %v1259_v15 = vrot.slane %v1251_v14, 4  ;;  %v2267_v45 = vrot.slane %v2259_v60, 4  ;;  %v1246_v23 = vadd.f32 %v1245_v16, %v1202_v53 }
 0x1dd   :  { %v3275_v59 = vrot.slane %v3267_v11, 4  ;;  %v4283_v41 = vrot.slane %v4275_v4, 4  ;;  %v2254_v42 = vadd.f32 %v2253_v21, %v2210_v2  ;;  %v3262_v44 = vadd.f32 %v3261_v33, %v3218_v17 }
 0x1de   :  { %v4270_v56 = vadd.f32 %v4269_v0, %v4226_v34  ;;  %v1260_v29 = vadd.f32 %v1259_v15, %v1251_v14  ;;  %v2268_v19 = vadd.f32 %v2267_v45, %v2259_v60  ;;  %v1247_v61 = vrot.slane %v1246_v23, 2 }
 0x1df   :  { %v3276_v62 = vadd.f32 %v3275_v59, %v3267_v11  ;;  %v4284_v52 = vadd.f32 %v4283_v41, %v4275_v4  ;;  %v2255_v13 = vrot.slane %v2254_v42, 2  ;;  %v3263_v28 = vrot.slane %v3262_v44, 2  ;;  %v415_v11 = vpop.f32.mrf.mxu0 }
 0x1e0   :  { %v4271_v20 = vrot.slane %v4270_v56, 2  ;;  %v1261_v47 = vrot.slane %v1260_v29, 2  ;;  %v2269_v7 = vrot.slane %v2268_v19, 2  ;;  %v1248_v25 = vadd.f32 %v1247_v61, %v1246_v23  ;;  %v13243_v23 = vld [vmem:[#allocation92_spill] sm:$0xff] }
 0x1e1   :  { %v3277_v40 = vrot.slane %v3276_v62, 2  ;;  %v4285_v9 = vrot.slane %v4284_v52, 2  ;;  %v2256_v22 = vadd.f32 %v2255_v13, %v2254_v42  ;;  %v3264_v55 = vadd.f32 %v3263_v28, %v3262_v44  ;;  %v13242_v44 = vld [vmem:[#allocation84_spill] sm:$0xff] }
 0x1e2   :  { %v4272_v58 = vadd.f32 %v4271_v20, %v4270_v56  ;;  %v1262_v16 = vadd.f32 %v1261_v47, %v1260_v29  ;;  %v2270_v21 = vadd.f32 %v2269_v7, %v2268_v19  ;;  %v1249_v15 = vrot.slane %v1248_v25, 1  ;;  %v8159_v47 = vpop.f32.mrf.mxu1  ;;  %v13238_v7 = vld [vmem:[#allocation83_spill] sm:$0xff]  ;;  %v13246_v20 = vld [vmem:[#allocation85_spill] sm:$0xff] }
 0x1e3   :  { %v3278_v53 = vadd.f32 %v3277_v40, %v3276_v62  ;;  %v4286_v0 = vadd.f32 %v4285_v9, %v4284_v52  ;;  %v2257_v45 = vrot.slane %v2256_v22, 1  ;;  %v3265_v59 = vrot.slane %v3264_v55, 1  ;;  %13233 = vst [vmem:[#allocation212_spill] sm:$0xff] %v8159_v47  ;;  %v419_v9 = vpop.f32.mrf.mxu0  ;;  %v13239_v19 = vld [vmem:[#allocation91_spill] sm:$0xff] }
 0x1e4   :  { %v4273_v4 = vrot.slane %v4272_v58, 1  ;;  %v1263_v60 = vrot.slane %v1262_v16, 1  ;;  %v2271_v41 = vrot.slane %v2270_v21, 1  ;;  %v8151_v34 = vadd.f32 %v1249_v15, %v1248_v25  ;;  %v13251_v15 = vld [vmem:[#allocation94_spill] sm:$0xff] }
 0x1e5   :  { %v3279_v2 = vrot.slane %v3278_v53, 1  ;;  %v4287_v17 = vrot.slane %v4286_v0, 1  ;;  %v8153_v14 = vadd.f32 %v2257_v45, %v2256_v22  ;;  %v8155_v61 = vadd.f32 %v3265_v59, %v3264_v55 }
 0x1e6   :  { %13229 = vst [vmem:[#allocation208_spill] sm:$0xff] %v8151_v34  ;;  %v8157_v28 = vadd.f32 %v4273_v4, %v4272_v58  ;;  %v8161_v52 = vadd.f32 %v1263_v60, %v1262_v16  ;;  %v8163_v62 = vadd.f32 %v2271_v41, %v2270_v21  ;;  %v13240_v42 = vmax.f32 %v13238_v7, %v13239_v19  ;;  %v13247_v16 = vld [vmem:[#allocation93_spill] sm:$0xff]  ;;  %v13255_v7 = vld [vmem:[#allocation7_spill] sm:$0xff]  ;;  %v13258_v58 = vld [vmem:[#allocation30_spill] sm:$0xff] }
 0x1e7   :  { %13230 = vst [vmem:[#allocation209_spill] sm:$0xff] %v8153_v14  ;;  %13231 = vst [vmem:[#allocation210_spill] sm:$0xff] %v8155_v61  ;;  %v8165_v40 = vadd.f32 %v3279_v2, %v3278_v53  ;;  %v8167_v13 = vadd.f32 %v4287_v17, %v4286_v0  ;;  %v13244_v33 = vmax.f32 %v13242_v44, %v13243_v23  ;;  %v13250_v0 = vld [vmem:[#allocation86_spill] sm:$0xff]  ;;  %v8205_v17 = vpop.f32.mrf.mxu1  ;;  %v13256_v44 = vld [vmem:[#allocation9_spill] sm:$0xff] }
 0x1e8   :  { %13232 = vst [vmem:[#allocation211_spill] sm:$0xff] %v8157_v28  ;;  %13234 = vst [vmem:[#allocation213_spill] sm:$0xff] %v8161_v52  ;;  %v8181_v29 = vmax.f32 %v13240_v42, %v8161_v52  ;;  %v13248_v21 = vmax.f32 %v13246_v20, %v13247_v16  ;;  %v13252_v45 = vmax.f32 %v13250_v0, %v13251_v15  ;;  %v13257_v20 = vld [vmem:[#allocation29_spill] sm:$0xff] }
 0x1e9   :  { %13235 = vst [vmem:[#allocation214_spill] sm:$0xff] %v8163_v62  ;;  %13236 = vst [vmem:[#allocation215_spill] sm:$0xff] %v8165_v40  ;;  %v8187_v56 = vmax.f32 %v13244_v33, %v8163_v62  ;;  %v1307_v4 = vmul.f32 %v415_v11, %v13225_v5  ;;  %v2315_v60 = vmul.f32 %v415_v11, %v13226_v38  ;;  %v8211_v23 = vpop.f32.mrf.mxu1 }
 0x1ea   :  { %13237 = vst [vmem:[#allocation216_spill] sm:$0xff] %v8167_v13  ;;  %13241 = vst [vmem:[#allocation83_spill] sm:$0xff] %v8181_v29  ;;  %v8193_v53 = vmax.f32 %v13248_v21, %v8165_v40  ;;  %v8199_v59 = vmax.f32 %v13252_v45, %v8167_v13  ;;  %v3323_v41 = vmul.f32 %v13227_v31, %v415_v11 }
 0x1eb   :  { %13245 = vst [vmem:[#allocation84_spill] sm:$0xff] %v8187_v56  ;;  %v4331_v2 = vmul.f32 %v13228_v26, %v415_v11  ;;  %13254 = vst [vmem:[#allocation217_spill] sm:$0xff] %v8205_v17  ;;  %v1252_v42 = vmul.f32 %v419_v9, %v13255_v7  ;;  %v2260_v33 = vmul.f32 %v419_v9, %v13256_v44  ;;  %v1315_v45 = vrot.slane %v1307_v4, 4 }
 0x1ec   :  { %13249 = vst [vmem:[#allocation85_spill] sm:$0xff] %v8193_v53  ;;  %13253 = vst [vmem:[#allocation86_spill] sm:$0xff] %v8199_v59  ;;  %v3268_v21 = vmul.f32 %v13257_v20, %v419_v9  ;;  %v4276_v0 = vmul.f32 %v13258_v58, %v419_v9  ;;  %v2323_v55 = vrot.slane %v2315_v60, 4  ;;  %v3331_v22 = vrot.slane %v3323_v41, 4 }
 0x1ed   :  { %v4339_v25 = vrot.slane %v4331_v2, 4  ;;  %v1265_v13 = vrot.slane %v1252_v42, 4  ;;  %v2273_v15 = vrot.slane %v2260_v33, 4  ;;  %v1316_v16 = vadd.f32 %v1315_v45, %v1307_v4  ;;  %13259 = vst [vmem:[#allocation218_spill] sm:$0xff] %v8211_v23 }
 0x1ee   :  { %v3281_v47 = vrot.slane %v3268_v21, 4  ;;  %v4289_v40 = vrot.slane %v4276_v0, 4  ;;  %v2324_v11 = vadd.f32 %v2323_v55, %v2315_v60  ;;  %v3332_v62 = vadd.f32 %v3331_v22, %v3323_v41  ;;  %v8213_v22 = vpop.f32.mrf.mxu1 }
 0x1ef   :  { %v4340_v17 = vadd.f32 %v4339_v25, %v4331_v2  ;;  %v1266_v52 = vadd.f32 %v1265_v13, %v1252_v42  ;;  %v2274_v19 = vadd.f32 %v2273_v15, %v2260_v33  ;;  %v1317_v61 = vrot.slane %v1316_v16, 2  ;;  %13260 = vst [vmem:[#allocation219_spill] sm:$0xff] %v8213_v22  ;;  %v421_v42 = vpop.f32.mrf.mxu0 }
 0x1f0   :  { %v3282_v28 = vadd.f32 %v3281_v47, %v3268_v21  ;;  %v4290_v63 = vadd.f32 %v4289_v40, %v4276_v0  ;;  %v2325_v9 = vrot.slane %v2324_v11, 2  ;;  %v3333_v43 = vrot.slane %v3332_v62, 2 }
 0x1f1   :  { %v4341_v14 = vrot.slane %v4340_v17, 2  ;;  %v1267_v1 = vrot.slane %v1266_v52, 2  ;;  %v2275_v34 = vrot.slane %v2274_v19, 2  ;;  %v1318_v39 = vadd.f32 %v1317_v61, %v1316_v16  ;;  %v13271_v16 = vld [vmem:[#allocation111_spill] sm:$0xff] }
 0x1f2   :  { %v3283_v12 = vrot.slane %v3282_v28, 2  ;;  %v4291_v37 = vrot.slane %v4290_v63, 2  ;;  %v2326_v26 = vadd.f32 %v2325_v9, %v2324_v11  ;;  %v3334_v4 = vadd.f32 %v3333_v43, %v3332_v62  ;;  %v425_v62 = vpop.f32.mrf.mxu0  ;;  %v13274_v9 = vld [vmem:[#allocation108_spill] sm:$0xff] }
 0x1f3   :  { %v4342_v55 = vadd.f32 %v4341_v14, %v4340_v17  ;;  %v1268_v25 = vadd.f32 %v1267_v1, %v1266_v52  ;;  %v2276_v60 = vadd.f32 %v2275_v34, %v2274_v19  ;;  %v1319_v47 = vrot.slane %v1318_v39, 1  ;;  %v8223_v1 = vpop.f32.mrf.mxu1  ;;  %v13270_v19 = vld [vmem:[#allocation107_spill] sm:$0xff] }
 0x1f4   :  { %v3284_v13 = vadd.f32 %v3283_v12, %v3282_v28  ;;  %v4292_v15 = vadd.f32 %v4291_v37, %v4290_v63  ;;  %v2327_v40 = vrot.slane %v2326_v26, 1  ;;  %v3335_v41 = vrot.slane %v3334_v4, 1  ;;  %13265 = vst [vmem:[#allocation224_spill] sm:$0xff] %v8223_v1  ;;  %v13289_v52 = vld [vmem:[#allocation39_spill] sm:$0xff] }
 0x1f5   :  { %v4343_v2 = vrot.slane %v4342_v55, 1  ;;  %v1269_v33 = vrot.slane %v1268_v25, 1  ;;  %v2277_v21 = vrot.slane %v2276_v60, 1  ;;  %v8215_v23 = vadd.f32 %v1319_v47, %v1318_v39 }
 0x1f6   :  { %v3285_v0 = vrot.slane %v3284_v13, 1  ;;  %v4293_v45 = vrot.slane %v4292_v15, 1  ;;  %v8217_v61 = vadd.f32 %v2327_v40, %v2326_v26  ;;  %v8219_v43 = vadd.f32 %v3335_v41, %v3334_v4  ;;  %v13275_v4 = vld [vmem:[#allocation112_spill] sm:$0xff]  ;;  %v13282_v40 = vld [vmem:[#allocation110_spill] sm:$0xff] }
 0x1f7   :  { %13261 = vst [vmem:[#allocation220_spill] sm:$0xff] %v8215_v23  ;;  %v8221_v14 = vadd.f32 %v4343_v2, %v4342_v55  ;;  %v8225_v37 = vadd.f32 %v1269_v33, %v1268_v25  ;;  %v8227_v12 = vadd.f32 %v2277_v21, %v2276_v60  ;;  %v13272_v17 = vmax.f32 %v13270_v19, %v13271_v16  ;;  %v13278_v60 = vld [vmem:[#allocation109_spill] sm:$0xff]  ;;  %v13283_v41 = vld [vmem:[#allocation114_spill] sm:$0xff]  ;;  %v13290_v26 = vld [vmem:[#allocation40_spill] sm:$0xff] }
 0x1f8   :  { %13262 = vst [vmem:[#allocation221_spill] sm:$0xff] %v8217_v61  ;;  %13263 = vst [vmem:[#allocation222_spill] sm:$0xff] %v8219_v43  ;;  %v8229_v63 = vadd.f32 %v3285_v0, %v3284_v13  ;;  %v8231_v34 = vadd.f32 %v4293_v45, %v4292_v15  ;;  %v13276_v55 = vmax.f32 %v13274_v9, %v13275_v4  ;;  %v13279_v13 = vld [vmem:[#allocation113_spill] sm:$0xff]  ;;  %v13287_v9 = vld [vmem:[#allocation11_spill] sm:$0xff] }
 0x1f9   :  { %13264 = vst [vmem:[#allocation223_spill] sm:$0xff] %v8221_v14  ;;  %13266 = vst [vmem:[#allocation225_spill] sm:$0xff] %v8225_v37  ;;  %v8245_v11 = vmax.f32 %v13272_v17, %v8225_v37  ;;  %v13280_v15 = vmax.f32 %v13278_v60, %v13279_v13  ;;  %v13284_v2 = vmax.f32 %v13282_v40, %v13283_v41  ;;  %v8269_v17 = vpop.f32.mrf.mxu1  ;;  %v13288_v60 = vld [vmem:[#allocation12_spill] sm:$0xff] }
 0x1fa   :  { %13267 = vst [vmem:[#allocation226_spill] sm:$0xff] %v8227_v12  ;;  %13268 = vst [vmem:[#allocation227_spill] sm:$0xff] %v8229_v63  ;;  %v8251_v25 = vmax.f32 %v13276_v55, %v8227_v12  ;;  %v1308_v21 = vmul.f32 %v421_v42, %v13255_v7  ;;  %v2316_v0 = vmul.f32 %v421_v42, %v13256_v44 }
 0x1fb   :  { %13269 = vst [vmem:[#allocation228_spill] sm:$0xff] %v8231_v34  ;;  %13273 = vst [vmem:[#allocation107_spill] sm:$0xff] %v8245_v11  ;;  %v8257_v47 = vmax.f32 %v13280_v15, %v8229_v63  ;;  %v8263_v33 = vmax.f32 %v13284_v2, %v8231_v34  ;;  %v3324_v45 = vmul.f32 %v13257_v20, %v421_v42  ;;  %v8275_v37 = vpop.f32.mrf.mxu1 }
 0x1fc   :  { %13277 = vst [vmem:[#allocation108_spill] sm:$0xff] %v8251_v25  ;;  %v4332_v19 = vmul.f32 %v13258_v58, %v421_v42  ;;  %13286 = vst [vmem:[#allocation229_spill] sm:$0xff] %v8269_v17  ;;  %v1253_v55 = vmul.f32 %v425_v62, %v13287_v9  ;;  %v2261_v15 = vmul.f32 %v425_v62, %v13288_v60  ;;  %v1321_v2 = vrot.slane %v1308_v21, 4 }
 0x1fd   :  { %13281 = vst [vmem:[#allocation109_spill] sm:$0xff] %v8257_v47  ;;  %13285 = vst [vmem:[#allocation110_spill] sm:$0xff] %v8263_v33  ;;  %v3269_v28 = vmul.f32 %v13289_v52, %v425_v62  ;;  %v4277_v40 = vmul.f32 %v13290_v26, %v425_v62  ;;  %v2329_v39 = vrot.slane %v2316_v0, 4  ;;  %v3337_v1 = vrot.slane %v3324_v45, 4 }
 0x1fe   :  { %v4345_v34 = vrot.slane %v4332_v19, 4  ;;  %v1271_v41 = vrot.slane %v1253_v55, 4  ;;  %v2279_v63 = vrot.slane %v2261_v15, 4  ;;  %v1322_v12 = vadd.f32 %v1321_v2, %v1308_v21  ;;  %13291 = vst [vmem:[#allocation230_spill] sm:$0xff] %v8275_v37 }
 0x1ff   :  { %v3287_v13 = vrot.slane %v3269_v28, 4  ;;  %v4295_v22 = vrot.slane %v4277_v40, 4  ;;  %v2330_v42 = vadd.f32 %v2329_v39, %v2316_v0  ;;  %v3338_v4 = vadd.f32 %v3337_v1, %v3324_v45  ;;  %v8277_v1 = vpop.f32.mrf.mxu1 }
 0x200   :  { %v4346_v17 = vadd.f32 %v4345_v34, %v4332_v19  ;;  %v1272_v16 = vadd.f32 %v1271_v41, %v1253_v55  ;;  %v2280_v58 = vadd.f32 %v2279_v63, %v2261_v15  ;;  %v1323_v7 = vrot.slane %v1322_v12, 2  ;;  %13292 = vst [vmem:[#allocation231_spill] sm:$0xff] %v8277_v1  ;;  %v427_v19 = vpop.f32.mrf.mxu0 }
 0x201   :  { %v3288_v20 = vadd.f32 %v3287_v13, %v3269_v28  ;;  %v4296_v44 = vadd.f32 %v4295_v22, %v4277_v40  ;;  %v2331_v62 = vrot.slane %v2330_v42, 2  ;;  %v3339_v14 = vrot.slane %v3338_v4, 2 }
 0x202   :  { %v4347_v59 = vrot.slane %v4346_v17, 2  ;;  %v1273_v43 = vrot.slane %v1272_v16, 2  ;;  %v2281_v53 = vrot.slane %v2280_v58, 2  ;;  %v1324_v23 = vadd.f32 %v1323_v7, %v1322_v12  ;;  %v431_v12 = vpop.f32.mrf.mxu0 }
 0x203   :  { %v3289_v61 = vrot.slane %v3288_v20, 2  ;;  %v4297_v56 = vrot.slane %v4296_v44, 2  ;;  %v2332_v29 = vadd.f32 %v2331_v62, %v2330_v42  ;;  %v3340_v21 = vadd.f32 %v3339_v14, %v3338_v4  ;;  %v13303_v4 = vld [vmem:[#allocation131_spill] sm:$0xff]  ;;  %v13305_v62 = vld [vmem:[#allocation128_spill] sm:$0xff] }
 0x204   :  { %v4348_v39 = vadd.f32 %v4347_v59, %v4346_v17  ;;  %v1274_v34 = vadd.f32 %v1273_v43, %v1272_v16  ;;  %v2282_v0 = vadd.f32 %v2281_v53, %v2280_v58  ;;  %v1325_v28 = vrot.slane %v1324_v23, 1  ;;  %v8287_v58 = vpop.f32.mrf.mxu1  ;;  %v13302_v16 = vld [vmem:[#allocation127_spill] sm:$0xff]  ;;  %v13317_v43 = vld [vmem:[#allocation41_spill] sm:$0xff] }
 0x205   :  { %v3290_v41 = vadd.f32 %v3289_v61, %v3288_v20  ;;  %v4298_v63 = vadd.f32 %v4297_v56, %v4296_v44  ;;  %v2333_v22 = vrot.slane %v2332_v29, 1  ;;  %v3341_v13 = vrot.slane %v3340_v21, 1  ;;  %13297 = vst [vmem:[#allocation236_spill] sm:$0xff] %v8287_v58 }
 0x206   :  { %v4349_v45 = vrot.slane %v4348_v39, 1  ;;  %v1275_v55 = vrot.slane %v1274_v34, 1  ;;  %v2283_v15 = vrot.slane %v2282_v0, 1  ;;  %v8279_v37 = vadd.f32 %v1325_v28, %v1324_v23 }
 0x207   :  { %v3291_v40 = vrot.slane %v3290_v41, 1  ;;  %v4299_v2 = vrot.slane %v4298_v63, 1  ;;  %v8281_v7 = vadd.f32 %v2333_v22, %v2332_v29  ;;  %v8283_v59 = vadd.f32 %v3341_v13, %v3340_v21  ;;  %v13306_v21 = vld [vmem:[#allocation132_spill] sm:$0xff]  ;;  %v13311_v22 = vld [vmem:[#allocation130_spill] sm:$0xff] }
 0x208   :  { %13293 = vst [vmem:[#allocation232_spill] sm:$0xff] %v8279_v37  ;;  %v8285_v14 = vadd.f32 %v4349_v45, %v4348_v39  ;;  %v8289_v56 = vadd.f32 %v1275_v55, %v1274_v34  ;;  %v8291_v53 = vadd.f32 %v2283_v15, %v2282_v0  ;;  %v13304_v17 = vmax.f32 %v13302_v16, %v13303_v4  ;;  %v13308_v0 = vld [vmem:[#allocation129_spill] sm:$0xff]  ;;  %v13312_v13 = vld [vmem:[#allocation134_spill] sm:$0xff] }
 0x209   :  { %13294 = vst [vmem:[#allocation233_spill] sm:$0xff] %v8281_v7  ;;  %13295 = vst [vmem:[#allocation234_spill] sm:$0xff] %v8283_v59  ;;  %v8293_v44 = vadd.f32 %v3291_v40, %v3290_v41  ;;  %v8295_v20 = vadd.f32 %v4299_v2, %v4298_v63  ;;  %v13307_v39 = vmax.f32 %v13305_v62, %v13306_v21  ;;  %v13309_v41 = vld [vmem:[#allocation133_spill] sm:$0xff]  ;;  %v13315_v62 = vld [vmem:[#allocation14_spill] sm:$0xff] }
 0x20a   :  { %13296 = vst [vmem:[#allocation235_spill] sm:$0xff] %v8285_v14  ;;  %13298 = vst [vmem:[#allocation237_spill] sm:$0xff] %v8289_v56  ;;  %v8309_v42 = vmax.f32 %v13304_v17, %v8289_v56  ;;  %v13310_v63 = vmax.f32 %v13308_v0, %v13309_v41  ;;  %v13313_v45 = vmax.f32 %v13311_v22, %v13312_v13  ;;  %v8333_v17 = vpop.f32.mrf.mxu1  ;;  %v13316_v0 = vld [vmem:[#allocation15_spill] sm:$0xff]  ;;  %v13318_v29 = vld [vmem:[#allocation46_spill] sm:$0xff] }
 0x20b   :  { %13299 = vst [vmem:[#allocation238_spill] sm:$0xff] %v8291_v53  ;;  %13300 = vst [vmem:[#allocation239_spill] sm:$0xff] %v8293_v44  ;;  %v8315_v34 = vmax.f32 %v13307_v39, %v8291_v53  ;;  %v1309_v15 = vmul.f32 %v427_v19, %v13287_v9  ;;  %v2317_v40 = vmul.f32 %v427_v19, %v13288_v60 }
 0x20c   :  { %13301 = vst [vmem:[#allocation240_spill] sm:$0xff] %v8295_v20  ;;  %v8321_v28 = vmax.f32 %v13310_v63, %v8293_v44  ;;  %v8327_v55 = vmax.f32 %v13313_v45, %v8295_v20  ;;  %v3325_v2 = vmul.f32 %v13289_v52, %v427_v19  ;;  %v4333_v16 = vmul.f32 %v13290_v26, %v427_v19  ;;  %v8339_v56 = vpop.f32.mrf.mxu1 }
 0x20d   :  { %13314 = vst [vmem:[#allocation127_spill] sm:$0xff] %v8333_v17  ;;  %v1254_v39 = vmul.f32 %v431_v12, %v13315_v62  ;;  %v2262_v63 = vmul.f32 %v431_v12, %v13316_v0  ;;  %v3270_v61 = vmul.f32 %v13317_v43, %v431_v12  ;;  %v4278_v22 = vmul.f32 %v13318_v29, %v431_v12 }
 0x20e   :  { %v1327_v45 = vrot.slane %v1309_v15, 4  ;;  %v2335_v23 = vrot.slane %v2317_v40, 4  ;;  %v3343_v58 = vrot.slane %v3325_v2, 4  ;;  %v4351_v1 = vrot.slane %v4333_v16, 4  ;;  %13319 = vst [vmem:[#allocation128_spill] sm:$0xff] %v8339_v56 }
 0x20f   :  { %v1277_v20 = vrot.slane %v1254_v39, 4  ;;  %v2285_v13 = vrot.slane %v2262_v63, 4  ;;  %v3293_v44 = vrot.slane %v3270_v61, 4  ;;  %v4301_v41 = vrot.slane %v4278_v22, 4 }
 0x210   :  { %v1328_v53 = vadd.f32 %v1327_v45, %v1309_v15  ;;  %v2336_v19 = vadd.f32 %v2335_v23, %v2317_v40  ;;  %v3344_v21 = vadd.f32 %v3343_v58, %v3325_v2  ;;  %v4352_v17 = vadd.f32 %v4351_v1, %v4333_v16  ;;  %v8341_v58 = vpop.f32.mrf.mxu1  ;;  %v433_v16 = vpop.f32.mrf.mxu0 }
 0x211   :  { %v1278_v4 = vadd.f32 %v1277_v20, %v1254_v39  ;;  %v2286_v26 = vadd.f32 %v2285_v13, %v2262_v63  ;;  %v3294_v52 = vadd.f32 %v3293_v44, %v3270_v61  ;;  %v4302_v60 = vadd.f32 %v4301_v41, %v4278_v22  ;;  %13320 = vst [vmem:[#allocation129_spill] sm:$0xff] %v8341_v58 }
 0x212   :  { %v1329_v9 = vrot.slane %v1328_v53, 2  ;;  %v2337_v12 = vrot.slane %v2336_v19, 2  ;;  %v3345_v14 = vrot.slane %v3344_v21, 2  ;;  %v4353_v33 = vrot.slane %v4352_v17, 2 }
 0x213   :  { %v1279_v59 = vrot.slane %v1278_v4, 2  ;;  %v2287_v47 = vrot.slane %v2286_v26, 2  ;;  %v3295_v7 = vrot.slane %v3294_v52, 2  ;;  %v4303_v25 = vrot.slane %v4302_v60, 2 }
 0x214   :  { %v1330_v37 = vadd.f32 %v1329_v9, %v1328_v53  ;;  %v2338_v11 = vadd.f32 %v2337_v12, %v2336_v19  ;;  %v3346_v15 = vadd.f32 %v3345_v14, %v3344_v21  ;;  %v4354_v23 = vadd.f32 %v4353_v33, %v4352_v17  ;;  %v437_v53 = vpop.f32.mrf.mxu0 }
 0x215   :  { %v1280_v1 = vadd.f32 %v1279_v59, %v1278_v4  ;;  %v2288_v40 = vadd.f32 %v2287_v47, %v2286_v26  ;;  %v3296_v20 = vadd.f32 %v3295_v7, %v3294_v52  ;;  %v4304_v13 = vadd.f32 %v4303_v25, %v4302_v60  ;;  %v8351_v26 = vpop.f32.mrf.mxu1 }
 0x216   :  { %v1331_v44 = vrot.slane %v1330_v37, 1  ;;  %v2339_v61 = vrot.slane %v2338_v11, 1  ;;  %v3347_v41 = vrot.slane %v3346_v15, 1  ;;  %v4355_v2 = vrot.slane %v4354_v23, 1  ;;  %13325 = vst [vmem:[#allocation244_spill] sm:$0xff] %v8351_v26 }
 0x217   :  { %v1281_v39 = vrot.slane %v1280_v1, 1  ;;  %v2289_v63 = vrot.slane %v2288_v40, 1  ;;  %v3297_v22 = vrot.slane %v3296_v20, 1  ;;  %v4305_v45 = vrot.slane %v4304_v13, 1 }
 0x218   :  { %v8343_v56 = vadd.f32 %v1331_v44, %v1330_v37  ;;  %v8345_v9 = vadd.f32 %v2339_v61, %v2338_v11  ;;  %v8347_v33 = vadd.f32 %v3347_v41, %v3346_v15  ;;  %v8349_v14 = vadd.f32 %v4355_v2, %v4354_v23 }
 0x219   :  { %v8353_v52 = vadd.f32 %v1281_v39, %v1280_v1  ;;  %v8355_v25 = vadd.f32 %v2289_v63, %v2288_v40  ;;  %v8357_v47 = vadd.f32 %v3297_v22, %v3296_v20  ;;  %v8359_v60 = vadd.f32 %v4305_v45, %v4304_v13  ;;  %v8397_v13 = vpop.f32.mrf.mxu1 }
 0x21a   :  { %13321 = vst [vmem:[#allocation130_spill] sm:$0xff] %v8343_v56  ;;  %13322 = vst [vmem:[#allocation241_spill] sm:$0xff] %v8345_v9  ;;  %v13330_v4 = vmax.f32 %v7859_v10, %v7903_v57  ;;  %v13331_v17 = vmax.f32 %v7865_v32, %v7905_v48  ;;  %v13332_v12 = vmax.f32 %v7871_v18, %v7907_v35 }
 0x21b   :  { %13323 = vst [vmem:[#allocation242_spill] sm:$0xff] %v8347_v33  ;;  %13324 = vst [vmem:[#allocation243_spill] sm:$0xff] %v8349_v14  ;;  %v13333_v23 = vmax.f32 %v7877_v54, %v7909_v6  ;;  %v1310_v10 = vmul.f32 %v433_v16, %v13315_v62  ;;  %v2318_v40 = vmul.f32 %v433_v16, %v13316_v0  ;;  %v8403_v7 = vpop.f32.mrf.mxu1 }
 0x21c   :  { %13326 = vst [vmem:[#allocation245_spill] sm:$0xff] %v8353_v52  ;;  %13327 = vst [vmem:[#allocation246_spill] sm:$0xff] %v8355_v25  ;;  %v8373_v21 = vmax.f32 %v13330_v4, %v8353_v52  ;;  %v8379_v19 = vmax.f32 %v13331_v17, %v8355_v25  ;;  %v8385_v15 = vmax.f32 %v13332_v12, %v8357_v47 }
 0x21d   :  { %13328 = vst [vmem:[#allocation247_spill] sm:$0xff] %v8357_v47  ;;  %13329 = vst [vmem:[#allocation248_spill] sm:$0xff] %v8359_v60  ;;  %v8391_v1 = vmax.f32 %v13333_v23, %v8359_v60  ;;  %v3326_v32 = vmul.f32 %v13317_v43, %v433_v16  ;;  %v4334_v20 = vmul.f32 %v13318_v29, %v433_v16  ;;  %v1333_v41 = vrot.slane %v1310_v10, 4 }
 0x21e   :  { %13334 = vst [vmem:[#allocation249_spill] sm:$0xff] %v8397_v13  ;;  %v1255_v18 = vmul.f32 %v437_v53, %v13122_v3  ;;  %v2263_v44 = vmul.f32 %v437_v53, %v13123_v50  ;;  %v3271_v61 = vmul.f32 %v13124_v51, %v437_v53  ;;  %v4279_v54 = vmul.f32 %v13125_v8, %v437_v53 }
 0x21f   :  { %v2341_v2 = vrot.slane %v2318_v40, 4  ;;  %v3349_v39 = vrot.slane %v3326_v32, 4  ;;  %v4357_v63 = vrot.slane %v4334_v20, 4  ;;  %v1334_v12 = vadd.f32 %v1333_v41, %v1310_v10  ;;  %13335 = vst [vmem:[#allocation250_spill] sm:$0xff] %v8403_v7 }
 0x220   :  { %v1283_v22 = vrot.slane %v1255_v18, 4  ;;  %v2291_v45 = vrot.slane %v2263_v44, 4  ;;  %v3299_v4 = vrot.slane %v3271_v61, 4  ;;  %v4307_v17 = vrot.slane %v4279_v54, 4 }
 0x221   :  { %v2342_v16 = vadd.f32 %v2341_v2, %v2318_v40  ;;  %v3350_v23 = vadd.f32 %v3349_v39, %v3326_v32  ;;  %v4358_v59 = vadd.f32 %v4357_v63, %v4334_v20  ;;  %v1335_v58 = vrot.slane %v1334_v12, 2  ;;  %v8405_v32 = vpop.f32.mrf.mxu1 }
 0x222   :  { %v1284_v11 = vadd.f32 %v1283_v22, %v1255_v18  ;;  %v2292_v37 = vadd.f32 %v2291_v45, %v2263_v44  ;;  %v3300_v13 = vadd.f32 %v3299_v4, %v3271_v61  ;;  %v4308_v26 = vadd.f32 %v4307_v17, %v4279_v54  ;;  %13336 = vst [vmem:[#allocation251_spill] sm:$0xff] %v8405_v32 }
 0x223   :  { %v2343_v53 = vrot.slane %v2342_v16, 2  ;;  %v3351_v60 = vrot.slane %v3350_v23, 2  ;;  %v4359_v6 = vrot.slane %v4358_v59, 2  ;;  %v1336_v52 = vadd.f32 %v1335_v58, %v1334_v12 }
 0x224   :  { %v1285_v47 = vrot.slane %v1284_v11, 2  ;;  %v2293_v35 = vrot.slane %v2292_v37, 2  ;;  %v3301_v25 = vrot.slane %v3300_v13, 2  ;;  %v4309_v48 = vrot.slane %v4308_v26, 2 }
 0x225   :  { %v2344_v57 = vadd.f32 %v2343_v53, %v2342_v16  ;;  %v3352_v10 = vadd.f32 %v3351_v60, %v3350_v23  ;;  %v4360_v40 = vadd.f32 %v4359_v6, %v4358_v59  ;;  %v1337_v61 = vrot.slane %v1336_v52, 1  ;;  %v439_v59 = vpop.f32.mrf.mxu0 }
 0x226   :  { %v1286_v20 = vadd.f32 %v1285_v47, %v1284_v11  ;;  %v2294_v41 = vadd.f32 %v2293_v35, %v2292_v37  ;;  %v3302_v18 = vadd.f32 %v3301_v25, %v3300_v13  ;;  %v4310_v44 = vadd.f32 %v4309_v48, %v4308_v26  ;;  %v718_v25 = vpop.f32.mrf.mxu1 }
 0x227   :  { %v2345_v54 = vrot.slane %v2344_v57, 1  ;;  %v3353_v2 = vrot.slane %v3352_v10, 1  ;;  %v4361_v39 = vrot.slane %v4360_v40, 1  ;;  %v8407_v17 = vadd.f32 %v1337_v61, %v1336_v52  ;;  %v13355_v61 = vld [vmem:[#allocation28_spill] sm:$0xff] }
 0x228   :  { %v1287_v63 = vrot.slane %v1286_v20, 1  ;;  %v2295_v22 = vrot.slane %v2294_v41, 1  ;;  %v3303_v45 = vrot.slane %v3302_v18, 1  ;;  %v4311_v4 = vrot.slane %v4310_v44, 1 }
 0x229   :  { %13337 = vst [vmem:[#allocation252_spill] sm:$0xff] %v8407_v17  ;;  %v8409_v58 = vadd.f32 %v2345_v54, %v2344_v57  ;;  %v8411_v60 = vadd.f32 %v3353_v2, %v3352_v10  ;;  %v8413_v6 = vadd.f32 %v4361_v39, %v4360_v40  ;;  %v13345_v13 = vmax.f32 %v7933_v36, %v7967_v46  ;;  %v13351_v40 = vld [vmem:[#allocation160_spill] sm:$0xff] }
 0x22a   :  { %v8415_v47 = vadd.f32 %v1287_v63, %v1286_v20  ;;  %v8417_v35 = vadd.f32 %v2295_v22, %v2294_v41  ;;  %v8419_v48 = vadd.f32 %v3303_v45, %v3302_v18  ;;  %v8421_v26 = vadd.f32 %v4311_v4, %v4310_v44  ;;  %v13352_v20 = vld [vmem:[#allocation167_spill] sm:$0xff] }
 0x22b   :  { %13338 = vst [vmem:[#allocation253_spill] sm:$0xff] %v8409_v58  ;;  %13339 = vst [vmem:[#allocation254_spill] sm:$0xff] %v8411_v60  ;;  %v13347_v16 = vmax.f32 %v7939_v49, %v7969_v30  ;;  %v13349_v53 = vmax.f32 %v7945_v27, %v7971_v24  ;;  %v13353_v41 = vmax.f32 %v13351_v40, %v13352_v20 }
 0x22c   :  { %13340 = vst [vmem:[#allocation255_spill] sm:$0xff] %v8413_v6  ;;  %13341 = vst [vmem:[#allocation256_spill] sm:$0xff] %v8415_v47  ;;  %v8435_v12 = vmax.f32 %v13345_v13, %v8415_v47  ;;  %v1363_v36 = vmul.f32 %v718_v25, %v13225_v5  ;;  %v2371_v44 = vmul.f32 %v718_v25, %v13226_v38 }
 0x22d   :  { %13342 = vst [vmem:[#allocation257_spill] sm:$0xff] %v8417_v35  ;;  %13343 = vst [vmem:[#allocation258_spill] sm:$0xff] %v8419_v48  ;;  %v8441_v23 = vmax.f32 %v13347_v16, %v8417_v35  ;;  %v8447_v10 = vmax.f32 %v13349_v53, %v8419_v48  ;;  %v8453_v18 = vmax.f32 %v13353_v41, %v8421_v26 }
 0x22e   :  { %13344 = vst [vmem:[#allocation259_spill] sm:$0xff] %v8421_v26  ;;  %13346 = vst [vmem:[#allocation260_spill] sm:$0xff] %v8435_v12  ;;  %v3379_v49 = vmul.f32 %v718_v25, %v13227_v31  ;;  %v4387_v54 = vmul.f32 %v718_v25, %v13355_v61  ;;  %v1311_v2 = vmul.f32 %v439_v59, %v13122_v3  ;;  %v1371_v22 = vrot.slane %v1363_v36, 4 }
 0x22f   :  { %13348 = vst [vmem:[#allocation261_spill] sm:$0xff] %v8441_v23  ;;  %13350 = vst [vmem:[#allocation262_spill] sm:$0xff] %v8447_v10  ;;  %v2319_v27 = vmul.f32 %v439_v59, %v13123_v50  ;;  %v3327_v39 = vmul.f32 %v13124_v51, %v439_v59  ;;  %v4335_v63 = vmul.f32 %v13125_v8, %v439_v59  ;;  %v2379_v45 = vrot.slane %v2371_v44, 4 }
 0x230   :  { %13354 = vst [vmem:[#allocation160_spill] sm:$0xff] %v8453_v18  ;;  %v3387_v4 = vrot.slane %v3379_v49, 4  ;;  %v4395_v13 = vrot.slane %v4387_v54, 4  ;;  %v1339_v16 = vrot.slane %v1311_v2, 4  ;;  %v1372_v11 = vadd.f32 %v1371_v22, %v1363_v36 }
 0x231   :  { %v2347_v53 = vrot.slane %v2319_v27, 4  ;;  %v3355_v40 = vrot.slane %v3327_v39, 4  ;;  %v4363_v41 = vrot.slane %v4335_v63, 4  ;;  %v2380_v52 = vadd.f32 %v2379_v45, %v2371_v44 }
 0x232   :  { %v3388_v57 = vadd.f32 %v3387_v4, %v3379_v49  ;;  %v4396_v25 = vadd.f32 %v4395_v13, %v4387_v54  ;;  %v1340_v37 = vadd.f32 %v1339_v16, %v1311_v2  ;;  %v1373_v20 = vrot.slane %v1372_v11, 2 }
 0x233   :  { %v2348_v32 = vadd.f32 %v2347_v53, %v2319_v27  ;;  %v3356_v7 = vadd.f32 %v3355_v40, %v3327_v39  ;;  %v4364_v26 = vadd.f32 %v4363_v41, %v4335_v63  ;;  %v2381_v48 = vrot.slane %v2380_v52, 2  ;;  %v13376_v41 = vld [vmem:[#allocation86_spill] sm:$0xff] }
 0x234   :  { %v3389_v24 = vrot.slane %v3388_v57, 2  ;;  %v4397_v59 = vrot.slane %v4396_v25, 2  ;;  %v1341_v35 = vrot.slane %v1340_v37, 2  ;;  %v1374_v8 = vadd.f32 %v1373_v20, %v1372_v11 }
 0x235   :  { %v2349_v30 = vrot.slane %v2348_v32, 2  ;;  %v3357_v47 = vrot.slane %v3356_v7, 2  ;;  %v4365_v46 = vrot.slane %v4364_v26, 2  ;;  %v2382_v51 = vadd.f32 %v2381_v48, %v2380_v52  ;;  %v13365_v48 = vld [vmem:[#allocation220_spill] sm:$0xff]  ;;  %v13373_v52 = vld [vmem:[#allocation222_spill] sm:$0xff] }
 0x236   :  { %v3390_v50 = vadd.f32 %v3389_v24, %v3388_v57  ;;  %v4398_v3 = vadd.f32 %v4397_v59, %v4396_v25  ;;  %v1342_v36 = vadd.f32 %v1341_v35, %v1340_v37  ;;  %v1375_v2 = vrot.slane %v1374_v8, 1  ;;  %v13372_v57 = vld [vmem:[#allocation85_spill] sm:$0xff]  ;;  %v13377_v25 = vld [vmem:[#allocation223_spill] sm:$0xff] }
 0x237   :  { %v2350_v44 = vadd.f32 %v2349_v30, %v2348_v32  ;;  %v3358_v49 = vadd.f32 %v3357_v47, %v3356_v7  ;;  %v4366_v54 = vadd.f32 %v4365_v46, %v4364_v26  ;;  %v2383_v27 = vrot.slane %v2382_v51, 1  ;;  %v720_v32 = vpop.f32.mrf.mxu1  ;;  %v13364_v47 = vld [vmem:[#allocation83_spill] sm:$0xff] }
 0x238   :  { %v3391_v39 = vrot.slane %v3390_v50, 1  ;;  %v4399_v63 = vrot.slane %v4398_v3, 1  ;;  %v1343_v22 = vrot.slane %v1342_v36, 1  ;;  %v8463_v16 = vadd.f32 %v1375_v2, %v1374_v8 }
 0x239   :  { %v2351_v45 = vrot.slane %v2350_v44, 1  ;;  %v3359_v4 = vrot.slane %v3358_v49, 1  ;;  %v4367_v13 = vrot.slane %v4366_v54, 1  ;;  %v8465_v53 = vadd.f32 %v2383_v27, %v2382_v51  ;;  %v13369_v51 = vld [vmem:[#allocation221_spill] sm:$0xff] }
 0x23a   :  { %13356 = vst [vmem:[#allocation263_spill] sm:$0xff] %v8463_v16  ;;  %v8467_v11 = vadd.f32 %v3391_v39, %v3390_v50  ;;  %v8469_v24 = vadd.f32 %v4399_v63, %v4398_v3  ;;  %v8471_v35 = vadd.f32 %v1343_v22, %v1342_v36  ;;  %v13366_v8 = vmax.f32 %v13364_v47, %v13365_v48  ;;  %v13368_v50 = vld [vmem:[#allocation84_spill] sm:$0xff]  ;;  %v13381_v47 = vld [vmem:[#allocation21_spill] sm:$0xff] }
 0x23b   :  { %13357 = vst [vmem:[#allocation264_spill] sm:$0xff] %v8465_v53  ;;  %v8473_v30 = vadd.f32 %v2351_v45, %v2350_v44  ;;  %v8475_v46 = vadd.f32 %v3359_v4, %v3358_v49  ;;  %v8477_v7 = vadd.f32 %v4367_v13, %v4366_v54  ;;  %v13370_v3 = vmax.f32 %v13368_v50, %v13369_v51  ;;  %v443_v44 = vpop.f32.mrf.mxu0  ;;  %v13380_v4 = vld [vmem:[#allocation20_spill] sm:$0xff]  ;;  %v13382_v50 = vld [vmem:[#allocation53_spill] sm:$0xff] }
 0x23c   :  { %13358 = vst [vmem:[#allocation265_spill] sm:$0xff] %v8467_v11  ;;  %13359 = vst [vmem:[#allocation266_spill] sm:$0xff] %v8469_v24  ;;  %v8483_v26 = vmax.f32 %v13366_v8, %v8463_v16  ;;  %v13374_v20 = vmax.f32 %v13372_v57, %v13373_v52  ;;  %v13378_v59 = vmax.f32 %v13376_v41, %v13377_v25  ;;  %v13383_v57 = vld [vmem:[#allocation58_spill] sm:$0xff] }
 0x23d   :  { %13360 = vst [vmem:[#allocation267_spill] sm:$0xff] %v8471_v35  ;;  %13361 = vst [vmem:[#allocation268_spill] sm:$0xff] %v8473_v30  ;;  %v8489_v37 = vmax.f32 %v13370_v3, %v8465_v53  ;;  %v1419_v39 = vmul.f32 %v720_v32, %v13225_v5  ;;  %v2427_v63 = vmul.f32 %v720_v32, %v13226_v38 }
 0x23e   :  { %13362 = vst [vmem:[#allocation269_spill] sm:$0xff] %v8475_v46  ;;  %13363 = vst [vmem:[#allocation270_spill] sm:$0xff] %v8477_v7  ;;  %v8495_v40 = vmax.f32 %v13374_v20, %v8467_v11  ;;  %v8501_v36 = vmax.f32 %v13378_v59, %v8469_v24  ;;  %v3435_v22 = vmul.f32 %v720_v32, %v13227_v31 }
 0x23f   :  { %13367 = vst [vmem:[#allocation83_spill] sm:$0xff] %v8483_v26  ;;  %13371 = vst [vmem:[#allocation84_spill] sm:$0xff] %v8489_v37  ;;  %v4443_v45 = vmul.f32 %v720_v32, %v13355_v61  ;;  %v1256_v13 = vmul.f32 %v443_v44, %v13380_v4  ;;  %v2264_v8 = vmul.f32 %v443_v44, %v13381_v47  ;;  %v1427_v41 = vrot.slane %v1419_v39, 4 }
 0x240   :  { %13375 = vst [vmem:[#allocation85_spill] sm:$0xff] %v8495_v40  ;;  %13379 = vst [vmem:[#allocation86_spill] sm:$0xff] %v8501_v36  ;;  %v3272_v3 = vmul.f32 %v13382_v50, %v443_v44  ;;  %v4280_v20 = vmul.f32 %v13383_v57, %v443_v44  ;;  %v2435_v59 = vrot.slane %v2427_v63, 4  ;;  %v3443_v2 = vrot.slane %v3435_v22, 4 }
 0x241   :  { %v4451_v27 = vrot.slane %v4443_v45, 4  ;;  %v1289_v54 = vrot.slane %v1256_v13, 4  ;;  %v2297_v49 = vrot.slane %v2264_v8, 4  ;;  %v1428_v11 = vadd.f32 %v1427_v41, %v1419_v39 }
 0x242   :  { %v3305_v24 = vrot.slane %v3272_v3, 4  ;;  %v4313_v25 = vrot.slane %v4280_v20, 4  ;;  %v2436_v52 = vadd.f32 %v2435_v59, %v2427_v63  ;;  %v3444_v53 = vadd.f32 %v3443_v2, %v3435_v22 }
 0x243   :  { %v4452_v32 = vadd.f32 %v4451_v27, %v4443_v45  ;;  %v1290_v51 = vadd.f32 %v1289_v54, %v1256_v13  ;;  %v2298_v16 = vadd.f32 %v2297_v49, %v2264_v8  ;;  %v1429_v31 = vrot.slane %v1428_v11, 2 }
 0x244   :  { %v3306_v48 = vadd.f32 %v3305_v24, %v3272_v3  ;;  %v4314_v61 = vadd.f32 %v4313_v25, %v4280_v20  ;;  %v2437_v38 = vrot.slane %v2436_v52, 2  ;;  %v3445_v5 = vrot.slane %v3444_v53, 2 }
 0x245   :  { %v4453_v44 = vrot.slane %v4452_v32, 2  ;;  %v1291_v7 = vrot.slane %v1290_v51, 2  ;;  %v2299_v18 = vrot.slane %v2298_v16, 2  ;;  %v1430_v30 = vadd.f32 %v1429_v31, %v1428_v11 }
 0x246   :  { %v3307_v46 = vrot.slane %v3306_v48, 2  ;;  %v4315_v10 = vrot.slane %v4314_v61, 2  ;;  %v2438_v23 = vadd.f32 %v2437_v38, %v2436_v52  ;;  %v3446_v35 = vadd.f32 %v3445_v5, %v3444_v53  ;;  %v13397_v52 = vld [vmem:[#allocation181_spill] sm:$0xff] }
 0x247   :  { %v4454_v12 = vadd.f32 %v4453_v44, %v4452_v32  ;;  %v1292_v39 = vadd.f32 %v1291_v7, %v1290_v51  ;;  %v2300_v63 = vadd.f32 %v2299_v18, %v2298_v16  ;;  %v1431_v54 = vrot.slane %v1430_v30, 1  ;;  %v724_v16 = vpop.f32.mrf.mxu1  ;;  %v13396_v51 = vld [vmem:[#allocation174_spill] sm:$0xff]  ;;  %v13400_v32 = vld [vmem:[#allocation175_spill] sm:$0xff] }
 0x248   :  { %v3308_v2 = vadd.f32 %v3307_v46, %v3306_v48  ;;  %v4316_v27 = vadd.f32 %v4315_v10, %v4314_v61  ;;  %v2439_v49 = vrot.slane %v2438_v23, 1  ;;  %v3447_v24 = vrot.slane %v3446_v35, 1  ;;  %v13393_v46 = vld [vmem:[#allocation180_spill] sm:$0xff]  ;;  %v13401_v44 = vld [vmem:[#allocation182_spill] sm:$0xff] }
 0x249   :  { %v4455_v25 = vrot.slane %v4454_v12, 1  ;;  %v1293_v22 = vrot.slane %v1292_v39, 1  ;;  %v2301_v45 = vrot.slane %v2300_v63, 1  ;;  %v8519_v3 = vadd.f32 %v1431_v54, %v1430_v30  ;;  %v13392_v30 = vld [vmem:[#allocation173_spill] sm:$0xff] }
 0x24a   :  { %v3309_v13 = vrot.slane %v3308_v2, 1  ;;  %v4317_v8 = vrot.slane %v4316_v27, 1  ;;  %v8521_v20 = vadd.f32 %v2439_v49, %v2438_v23  ;;  %v8523_v31 = vadd.f32 %v3447_v24, %v3446_v35  ;;  %v445_v35 = vpop.f32.mrf.mxu0  ;;  %v13408_v24 = vld [vmem:[#allocation7_spill] sm:$0xff] }
 0x24b   :  { %13384 = vst [vmem:[#allocation271_spill] sm:$0xff] %v8519_v3  ;;  %v8525_v5 = vadd.f32 %v4455_v25, %v4454_v12  ;;  %v8527_v38 = vadd.f32 %v1293_v22, %v1292_v39  ;;  %v8529_v18 = vadd.f32 %v2301_v45, %v2300_v63  ;;  %v13394_v7 = vmax.f32 %v13392_v30, %v13393_v46  ;;  %v13409_v22 = vld [vmem:[#allocation9_spill] sm:$0xff]  ;;  %v13411_v30 = vld [vmem:[#allocation30_spill] sm:$0xff] }
 0x24c   :  { %13385 = vst [vmem:[#allocation272_spill] sm:$0xff] %v8521_v20  ;;  %13386 = vst [vmem:[#allocation273_spill] sm:$0xff] %v8523_v31  ;;  %v8531_v10 = vadd.f32 %v3309_v13, %v3308_v2  ;;  %v8533_v61 = vadd.f32 %v4317_v8, %v4316_v27  ;;  %v13398_v41 = vmax.f32 %v13396_v51, %v13397_v52  ;;  %v13404_v2 = vld [vmem:[#allocation176_spill] sm:$0xff]  ;;  %v13405_v27 = vld [vmem:[#allocation183_spill] sm:$0xff] }
 0x24d   :  { %13387 = vst [vmem:[#allocation274_spill] sm:$0xff] %v8525_v5  ;;  %13388 = vst [vmem:[#allocation275_spill] sm:$0xff] %v8527_v38  ;;  %v8547_v48 = vmax.f32 %v13394_v7, %v8527_v38  ;;  %v13402_v39 = vmax.f32 %v13400_v32, %v13401_v44  ;;  %v13406_v54 = vmax.f32 %v13404_v2, %v13405_v27  ;;  %v13410_v13 = vld [vmem:[#allocation29_spill] sm:$0xff] }
 0x24e   :  { %13389 = vst [vmem:[#allocation276_spill] sm:$0xff] %v8529_v18  ;;  %13390 = vst [vmem:[#allocation277_spill] sm:$0xff] %v8531_v10  ;;  %v8553_v59 = vmax.f32 %v13398_v41, %v8529_v18  ;;  %v1364_v25 = vmul.f32 %v724_v16, %v13408_v24  ;;  %v2372_v45 = vmul.f32 %v724_v16, %v13409_v22 }
 0x24f   :  { %13391 = vst [vmem:[#allocation278_spill] sm:$0xff] %v8533_v61  ;;  %13395 = vst [vmem:[#allocation173_spill] sm:$0xff] %v8547_v48  ;;  %v8559_v63 = vmax.f32 %v13402_v39, %v8531_v10  ;;  %v8565_v49 = vmax.f32 %v13406_v54, %v8533_v61  ;;  %v3380_v8 = vmul.f32 %v724_v16, %v13410_v13 }
 0x250   :  { %13399 = vst [vmem:[#allocation174_spill] sm:$0xff] %v8553_v59  ;;  %v4388_v7 = vmul.f32 %v724_v16, %v13411_v30  ;;  %v1312_v51 = vmul.f32 %v445_v35, %v13380_v4  ;;  %v2320_v41 = vmul.f32 %v445_v35, %v13381_v47  ;;  %v3328_v32 = vmul.f32 %v13382_v50, %v445_v35 }
 0x251   :  { %13403 = vst [vmem:[#allocation175_spill] sm:$0xff] %v8559_v63  ;;  %13407 = vst [vmem:[#allocation176_spill] sm:$0xff] %v8565_v49  ;;  %v4336_v39 = vmul.f32 %v13383_v57, %v445_v35  ;;  %v1377_v12 = vrot.slane %v1364_v25, 4  ;;  %v2385_v2 = vrot.slane %v2372_v45, 4  ;;  %v3393_v54 = vrot.slane %v3380_v8, 4 }
 0x252   :  { %v4401_v11 = vrot.slane %v4388_v7, 4  ;;  %v1345_v23 = vrot.slane %v1312_v51, 4  ;;  %v2353_v53 = vrot.slane %v2320_v41, 4  ;;  %v3361_v61 = vrot.slane %v3328_v32, 4 }
 0x253   :  { %v4369_v27 = vrot.slane %v4336_v39, 4  ;;  %v1378_v10 = vadd.f32 %v1377_v12, %v1364_v25  ;;  %v2386_v44 = vadd.f32 %v2385_v2, %v2372_v45  ;;  %v3394_v18 = vadd.f32 %v3393_v54, %v3380_v8  ;;  %v13432_v54 = vld [vmem:[#allocation110_spill] sm:$0xff] }
 0x254   :  { %v4402_v16 = vadd.f32 %v4401_v11, %v4388_v7  ;;  %v1346_v52 = vadd.f32 %v1345_v23, %v1312_v51  ;;  %v2354_v38 = vadd.f32 %v2353_v53, %v2320_v41  ;;  %v3362_v46 = vadd.f32 %v3361_v61, %v3328_v32 }
 0x255   :  { %v4370_v5 = vadd.f32 %v4369_v27, %v4336_v39  ;;  %v1379_v36 = vrot.slane %v1378_v10, 2  ;;  %v2387_v31 = vrot.slane %v2386_v44, 2  ;;  %v3395_v40 = vrot.slane %v3394_v18, 2 }
 0x256   :  { %v4403_v35 = vrot.slane %v4402_v16, 2  ;;  %v1347_v20 = vrot.slane %v1346_v52, 2  ;;  %v2355_v37 = vrot.slane %v2354_v38, 2  ;;  %v3363_v3 = vrot.slane %v3362_v46, 2 }
 0x257   :  { %v4371_v26 = vrot.slane %v4370_v5, 2  ;;  %v1380_v57 = vadd.f32 %v1379_v36, %v1378_v10  ;;  %v2388_v50 = vadd.f32 %v2387_v31, %v2386_v44  ;;  %v3396_v47 = vadd.f32 %v3395_v40, %v3394_v18  ;;  %v726_v31 = vpop.f32.mrf.mxu1 }
 0x258   :  { %v4404_v4 = vadd.f32 %v4403_v35, %v4402_v16  ;;  %v1348_v12 = vadd.f32 %v1347_v20, %v1346_v52  ;;  %v2356_v25 = vadd.f32 %v2355_v37, %v2354_v38  ;;  %v3364_v45 = vadd.f32 %v3363_v3, %v3362_v46  ;;  %v13421_v38 = vld [vmem:[#allocation232_spill] sm:$0xff]  ;;  %v13428_v46 = vld [vmem:[#allocation109_spill] sm:$0xff]  ;;  %v13429_v52 = vld [vmem:[#allocation234_spill] sm:$0xff] }
 0x259   :  { %v4372_v11 = vadd.f32 %v4371_v26, %v4370_v5  ;;  %v1381_v23 = vrot.slane %v1380_v57, 1  ;;  %v2389_v53 = vrot.slane %v2388_v50, 1  ;;  %v3397_v61 = vrot.slane %v3396_v47, 1  ;;  %v13420_v5 = vld [vmem:[#allocation107_spill] sm:$0xff] }
 0x25a   :  { %v4405_v27 = vrot.slane %v4404_v4, 1  ;;  %v1349_v8 = vrot.slane %v1348_v12, 1  ;;  %v2357_v7 = vrot.slane %v2356_v25, 1  ;;  %v3365_v51 = vrot.slane %v3364_v45, 1  ;;  %v13433_v16 = vld [vmem:[#allocation235_spill] sm:$0xff] }
 0x25b   :  { %v4373_v41 = vrot.slane %v4372_v11, 1  ;;  %v8575_v32 = vadd.f32 %v1381_v23, %v1380_v57  ;;  %v8577_v39 = vadd.f32 %v2389_v53, %v2388_v50  ;;  %v8579_v36 = vadd.f32 %v3397_v61, %v3396_v47  ;;  %v13424_v47 = vld [vmem:[#allocation108_spill] sm:$0xff]  ;;  %v13425_v50 = vld [vmem:[#allocation233_spill] sm:$0xff] }
 0x25c   :  { %v8581_v40 = vadd.f32 %v4405_v27, %v4404_v4  ;;  %v8583_v20 = vadd.f32 %v1349_v8, %v1348_v12  ;;  %v8585_v37 = vadd.f32 %v2357_v7, %v2356_v25  ;;  %v8587_v26 = vadd.f32 %v3365_v51, %v3364_v45  ;;  %v449_v25 = vpop.f32.mrf.mxu0  ;;  %v13436_v51 = vld [vmem:[#allocation23_spill] sm:$0xff] }
 0x25d   :  { %13412 = vst [vmem:[#allocation279_spill] sm:$0xff] %v8575_v32  ;;  %13413 = vst [vmem:[#allocation280_spill] sm:$0xff] %v8577_v39  ;;  %v8589_v3 = vadd.f32 %v4373_v41, %v4372_v11  ;;  %v13422_v57 = vmax.f32 %v13420_v5, %v13421_v38  ;;  %v13426_v4 = vmax.f32 %v13424_v47, %v13425_v50  ;;  %v13437_v5 = vld [vmem:[#allocation24_spill] sm:$0xff]  ;;  %v13438_v47 = vld [vmem:[#allocation63_spill] sm:$0xff] }
 0x25e   :  { %13414 = vst [vmem:[#allocation281_spill] sm:$0xff] %v8579_v36  ;;  %13415 = vst [vmem:[#allocation282_spill] sm:$0xff] %v8581_v40  ;;  %v13430_v44 = vmax.f32 %v13428_v46, %v13429_v52  ;;  %v13434_v35 = vmax.f32 %v13432_v54, %v13433_v16  ;;  %v1420_v61 = vmul.f32 %v726_v31, %v13408_v24  ;;  %v13439_v46 = vld [vmem:[#allocation64_spill] sm:$0xff] }
 0x25f   :  { %13416 = vst [vmem:[#allocation283_spill] sm:$0xff] %v8583_v20  ;;  %13417 = vst [vmem:[#allocation284_spill] sm:$0xff] %v8585_v37  ;;  %v8595_v18 = vmax.f32 %v13422_v57, %v8575_v32  ;;  %v8601_v10 = vmax.f32 %v13426_v4, %v8577_v39  ;;  %v2428_v27 = vmul.f32 %v726_v31, %v13409_v22 }
 0x260   :  { %13418 = vst [vmem:[#allocation285_spill] sm:$0xff] %v8587_v26  ;;  %13419 = vst [vmem:[#allocation286_spill] sm:$0xff] %v8589_v3  ;;  %v8607_v2 = vmax.f32 %v13430_v44, %v8579_v36  ;;  %v8613_v12 = vmax.f32 %v13434_v35, %v8581_v40  ;;  %v3436_v8 = vmul.f32 %v726_v31, %v13410_v13  ;;  %v1433_v54 = vrot.slane %v1420_v61, 4 }
 0x261   :  { %13423 = vst [vmem:[#allocation107_spill] sm:$0xff] %v8595_v18  ;;  %13427 = vst [vmem:[#allocation108_spill] sm:$0xff] %v8601_v10  ;;  %v4444_v7 = vmul.f32 %v726_v31, %v13411_v30  ;;  %v1257_v41 = vmul.f32 %v449_v25, %v13436_v51  ;;  %v2265_v57 = vmul.f32 %v449_v25, %v13437_v5  ;;  %v2441_v35 = vrot.slane %v2428_v27, 4 }
 0x262   :  { %13431 = vst [vmem:[#allocation109_spill] sm:$0xff] %v8607_v2  ;;  %13435 = vst [vmem:[#allocation110_spill] sm:$0xff] %v8613_v12  ;;  %v3273_v4 = vmul.f32 %v13438_v47, %v449_v25  ;;  %v4281_v44 = vmul.f32 %v13439_v46, %v449_v25  ;;  %v3449_v23 = vrot.slane %v3436_v8, 4  ;;  %v1434_v36 = vadd.f32 %v1433_v54, %v1420_v61 }
 0x263   :  { %v4457_v53 = vrot.slane %v4444_v7, 4  ;;  %v1295_v11 = vrot.slane %v1257_v41, 4  ;;  %v2303_v45 = vrot.slane %v2265_v57, 4  ;;  %v2442_v52 = vadd.f32 %v2441_v35, %v2428_v27 }
 0x264   :  { %v3311_v40 = vrot.slane %v3273_v4, 4  ;;  %v4319_v16 = vrot.slane %v4281_v44, 4  ;;  %v3450_v39 = vadd.f32 %v3449_v23, %v3436_v8  ;;  %v1435_v13 = vrot.slane %v1434_v36, 2 }
 0x265   :  { %v4458_v31 = vadd.f32 %v4457_v53, %v4444_v7  ;;  %v1296_v50 = vadd.f32 %v1295_v11, %v1257_v41  ;;  %v2304_v32 = vadd.f32 %v2303_v45, %v2265_v57  ;;  %v2443_v22 = vrot.slane %v2442_v52, 2 }
 0x266   :  { %v3312_v38 = vadd.f32 %v3311_v40, %v3273_v4  ;;  %v4320_v30 = vadd.f32 %v4319_v16, %v4281_v44  ;;  %v3451_v24 = vrot.slane %v3450_v39, 2  ;;  %v1436_v37 = vadd.f32 %v1435_v13, %v1434_v36 }
 0x267   :  { %v4459_v25 = vrot.slane %v4458_v31, 2  ;;  %v1297_v3 = vrot.slane %v1296_v50, 2  ;;  %v2305_v49 = vrot.slane %v2304_v32, 2  ;;  %v2444_v59 = vadd.f32 %v2443_v22, %v2442_v52  ;;  %v13452_v52 = vld [vmem:[#allocation197_spill] sm:$0xff] }
 0x268   :  { %v3313_v26 = vrot.slane %v3312_v38, 2  ;;  %v4321_v63 = vrot.slane %v4320_v30, 2  ;;  %v3452_v20 = vadd.f32 %v3451_v24, %v3450_v39  ;;  %v1437_v11 = vrot.slane %v1436_v37, 1 }
 0x269   :  { %v4460_v48 = vadd.f32 %v4459_v25, %v4458_v31  ;;  %v1298_v61 = vadd.f32 %v1297_v3, %v1296_v50  ;;  %v2306_v27 = vadd.f32 %v2305_v49, %v2304_v32  ;;  %v2445_v45 = vrot.slane %v2444_v59, 1  ;;  %v730_v32 = vpop.f32.mrf.mxu1  ;;  %v13451_v50 = vld [vmem:[#allocation190_spill] sm:$0xff]  ;;  %v13454_v31 = vld [vmem:[#allocation191_spill] sm:$0xff] }
 0x26a   :  { %v3314_v23 = vadd.f32 %v3313_v26, %v3312_v38  ;;  %v4322_v53 = vadd.f32 %v4321_v63, %v4320_v30  ;;  %v3453_v40 = vrot.slane %v3452_v20, 1  ;;  %v8631_v4 = vadd.f32 %v1437_v11, %v1436_v37  ;;  %v13448_v37 = vld [vmem:[#allocation189_spill] sm:$0xff]  ;;  %v13449_v26 = vld [vmem:[#allocation196_spill] sm:$0xff]  ;;  %v13455_v25 = vld [vmem:[#allocation198_spill] sm:$0xff] }
 0x26b   :  { %v4461_v16 = vrot.slane %v4460_v48, 1  ;;  %v1299_v8 = vrot.slane %v1298_v61, 1  ;;  %v2307_v7 = vrot.slane %v2306_v27, 1  ;;  %v8633_v44 = vadd.f32 %v2445_v45, %v2444_v59 }
 0x26c   :  { %v3315_v41 = vrot.slane %v3314_v23, 1  ;;  %v4323_v57 = vrot.slane %v4322_v53, 1  ;;  %13440 = vst [vmem:[#allocation287_spill] sm:$0xff] %v8631_v4  ;;  %v8635_v13 = vadd.f32 %v3453_v40, %v3452_v20  ;;  %v451_v20 = vpop.f32.mrf.mxu0  ;;  %v13450_v3 = vmax.f32 %v13448_v37, %v13449_v26  ;;  %v13460_v40 = vld [vmem:[#allocation11_spill] sm:$0xff]  ;;  %v13463_v37 = vld [vmem:[#allocation40_spill] sm:$0xff] }
 0x26d   :  { %13441 = vst [vmem:[#allocation288_spill] sm:$0xff] %v8633_v44  ;;  %v8637_v24 = vadd.f32 %v4461_v16, %v4460_v48  ;;  %v8639_v22 = vadd.f32 %v1299_v8, %v1298_v61  ;;  %v8641_v49 = vadd.f32 %v2307_v7, %v2306_v27  ;;  %v13453_v54 = vmax.f32 %v13451_v50, %v13452_v52  ;;  %v13461_v8 = vld [vmem:[#allocation12_spill] sm:$0xff] }
 0x26e   :  { %13442 = vst [vmem:[#allocation289_spill] sm:$0xff] %v8635_v13  ;;  %v8643_v63 = vadd.f32 %v3315_v41, %v3314_v23  ;;  %v8645_v30 = vadd.f32 %v4323_v57, %v4322_v53  ;;  %v13456_v61 = vmax.f32 %v13454_v31, %v13455_v25  ;;  %v13457_v23 = vld [vmem:[#allocation192_spill] sm:$0xff]  ;;  %v13458_v53 = vld [vmem:[#allocation199_spill] sm:$0xff]  ;;  %v1365_v16 = vmul.f32 %v730_v32, %v13460_v40 }
 0x26f   :  { %13443 = vst [vmem:[#allocation290_spill] sm:$0xff] %v8637_v24  ;;  %13444 = vst [vmem:[#allocation291_spill] sm:$0xff] %v8639_v22  ;;  %v8659_v38 = vmax.f32 %v13450_v3, %v8639_v22  ;;  %v8665_v35 = vmax.f32 %v13453_v54, %v8641_v49  ;;  %v13459_v11 = vmax.f32 %v13457_v23, %v13458_v53  ;;  %v13462_v41 = vld [vmem:[#allocation39_spill] sm:$0xff] }
 0x270   :  { %13445 = vst [vmem:[#allocation292_spill] sm:$0xff] %v8641_v49  ;;  %13446 = vst [vmem:[#allocation293_spill] sm:$0xff] %v8643_v63  ;;  %v8671_v27 = vmax.f32 %v13456_v61, %v8643_v63  ;;  %v2373_v7 = vmul.f32 %v730_v32, %v13461_v8  ;;  %v3381_v57 = vmul.f32 %v730_v32, %v13462_v41  ;;  %v1383_v48 = vrot.slane %v1365_v16, 4 }
 0x271   :  { %13447 = vst [vmem:[#allocation294_spill] sm:$0xff] %v8645_v30  ;;  %v8677_v45 = vmax.f32 %v13459_v11, %v8645_v30  ;;  %v4389_v3 = vmul.f32 %v730_v32, %v13463_v37  ;;  %v1313_v50 = vmul.f32 %v451_v20, %v13436_v51  ;;  %v2321_v54 = vmul.f32 %v451_v20, %v13437_v5 }
 0x272   :  { %v3329_v31 = vmul.f32 %v13438_v47, %v451_v20  ;;  %v4337_v61 = vmul.f32 %v13439_v46, %v451_v20  ;;  %v2391_v23 = vrot.slane %v2373_v7, 4  ;;  %v3399_v11 = vrot.slane %v3381_v57, 4 }
 0x273   :  { %v4407_v36 = vrot.slane %v4389_v3, 4  ;;  %v1351_v59 = vrot.slane %v1313_v50, 4  ;;  %v2359_v39 = vrot.slane %v2321_v54, 4  ;;  %v1384_v63 = vadd.f32 %v1383_v48, %v1365_v16 }
 0x274   :  { %v3367_v30 = vrot.slane %v3329_v31, 4  ;;  %v4375_v53 = vrot.slane %v4337_v61, 4  ;;  %v2392_v25 = vadd.f32 %v2391_v23, %v2373_v7  ;;  %v3400_v49 = vadd.f32 %v3399_v11, %v3381_v57 }
 0x275   :  { %v4408_v32 = vadd.f32 %v4407_v36, %v4389_v3  ;;  %v1352_v52 = vadd.f32 %v1351_v59, %v1313_v50  ;;  %v2360_v22 = vadd.f32 %v2359_v39, %v2321_v54  ;;  %v1385_v12 = vrot.slane %v1384_v63, 2 }
 0x276   :  { %v3368_v26 = vadd.f32 %v3367_v30, %v3329_v31  ;;  %v4376_v24 = vadd.f32 %v4375_v53, %v4337_v61  ;;  %v2393_v13 = vrot.slane %v2392_v25, 2  ;;  %v3401_v2 = vrot.slane %v3400_v49, 2 }
 0x277   :  { %v4409_v20 = vrot.slane %v4408_v32, 2  ;;  %v1353_v44 = vrot.slane %v1352_v52, 2  ;;  %v2361_v10 = vrot.slane %v2360_v22, 2  ;;  %v1386_v46 = vadd.f32 %v1385_v12, %v1384_v63 }
 0x278   :  { %v3369_v4 = vrot.slane %v3368_v26, 2  ;;  %v4377_v18 = vrot.slane %v4376_v24, 2  ;;  %v2394_v47 = vadd.f32 %v2393_v13, %v2392_v25  ;;  %v3402_v5 = vadd.f32 %v3401_v2, %v3400_v49  ;;  %v732_v13 = vpop.f32.mrf.mxu1 }
 0x279   :  { %v4410_v51 = vadd.f32 %v4409_v20, %v4408_v32  ;;  %v1354_v48 = vadd.f32 %v1353_v44, %v1352_v52  ;;  %v2362_v16 = vadd.f32 %v2361_v10, %v2360_v22  ;;  %v1387_v59 = vrot.slane %v1386_v46, 1  ;;  %v13480_v32 = vld [vmem:[#allocation26_spill] sm:$0xff] }
 0x27a   :  { %v3370_v7 = vadd.f32 %v3369_v4, %v3368_v26  ;;  %v4378_v36 = vadd.f32 %v4377_v18, %v4376_v24  ;;  %v2395_v39 = vrot.slane %v2394_v47, 1  ;;  %v3403_v30 = vrot.slane %v3402_v5, 1 }
 0x27b   :  { %v4411_v53 = vrot.slane %v4410_v51, 1  ;;  %v1355_v57 = vrot.slane %v1354_v48, 1  ;;  %v2363_v3 = vrot.slane %v2362_v16, 1  ;;  %v8687_v31 = vadd.f32 %v1387_v59, %v1386_v46  ;;  %v13483_v59 = vld [vmem:[#allocation70_spill] sm:$0xff] }
 0x27c   :  { %v3371_v50 = vrot.slane %v3370_v7, 1  ;;  %v4379_v54 = vrot.slane %v4378_v36, 1  ;;  %v8689_v61 = vadd.f32 %v2395_v39, %v2394_v47  ;;  %v8691_v12 = vadd.f32 %v3403_v30, %v3402_v5 }
 0x27d   :  { %13464 = vst [vmem:[#allocation189_spill] sm:$0xff] %v8687_v31  ;;  %v8693_v2 = vadd.f32 %v4411_v53, %v4410_v51  ;;  %v8695_v44 = vadd.f32 %v1355_v57, %v1354_v48  ;;  %v8697_v10 = vadd.f32 %v2363_v3, %v2362_v16  ;;  %v13472_v46 = vmax.f32 %v8309_v42, %v8343_v56  ;;  %v455_v42 = vpop.f32.mrf.mxu0  ;;  %v13481_v48 = vld [vmem:[#allocation27_spill] sm:$0xff] }
 0x27e   :  { %13465 = vst [vmem:[#allocation190_spill] sm:$0xff] %v8689_v61  ;;  %13466 = vst [vmem:[#allocation191_spill] sm:$0xff] %v8691_v12  ;;  %v8699_v18 = vadd.f32 %v3371_v50, %v3370_v7  ;;  %v8701_v4 = vadd.f32 %v4379_v54, %v4378_v36  ;;  %v13474_v51 = vmax.f32 %v8315_v34, %v8345_v9  ;;  %v13482_v7 = vld [vmem:[#allocation69_spill] sm:$0xff] }
 0x27f   :  { %13467 = vst [vmem:[#allocation192_spill] sm:$0xff] %v8693_v2  ;;  %13468 = vst [vmem:[#allocation295_spill] sm:$0xff] %v8695_v44  ;;  %v8707_v24 = vmax.f32 %v13472_v46, %v8687_v31  ;;  %v13476_v47 = vmax.f32 %v8321_v28, %v8347_v33  ;;  %v13478_v49 = vmax.f32 %v8327_v55, %v8349_v14 }
 0x280   :  { %13469 = vst [vmem:[#allocation296_spill] sm:$0xff] %v8697_v10  ;;  %13470 = vst [vmem:[#allocation297_spill] sm:$0xff] %v8699_v18  ;;  %v8713_v5 = vmax.f32 %v13474_v51, %v8689_v61  ;;  %v1421_v25 = vmul.f32 %v732_v13, %v13460_v40  ;;  %v2429_v23 = vmul.f32 %v732_v13, %v13461_v8 }
 0x281   :  { %13471 = vst [vmem:[#allocation298_spill] sm:$0xff] %v8701_v4  ;;  %13473 = vst [vmem:[#allocation299_spill] sm:$0xff] %v8707_v24  ;;  %v8719_v22 = vmax.f32 %v13476_v47, %v8691_v12  ;;  %v8725_v63 = vmax.f32 %v13478_v49, %v8693_v2  ;;  %v3437_v55 = vmul.f32 %v732_v13, %v13462_v41 }
 0x282   :  { %13475 = vst [vmem:[#allocation300_spill] sm:$0xff] %v8713_v5  ;;  %v4445_v11 = vmul.f32 %v732_v13, %v13463_v37  ;;  %v1258_v20 = vmul.f32 %v455_v42, %v13480_v32  ;;  %v2266_v16 = vmul.f32 %v455_v42, %v13481_v48  ;;  %v3274_v36 = vmul.f32 %v13482_v7, %v455_v42 }
 0x283   :  { %13477 = vst [vmem:[#allocation301_spill] sm:$0xff] %v8719_v22  ;;  %13479 = vst [vmem:[#allocation302_spill] sm:$0xff] %v8725_v63  ;;  %v4282_v39 = vmul.f32 %v13483_v59, %v455_v42  ;;  %v1439_v30 = vrot.slane %v1421_v25, 4  ;;  %v2447_v53 = vrot.slane %v2429_v23, 4  ;;  %v3455_v57 = vrot.slane %v3437_v55, 4 }
 0x284   :  { %v4463_v3 = vrot.slane %v4445_v11, 4  ;;  %v1301_v50 = vrot.slane %v1258_v20, 4  ;;  %v2309_v54 = vrot.slane %v2266_v16, 4  ;;  %v3317_v46 = vrot.slane %v3274_v36, 4 }
 0x285   :  { %v4325_v51 = vrot.slane %v4282_v39, 4  ;;  %v1440_v47 = vadd.f32 %v1439_v30, %v1421_v25  ;;  %v2448_v49 = vadd.f32 %v2447_v53, %v2429_v23  ;;  %v3456_v28 = vadd.f32 %v3455_v57, %v3437_v55 }
 0x286   :  { %v4464_v13 = vadd.f32 %v4463_v3, %v4445_v11  ;;  %v1302_v52 = vadd.f32 %v1301_v50, %v1258_v20  ;;  %v2310_v34 = vadd.f32 %v2309_v54, %v2266_v16  ;;  %v3318_v26 = vadd.f32 %v3317_v46, %v3274_v36  ;;  %v13495_v46 = vld [vmem:[#allocation205_spill] sm:$0xff] }
 0x287   :  { %v4326_v2 = vadd.f32 %v4325_v51, %v4282_v39  ;;  %v1441_v14 = vrot.slane %v1440_v47, 2  ;;  %v2449_v12 = vrot.slane %v2448_v49, 2  ;;  %v3457_v33 = vrot.slane %v3456_v28, 2  ;;  %v13496_v51 = vld [vmem:[#allocation209_spill] sm:$0xff] }
 0x288   :  { %v4465_v42 = vrot.slane %v4464_v13, 2  ;;  %v1303_v61 = vrot.slane %v1302_v52, 2  ;;  %v2311_v9 = vrot.slane %v2310_v34, 2  ;;  %v3319_v31 = vrot.slane %v3318_v26, 2 }
 0x289   :  { %v4327_v56 = vrot.slane %v4326_v2, 2  ;;  %v1442_v37 = vadd.f32 %v1441_v14, %v1440_v47  ;;  %v2450_v41 = vadd.f32 %v2449_v12, %v2448_v49  ;;  %v3458_v8 = vadd.f32 %v3457_v33, %v3456_v28  ;;  %v736_v12 = vpop.f32.mrf.mxu1 }
 0x28a   :  { %v4466_v40 = vadd.f32 %v4465_v42, %v4464_v13  ;;  %v1304_v25 = vadd.f32 %v1303_v61, %v1302_v52  ;;  %v2312_v23 = vadd.f32 %v2311_v9, %v2310_v34  ;;  %v3320_v55 = vadd.f32 %v3319_v31, %v3318_v26  ;;  %v13492_v26 = vld [vmem:[#allocation204_spill] sm:$0xff]  ;;  %v13498_v13 = vld [vmem:[#allocation206_spill] sm:$0xff] }
 0x28b   :  { %v4328_v11 = vadd.f32 %v4327_v56, %v4326_v2  ;;  %v1443_v20 = vrot.slane %v1442_v37, 1  ;;  %v2451_v16 = vrot.slane %v2450_v41, 1  ;;  %v3459_v36 = vrot.slane %v3458_v8, 1  ;;  %v13493_v34 = vld [vmem:[#allocation208_spill] sm:$0xff]  ;;  %v13499_v42 = vld [vmem:[#allocation210_spill] sm:$0xff] }
 0x28c   :  { %v4467_v39 = vrot.slane %v4466_v40, 1  ;;  %v1305_v30 = vrot.slane %v1304_v25, 1  ;;  %v2313_v53 = vrot.slane %v2312_v23, 1  ;;  %v3321_v57 = vrot.slane %v3320_v55, 1 }
 0x28d   :  { %v4329_v3 = vrot.slane %v4328_v11, 1  ;;  %v8743_v50 = vadd.f32 %v1443_v20, %v1442_v37  ;;  %v8745_v54 = vadd.f32 %v2451_v16, %v2450_v41  ;;  %v8747_v14 = vadd.f32 %v3459_v36, %v3458_v8  ;;  %v457_v37 = vpop.f32.mrf.mxu0 }
 0x28e   :  { %v8749_v33 = vadd.f32 %v4467_v39, %v4466_v40  ;;  %v8751_v61 = vadd.f32 %v1305_v30, %v1304_v25  ;;  %v8753_v9 = vadd.f32 %v2313_v53, %v2312_v23  ;;  %v8755_v56 = vadd.f32 %v3321_v57, %v3320_v55  ;;  %v13501_v55 = vld [vmem:[#allocation207_spill] sm:$0xff] }
 0x28f   :  { %13484 = vst [vmem:[#allocation26_spill] sm:$0xff] %v8743_v50  ;;  %13485 = vst [vmem:[#allocation27_spill] sm:$0xff] %v8745_v54  ;;  %v8757_v31 = vadd.f32 %v4329_v3, %v4328_v11  ;;  %v13494_v52 = vmax.f32 %v13492_v26, %v13493_v34  ;;  %v13497_v47 = vmax.f32 %v13495_v46, %v13496_v51  ;;  %v13502_v11 = vld [vmem:[#allocation211_spill] sm:$0xff] }
 0x290   :  { %13486 = vst [vmem:[#allocation69_spill] sm:$0xff] %v8747_v14  ;;  %13487 = vst [vmem:[#allocation70_spill] sm:$0xff] %v8749_v33  ;;  %v13500_v25 = vmax.f32 %v13498_v13, %v13499_v42  ;;  %v13503_v20 = vmax.f32 %v13501_v55, %v13502_v11  ;;  %v1366_v36 = vmul.f32 %v736_v12, %v13315_v62 }
 0x291   :  { %13488 = vst [vmem:[#allocation303_spill] sm:$0xff] %v8751_v61  ;;  %13489 = vst [vmem:[#allocation304_spill] sm:$0xff] %v8753_v9  ;;  %v8771_v28 = vmax.f32 %v13494_v52, %v8751_v61  ;;  %v8777_v49 = vmax.f32 %v13497_v47, %v8753_v9  ;;  %v2374_v39 = vmul.f32 %v736_v12, %v13316_v0 }
 0x292   :  { %13490 = vst [vmem:[#allocation305_spill] sm:$0xff] %v8755_v56  ;;  %13491 = vst [vmem:[#allocation306_spill] sm:$0xff] %v8757_v31  ;;  %v8783_v23 = vmax.f32 %v13500_v25, %v8755_v56  ;;  %v8789_v16 = vmax.f32 %v13503_v20, %v8757_v31  ;;  %v3382_v30 = vmul.f32 %v736_v12, %v13317_v43  ;;  %v1389_v46 = vrot.slane %v1366_v36, 4 }
 0x293   :  { %v4390_v53 = vmul.f32 %v736_v12, %v13318_v29  ;;  %v1314_v57 = vmul.f32 %v457_v37, %v13480_v32  ;;  %v2322_v3 = vmul.f32 %v457_v37, %v13481_v48  ;;  %v3330_v26 = vmul.f32 %v13482_v7, %v457_v37 }
 0x294   :  { %v4338_v52 = vmul.f32 %v13483_v59, %v457_v37  ;;  %v2397_v47 = vrot.slane %v2374_v39, 4  ;;  %v3405_v13 = vrot.slane %v3382_v30, 4  ;;  %v1390_v41 = vadd.f32 %v1389_v46, %v1366_v36 }
 0x295   :  { %v4413_v25 = vrot.slane %v4390_v53, 4  ;;  %v1357_v55 = vrot.slane %v1314_v57, 4  ;;  %v2365_v20 = vrot.slane %v2322_v3, 4  ;;  %v3373_v40 = vrot.slane %v3330_v26, 4 }
 0x296   :  { %v4381_v8 = vrot.slane %v4338_v52, 4  ;;  %v2398_v2 = vadd.f32 %v2397_v47, %v2374_v39  ;;  %v3406_v31 = vadd.f32 %v3405_v13, %v3382_v30  ;;  %v1391_v51 = vrot.slane %v1390_v41, 2 }
 0x297   :  { %v4414_v12 = vadd.f32 %v4413_v25, %v4390_v53  ;;  %v1358_v11 = vadd.f32 %v1357_v55, %v1314_v57  ;;  %v2366_v56 = vadd.f32 %v2365_v20, %v2322_v3  ;;  %v3374_v42 = vadd.f32 %v3373_v40, %v3330_v26  ;;  %v738_v26 = vpop.f32.mrf.mxu1 }
 0x298   :  { %v4382_v9 = vadd.f32 %v4381_v8, %v4338_v52  ;;  %v2399_v61 = vrot.slane %v2398_v2, 2  ;;  %v3407_v34 = vrot.slane %v3406_v31, 2  ;;  %v1392_v54 = vadd.f32 %v1391_v51, %v1390_v41 }
 0x299   :  { %v4415_v37 = vrot.slane %v4414_v12, 2  ;;  %v1359_v33 = vrot.slane %v1358_v11, 2  ;;  %v2367_v63 = vrot.slane %v2366_v56, 2  ;;  %v3375_v14 = vrot.slane %v3374_v42, 2 }
 0x29a   :  { %v4383_v22 = vrot.slane %v4382_v9, 2  ;;  %v2400_v5 = vadd.f32 %v2399_v61, %v2398_v2  ;;  %v3408_v50 = vadd.f32 %v3407_v34, %v3406_v31  ;;  %v1393_v57 = vrot.slane %v1392_v54, 1 }
 0x29b   :  { %v4416_v24 = vadd.f32 %v4415_v37, %v4414_v12  ;;  %v1360_v36 = vadd.f32 %v1359_v33, %v1358_v11  ;;  %v2368_v39 = vadd.f32 %v2367_v63, %v2366_v56  ;;  %v3376_v30 = vadd.f32 %v3375_v14, %v3374_v42  ;;  %v13520_v12 = vld [vmem:[#allocation17_spill] sm:$0xff] }
 0x29c   :  { %v4384_v53 = vadd.f32 %v4383_v22, %v4382_v9  ;;  %v2401_v3 = vrot.slane %v2400_v5, 1  ;;  %v3409_v40 = vrot.slane %v3408_v50, 1  ;;  %v8799_v25 = vadd.f32 %v1393_v57, %v1392_v54  ;;  %v13523_v57 = vld [vmem:[#allocation52_spill] sm:$0xff] }
 0x29d   :  { %v4417_v8 = vrot.slane %v4416_v24, 1  ;;  %v1361_v52 = vrot.slane %v1360_v36, 1  ;;  %v2369_v46 = vrot.slane %v2368_v39, 1  ;;  %v3377_v47 = vrot.slane %v3376_v30, 1 }
 0x29e   :  { %v4385_v13 = vrot.slane %v4384_v53, 1  ;;  %13504 = vst [vmem:[#allocation204_spill] sm:$0xff] %v8799_v25  ;;  %v8801_v55 = vadd.f32 %v2401_v3, %v2400_v5  ;;  %v8803_v61 = vadd.f32 %v3409_v40, %v3408_v50  ;;  %v13512_v9 = vmax.f32 %v8373_v21, %v8407_v17  ;;  %v742_v21 = vpop.f32.mrf.mxu1 }
 0x29f   :  { %v8805_v31 = vadd.f32 %v4417_v8, %v4416_v24  ;;  %v8807_v63 = vadd.f32 %v1361_v52, %v1360_v36  ;;  %v8809_v22 = vadd.f32 %v2369_v46, %v2368_v39  ;;  %v8811_v14 = vadd.f32 %v3377_v47, %v3376_v30  ;;  %v13521_v36 = vld [vmem:[#allocation18_spill] sm:$0xff]  ;;  %v13522_v30 = vld [vmem:[#allocation51_spill] sm:$0xff] }
 0x2a0   :  { %13505 = vst [vmem:[#allocation205_spill] sm:$0xff] %v8801_v55  ;;  %13506 = vst [vmem:[#allocation206_spill] sm:$0xff] %v8803_v61  ;;  %v8813_v33 = vadd.f32 %v4385_v13, %v4384_v53  ;;  %v8819_v54 = vmax.f32 %v13512_v9, %v8799_v25  ;;  %v13514_v5 = vmax.f32 %v8379_v19, %v8409_v58 }
 0x2a1   :  { %13507 = vst [vmem:[#allocation207_spill] sm:$0xff] %v8805_v31  ;;  %13508 = vst [vmem:[#allocation307_spill] sm:$0xff] %v8807_v63  ;;  %v13516_v50 = vmax.f32 %v8385_v15, %v8411_v60  ;;  %v13518_v2 = vmax.f32 %v8391_v1, %v8413_v6  ;;  %v1422_v42 = vmul.f32 %v738_v26, %v13315_v62 }
 0x2a2   :  { %13509 = vst [vmem:[#allocation308_spill] sm:$0xff] %v8809_v22  ;;  %13510 = vst [vmem:[#allocation309_spill] sm:$0xff] %v8811_v14  ;;  %v8825_v24 = vmax.f32 %v13514_v5, %v8801_v55  ;;  %v2430_v11 = vmul.f32 %v738_v26, %v13316_v0  ;;  %v3438_v1 = vmul.f32 %v738_v26, %v13317_v43 }
 0x2a3   :  { %13511 = vst [vmem:[#allocation310_spill] sm:$0xff] %v8813_v33  ;;  %13513 = vst [vmem:[#allocation311_spill] sm:$0xff] %v8819_v54  ;;  %v8831_v56 = vmax.f32 %v13516_v50, %v8803_v61  ;;  %v8837_v41 = vmax.f32 %v13518_v2, %v8805_v31  ;;  %v4446_v20 = vmul.f32 %v738_v26, %v13318_v29  ;;  %v1445_v40 = vrot.slane %v1422_v42, 4 }
 0x2a4   :  { %13515 = vst [vmem:[#allocation312_spill] sm:$0xff] %v8825_v24  ;;  %v1367_v37 = vmul.f32 %v742_v21, %v13520_v12  ;;  %v2375_v39 = vmul.f32 %v742_v21, %v13521_v36  ;;  %v3383_v53 = vmul.f32 %v742_v21, %v13522_v30  ;;  %v4391_v3 = vmul.f32 %v742_v21, %v13523_v57 }
 0x2a5   :  { %13517 = vst [vmem:[#allocation313_spill] sm:$0xff] %v8831_v56  ;;  %13519 = vst [vmem:[#allocation314_spill] sm:$0xff] %v8837_v41  ;;  %v2453_v8 = vrot.slane %v2430_v11, 4  ;;  %v3461_v52 = vrot.slane %v3438_v1, 4  ;;  %v4469_v46 = vrot.slane %v4446_v20, 4  ;;  %v1446_v50 = vadd.f32 %v1445_v40, %v1422_v42  ;;  %v744_v40 = vpop.f32.mrf.mxu1 }
 0x2a6   :  { %v1395_v47 = vrot.slane %v1367_v37, 4  ;;  %v2403_v13 = vrot.slane %v2375_v39, 4  ;;  %v3411_v9 = vrot.slane %v3383_v53, 4  ;;  %v4419_v5 = vrot.slane %v4391_v3, 4 }
 0x2a7   :  { %v2454_v2 = vadd.f32 %v2453_v8, %v2430_v11  ;;  %v3462_v15 = vadd.f32 %v3461_v52, %v3438_v1  ;;  %v4470_v26 = vadd.f32 %v4469_v46, %v4446_v20  ;;  %v1447_v6 = vrot.slane %v1446_v50, 2 }
 0x2a8   :  { %v1396_v51 = vadd.f32 %v1395_v47, %v1367_v37  ;;  %v2404_v19 = vadd.f32 %v2403_v13, %v2375_v39  ;;  %v3412_v34 = vadd.f32 %v3411_v9, %v3383_v53  ;;  %v4420_v31 = vadd.f32 %v4419_v5, %v4391_v3  ;;  %v13537_v5 = vld [vmem:[#allocation268_spill] sm:$0xff] }
 0x2a9   :  { %v2455_v61 = vrot.slane %v2454_v2, 2  ;;  %v3463_v60 = vrot.slane %v3462_v15, 2  ;;  %v4471_v21 = vrot.slane %v4470_v26, 2  ;;  %v1448_v29 = vadd.f32 %v1447_v6, %v1446_v50 }
 0x2aa   :  { %v1397_v55 = vrot.slane %v1396_v51, 2  ;;  %v2405_v58 = vrot.slane %v2404_v19, 2  ;;  %v3413_v25 = vrot.slane %v3412_v34, 2  ;;  %v4421_v17 = vrot.slane %v4420_v31, 2 }
 0x2ab   :  { %v2456_v43 = vadd.f32 %v2455_v61, %v2454_v2  ;;  %v3464_v0 = vadd.f32 %v3463_v60, %v3462_v15  ;;  %v4472_v62 = vadd.f32 %v4471_v21, %v4470_v26  ;;  %v1449_v37 = vrot.slane %v1448_v29, 1  ;;  %v13536_v15 = vld [vmem:[#allocation261_spill] sm:$0xff]  ;;  %v13540_v26 = vld [vmem:[#allocation262_spill] sm:$0xff] }
 0x2ac   :  { %v1398_v42 = vadd.f32 %v1397_v55, %v1396_v51  ;;  %v2406_v11 = vadd.f32 %v2405_v58, %v2404_v19  ;;  %v3414_v1 = vadd.f32 %v3413_v25, %v3412_v34  ;;  %v4422_v20 = vadd.f32 %v4421_v17, %v4420_v31  ;;  %v13532_v31 = vld [vmem:[#allocation260_spill] sm:$0xff]  ;;  %v13533_v34 = vld [vmem:[#allocation267_spill] sm:$0xff]  ;;  %v13541_v21 = vld [vmem:[#allocation269_spill] sm:$0xff] }
 0x2ad   :  { %v2457_v39 = vrot.slane %v2456_v43, 1  ;;  %v3465_v53 = vrot.slane %v3464_v0, 1  ;;  %v4473_v3 = vrot.slane %v4472_v62, 1  ;;  %v8855_v13 = vadd.f32 %v1449_v37, %v1448_v29 }
 0x2ae   :  { %v1399_v8 = vrot.slane %v1398_v42, 1  ;;  %v2407_v52 = vrot.slane %v2406_v11, 1  ;;  %v3415_v46 = vrot.slane %v3414_v1, 1  ;;  %v4423_v47 = vrot.slane %v4422_v20, 1 }
 0x2af   :  { %13524 = vst [vmem:[#allocation315_spill] sm:$0xff] %v8855_v13  ;;  %v8857_v9 = vadd.f32 %v2457_v39, %v2456_v43  ;;  %v8859_v6 = vadd.f32 %v3465_v53, %v3464_v0  ;;  %v8861_v60 = vadd.f32 %v4473_v3, %v4472_v62  ;;  %v748_v0 = vpop.f32.mrf.mxu1  ;;  %v13534_v19 = vmax.f32 %v13532_v31, %v13533_v34  ;;  %v13549_v31 = vld [vmem:[#allocation21_spill] sm:$0xff] }
 0x2b0   :  { %v8863_v58 = vadd.f32 %v1399_v8, %v1398_v42  ;;  %v8865_v17 = vadd.f32 %v2407_v52, %v2406_v11  ;;  %v8867_v25 = vadd.f32 %v3415_v46, %v3414_v1  ;;  %v8869_v55 = vadd.f32 %v4423_v47, %v4422_v20  ;;  %v13544_v1 = vld [vmem:[#allocation160_spill] sm:$0xff]  ;;  %v13545_v20 = vld [vmem:[#allocation270_spill] sm:$0xff] }
 0x2b1   :  { %13525 = vst [vmem:[#allocation316_spill] sm:$0xff] %v8857_v9  ;;  %13526 = vst [vmem:[#allocation317_spill] sm:$0xff] %v8859_v6  ;;  %v13538_v50 = vmax.f32 %v13536_v15, %v13537_v5  ;;  %v13542_v42 = vmax.f32 %v13540_v26, %v13541_v21  ;;  %v13546_v37 = vmax.f32 %v13544_v1, %v13545_v20  ;;  %v13548_v46 = vld [vmem:[#allocation20_spill] sm:$0xff]  ;;  %v13550_v15 = vld [vmem:[#allocation53_spill] sm:$0xff] }
 0x2b2   :  { %13527 = vst [vmem:[#allocation318_spill] sm:$0xff] %v8861_v60  ;;  %13528 = vst [vmem:[#allocation319_spill] sm:$0xff] %v8863_v58  ;;  %v8883_v51 = vmax.f32 %v13534_v19, %v8863_v58  ;;  %v1423_v53 = vmul.f32 %v744_v40, %v13520_v12  ;;  %v2431_v3 = vmul.f32 %v744_v40, %v13521_v36  ;;  %v13551_v26 = vld [vmem:[#allocation58_spill] sm:$0xff] }
 0x2b3   :  { %13529 = vst [vmem:[#allocation320_spill] sm:$0xff] %v8865_v17  ;;  %13530 = vst [vmem:[#allocation321_spill] sm:$0xff] %v8867_v25  ;;  %v8889_v2 = vmax.f32 %v13538_v50, %v8865_v17  ;;  %v8895_v11 = vmax.f32 %v13542_v42, %v8867_v25  ;;  %v8901_v39 = vmax.f32 %v13546_v37, %v8869_v55 }
 0x2b4   :  { %13531 = vst [vmem:[#allocation322_spill] sm:$0xff] %v8869_v55  ;;  %13535 = vst [vmem:[#allocation260_spill] sm:$0xff] %v8883_v51  ;;  %v3439_v8 = vmul.f32 %v744_v40, %v13522_v30  ;;  %v4447_v52 = vmul.f32 %v744_v40, %v13523_v57  ;;  %v1368_v47 = vmul.f32 %v748_v0, %v13548_v46  ;;  %v1451_v62 = vrot.slane %v1423_v53, 4 }
 0x2b5   :  { %13539 = vst [vmem:[#allocation261_spill] sm:$0xff] %v8889_v2  ;;  %13543 = vst [vmem:[#allocation262_spill] sm:$0xff] %v8895_v11  ;;  %v2376_v19 = vmul.f32 %v748_v0, %v13549_v31  ;;  %v3384_v50 = vmul.f32 %v748_v0, %v13550_v15  ;;  %v4392_v42 = vmul.f32 %v748_v0, %v13551_v26  ;;  %v2459_v1 = vrot.slane %v2431_v3, 4 }
 0x2b6   :  { %13547 = vst [vmem:[#allocation160_spill] sm:$0xff] %v8901_v39  ;;  %v3467_v37 = vrot.slane %v3439_v8, 4  ;;  %v4475_v43 = vrot.slane %v4447_v52, 4  ;;  %v1401_v29 = vrot.slane %v1368_v47, 4  ;;  %v1452_v25 = vadd.f32 %v1451_v62, %v1423_v53 }
 0x2b7   :  { %v2409_v61 = vrot.slane %v2376_v19, 4  ;;  %v3417_v55 = vrot.slane %v3384_v50, 4  ;;  %v4425_v20 = vrot.slane %v4392_v42, 4  ;;  %v2460_v21 = vadd.f32 %v2459_v1, %v2431_v3 }
 0x2b8   :  { %v3468_v17 = vadd.f32 %v3467_v37, %v3439_v8  ;;  %v4476_v40 = vadd.f32 %v4475_v43, %v4447_v52  ;;  %v1402_v5 = vadd.f32 %v1401_v29, %v1368_v47  ;;  %v1453_v30 = vrot.slane %v1452_v25, 2  ;;  %v750_v8 = vpop.f32.mrf.mxu1 }
 0x2b9   :  { %v2410_v58 = vadd.f32 %v2409_v61, %v2376_v19  ;;  %v3418_v34 = vadd.f32 %v3417_v55, %v3384_v50  ;;  %v4426_v57 = vadd.f32 %v4425_v20, %v4392_v42  ;;  %v2461_v36 = vrot.slane %v2460_v21, 2 }
 0x2ba   :  { %v3469_v12 = vrot.slane %v3468_v17, 2  ;;  %v4477_v0 = vrot.slane %v4476_v40, 2  ;;  %v1403_v60 = vrot.slane %v1402_v5, 2  ;;  %v1454_v9 = vadd.f32 %v1453_v30, %v1452_v25 }
 0x2bb   :  { %v2411_v41 = vrot.slane %v2410_v58, 2  ;;  %v3419_v6 = vrot.slane %v3418_v34, 2  ;;  %v4427_v56 = vrot.slane %v4426_v57, 2  ;;  %v2462_v24 = vadd.f32 %v2461_v36, %v2460_v21  ;;  %v13565_v21 = vld [vmem:[#allocation284_spill] sm:$0xff] }
 0x2bc   :  { %v3470_v13 = vadd.f32 %v3469_v12, %v3468_v17  ;;  %v4478_v54 = vadd.f32 %v4477_v0, %v4476_v40  ;;  %v1404_v62 = vadd.f32 %v1403_v60, %v1402_v5  ;;  %v1455_v29 = vrot.slane %v1454_v9, 1  ;;  %v754_v60 = vpop.f32.mrf.mxu1  ;;  %v13562_v17 = vld [vmem:[#allocation283_spill] sm:$0xff]  ;;  %v13564_v5 = vld [vmem:[#allocation174_spill] sm:$0xff] }
 0x2bd   :  { %v2412_v53 = vadd.f32 %v2411_v41, %v2410_v58  ;;  %v3420_v3 = vadd.f32 %v3419_v6, %v3418_v34  ;;  %v4428_v43 = vadd.f32 %v4427_v56, %v4426_v57  ;;  %v2463_v61 = vrot.slane %v2462_v24, 1  ;;  %v8927_v6 = vpop.f32.mrf.mxu0  ;;  %v13561_v58 = vld [vmem:[#allocation173_spill] sm:$0xff]  ;;  %v13567_v0 = vld [vmem:[#allocation175_spill] sm:$0xff] }
 0x2be   :  { %v3471_v55 = vrot.slane %v3470_v13, 1  ;;  %v4479_v20 = vrot.slane %v4478_v54, 1  ;;  %v1405_v52 = vrot.slane %v1404_v62, 1  ;;  %v8911_v42 = vadd.f32 %v1455_v29, %v1454_v9  ;;  %13560 = vst [vmem:[#allocation330_spill] sm:$0xff] %v8927_v6  ;;  %v13571_v29 = vld [vmem:[#allocation286_spill] sm:$0xff] }
 0x2bf   :  { %v2413_v47 = vrot.slane %v2412_v53, 1  ;;  %v3421_v19 = vrot.slane %v3420_v3, 1  ;;  %v4429_v50 = vrot.slane %v4428_v43, 1  ;;  %v8913_v1 = vadd.f32 %v2463_v61, %v2462_v24 }
 0x2c0   :  { %13552 = vst [vmem:[#allocation20_spill] sm:$0xff] %v8911_v42  ;;  %v8915_v36 = vadd.f32 %v3471_v55, %v3470_v13  ;;  %v8917_v12 = vadd.f32 %v4479_v20, %v4478_v54  ;;  %v8919_v41 = vadd.f32 %v1405_v52, %v1404_v62  ;;  %v13563_v25 = vmax.f32 %v13561_v58, %v13562_v17  ;;  %v13568_v62 = vld [vmem:[#allocation285_spill] sm:$0xff]  ;;  %v8969_v54 = vpop.f32.mrf.mxu0 }
 0x2c1   :  { %13553 = vst [vmem:[#allocation323_spill] sm:$0xff] %v8913_v1  ;;  %v8921_v56 = vadd.f32 %v2413_v47, %v2412_v53  ;;  %v8923_v30 = vadd.f32 %v3421_v19, %v3420_v3  ;;  %v8925_v57 = vadd.f32 %v4429_v50, %v4428_v43  ;;  %v13566_v37 = vmax.f32 %v13564_v5, %v13565_v21  ;;  %v13570_v43 = vld [vmem:[#allocation176_spill] sm:$0xff]  ;;  %v13573_v50 = vld [vmem:[#allocation23_spill] sm:$0xff] }
 0x2c2   :  { %13554 = vst [vmem:[#allocation324_spill] sm:$0xff] %v8915_v36  ;;  %13555 = vst [vmem:[#allocation325_spill] sm:$0xff] %v8917_v12  ;;  %v8941_v34 = vmax.f32 %v13563_v25, %v8919_v41  ;;  %v13569_v53 = vmax.f32 %v13567_v0, %v13568_v62  ;;  %v13572_v61 = vmax.f32 %v13570_v43, %v13571_v29  ;;  %v13574_v25 = vld [vmem:[#allocation24_spill] sm:$0xff]  ;;  %v8971_v36 = vpop.f32.mrf.mxu0 }
 0x2c3   :  { %13556 = vst [vmem:[#allocation326_spill] sm:$0xff] %v8919_v41  ;;  %13557 = vst [vmem:[#allocation327_spill] sm:$0xff] %v8921_v56  ;;  %v8947_v40 = vmax.f32 %v13566_v37, %v8921_v56  ;;  %v1424_v20 = vmul.f32 %v750_v8, %v13548_v46  ;;  %v2432_v52 = vmul.f32 %v750_v8, %v13549_v31  ;;  %v13575_v37 = vld [vmem:[#allocation63_spill] sm:$0xff] }
 0x2c4   :  { %13558 = vst [vmem:[#allocation328_spill] sm:$0xff] %v8923_v30  ;;  %13559 = vst [vmem:[#allocation329_spill] sm:$0xff] %v8925_v57  ;;  %v8953_v3 = vmax.f32 %v13569_v53, %v8923_v30  ;;  %v8959_v55 = vmax.f32 %v13572_v61, %v8925_v57  ;;  %v3440_v47 = vmul.f32 %v750_v8, %v13550_v15  ;;  %v13576_v53 = vld [vmem:[#allocation64_spill] sm:$0xff] }
 0x2c5   :  { %v4448_v19 = vmul.f32 %v750_v8, %v13551_v26  ;;  %v1369_v58 = vmul.f32 %v754_v60, %v13573_v50  ;;  %v2377_v5 = vmul.f32 %v754_v60, %v13574_v25  ;;  %v3385_v0 = vmul.f32 %v754_v60, %v13575_v37  ;;  %13577 = vst [vmem:[#allocation173_spill] sm:$0xff] %v8969_v54 }
 0x2c6   :  { %v4393_v13 = vmul.f32 %v754_v60, %v13576_v53  ;;  %v1457_v43 = vrot.slane %v1424_v20, 4  ;;  %v2465_v61 = vrot.slane %v2432_v52, 4  ;;  %v3473_v24 = vrot.slane %v3440_v47, 4  ;;  %13578 = vst [vmem:[#allocation174_spill] sm:$0xff] %v8971_v36 }
 0x2c7   :  { %v4481_v9 = vrot.slane %v4448_v19, 4  ;;  %v1407_v57 = vrot.slane %v1369_v58, 4  ;;  %v2415_v29 = vrot.slane %v2377_v5, 4  ;;  %v3423_v30 = vrot.slane %v3385_v0, 4 }
 0x2c8   :  { %v4431_v62 = vrot.slane %v4393_v13, 4  ;;  %v1458_v56 = vadd.f32 %v1457_v43, %v1424_v20  ;;  %v2466_v8 = vadd.f32 %v2465_v61, %v2432_v52  ;;  %v3474_v21 = vadd.f32 %v3473_v24, %v3440_v47 }
 0x2c9   :  { %v4482_v41 = vadd.f32 %v4481_v9, %v4448_v19  ;;  %v1408_v17 = vadd.f32 %v1407_v57, %v1369_v58  ;;  %v2416_v6 = vadd.f32 %v2415_v29, %v2377_v5  ;;  %v3424_v12 = vadd.f32 %v3423_v30, %v3385_v0  ;;  %v8973_v30 = vpop.f32.mrf.mxu0  ;;  %v756_v58 = vpop.f32.mrf.mxu1 }
 0x2ca   :  { %v4432_v39 = vadd.f32 %v4431_v62, %v4393_v13  ;;  %v1459_v60 = vrot.slane %v1458_v56, 2  ;;  %v2467_v54 = vrot.slane %v2466_v8, 2  ;;  %v3475_v11 = vrot.slane %v3474_v21, 2  ;;  %13579 = vst [vmem:[#allocation175_spill] sm:$0xff] %v8973_v30 }
 0x2cb   :  { %v4483_v1 = vrot.slane %v4482_v41, 2  ;;  %v1409_v2 = vrot.slane %v1408_v17, 2  ;;  %v2417_v42 = vrot.slane %v2416_v6, 2  ;;  %v3425_v51 = vrot.slane %v3424_v12, 2 }
 0x2cc   :  { %v4433_v26 = vrot.slane %v4432_v39, 2  ;;  %v1460_v15 = vadd.f32 %v1459_v60, %v1458_v56  ;;  %v2468_v31 = vadd.f32 %v2467_v54, %v2466_v8  ;;  %v3476_v20 = vadd.f32 %v3475_v11, %v3474_v21 }
 0x2cd   :  { %v4484_v52 = vadd.f32 %v4483_v1, %v4482_v41  ;;  %v1410_v24 = vadd.f32 %v1409_v2, %v1408_v17  ;;  %v2418_v9 = vadd.f32 %v2417_v42, %v2416_v6  ;;  %v3426_v57 = vadd.f32 %v3425_v51, %v3424_v12  ;;  %v8999_v41 = vpop.f32.mrf.mxu0  ;;  %v760_v6 = vpop.f32.mrf.mxu1 }
 0x2ce   :  { %v4434_v29 = vadd.f32 %v4433_v26, %v4432_v39  ;;  %v1461_v13 = vrot.slane %v1460_v15, 1  ;;  %v2469_v62 = vrot.slane %v2468_v31, 1  ;;  %v3477_v47 = vrot.slane %v3476_v20, 1  ;;  %13588 = vst [vmem:[#allocation334_spill] sm:$0xff] %v8999_v41 }
 0x2cf   :  { %v4485_v19 = vrot.slane %v4484_v52, 1  ;;  %v1411_v5 = vrot.slane %v1410_v24, 1  ;;  %v2419_v0 = vrot.slane %v2418_v9, 1  ;;  %v3427_v43 = vrot.slane %v3426_v57, 1 }
 0x2d0   :  { %v4435_v61 = vrot.slane %v4434_v29, 1  ;;  %v8975_v36 = vadd.f32 %v1461_v13, %v1460_v15  ;;  %v8977_v56 = vadd.f32 %v2469_v62, %v2468_v31  ;;  %v8979_v11 = vadd.f32 %v3477_v47, %v3476_v20  ;;  %v9033_v47 = vpop.f32.mrf.mxu0 }
 0x2d1   :  { %v8981_v2 = vadd.f32 %v4485_v19, %v4484_v52  ;;  %v8983_v51 = vadd.f32 %v1411_v5, %v1410_v24  ;;  %v8985_v39 = vadd.f32 %v2419_v0, %v2418_v9  ;;  %v8987_v26 = vadd.f32 %v3427_v43, %v3426_v57  ;;  %13593 = vst [vmem:[#allocation335_spill] sm:$0xff] %v9033_v47 }
 0x2d2   :  { %13580 = vst [vmem:[#allocation176_spill] sm:$0xff] %v8975_v36  ;;  %13581 = vst [vmem:[#allocation23_spill] sm:$0xff] %v8977_v56  ;;  %v8989_v42 = vadd.f32 %v4435_v61, %v4434_v29  ;;  %v13589_v54 = vmax.f32 %v8659_v38, %v8695_v44  ;;  %v13590_v21 = vmax.f32 %v8665_v35, %v8697_v10 }
 0x2d3   :  { %13582 = vst [vmem:[#allocation24_spill] sm:$0xff] %v8979_v11  ;;  %13583 = vst [vmem:[#allocation63_spill] sm:$0xff] %v8981_v2  ;;  %v13591_v60 = vmax.f32 %v8671_v27, %v8699_v18  ;;  %v13592_v52 = vmax.f32 %v8677_v45, %v8701_v4  ;;  %v1425_v38 = vmul.f32 %v756_v58, %v13573_v50 }
 0x2d4   :  { %13584 = vst [vmem:[#allocation64_spill] sm:$0xff] %v8983_v51  ;;  %13585 = vst [vmem:[#allocation331_spill] sm:$0xff] %v8985_v39  ;;  %v9005_v17 = vmax.f32 %v13589_v54, %v8983_v51  ;;  %v9011_v8 = vmax.f32 %v13590_v21, %v8985_v39  ;;  %v2433_v9 = vmul.f32 %v756_v58, %v13574_v25  ;;  %v9035_v39 = vpop.f32.mrf.mxu0 }
 0x2d5   :  { %13586 = vst [vmem:[#allocation332_spill] sm:$0xff] %v8987_v26  ;;  %13587 = vst [vmem:[#allocation333_spill] sm:$0xff] %v8989_v42  ;;  %v9017_v20 = vmax.f32 %v13591_v60, %v8987_v26  ;;  %v9023_v24 = vmax.f32 %v13592_v52, %v8989_v42  ;;  %v3441_v35 = vmul.f32 %v756_v58, %v13575_v37  ;;  %v1463_v45 = vrot.slane %v1425_v38, 4 }
 0x2d6   :  { %v4449_v57 = vmul.f32 %v756_v58, %v13576_v53  ;;  %v1370_v29 = vmul.f32 %v760_v6, %v13480_v32  ;;  %v2378_v27 = vmul.f32 %v760_v6, %v13481_v48  ;;  %v3386_v13 = vmul.f32 %v760_v6, %v13482_v7  ;;  %13594 = vst [vmem:[#allocation336_spill] sm:$0xff] %v9035_v39 }
 0x2d7   :  { %v4394_v62 = vmul.f32 %v760_v6, %v13483_v59  ;;  %v2471_v19 = vrot.slane %v2433_v9, 4  ;;  %v3479_v5 = vrot.slane %v3441_v35, 4  ;;  %v1464_v60 = vadd.f32 %v1463_v45, %v1425_v38 }
 0x2d8   :  { %v4487_v0 = vrot.slane %v4449_v57, 4  ;;  %v1413_v43 = vrot.slane %v1370_v29, 4  ;;  %v2421_v61 = vrot.slane %v2378_v27, 4  ;;  %v3429_v54 = vrot.slane %v3386_v13, 4 }
 0x2d9   :  { %v4437_v21 = vrot.slane %v4394_v62, 4  ;;  %v2472_v58 = vadd.f32 %v2471_v19, %v2433_v9  ;;  %v3480_v52 = vadd.f32 %v3479_v5, %v3441_v35  ;;  %v1465_v4 = vrot.slane %v1464_v60, 2  ;;  %v9037_v5 = vpop.f32.mrf.mxu0 }
 0x2da   :  { %v4488_v12 = vadd.f32 %v4487_v0, %v4449_v57  ;;  %v1414_v31 = vadd.f32 %v1413_v43, %v1370_v29  ;;  %v2422_v15 = vadd.f32 %v2421_v61, %v2378_v27  ;;  %v3430_v1 = vadd.f32 %v3429_v54, %v3386_v13  ;;  %13595 = vst [vmem:[#allocation337_spill] sm:$0xff] %v9037_v5 }
 0x2db   :  { %v4438_v42 = vadd.f32 %v4437_v21, %v4394_v62  ;;  %v2473_v6 = vrot.slane %v2472_v58, 2  ;;  %v3481_v26 = vrot.slane %v3480_v52, 2  ;;  %v1466_v41 = vadd.f32 %v1465_v4, %v1464_v60 }
 0x2dc   :  { %v4489_v18 = vrot.slane %v4488_v12, 2  ;;  %v1415_v10 = vrot.slane %v1414_v31, 2  ;;  %v2423_v51 = vrot.slane %v2422_v15, 2  ;;  %v3431_v44 = vrot.slane %v3430_v1, 2 }
 0x2dd   :  { %v4439_v47 = vrot.slane %v4438_v42, 2  ;;  %v2474_v30 = vadd.f32 %v2473_v6, %v2472_v58  ;;  %v3482_v38 = vadd.f32 %v3481_v26, %v3480_v52  ;;  %v1467_v13 = vrot.slane %v1466_v41, 1 }
 0x2de   :  { %v4490_v9 = vadd.f32 %v4489_v18, %v4488_v12  ;;  %v1416_v35 = vadd.f32 %v1415_v10, %v1414_v31  ;;  %v2424_v57 = vadd.f32 %v2423_v51, %v2422_v15  ;;  %v3432_v29 = vadd.f32 %v3431_v44, %v3430_v1  ;;  %v762_v1 = vpop.f32.mrf.mxu1 }
 0x2df   :  { %v4440_v27 = vadd.f32 %v4439_v47, %v4438_v42  ;;  %v2475_v62 = vrot.slane %v2474_v30, 1  ;;  %v3483_v45 = vrot.slane %v3482_v38, 1  ;;  %v9039_v21 = vadd.f32 %v1467_v13, %v1466_v41  ;;  %v6242_v41 = vpop.f32.mrf.mxu0 }
 0x2e0   :  { %v4491_v19 = vrot.slane %v4490_v9, 1  ;;  %v1417_v0 = vrot.slane %v1416_v35, 1  ;;  %v2425_v43 = vrot.slane %v2424_v57, 1  ;;  %v3433_v61 = vrot.slane %v3432_v29, 1 }
 0x2e1   :  { %v4441_v54 = vrot.slane %v4440_v27, 1  ;;  %v9041_v4 = vadd.f32 %v2475_v62, %v2474_v30  ;;  %v9043_v26 = vadd.f32 %v3483_v45, %v3482_v38  ;;  %v13601_v47 = vmax.f32 %v8771_v28, %v8807_v63  ;;  %v13606_v62 = vld [vmem:[#allocation9_spill] sm:$0xff] }
 0x2e2   :  { %v9045_v10 = vadd.f32 %v4491_v19, %v4490_v9  ;;  %v9047_v44 = vadd.f32 %v1417_v0, %v1416_v35  ;;  %v9049_v18 = vadd.f32 %v2425_v43, %v2424_v57  ;;  %v9051_v51 = vadd.f32 %v3433_v61, %v3432_v29  ;;  %v13607_v45 = vld [vmem:[#allocation29_spill] sm:$0xff]  ;;  %v13608_v0 = vld [vmem:[#allocation30_spill] sm:$0xff] }
 0x2e3   :  { %v9053_v42 = vadd.f32 %v4441_v54, %v4440_v27  ;;  %v13602_v58 = vmax.f32 %v8777_v49, %v8809_v22  ;;  %v13603_v6 = vmax.f32 %v8783_v23, %v8811_v14  ;;  %v13604_v9 = vmax.f32 %v8789_v16, %v8813_v33  ;;  %v13605_v27 = vld [vmem:[#allocation7_spill] sm:$0xff] }
 0x2e4   :  { %13596 = vst [vmem:[#allocation338_spill] sm:$0xff] %v9045_v10  ;;  %13597 = vst [vmem:[#allocation339_spill] sm:$0xff] %v9047_v44  ;;  %v9067_v60 = vmax.f32 %v13601_v47, %v9047_v44  ;;  %v1426_v28 = vmul.f32 %v762_v1, %v13480_v32  ;;  %v2434_v57 = vmul.f32 %v762_v1, %v13481_v48 }
 0x2e5   :  { %13598 = vst [vmem:[#allocation340_spill] sm:$0xff] %v9049_v18  ;;  %13599 = vst [vmem:[#allocation341_spill] sm:$0xff] %v9051_v51  ;;  %v9073_v52 = vmax.f32 %v13602_v58, %v9049_v18  ;;  %v9079_v38 = vmax.f32 %v13603_v6, %v9051_v51  ;;  %v9085_v35 = vmax.f32 %v13604_v9, %v9053_v42 }
 0x2e6   :  { %13600 = vst [vmem:[#allocation342_spill] sm:$0xff] %v9053_v42  ;;  %v3442_v49 = vmul.f32 %v762_v1, %v13482_v7  ;;  %v4450_v29 = vmul.f32 %v762_v1, %v13483_v59  ;;  %v1476_v13 = vmul.f32 %v6242_v41, %v13605_v27  ;;  %v2484_v23 = vmul.f32 %v6242_v41, %v13606_v62 }
 0x2e7   :  { %v3492_v19 = vmul.f32 %v6242_v41, %v13607_v45  ;;  %v4500_v43 = vmul.f32 %v6242_v41, %v13608_v0  ;;  %v1469_v61 = vrot.slane %v1426_v28, 4  ;;  %v2477_v16 = vrot.slane %v2434_v57, 4 }
 0x2e8   :  { %v3485_v54 = vrot.slane %v3442_v49, 4  ;;  %v4493_v47 = vrot.slane %v4450_v29, 4  ;;  %v1489_v58 = vrot.slane %v1476_v13, 4  ;;  %v2497_v6 = vrot.slane %v2484_v23, 4 }
 0x2e9   :  { %v3505_v9 = vrot.slane %v3492_v19, 4  ;;  %v4513_v12 = vrot.slane %v4500_v43, 4  ;;  %v1470_v31 = vadd.f32 %v1469_v61, %v1426_v28  ;;  %v2478_v30 = vadd.f32 %v2477_v16, %v2434_v57 }
 0x2ea   :  { %v3486_v15 = vadd.f32 %v3485_v54, %v3442_v49  ;;  %v4494_v1 = vadd.f32 %v4493_v47, %v4450_v29  ;;  %v1490_v42 = vadd.f32 %v1489_v58, %v1476_v13  ;;  %v2498_v27 = vadd.f32 %v2497_v6, %v2484_v23 }
 0x2eb   :  { %v3506_v33 = vadd.f32 %v3505_v9, %v3492_v19  ;;  %v4514_v62 = vadd.f32 %v4513_v12, %v4500_v43  ;;  %v1471_v51 = vrot.slane %v1470_v31, 2  ;;  %v2479_v45 = vrot.slane %v2478_v30, 2  ;;  %v13617_v9 = vld [vmem:[#allocation108_spill] sm:$0xff] }
 0x2ec   :  { %v3487_v14 = vrot.slane %v3486_v15, 2  ;;  %v4495_v41 = vrot.slane %v4494_v1, 2  ;;  %v1491_v0 = vrot.slane %v1490_v42, 2  ;;  %v2499_v18 = vrot.slane %v2498_v27, 2 }
 0x2ed   :  { %v3507_v22 = vrot.slane %v3506_v33, 2  ;;  %v4515_v44 = vrot.slane %v4514_v62, 2  ;;  %v1472_v63 = vadd.f32 %v1471_v51, %v1470_v31  ;;  %v2480_v5 = vadd.f32 %v2479_v45, %v2478_v30  ;;  %v13621_v45 = vld [vmem:[#allocation109_spill] sm:$0xff] }
 0x2ee   :  { %v3488_v39 = vadd.f32 %v3487_v14, %v3486_v15  ;;  %v4496_v10 = vadd.f32 %v4495_v41, %v4494_v1  ;;  %v1492_v28 = vadd.f32 %v1491_v0, %v1490_v42  ;;  %v2500_v57 = vadd.f32 %v2499_v18, %v2498_v27  ;;  %v948_v42 = vpop.f32.mrf.mxu0  ;;  %v13618_v1 = vld [vmem:[#allocation288_spill] sm:$0xff]  ;;  %v13622_v41 = vld [vmem:[#allocation289_spill] sm:$0xff]  ;;  %v13633_v15 = vld [vmem:[#allocation14_spill] sm:$0xff] }
 0x2ef   :  { %v3508_v49 = vadd.f32 %v3507_v22, %v3506_v33  ;;  %v4516_v29 = vadd.f32 %v4515_v44, %v4514_v62  ;;  %v1473_v13 = vrot.slane %v1472_v63, 1  ;;  %v2481_v23 = vrot.slane %v2480_v5, 1 }
 0x2f0   :  { %v3489_v19 = vrot.slane %v3488_v39, 1  ;;  %v4497_v12 = vrot.slane %v4496_v10, 1  ;;  %v1493_v43 = vrot.slane %v1492_v28, 1  ;;  %v2501_v61 = vrot.slane %v2500_v57, 1 }
 0x2f1   :  { %v3509_v16 = vrot.slane %v3508_v49, 1  ;;  %v4517_v54 = vrot.slane %v4516_v29, 1  ;;  %v9095_v47 = vadd.f32 %v1473_v13, %v1472_v63  ;;  %v9097_v58 = vadd.f32 %v2481_v23, %v2480_v5  ;;  %v13613_v5 = vld [vmem:[#allocation107_spill] sm:$0xff] }
 0x2f2   :  { %v9099_v51 = vadd.f32 %v3489_v19, %v3488_v39  ;;  %v9101_v14 = vadd.f32 %v4497_v12, %v4496_v10  ;;  %v1494_v18 = vadd.f32 %v1493_v43, %v1492_v28  ;;  %v2502_v22 = vadd.f32 %v2501_v61, %v2500_v57  ;;  %v13614_v10 = vld [vmem:[#allocation287_spill] sm:$0xff]  ;;  %v13625_v57 = vld [vmem:[#allocation110_spill] sm:$0xff]  ;;  %v13630_v12 = vld [vmem:[#allocation5_spill] sm:$0xff] }
 0x2f3   :  { %13609 = vst [vmem:[#allocation7_spill] sm:$0xff] %v9095_v47  ;;  %13610 = vst [vmem:[#allocation9_spill] sm:$0xff] %v9097_v58  ;;  %v3510_v33 = vadd.f32 %v3509_v16, %v3508_v49  ;;  %v4518_v44 = vadd.f32 %v4517_v54, %v4516_v29  ;;  %v13615_v31 = vmax.f32 %v13613_v5, %v13614_v10  ;;  %v13626_v49 = vld [vmem:[#allocation290_spill] sm:$0xff]  ;;  %v13629_v23 = vld [vmem:[#allocation3_spill] sm:$0xff] }
 0x2f4   :  { %13611 = vst [vmem:[#allocation29_spill] sm:$0xff] %v9099_v51  ;;  %13612 = vst [vmem:[#allocation30_spill] sm:$0xff] %v9101_v14  ;;  %v13619_v27 = vmax.f32 %v13617_v9, %v13618_v1  ;;  %v13623_v0 = vmax.f32 %v13621_v45, %v13622_v41  ;;  %v13627_v29 = vmax.f32 %v13625_v57, %v13626_v49  ;;  %v13631_v61 = vld [vmem:[#allocation25_spill] sm:$0xff]  ;;  %v13632_v54 = vld [vmem:[#allocation28_spill] sm:$0xff] }
 0x2f5   :  { %v9114_v6 = vmax.f32 %v13615_v31, %v1494_v18  ;;  %v1475_v19 = vmul.f32 %v948_v42, %v13629_v23  ;;  %v2483_v43 = vmul.f32 %v948_v42, %v13630_v12  ;;  %v3491_v16 = vmul.f32 %v948_v42, %v13631_v61  ;;  %v6245_v31 = vpop.f32.mrf.mxu0  ;;  %v13634_v1 = vld [vmem:[#allocation15_spill] sm:$0xff] }
 0x2f6   :  { %v9119_v62 = vmax.f32 %v13619_v27, %v2502_v22  ;;  %v9124_v28 = vmax.f32 %v13623_v0, %v3510_v33  ;;  %v9129_v13 = vmax.f32 %v13627_v29, %v4518_v44  ;;  %v4499_v5 = vmul.f32 %v948_v42, %v13632_v54 }
 0x2f7   :  { %13616 = vst [vmem:[#allocation107_spill] sm:$0xff] %v9114_v6  ;;  %v1788_v9 = vsub.f32 %v1494_v18, %v9114_v6  ;;  %v1483_v57 = vrot.slane %v1475_v19, 4  ;;  %v2491_v29 = vrot.slane %v2483_v43, 4  ;;  %v3499_v39 = vrot.slane %v3491_v16, 4 }
 0x2f8   :  { %13620 = vst [vmem:[#allocation108_spill] sm:$0xff] %v9119_v62  ;;  %13624 = vst [vmem:[#allocation109_spill] sm:$0xff] %v9124_v28  ;;  %v2796_v27 = vsub.f32 %v2502_v22, %v9119_v62  ;;  %v3804_v45 = vsub.f32 %v3510_v33, %v9124_v28  ;;  %v4812_v0 = vsub.f32 %v4518_v44, %v9129_v13  ;;  %v4507_v63 = vrot.slane %v4499_v5, 4 }
 0x2f9   :  { %13628 = vst [vmem:[#allocation110_spill] sm:$0xff] %v9129_v13  ;;  %v1797_v23 = vmul.f32 1.442695, %v1788_v9  ;;  %v1478_v61 = vmul.f32 %v6245_v31, %v13633_v15  ;;  %v1484_v42 = vadd.f32 %v1483_v57, %v1475_v19  ;;  %v2492_v54 = vadd.f32 %v2491_v29, %v2483_v43 }
 0x2fa   :  { %v2805_v30 = vmul.f32 1.442695, %v2796_v27  ;;  %v3813_v12 = vmul.f32 1.442695, %v3804_v45  ;;  %v4821_v49 = vmul.f32 1.442695, %v4812_v0  ;;  %v3500_v41 = vadd.f32 %v3499_v39, %v3491_v16 }
 0x2fb   :  { %6269 = vpow2.f32 %v1797_v23  ;;  %v4508_v18 = vadd.f32 %v4507_v63, %v4499_v5  ;;  %v1501_v22 = vrot.slane %v1478_v61, 4  ;;  %v2486_v33 = vmul.f32 %v6245_v31, %v13634_v1  ;;  %v13635_v16 = vld [vmem:[#allocation41_spill] sm:$0xff] }
 0x2fc   :  { %6271 = vpow2.f32 %v2805_v30  ;;  %v1485_v44 = vrot.slane %v1484_v42, 2  ;;  %v2493_v10 = vrot.slane %v2492_v54, 2  ;;  %v3501_v13 = vrot.slane %v3500_v41, 2  ;;  %v13636_v30 = vld [vmem:[#allocation46_spill] sm:$0xff] }
 0x2fd   :  { %6273 = vpow2.f32 %v3813_v12  ;;  %v4509_v28 = vrot.slane %v4508_v18, 2  ;;  %v1502_v9 = vadd.f32 %v1501_v22, %v1478_v61  ;;  %v2509_v27 = vrot.slane %v2486_v33, 4 }
 0x2fe   :  { %6275 = vpow2.f32 %v4821_v49  ;;  %v1486_v45 = vadd.f32 %v1485_v44, %v1484_v42  ;;  %v2494_v15 = vadd.f32 %v2493_v10, %v2492_v54  ;;  %v3502_v0 = vadd.f32 %v3501_v13, %v3500_v41  ;;  %v13637_v54 = vld [vmem:[#allocation83_spill] sm:$0xff] }
 0x2ff   :  { %v4510_v19 = vadd.f32 %v4509_v28, %v4508_v18  ;;  %v1503_v43 = vrot.slane %v1502_v9, 2  ;;  %v2510_v39 = vadd.f32 %v2509_v27, %v2486_v33  ;;  %v3494_v63 = vmul.f32 %v6245_v31, %v13635_v16  ;;  %v13638_v18 = vld [vmem:[#allocation271_spill] sm:$0xff]  ;;  %v13640_v27 = vld [vmem:[#allocation84_spill] sm:$0xff] }
 0x300   :  { %v1487_v5 = vrot.slane %v1486_v45, 1  ;;  %v2495_v57 = vrot.slane %v2494_v15, 1  ;;  %v3503_v1 = vrot.slane %v3502_v0, 1  ;;  %v4502_v29 = vmul.f32 %v6245_v31, %v13636_v30  ;;  %v13641_v16 = vld [vmem:[#allocation272_spill] sm:$0xff] }
 0x301   :  { %v4511_v23 = vrot.slane %v4510_v19, 1  ;;  %v1504_v62 = vadd.f32 %v1503_v43, %v1502_v9  ;;  %v2511_v12 = vrot.slane %v2510_v39, 2  ;;  %v3517_v6 = vrot.slane %v3494_v63, 4  ;;  %v13643_v9 = vld [vmem:[#allocation85_spill] sm:$0xff] }
 0x302   :  { %v1488_v61 = vadd.f32 %v1487_v5, %v1486_v45  ;;  %v2496_v22 = vadd.f32 %v2495_v57, %v2494_v15  ;;  %v3504_v49 = vadd.f32 %v3503_v1, %v3502_v0  ;;  %v4525_v42 = vrot.slane %v4502_v29, 4  ;;  %v13644_v43 = vld [vmem:[#allocation273_spill] sm:$0xff]  ;;  %v13647_v5 = vld [vmem:[#allocation274_spill] sm:$0xff] }
 0x303   :  { %v4512_v10 = vadd.f32 %v4511_v23, %v4510_v19  ;;  %v1505_v41 = vrot.slane %v1504_v62, 1  ;;  %v2512_v28 = vadd.f32 %v2511_v12, %v2510_v39  ;;  %v3518_v13 = vadd.f32 %v3517_v6, %v3494_v63  ;;  %v13646_v19 = vld [vmem:[#allocation86_spill] sm:$0xff] }
 0x304   :  { %v13639_v33 = vmax.f32 %v13637_v54, %v13638_v18  ;;  %v13642_v31 = vmax.f32 %v13640_v27, %v13641_v16  ;;  %v13645_v45 = vmax.f32 %v13643_v9, %v13644_v43  ;;  %v4526_v0 = vadd.f32 %v4525_v42, %v4502_v29  ;;  %v13651_v9 = vld [vmem:[#allocation315_spill] sm:$0xff]  ;;  %v13657_v18 = vld [vmem:[#allocation316_spill] sm:$0xff] }
 0x305   :  { %v13648_v39 = vmax.f32 %v13646_v19, %v13647_v5  ;;  %v1506_v63 = vadd.f32 %v1505_v41, %v1504_v62  ;;  %v2513_v57 = vrot.slane %v2512_v28, 1  ;;  %v3519_v1 = vrot.slane %v3518_v13, 2 }
 0x306   :  { %v9146_v44 = vmax.f32 %v13639_v33, %v1488_v61  ;;  %v9151_v30 = vmax.f32 %v13642_v31, %v2496_v22  ;;  %v9156_v15 = vmax.f32 %v13645_v45, %v3504_v49  ;;  %v4527_v33 = vrot.slane %v4526_v0, 2  ;;  %v13650_v31 = vld [vmem:[#allocation311_spill] sm:$0xff] }
 0x307   :  { %v9161_v6 = vmax.f32 %v13648_v39, %v4512_v10  ;;  %v13652_v29 = vmax.f32 %v13650_v31, %v13651_v9  ;;  %v2514_v45 = vadd.f32 %v2513_v57, %v2512_v28  ;;  %v3520_v19 = vadd.f32 %v3519_v1, %v3518_v13  ;;  %v958_v39 = vpop.f32.mrf.mxu0  ;;  %v13661_v57 = vld [vmem:[#allocation11_spill] sm:$0xff] }
 0x308   :  { %v1787_v23 = vsub.f32 %v1488_v61, %v9146_v44  ;;  %v2795_v12 = vsub.f32 %v2496_v22, %v9151_v30  ;;  %v3803_v54 = vsub.f32 %v3504_v49, %v9156_v15  ;;  %v9172_v62 = vpop.eup %6269  ;;  %v4528_v43 = vadd.f32 %v4527_v33, %v4526_v0 }
 0x309   :  { %13649 = vst [vmem:[#allocation3_spill] sm:$0xff] %v9161_v6  ;;  %v4811_v27 = vsub.f32 %v4512_v10, %v9161_v6  ;;  %v9170_v42 = vmax.f32 %v13652_v29, %v1506_v63  ;;  %13654 = vst [vmem:[#allocation25_spill] sm:$0xff] %v9172_v62  ;;  %v9174_v22 = vpop.eup %6271  ;;  %v13656_v10 = vld [vmem:[#allocation312_spill] sm:$0xff]  ;;  %v3521_v29 = vrot.slane %v3520_v19, 1  ;;  %v1477_v1 = vmul.f32 %v958_v39, %v13661_v57  ;;  %v13668_v57 = vld [vmem:[#allocation39_spill] sm:$0xff]  ;;  %v6248_v9 = vpop.f32.mrf.mxu0 }
 0x30a   :  { %v1795_v41 = vmul.f32 1.442695, %v1787_v23  ;;  %v2803_v5 = vmul.f32 1.442695, %v2795_v12  ;;  %v3811_v61 = vmul.f32 1.442695, %v3803_v54  ;;  %v13658_v6 = vmax.f32 %v13656_v10, %v13657_v18  ;;  %v9182_v28 = vpop.eup %6273 }
 0x30b   :  { %13653 = vst [vmem:[#allocation5_spill] sm:$0xff] %v9170_v42  ;;  %13655 = vst [vmem:[#allocation28_spill] sm:$0xff] %v9174_v22  ;;  %v4819_v49 = vmul.f32 1.442695, %v4811_v27  ;;  %v1790_v16 = vsub.f32 %v1506_v63, %v9170_v42  ;;  %v4529_v13 = vrot.slane %v4528_v43, 1  ;;  %v13662_v23 = vld [vmem:[#allocation12_spill] sm:$0xff]  ;;  %v9186_v0 = vpop.eup %6275  ;;  %v3522_v33 = vadd.f32 %v3521_v29, %v3520_v19 }
 0x30c   :  { %v9180_v31 = vmax.f32 %v13658_v6, %v2514_v45  ;;  %13660 = vst [vmem:[#allocation15_spill] sm:$0xff] %v9182_v28  ;;  %6277 = vpow2.f32 %v1795_v41  ;;  %v2485_v12 = vmul.f32 %v958_v39, %v13662_v23  ;;  %13663 = vst [vmem:[#allocation41_spill] sm:$0xff] %v9186_v0  ;;  %v1495_v6 = vrot.slane %v1477_v1, 4  ;;  %v13664_v28 = vld [vmem:[#allocation313_spill] sm:$0xff]  ;;  %v13673_v29 = vld [vmem:[#allocation40_spill] sm:$0xff] }
 0x30d   :  { %6279 = vpow2.f32 %v2803_v5  ;;  %v1801_v54 = vmul.f32 1.442695, %v1790_v16  ;;  %v4530_v27 = vadd.f32 %v4529_v13, %v4528_v43  ;;  %v13665_v41 = vld [vmem:[#allocation317_spill] sm:$0xff]  ;;  %v3493_v23 = vmul.f32 %v958_v39, %v13668_v57  ;;  %v13669_v5 = vld [vmem:[#allocation314_spill] sm:$0xff] }
 0x30e   :  { %13659 = vst [vmem:[#allocation14_spill] sm:$0xff] %v9180_v31  ;;  %v2798_v63 = vsub.f32 %v2514_v45, %v9180_v31  ;;  %6281 = vpow2.f32 %v3811_v61  ;;  %v2503_v10 = vrot.slane %v2485_v12, 4  ;;  %v13666_v62 = vmax.f32 %v13664_v28, %v13665_v41  ;;  %v13670_v16 = vld [vmem:[#allocation318_spill] sm:$0xff] }
 0x30f   :  { %6283 = vpow2.f32 %v4819_v49  ;;  %v13671_v0 = vmax.f32 %v13669_v5, %v13670_v16  ;;  %v1496_v19 = vadd.f32 %v1495_v6, %v1477_v1  ;;  %v3511_v49 = vrot.slane %v3493_v23, 4  ;;  %v13674_v5 = vld [vmem:[#allocation21_spill] sm:$0xff] }
 0x310   :  { %v2809_v22 = vmul.f32 1.442695, %v2798_v63  ;;  %v9192_v18 = vmax.f32 %v13666_v62, %v3522_v33  ;;  %6285 = vpow2.f32 %v1801_v54  ;;  %v2504_v43 = vadd.f32 %v2503_v10, %v2485_v12 }
 0x311   :  { %v9198_v45 = vmax.f32 %v13671_v0, %v4530_v27  ;;  %v4501_v13 = vmul.f32 %v958_v39, %v13673_v29  ;;  %v1497_v28 = vrot.slane %v1496_v19, 2  ;;  %v1480_v57 = vmul.f32 %v6248_v9, %v13548_v46 }
 0x312   :  { %13667 = vst [vmem:[#allocation46_spill] sm:$0xff] %v9192_v18  ;;  %6287 = vpow2.f32 %v2809_v22  ;;  %v3806_v61 = vsub.f32 %v3522_v33, %v9192_v18  ;;  %v2505_v63 = vrot.slane %v2504_v43, 2  ;;  %v3512_v41 = vadd.f32 %v3511_v49, %v3493_v23 }
 0x313   :  { %13672 = vst [vmem:[#allocation83_spill] sm:$0xff] %v9198_v45  ;;  %v4814_v62 = vsub.f32 %v4530_v27, %v9198_v45  ;;  %v4519_v31 = vrot.slane %v4501_v13, 4  ;;  %v2488_v0 = vmul.f32 %v6248_v9, %v13674_v5  ;;  %v1498_v1 = vadd.f32 %v1497_v28, %v1496_v19 }
 0x314   :  { %v3817_v54 = vmul.f32 1.442695, %v3806_v61  ;;  %v2506_v12 = vadd.f32 %v2505_v63, %v2504_v43  ;;  %v1513_v22 = vrot.slane %v1480_v57, 4  ;;  %v3513_v33 = vrot.slane %v3512_v41, 2  ;;  %v13675_v61 = vld [vmem:[#allocation53_spill] sm:$0xff] }
 0x315   :  { %v4825_v16 = vmul.f32 1.442695, %v4814_v62  ;;  %v4520_v6 = vadd.f32 %v4519_v31, %v4501_v13  ;;  %v2521_v10 = vrot.slane %v2488_v0, 4  ;;  %v1499_v39 = vrot.slane %v1498_v1, 1  ;;  %v13676_v62 = vld [vmem:[#allocation58_spill] sm:$0xff] }
 0x316   :  { %6289 = vpow2.f32 %v3817_v54  ;;  %v2507_v27 = vrot.slane %v2506_v12, 1  ;;  %v1514_v29 = vadd.f32 %v1513_v22, %v1480_v57  ;;  %v3514_v45 = vadd.f32 %v3513_v33, %v3512_v41  ;;  %v13679_v54 = vld [vmem:[#allocation299_spill] sm:$0xff]  ;;  %v13680_v57 = vld [vmem:[#allocation26_spill] sm:$0xff] }
 0x317   :  { %6291 = vpow2.f32 %v4825_v16  ;;  %v4521_v18 = vrot.slane %v4520_v6, 2  ;;  %v2522_v46 = vadd.f32 %v2521_v10, %v2488_v0  ;;  %v3496_v23 = vmul.f32 %v6248_v9, %v13675_v61  ;;  %v13682_v0 = vld [vmem:[#allocation300_spill] sm:$0xff]  ;;  %v13683_v33 = vld [vmem:[#allocation27_spill] sm:$0xff] }
 0x318   :  { %v1500_v49 = vadd.f32 %v1499_v39, %v1498_v1  ;;  %v2508_v42 = vadd.f32 %v2507_v27, %v2506_v12  ;;  %v1515_v5 = vrot.slane %v1514_v29, 2  ;;  %v4504_v19 = vmul.f32 %v6248_v9, %v13676_v62 }
 0x319   :  { %v9207_v43 = vpop.eup %6277  ;;  %v3515_v28 = vrot.slane %v3514_v45, 1  ;;  %v4522_v63 = vadd.f32 %v4521_v18, %v4520_v6  ;;  %v2523_v31 = vrot.slane %v2522_v46, 2  ;;  %v3529_v13 = vrot.slane %v3496_v23, 4 }
 0x31a   :  { %13677 = vst [vmem:[#allocation84_spill] sm:$0xff] %v9207_v43  ;;  %v9209_v16 = vpop.eup %6279  ;;  %v13681_v41 = vmax.f32 %v13679_v54, %v13680_v57  ;;  %v13684_v1 = vmax.f32 %v13682_v0, %v13683_v33  ;;  %v1516_v10 = vadd.f32 %v1515_v5, %v1514_v29  ;;  %v4537_v9 = vrot.slane %v4504_v19, 4  ;;  %v13688_v0 = vld [vmem:[#allocation301_spill] sm:$0xff] }
 0x31b   :  { %13678 = vst [vmem:[#allocation85_spill] sm:$0xff] %v9209_v16  ;;  %v9221_v39 = vpop.eup %6281  ;;  %v3516_v27 = vadd.f32 %v3515_v28, %v3514_v45  ;;  %v4523_v18 = vrot.slane %v4522_v63, 1  ;;  %v2524_v6 = vadd.f32 %v2523_v31, %v2522_v46  ;;  %v3530_v61 = vadd.f32 %v3529_v13, %v3496_v23  ;;  %v968_v46 = vpop.f32.mrf.mxu0 }
 0x31c   :  { %v9214_v22 = vmax.f32 %v13681_v41, %v1500_v49  ;;  %v9219_v12 = vmax.f32 %v13684_v1, %v2508_v42  ;;  %13685 = vst [vmem:[#allocation86_spill] sm:$0xff] %v9221_v39  ;;  %v9223_v62 = vpop.eup %6283  ;;  %v1517_v41 = vrot.slane %v1516_v10, 1  ;;  %v4538_v43 = vadd.f32 %v4537_v9, %v4504_v19  ;;  %v13689_v1 = vld [vmem:[#allocation69_spill] sm:$0xff]  ;;  %v13692_v19 = vld [vmem:[#allocation302_spill] sm:$0xff] }
 0x31d   :  { %13686 = vst [vmem:[#allocation311_spill] sm:$0xff] %v9223_v62  ;;  %v9227_v57 = vpop.eup %6285  ;;  %v13690_v29 = vmax.f32 %v13688_v0, %v13689_v1  ;;  %v4524_v39 = vadd.f32 %v4523_v18, %v4522_v63  ;;  %v2525_v45 = vrot.slane %v2524_v6, 1  ;;  %v3531_v28 = vrot.slane %v3530_v61, 2  ;;  %v13693_v9 = vld [vmem:[#allocation70_spill] sm:$0xff] }
 0x31e   :  { %v1789_v16 = vsub.f32 %v1500_v49, %v9214_v22  ;;  %v2797_v54 = vsub.f32 %v2508_v42, %v9219_v12  ;;  %13687 = vst [vmem:[#allocation312_spill] sm:$0xff] %v9227_v57  ;;  %v1518_v49 = vadd.f32 %v1517_v41, %v1516_v10  ;;  %v4539_v62 = vrot.slane %v4538_v43, 2 }
 0x31f   :  { %v9232_v5 = vmax.f32 %v13690_v29, %v3516_v27  ;;  %v9234_v23 = vpop.eup %6287  ;;  %v13694_v57 = vmax.f32 %v13692_v19, %v13693_v9  ;;  %v2526_v0 = vadd.f32 %v2525_v45, %v2524_v6  ;;  %v3532_v29 = vadd.f32 %v3531_v28, %v3530_v61 }
 0x320   :  { %13691 = vst [vmem:[#allocation11_spill] sm:$0xff] %v9234_v23  ;;  %v1799_v31 = vmul.f32 1.442695, %v1789_v16  ;;  %v2807_v13 = vmul.f32 1.442695, %v2797_v54  ;;  %v13695_v63 = vmax.f32 %v8941_v34, %v8975_v36  ;;  %v4540_v23 = vadd.f32 %v4539_v62, %v4538_v43  ;;  %v13696_v16 = vld [vmem:[#allocation17_spill] sm:$0xff] }
 0x321   :  { %v3805_v42 = vsub.f32 %v3516_v27, %v9232_v5  ;;  %v9240_v33 = vmax.f32 %v13694_v57, %v4524_v39  ;;  %v1479_v54 = vmul.f32 %v968_v46, %v13696_v16  ;;  %v13697_v41 = vmax.f32 %v8947_v40, %v8977_v56  ;;  %v6251_v56 = vpop.f32.mrf.mxu0  ;;  %v13722_v36 = vld [vmem:[#allocation325_spill] sm:$0xff] }
 0x322   :  { %6293 = vpow2.f32 %v1799_v31  ;;  %v9245_v18 = vmax.f32 %v13695_v63, %v1518_v49  ;;  %v3533_v45 = vrot.slane %v3532_v29, 1  ;;  %v4541_v34 = vrot.slane %v4540_v23, 1 }
 0x323   :  { %6295 = vpow2.f32 %v2807_v13  ;;  %v3815_v10 = vmul.f32 1.442695, %v3805_v42  ;;  %v4813_v27 = vsub.f32 %v4524_v39, %v9240_v33  ;;  %v9252_v57 = vmax.f32 %v13697_v41, %v2526_v0  ;;  %v9254_v6 = vpop.eup %6289  ;;  %v13700_v13 = vld [vmem:[#allocation18_spill] sm:$0xff] }
 0x324   :  { %13698 = vst [vmem:[#allocation12_spill] sm:$0xff] %v9254_v6  ;;  %v1792_v61 = vsub.f32 %v1518_v49, %v9245_v18  ;;  %v1507_v28 = vrot.slane %v1479_v54, 4  ;;  %v9257_v31 = vpop.eup %6291  ;;  %v2487_v39 = vmul.f32 %v968_v46, %v13700_v13  ;;  %v3534_v19 = vadd.f32 %v3533_v45, %v3532_v29  ;;  %v13701_v6 = vld [vmem:[#allocation51_spill] sm:$0xff] }
 0x325   :  { %13699 = vst [vmem:[#allocation313_spill] sm:$0xff] %v9257_v31  ;;  %6297 = vpow2.f32 %v3815_v10  ;;  %v4823_v43 = vmul.f32 1.442695, %v4813_v27  ;;  %v2800_v62 = vsub.f32 %v2526_v0, %v9252_v57  ;;  %v4542_v40 = vadd.f32 %v4541_v34, %v4540_v23 }
 0x326   :  { %v1805_v42 = vmul.f32 1.442695, %v1792_v61  ;;  %v1508_v63 = vadd.f32 %v1507_v28, %v1479_v54  ;;  %v2515_v41 = vrot.slane %v2487_v39, 4  ;;  %v3495_v49 = vmul.f32 %v968_v46, %v13701_v6  ;;  %v13705_v61 = vld [vmem:[#allocation52_spill] sm:$0xff] }
 0x327   :  { %6299 = vpow2.f32 %v4823_v43  ;;  %v2813_v16 = vmul.f32 1.442695, %v2800_v62  ;;  %v13702_v31 = vmax.f32 %v8953_v3, %v8979_v11  ;;  %v13703_v0 = vmax.f32 %v8959_v55, %v8981_v2 }
 0x328   :  { %6301 = vpow2.f32 %v1805_v42  ;;  %v1509_v29 = vrot.slane %v1508_v63, 2  ;;  %v2516_v23 = vadd.f32 %v2515_v41, %v2487_v39  ;;  %v3523_v54 = vrot.slane %v3495_v49, 4 }
 0x329   :  { %v9265_v10 = vmax.f32 %v13702_v31, %v3534_v19  ;;  %v9270_v27 = vmax.f32 %v13703_v0, %v4542_v40  ;;  %6303 = vpow2.f32 %v2813_v16  ;;  %v4503_v45 = vmul.f32 %v968_v46, %v13705_v61 }
 0x32a   :  { %v1510_v28 = vadd.f32 %v1509_v29, %v1508_v63  ;;  %v1482_v3 = vmul.f32 %v6251_v56, %v13480_v32  ;;  %v2517_v31 = vrot.slane %v2516_v23, 2  ;;  %v3524_v43 = vadd.f32 %v3523_v54, %v3495_v49  ;;  %v13708_v54 = vld [vmem:[#allocation260_spill] sm:$0xff] }
 0x32b   :  { %13704 = vst [vmem:[#allocation39_spill] sm:$0xff] %v9270_v27  ;;  %v3808_v6 = vsub.f32 %v3534_v19, %v9265_v10  ;;  %v4816_v34 = vsub.f32 %v4542_v40, %v9270_v27  ;;  %v4531_v62 = vrot.slane %v4503_v45, 4  ;;  %v2490_v55 = vmul.f32 %v6251_v56, %v13481_v48 }
 0x32c   :  { %v1511_v0 = vrot.slane %v1510_v28, 1  ;;  %v1525_v16 = vrot.slane %v1482_v3, 4  ;;  %v2518_v39 = vadd.f32 %v2517_v31, %v2516_v23  ;;  %v3525_v41 = vrot.slane %v3524_v43, 2 }
 0x32d   :  { %v3821_v13 = vmul.f32 1.442695, %v3808_v6  ;;  %v4829_v42 = vmul.f32 1.442695, %v4816_v34  ;;  %v4532_v2 = vadd.f32 %v4531_v62, %v4503_v45  ;;  %v2533_v46 = vrot.slane %v2490_v55, 4  ;;  %v13709_v6 = vld [vmem:[#allocation20_spill] sm:$0xff] }
 0x32e   :  { %v1512_v19 = vadd.f32 %v1511_v0, %v1510_v28  ;;  %v1526_v61 = vadd.f32 %v1525_v16, %v1482_v3  ;;  %v3498_v40 = vmul.f32 %v6251_v56, %v13482_v7  ;;  %v2519_v32 = vrot.slane %v2518_v39, 1 }
 0x32f   :  { %6305 = vpow2.f32 %v3821_v13  ;;  %v9278_v63 = vpop.eup %6293  ;;  %v3526_v49 = vadd.f32 %v3525_v41, %v3524_v43  ;;  %v4533_v29 = vrot.slane %v4532_v2, 2  ;;  %v13710_v34 = vmax.f32 %v13708_v54, %v13709_v6 }
 0x330   :  { %13706 = vst [vmem:[#allocation314_spill] sm:$0xff] %v9278_v63  ;;  %6307 = vpow2.f32 %v4829_v42  ;;  %v9280_v48 = vpop.eup %6295  ;;  %v1527_v45 = vrot.slane %v1526_v61, 2  ;;  %v2534_v31 = vadd.f32 %v2533_v46, %v2490_v55  ;;  %v3541_v62 = vrot.slane %v3498_v40, 4  ;;  %v13713_v63 = vld [vmem:[#allocation323_spill] sm:$0xff] }
 0x331   :  { %13707 = vst [vmem:[#allocation40_spill] sm:$0xff] %v9280_v48  ;;  %v9285_v23 = vmax.f32 %v13710_v34, %v1512_v19  ;;  %v2520_v28 = vadd.f32 %v2519_v32, %v2518_v39  ;;  %v3527_v3 = vrot.slane %v3526_v49, 1  ;;  %v4534_v13 = vadd.f32 %v4533_v29, %v4532_v2  ;;  %v13712_v48 = vld [vmem:[#allocation261_spill] sm:$0xff] }
 0x332   :  { %v4506_v7 = vmul.f32 %v6251_v56, %v13483_v59  ;;  %v9288_v0 = vpop.eup %6297  ;;  %v1528_v42 = vadd.f32 %v1527_v45, %v1526_v61  ;;  %v2535_v16 = vrot.slane %v2534_v31, 2  ;;  %v3542_v41 = vadd.f32 %v3541_v62, %v3498_v40  ;;  %v13717_v61 = vld [vmem:[#allocation262_spill] sm:$0xff]  ;;  %v13718_v40 = vld [vmem:[#allocation324_spill] sm:$0xff] }
 0x333   :  { %13711 = vst [vmem:[#allocation21_spill] sm:$0xff] %v9288_v0  ;;  %v1791_v43 = vsub.f32 %v1512_v19, %v9285_v23  ;;  %v13714_v54 = vmax.f32 %v13712_v48, %v13713_v63  ;;  %v3528_v11 = vadd.f32 %v3527_v3, %v3526_v49  ;;  %v4535_v55 = vrot.slane %v4534_v13, 1  ;;  %v978_v49 = vpop.f32.mrf.mxu0 }
 0x334   :  { %v4549_v46 = vrot.slane %v4506_v7, 4  ;;  %v9296_v39 = vpop.eup %6299  ;;  %v1529_v32 = vrot.slane %v1528_v42, 1  ;;  %v2536_v59 = vadd.f32 %v2535_v16, %v2534_v31  ;;  %v3543_v56 = vrot.slane %v3542_v41, 2 }
 0x335   :  { %v9294_v34 = vmax.f32 %v13714_v54, %v2520_v28  ;;  %13715 = vst [vmem:[#allocation53_spill] sm:$0xff] %v9296_v39  ;;  %v1803_v2 = vmul.f32 1.442695, %v1791_v43  ;;  %v9298_v29 = vpop.eup %6301  ;;  %v13719_v45 = vmax.f32 %v13717_v61, %v13718_v40  ;;  %v4536_v48 = vadd.f32 %v4535_v55, %v4534_v13 }
 0x336   :  { %13716 = vst [vmem:[#allocation58_spill] sm:$0xff] %v9298_v29  ;;  %v4550_v54 = vadd.f32 %v4549_v46, %v4506_v7  ;;  %v9306_v3 = vpop.eup %6303  ;;  %v1530_v39 = vadd.f32 %v1529_v32, %v1528_v42  ;;  %v2537_v43 = vrot.slane %v2536_v59, 1  ;;  %v3544_v0 = vadd.f32 %v3543_v56, %v3542_v41  ;;  %v13721_v29 = vld [vmem:[#allocation160_spill] sm:$0xff] }
 0x337   :  { %v2799_v19 = vsub.f32 %v2520_v28, %v9294_v34  ;;  %v9304_v62 = vmax.f32 %v13719_v45, %v3528_v11  ;;  %13720 = vst [vmem:[#allocation299_spill] sm:$0xff] %v9306_v3  ;;  %6309 = vpow2.f32 %v1803_v2  ;;  %v13723_v28 = vmax.f32 %v13721_v29, %v13722_v36 }
 0x338   :  { %v4551_v61 = vrot.slane %v4550_v54, 2  ;;  %v13724_v13 = vmax.f32 %v9067_v60, %v9095_v47  ;;  %v2538_v55 = vadd.f32 %v2537_v43, %v2536_v59  ;;  %v3545_v46 = vrot.slane %v3544_v0, 1 }
 0x339   :  { %v2811_v31 = vmul.f32 1.442695, %v2799_v19  ;;  %v3807_v16 = vsub.f32 %v3528_v11, %v9304_v62  ;;  %v9312_v27 = vmax.f32 %v13723_v28, %v4536_v48  ;;  %v1481_v42 = vmul.f32 %v978_v49, %v13573_v50 }
 0x33a   :  { %v9317_v7 = vmax.f32 %v13724_v13, %v1530_v39  ;;  %v4552_v11 = vadd.f32 %v4551_v61, %v4550_v54  ;;  %v13725_v56 = vmax.f32 %v9073_v52, %v9097_v58  ;;  %v3546_v19 = vadd.f32 %v3545_v46, %v3544_v0 }
 0x33b   :  { %6311 = vpow2.f32 %v2811_v31  ;;  %v3819_v41 = vmul.f32 1.442695, %v3807_v16  ;;  %v4815_v2 = vsub.f32 %v4536_v48, %v9312_v27  ;;  %v1519_v60 = vrot.slane %v1481_v42, 4 }
 0x33c   :  { %v1794_v32 = vsub.f32 %v1530_v39, %v9317_v7  ;;  %v9325_v29 = vmax.f32 %v13725_v56, %v2538_v55  ;;  %v9327_v45 = vpop.eup %6305  ;;  %v4553_v43 = vrot.slane %v4552_v11, 1  ;;  %v2489_v50 = vmul.f32 %v978_v49, %v13574_v25  ;;  %v13733_v56 = vld [vmem:[#allocation31_spill] sm:$0xff] }
 0x33d   :  { %13727 = vst [vmem:[#allocation301_spill] sm:$0xff] %v9327_v45  ;;  %6313 = vpow2.f32 %v3819_v41  ;;  %v4827_v59 = vmul.f32 1.442695, %v4815_v2  ;;  %v9330_v31 = vpop.eup %6307  ;;  %v13729_v39 = vmax.f32 %v9079_v38, %v9099_v51  ;;  %v1520_v16 = vadd.f32 %v1519_v60, %v1481_v42 }
 0x33e   :  { %13726 = vst [vmem:[#allocation300_spill] sm:$0xff] %v9325_v29  ;;  %13728 = vst [vmem:[#allocation69_spill] sm:$0xff] %v9330_v31  ;;  %v1809_v48 = vmul.f32 1.442695, %v1794_v32  ;;  %v2802_v54 = vsub.f32 %v2538_v55, %v9325_v29  ;;  %v4554_v0 = vadd.f32 %v4553_v43, %v4552_v11  ;;  %v2527_v28 = vrot.slane %v2489_v50, 4 }
 0x33f   :  { %v9336_v52 = vmax.f32 %v13729_v39, %v3546_v19  ;;  %6315 = vpow2.f32 %v4827_v59  ;;  %v3497_v61 = vmul.f32 %v978_v49, %v13575_v37  ;;  %v1521_v46 = vrot.slane %v1520_v16, 2 }
 0x340   :  { %6317 = vpow2.f32 %v1809_v48  ;;  %v2817_v13 = vmul.f32 1.442695, %v2802_v54  ;;  %v13731_v41 = vmax.f32 %v9085_v35, %v9101_v14  ;;  %v2528_v2 = vadd.f32 %v2527_v28, %v2489_v50  ;;  %v13734_v54 = vld [vmem:[#allocation35_spill] sm:$0xff] }
 0x341   :  { %13730 = vst [vmem:[#allocation302_spill] sm:$0xff] %v9336_v52  ;;  %v3810_v25 = vsub.f32 %v3546_v19, %v9336_v52  ;;  %v3535_v38 = vrot.slane %v3497_v61, 4  ;;  %v4505_v32 = vmul.f32 %v978_v49, %v13576_v53  ;;  %v1522_v11 = vadd.f32 %v1521_v46, %v1520_v16 }
 0x342   :  { %v9343_v55 = vmax.f32 %v13731_v41, %v4554_v0  ;;  %6319 = vpow2.f32 %v2817_v13  ;;  %v1595_v37 = vsub.f32 %v13733_v56, %v9146_v44  ;;  %v2529_v59 = vrot.slane %v2528_v2, 2 }
 0x343   :  { %v3825_v42 = vmul.f32 1.442695, %v3810_v25  ;;  %v3536_v19 = vadd.f32 %v3535_v38, %v3497_v61  ;;  %v4543_v43 = vrot.slane %v4505_v32, 4  ;;  %v1523_v48 = vrot.slane %v1522_v11, 1 }
 0x344   :  { %13732 = vst [vmem:[#allocation70_spill] sm:$0xff] %v9343_v55  ;;  %v4818_v60 = vsub.f32 %v4554_v0, %v9343_v55  ;;  %v1603_v35 = vmul.f32 1.442695, %v1595_v37  ;;  %v1619_v50 = vsub.f32 %v13734_v54, %v9146_v44  ;;  %v9351_v39 = vpop.eup %6309  ;;  %v2530_v49 = vadd.f32 %v2529_v59, %v2528_v2  ;;  %v13736_v0 = vld [vmem:[#allocation79_spill] sm:$0xff]  ;;  %v13787_v55 = vld [vmem:[#allocation94_spill] sm:$0xff] }
 0x345   :  { %6321 = vpow2.f32 %v3825_v42  ;;  %13735 = vst [vmem:[#allocation17_spill] sm:$0xff] %v9351_v39  ;;  %v3537_v28 = vrot.slane %v3536_v19, 2  ;;  %v4544_v16 = vadd.f32 %v4543_v43, %v4505_v32  ;;  %v1524_v13 = vadd.f32 %v1523_v48, %v1522_v11  ;;  %v13739_v32 = vld [vmem:[#allocation91_spill] sm:$0xff]  ;;  %v13740_v48 = vld [vmem:[#allocation213_spill] sm:$0xff] }
 0x346   :  { %v4833_v53 = vmul.f32 1.442695, %v4818_v60  ;;  %6323 = vpow2.f32 %v1603_v35  ;;  %v1627_v25 = vmul.f32 1.442695, %v1619_v50  ;;  %v1643_v46 = vsub.f32 %v13736_v0, %v9146_v44 }
 0x347   :  { %v2531_v61 = vrot.slane %v2530_v49, 1  ;;  %v3538_v41 = vadd.f32 %v3537_v28, %v3536_v19  ;;  %v4545_v38 = vrot.slane %v4544_v16, 2  ;;  %v13738_v56 = vmax.f32 %v9005_v17, %v9039_v21  ;;  %v13742_v17 = vld [vmem:[#allocation220_spill] sm:$0xff] }
 0x348   :  { %6325 = vpow2.f32 %v4833_v53  ;;  %v9355_v42 = vpop.eup %6311  ;;  %v1651_v2 = vmul.f32 1.442695, %v1643_v46  ;;  %v1667_v11 = vsub.f32 %v13739_v32, %v9146_v44  ;;  %v1691_v35 = vsub.f32 %v13740_v48, %v9146_v44  ;;  %v13748_v48 = vld [vmem:[#allocation32_spill] sm:$0xff] }
 0x349   :  { %13737 = vst [vmem:[#allocation18_spill] sm:$0xff] %v9355_v42  ;;  %v9360_v37 = vmax.f32 %v13738_v56, %v1524_v13  ;;  %6327 = vpow2.f32 %v1627_v25  ;;  %v2532_v60 = vadd.f32 %v2531_v61, %v2530_v49  ;;  %v3539_v59 = vrot.slane %v3538_v41, 1 }
 0x34a   :  { %v4546_v43 = vadd.f32 %v4545_v38, %v4544_v16  ;;  %v9366_v19 = vpop.eup %6313  ;;  %6329 = vpow2.f32 %v1651_v2  ;;  %v1675_v50 = vmul.f32 1.442695, %v1667_v11  ;;  %v1715_v53 = vsub.f32 %v13742_v17, %v9146_v44 }
 0x34b   :  { %13741 = vst [vmem:[#allocation51_spill] sm:$0xff] %v9366_v19  ;;  %v1793_v54 = vsub.f32 %v1524_v13, %v9360_v37  ;;  %v13743_v28 = vmax.f32 %v9011_v8, %v9041_v4  ;;  %v3540_v49 = vadd.f32 %v3539_v59, %v3538_v41  ;;  %v1699_v16 = vmul.f32 1.442695, %v1691_v35  ;;  %v13745_v13 = vld [vmem:[#allocation263_spill] sm:$0xff] }
 0x34c   :  { %v4547_v0 = vrot.slane %v4546_v43, 1  ;;  %v9376_v46 = vpop.eup %6315  ;;  %6331 = vpow2.f32 %v1675_v50  ;;  %v1723_v38 = vmul.f32 1.442695, %v1715_v53  ;;  %v1739_v56 = vsub.f32 %v13745_v13, %v9146_v44 }
 0x34d   :  { %v9374_v25 = vmax.f32 %v13743_v28, %v2532_v60  ;;  %13744 = vst [vmem:[#allocation52_spill] sm:$0xff] %v9376_v46  ;;  %v1807_v61 = vmul.f32 1.442695, %v1793_v54  ;;  %v9380_v2 = vpop.eup %6317  ;;  %v13747_v8 = vmax.f32 %v9017_v20, %v9043_v26  ;;  %6333 = vpow2.f32 %v1699_v16  ;;  %v13749_v54 = vld [vmem:[#allocation36_spill] sm:$0xff]  ;;  %v13751_v28 = vld [vmem:[#allocation338_spill] sm:$0xff] }
 0x34e   :  { %13746 = vst [vmem:[#allocation260_spill] sm:$0xff] %v9380_v2  ;;  %v4548_v41 = vadd.f32 %v4547_v0, %v4546_v43  ;;  %v1747_v59 = vmul.f32 1.442695, %v1739_v56  ;;  %v2603_v35 = vsub.f32 %v13748_v48, %v9151_v30  ;;  %v2627_v50 = vsub.f32 %v13749_v54, %v9151_v30  ;;  %v13753_v16 = vld [vmem:[#allocation80_spill] sm:$0xff]  ;;  %v13756_v54 = vld [vmem:[#allocation214_spill] sm:$0xff] }
 0x34f   :  { %v2801_v32 = vsub.f32 %v2532_v60, %v9374_v25  ;;  %v9386_v11 = vmax.f32 %v13747_v8, %v3540_v49  ;;  %6335 = vpow2.f32 %v1807_v61  ;;  %v9392_v17 = vpop.eup %6319  ;;  %v13752_v20 = vmax.f32 %v9023_v24, %v13751_v28  ;;  %v13765_v2 = vld [vmem:[#allocation148_spill] sm:$0xff] }
 0x350   :  { %13750 = vst [vmem:[#allocation20_spill] sm:$0xff] %v9392_v17  ;;  %6337 = vpow2.f32 %v1723_v38  ;;  %v2611_v43 = vmul.f32 1.442695, %v2603_v35  ;;  %v2635_v0 = vmul.f32 1.442695, %v2627_v50  ;;  %v2651_v61 = vsub.f32 %v13753_v16, %v9151_v30  ;;  %v13763_v17 = vld [vmem:[#allocation33_spill] sm:$0xff] }
 0x351   :  { %v2815_v53 = vmul.f32 1.442695, %v2801_v32  ;;  %v3809_v60 = vsub.f32 %v3540_v49, %v9386_v11  ;;  %v9398_v13 = vmax.f32 %v13752_v20, %v4548_v41  ;;  %6339 = vpow2.f32 %v1747_v59  ;;  %v13755_v49 = vld [vmem:[#allocation92_spill] sm:$0xff]  ;;  %v13757_v59 = vld [vmem:[#allocation221_spill] sm:$0xff] }
 0x352   :  { %v9402_v56 = vpop.eup %6321  ;;  %v2675_v48 = vsub.f32 %v13755_v49, %v9151_v30  ;;  %v2659_v24 = vmul.f32 1.442695, %v2651_v61  ;;  %v2699_v38 = vsub.f32 %v13756_v54, %v9151_v30  ;;  %v2723_v35 = vsub.f32 %v13757_v59, %v9151_v30 }
 0x353   :  { %13754 = vst [vmem:[#allocation261_spill] sm:$0xff] %v9402_v56  ;;  %6341 = vpow2.f32 %v2815_v53  ;;  %v3823_v8 = vmul.f32 1.442695, %v3809_v60  ;;  %v4817_v32 = vsub.f32 %v4548_v41, %v9398_v13  ;;  %v9411_v50 = vpop.eup %6323  ;;  %v13759_v53 = vld [vmem:[#allocation264_spill] sm:$0xff]  ;;  %v13761_v56 = vld [vmem:[#allocation147_spill] sm:$0xff] }
 0x354   :  { %6343 = vpow2.f32 %v2611_v43  ;;  %13758 = vst [vmem:[#allocation323_spill] sm:$0xff] %v9411_v50  ;;  %v2683_v16 = vmul.f32 1.442695, %v2675_v48  ;;  %v2747_v60 = vsub.f32 %v13759_v53, %v9151_v30  ;;  %v1883_v43 = vmul.f32 %v9411_v50, %v13761_v56 }
 0x355   :  { %6345 = vpow2.f32 %v3823_v8  ;;  %v4831_v20 = vmul.f32 1.442695, %v4817_v32  ;;  %v9415_v41 = vpop.eup %6325  ;;  %v2707_v61 = vmul.f32 1.442695, %v2699_v38  ;;  %v2731_v49 = vmul.f32 1.442695, %v2723_v35 }
 0x356   :  { %13760 = vst [vmem:[#allocation262_spill] sm:$0xff] %v9415_v41  ;;  %6347 = vpow2.f32 %v2635_v0  ;;  %v9419_v54 = vpop.eup %6327  ;;  %v2755_v59 = vmul.f32 1.442695, %v2747_v60  ;;  %v3611_v8 = vsub.f32 %v13763_v17, %v9156_v15  ;;  %v13764_v32 = vld [vmem:[#allocation37_spill] sm:$0xff]  ;;  %v13769_v17 = vld [vmem:[#allocation215_spill] sm:$0xff] }
 0x357   :  { %13762 = vst [vmem:[#allocation324_spill] sm:$0xff] %v9419_v54  ;;  %6349 = vpow2.f32 %v4831_v20  ;;  %v3635_v48 = vsub.f32 %v13764_v32, %v9156_v15  ;;  %v1891_v53 = vmul.f32 %v9419_v54, %v13765_v2  ;;  %v13766_v41 = vld [vmem:[#allocation81_spill] sm:$0xff]  ;;  %v9431_v35 = vpop.eup %6329  ;;  %v3707_v14 = vsub.f32 %v13769_v17, %v9156_v15  ;;  %v13770_v32 = vld [vmem:[#allocation212_spill] sm:$0xff] }
 0x358   :  { %6351 = vpow2.f32 %v2659_v24  ;;  %v3659_v50 = vsub.f32 %v13766_v41, %v9156_v15  ;;  %v13767_v0 = vld [vmem:[#allocation93_spill] sm:$0xff]  ;;  %13768 = vst [vmem:[#allocation160_spill] sm:$0xff] %v9431_v35  ;;  %v3619_v20 = vmul.f32 1.442695, %v3611_v8  ;;  %v1907_v58 = vmul.f32 %v9431_v35, %v13770_v32  ;;  %v13779_v35 = vld [vmem:[#allocation34_spill] sm:$0xff] }
 0x359   :  { %v3683_v38 = vsub.f32 %v13767_v0, %v9156_v15  ;;  %6353 = vpow2.f32 %v2683_v16  ;;  %v3643_v60 = vmul.f32 1.442695, %v3635_v48  ;;  %v1899_v51 = vadd.f32 %v1891_v53, %v1883_v43  ;;  %v9437_v54 = vpop.eup %6331  ;;  %v13772_v0 = vld [vmem:[#allocation222_spill] sm:$0xff]  ;;  %v13774_v48 = vld [vmem:[#allocation217_spill] sm:$0xff] }
 0x35a   :  { %6355 = vpow2.f32 %v2707_v61  ;;  %v3667_v24 = vmul.f32 1.442695, %v3659_v50  ;;  %13771 = vst [vmem:[#allocation325_spill] sm:$0xff] %v9437_v54  ;;  %v3715_v47 = vmul.f32 1.442695, %v3707_v14  ;;  %v3731_v46 = vsub.f32 %v13772_v0, %v9156_v15  ;;  %v9441_v16 = vpop.eup %6333  ;;  %v13775_v43 = vld [vmem:[#allocation265_spill] sm:$0xff] }
 0x35b   :  { %6357 = vpow2.f32 %v2731_v49  ;;  %v3691_v41 = vmul.f32 1.442695, %v3683_v38  ;;  %13773 = vst [vmem:[#allocation31_spill] sm:$0xff] %v9441_v16  ;;  %v1915_v8 = vadd.f32 %v1907_v58, %v1899_v51  ;;  %v1923_v17 = vmul.f32 %v9437_v54, %v13774_v48  ;;  %v13777_v50 = vld [vmem:[#allocation330_spill] sm:$0xff]  ;;  %v13778_v38 = vld [vmem:[#allocation3_spill] sm:$0xff] }
 0x35c   :  { %6359 = vpow2.f32 %v2755_v59  ;;  %v3755_v53 = vsub.f32 %v13775_v43, %v9156_v15  ;;  %v9447_v61 = vpop.eup %6335  ;;  %v1939_v49 = vmul.f32 %v9441_v16, %v13777_v50  ;;  %v3739_v14 = vmul.f32 1.442695, %v3731_v46  ;;  %v13781_v59 = vld [vmem:[#allocation38_spill] sm:$0xff]  ;;  %v9459_v43 = vpop.f32.mrf.mxu1 }
 0x35d   :  { %13776 = vst [vmem:[#allocation35_spill] sm:$0xff] %v9447_v61  ;;  %6361 = vpow2.f32 %v3619_v20  ;;  %v4619_v0 = vsub.f32 %v13779_v35, %v13778_v38  ;;  %v9453_v19 = vpop.eup %6337  ;;  %v1931_v58 = vadd.f32 %v1923_v17, %v1915_v8  ;;  %v4643_v54 = vsub.f32 %v13781_v59, %v13778_v38  ;;  %v13783_v61 = vld [vmem:[#allocation173_spill] sm:$0xff]  ;;  %v13784_v20 = vld [vmem:[#allocation82_spill] sm:$0xff] }
 0x35e   :  { %13780 = vst [vmem:[#allocation79_spill] sm:$0xff] %v9453_v19  ;;  %6363 = vpow2.f32 %v3643_v60  ;;  %v3763_v51 = vmul.f32 1.442695, %v3755_v53  ;;  %v9457_v42 = vpop.eup %6339  ;;  %v1955_v16 = vmul.f32 %v9453_v19, %v13783_v61  ;;  %v4667_v35 = vsub.f32 %v13784_v20, %v13778_v38 }
 0x35f   :  { %13782 = vst [vmem:[#allocation91_spill] sm:$0xff] %v9457_v42  ;;  %6365 = vpow2.f32 %v3667_v24  ;;  %v4627_v46 = vmul.f32 1.442695, %v4619_v0  ;;  %v1947_v8 = vadd.f32 %v1939_v49, %v1931_v58  ;;  %v1971_v60 = vmul.f32 %v9457_v42, %v9459_v43  ;;  %v13788_v24 = vld [vmem:[#allocation216_spill] sm:$0xff] }
 0x360   :  { %v9465_v39 = vpop.eup %6341  ;;  %6367 = vpow2.f32 %v3691_v41  ;;  %v4651_v17 = vmul.f32 1.442695, %v4643_v54  ;;  %v4675_v59 = vmul.f32 1.442695, %v4667_v35  ;;  %v4691_v19 = vsub.f32 %v13787_v55, %v13778_v38  ;;  %v13790_v41 = vld [vmem:[#allocation223_spill] sm:$0xff]  ;;  %v13792_v55 = vld [vmem:[#allocation266_spill] sm:$0xff] }
 0x361   :  { %13785 = vst [vmem:[#allocation213_spill] sm:$0xff] %v9465_v39  ;;  %v9469_v53 = vpop.eup %6343  ;;  %6369 = vpow2.f32 %v3715_v47  ;;  %v4715_v0 = vsub.f32 %v13788_v24, %v13778_v38  ;;  %v1963_v20 = vadd.f32 %v1955_v16, %v1947_v8  ;;  %v4739_v54 = vsub.f32 %v13790_v41, %v13778_v38 }
 0x362   :  { %13786 = vst [vmem:[#allocation220_spill] sm:$0xff] %v9469_v53  ;;  %v9475_v52 = vpop.eup %6345  ;;  %v2891_v49 = vmul.f32 %v9469_v53, %v13761_v56  ;;  %6371 = vpow2.f32 %v3739_v14  ;;  %v4699_v47 = vmul.f32 1.442695, %v4691_v19  ;;  %v4763_v42 = vsub.f32 %v13792_v55, %v13778_v38 }
 0x363   :  { %13789 = vst [vmem:[#allocation263_spill] sm:$0xff] %v9475_v52  ;;  %v9481_v58 = vpop.eup %6347  ;;  %6373 = vpow2.f32 %v3763_v51  ;;  %v4723_v35 = vmul.f32 1.442695, %v4715_v0  ;;  %v9487_v24 = vadd.f32 %v1971_v60, %v1963_v20  ;;  %v4747_v14 = vmul.f32 1.442695, %v4739_v54  ;;  %v13795_v51 = vld [vmem:[#allocation271_spill] sm:$0xff] }
 0x364   :  { %13791 = vst [vmem:[#allocation32_spill] sm:$0xff] %v9481_v58  ;;  %v9485_v39 = vpop.eup %6349  ;;  %v2899_v16 = vmul.f32 %v9481_v58, %v13765_v2  ;;  %6375 = vpow2.f32 %v4627_v46  ;;  %v4771_v41 = vmul.f32 1.442695, %v4763_v42  ;;  %v1763_v19 = vsub.f32 %v13795_v51, %v9146_v44  ;;  %v13796_v0 = vld [vmem:[#allocation272_spill] sm:$0xff]  ;;  %v13798_v46 = vld [vmem:[#allocation273_spill] sm:$0xff] }
 0x365   :  { %13793 = vst [vmem:[#allocation36_spill] sm:$0xff] %v9485_v39  ;;  %v9491_v8 = vpop.eup %6351  ;;  %6377 = vpow2.f32 %v4651_v17  ;;  %v2771_v53 = vsub.f32 %v13796_v0, %v9151_v30  ;;  %v3779_v20 = vsub.f32 %v13798_v46, %v9156_v15  ;;  %v13802_v0 = vld [vmem:[#allocation274_spill] sm:$0xff] }
 0x366   :  { %13794 = vst [vmem:[#allocation338_spill] sm:$0xff] %v9491_v8  ;;  %v9497_v55 = vpop.eup %6353  ;;  %v2907_v39 = vadd.f32 %v2899_v16, %v2891_v49  ;;  %v2915_v60 = vmul.f32 %v9491_v8, %v13770_v32  ;;  %6379 = vpow2.f32 %v4675_v59  ;;  %v1771_v44 = vmul.f32 1.442695, %v1763_v19  ;;  %v13804_v19 = vld [vmem:[#allocation42_spill] sm:$0xff] }
 0x367   :  { %13797 = vst [vmem:[#allocation80_spill] sm:$0xff] %v9497_v55  ;;  %v9503_v54 = vpop.eup %6355  ;;  %v2931_v42 = vmul.f32 %v9497_v55, %v13774_v48  ;;  %6381 = vpow2.f32 %v4699_v47  ;;  %v2779_v17 = vmul.f32 1.442695, %v2771_v53  ;;  %v3787_v16 = vmul.f32 1.442695, %v3779_v20  ;;  %v13803_v47 = vld [vmem:[#allocation107_spill] sm:$0xff] }
 0x368   :  { %13799 = vst [vmem:[#allocation92_spill] sm:$0xff] %v9503_v54  ;;  %v9507_v51 = vpop.eup %6357  ;;  %v2923_v30 = vadd.f32 %v2915_v60, %v2907_v39  ;;  %v2947_v49 = vmul.f32 %v9503_v54, %v13777_v50  ;;  %6383 = vpow2.f32 %v4723_v35  ;;  %v4787_v46 = vsub.f32 %v13802_v0, %v13778_v38  ;;  %v13806_v35 = vld [vmem:[#allocation47_spill] sm:$0xff] }
 0x369   :  { %13800 = vst [vmem:[#allocation214_spill] sm:$0xff] %v9507_v51  ;;  %v9511_v59 = vpop.eup %6359  ;;  %v2963_v15 = vmul.f32 %v9507_v51, %v13783_v61  ;;  %6385 = vpow2.f32 %v4747_v14  ;;  %v1596_v53 = vsub.f32 %v13804_v19, %v13803_v47  ;;  %v1620_v20 = vsub.f32 %v13806_v35, %v13803_v47 }
 0x36a   :  { %13801 = vst [vmem:[#allocation221_spill] sm:$0xff] %v9511_v59  ;;  %v9519_v55 = vpop.eup %6361  ;;  %v2939_v39 = vadd.f32 %v2931_v42, %v2923_v30  ;;  %v2979_v60 = vmul.f32 %v9511_v59, %v9459_v43  ;;  %6387 = vpow2.f32 %v4771_v41  ;;  %v4795_v38 = vmul.f32 1.442695, %v4787_v46  ;;  %v13810_v59 = vld [vmem:[#allocation99_spill] sm:$0xff] }
 0x36b   :  { %13805 = vst [vmem:[#allocation264_spill] sm:$0xff] %v9519_v55  ;;  %v9525_v54 = vpop.eup %6363  ;;  %v3899_v14 = vmul.f32 %v9519_v55, %v13761_v56  ;;  %6389 = vpow2.f32 %v1771_v44  ;;  %v1605_v0 = vmul.f32 1.442695, %v1596_v53  ;;  %v1629_v30 = vmul.f32 1.442695, %v1620_v20  ;;  %v13811_v44 = vld [vmem:[#allocation111_spill] sm:$0xff] }
 0x36c   :  { %13807 = vst [vmem:[#allocation147_spill] sm:$0xff] %v9525_v54  ;;  %v9529_v51 = vpop.eup %6365  ;;  %v2955_v19 = vadd.f32 %v2947_v49, %v2939_v39  ;;  %v3907_v42 = vmul.f32 %v9525_v54, %v13765_v2  ;;  %6391 = vpow2.f32 %v2779_v17  ;;  %v1644_v55 = vsub.f32 %v13810_v59, %v13803_v47 }
 0x36d   :  { %13808 = vst [vmem:[#allocation33_spill] sm:$0xff] %v9529_v51  ;;  %v9533_v41 = vpop.eup %6367  ;;  %v3923_v35 = vmul.f32 %v9529_v51, %v13770_v32  ;;  %6393 = vpow2.f32 %v3787_v16  ;;  %v1668_v46 = vsub.f32 %v13811_v44, %v13803_v47 }
 0x36e   :  { %13809 = vst [vmem:[#allocation37_spill] sm:$0xff] %v9533_v41  ;;  %v9541_v53 = vpop.eup %6369  ;;  %v2971_v49 = vadd.f32 %v2963_v15, %v2955_v19  ;;  %v3915_v39 = vadd.f32 %v3907_v42, %v3899_v14  ;;  %v3939_v17 = vmul.f32 %v9533_v41, %v13774_v48  ;;  %6395 = vpow2.f32 %v4795_v38  ;;  %v13816_v19 = vld [vmem:[#allocation225_spill] sm:$0xff] }
 0x36f   :  { %13812 = vst [vmem:[#allocation148_spill] sm:$0xff] %v9541_v53  ;;  %v9545_v20 = vpop.eup %6371  ;;  %v3955_v51 = vmul.f32 %v9541_v53, %v13777_v50  ;;  %6397 = vpow2.f32 %v1605_v0  ;;  %v1653_v16 = vmul.f32 1.442695, %v1644_v55  ;;  %v1677_v54 = vmul.f32 1.442695, %v1668_v46  ;;  %v13817_v55 = vld [vmem:[#allocation232_spill] sm:$0xff] }
 0x370   :  { %13813 = vst [vmem:[#allocation81_spill] sm:$0xff] %v9545_v20  ;;  %v9549_v59 = vpop.eup %6373  ;;  %v2987_v8 = vadd.f32 %v2979_v60, %v2971_v49  ;;  %v3931_v44 = vadd.f32 %v3923_v35, %v3915_v39  ;;  %v3971_v15 = vmul.f32 %v9545_v20, %v13783_v61  ;;  %6399 = vpow2.f32 %v1629_v30  ;;  %v13819_v30 = vld [vmem:[#allocation279_spill] sm:$0xff]  ;;  %v13821_v20 = vld [vmem:[#allocation108_spill] sm:$0xff] }
 0x371   :  { %13814 = vst [vmem:[#allocation93_spill] sm:$0xff] %v9549_v59  ;;  %v9553_v14 = vpop.eup %6375  ;;  %v3987_v38 = vmul.f32 %v9549_v59, %v9459_v43  ;;  %6401 = vpow2.f32 %v1653_v16  ;;  %v1692_v42 = vsub.f32 %v13816_v19, %v13803_v47  ;;  %v1716_v0 = vsub.f32 %v13817_v55, %v13803_v47  ;;  %v13822_v53 = vld [vmem:[#allocation43_spill] sm:$0xff] }
 0x372   :  { %13815 = vst [vmem:[#allocation215_spill] sm:$0xff] %v9553_v14  ;;  %v9561_v46 = vpop.eup %6377  ;;  %v3947_v60 = vadd.f32 %v3939_v17, %v3931_v44  ;;  %v4907_v35 = vmul.f32 %v9553_v14, %v13761_v56  ;;  %6403 = vpow2.f32 %v1677_v54  ;;  %v1740_v49 = vsub.f32 %v13819_v30, %v13803_v47  ;;  %v13824_v44 = vld [vmem:[#allocation48_spill] sm:$0xff] }
 0x373   :  { %13818 = vst [vmem:[#allocation212_spill] sm:$0xff] %v9561_v46  ;;  %v9567_v39 = vpop.eup %6379  ;;  %v4915_v16 = vmul.f32 %v9561_v46, %v13765_v2  ;;  %v1701_v59 = vmul.f32 1.442695, %v1692_v42  ;;  %v1725_v19 = vmul.f32 1.442695, %v1716_v0  ;;  %v2604_v55 = vsub.f32 %v13822_v53, %v13821_v20 }
 0x374   :  { %13820 = vst [vmem:[#allocation222_spill] sm:$0xff] %v9567_v39  ;;  %v9573_v41 = vpop.eup %6381  ;;  %v3963_v17 = vadd.f32 %v3955_v51, %v3947_v60  ;;  %v4931_v56 = vmul.f32 %v9567_v39, %v13770_v32  ;;  %v1749_v54 = vmul.f32 1.442695, %v1740_v49  ;;  %v2628_v30 = vsub.f32 %v13824_v44, %v13821_v20 }
 0x375   :  { %13823 = vst [vmem:[#allocation217_spill] sm:$0xff] %v9573_v41  ;;  %v9579_v14 = vpop.eup %6383  ;;  %v4923_v58 = vadd.f32 %v4915_v16, %v4907_v35  ;;  %v4947_v2 = vmul.f32 %v9573_v41, %v13774_v48  ;;  %6405 = vpow2.f32 %v1701_v59  ;;  %v2613_v42 = vmul.f32 1.442695, %v2604_v55  ;;  %v13828_v35 = vld [vmem:[#allocation100_spill] sm:$0xff]  ;;  %v768_v55 = vpop.f32.mrf.mxu1 }
 0x376   :  { %13825 = vst [vmem:[#allocation265_spill] sm:$0xff] %v9579_v14  ;;  %v9583_v0 = vpop.eup %6385  ;;  %v3979_v53 = vadd.f32 %v3971_v15, %v3963_v17  ;;  %v4963_v51 = vmul.f32 %v9579_v14, %v13777_v50  ;;  %6407 = vpow2.f32 %v1725_v19  ;;  %v2637_v32 = vmul.f32 1.442695, %v2628_v30  ;;  %v13830_v50 = vld [vmem:[#allocation112_spill] sm:$0xff]  ;;  %v13848_v14 = vld [vmem:[#allocation219_spill] sm:$0xff] }
 0x377   :  { %13826 = vst [vmem:[#allocation330_spill] sm:$0xff] %v9583_v0  ;;  %v9587_v60 = vpop.eup %6387  ;;  %v4939_v49 = vadd.f32 %v4931_v56, %v4923_v58  ;;  %v4979_v44 = vmul.f32 %v9583_v0, %v13783_v61  ;;  %6409 = vpow2.f32 %v1749_v54  ;;  %v2652_v48 = vsub.f32 %v13828_v35, %v13821_v20 }
 0x378   :  { %13827 = vst [vmem:[#allocation3_spill] sm:$0xff] %v9587_v60  ;;  %v9593_v59 = vpop.eup %6389  ;;  %v3995_v16 = vadd.f32 %v3987_v38, %v3979_v53  ;;  %v4995_v15 = vmul.f32 %v9587_v60, %v9459_v43  ;;  %6411 = vpow2.f32 %v2613_v42  ;;  %v2676_v19 = vsub.f32 %v13830_v50, %v13821_v20  ;;  %v13833_v53 = vld [vmem:[#allocation226_spill] sm:$0xff]  ;;  %v13834_v42 = vld [vmem:[#allocation233_spill] sm:$0xff] }
 0x379   :  { %13829 = vst [vmem:[#allocation34_spill] sm:$0xff] %v9593_v59  ;;  %v9599_v17 = vpop.eup %6391  ;;  %v4955_v58 = vadd.f32 %v4947_v2, %v4939_v49  ;;  %v1987_v61 = vmul.f32 %v9593_v59, %v768_v55  ;;  %6413 = vpow2.f32 %v2637_v32  ;;  %v2661_v56 = vmul.f32 1.442695, %v2652_v48 }
 0x37a   :  { %13831 = vst [vmem:[#allocation38_spill] sm:$0xff] %v9599_v17  ;;  %v9602_v54 = vpop.eup %6393  ;;  %v2995_v30 = vmul.f32 %v9599_v17, %v768_v55  ;;  %v2685_v38 = vmul.f32 1.442695, %v2676_v19  ;;  %v2700_v43 = vsub.f32 %v13833_v53, %v13821_v20  ;;  %v2724_v35 = vsub.f32 %v13834_v42, %v13821_v20 }
 0x37b   :  { %13832 = vst [vmem:[#allocation173_spill] sm:$0xff] %v9602_v54  ;;  %v9609_v60 = vpop.eup %6395  ;;  %v4971_v50 = vadd.f32 %v4963_v51, %v4955_v58  ;;  %v9612_v2 = vadd.f32 %v1987_v61, %v9487_v24  ;;  %v4003_v32 = vmul.f32 %v9602_v54, %v768_v55  ;;  %6415 = vpow2.f32 %v2661_v56  ;;  %v13839_v51 = vld [vmem:[#allocation149_spill] sm:$0xff]  ;;  %v13841_v56 = vld [vmem:[#allocation150_spill] sm:$0xff] }
 0x37c   :  { %13835 = vst [vmem:[#allocation82_spill] sm:$0xff] %v9609_v60  ;;  %v9615_v49 = vpop.eup %6397  ;;  %v9617_v48 = vadd.f32 %v2995_v30, %v2987_v8  ;;  %v5011_v19 = vmul.f32 %v9609_v60, %v768_v55  ;;  %6417 = vpow2.f32 %v2685_v38  ;;  %v2709_v53 = vmul.f32 1.442695, %v2700_v43  ;;  %v13842_v8 = vld [vmem:[#allocation280_spill] sm:$0xff]  ;;  %v13843_v30 = vld [vmem:[#allocation109_spill] sm:$0xff] }
 0x37d   :  { %13836 = vst [vmem:[#allocation94_spill] sm:$0xff] %v9615_v49  ;;  %v9620_v59 = vpop.eup %6399  ;;  %v4987_v42 = vadd.f32 %v4979_v44, %v4971_v50  ;;  %v9622_v17 = vadd.f32 %v4003_v32, %v3995_v16  ;;  %v1884_v24 = vmul.f32 %v9615_v49, %v13839_v51  ;;  %v2733_v58 = vmul.f32 1.442695, %v2724_v35  ;;  %v13844_v38 = vld [vmem:[#allocation44_spill] sm:$0xff]  ;;  %v13846_v16 = vld [vmem:[#allocation218_spill] sm:$0xff]  ;;  %v13847_v35 = vld [vmem:[#allocation49_spill] sm:$0xff] }
 0x37e   :  { %13837 = vst [vmem:[#allocation216_spill] sm:$0xff] %v9617_v48  ;;  %13838 = vst [vmem:[#allocation223_spill] sm:$0xff] %v9620_v59  ;;  %v9626_v61 = vpop.eup %6401  ;;  %v1892_v54 = vmul.f32 %v9620_v59, %v13841_v56  ;;  %6419 = vpow2.f32 %v2709_v53  ;;  %v2748_v55 = vsub.f32 %v13842_v8, %v13821_v20  ;;  %v3612_v43 = vsub.f32 %v13844_v38, %v13843_v30  ;;  %v13850_v38 = vld [vmem:[#allocation101_spill] sm:$0xff] }
 0x37f   :  { %13840 = vst [vmem:[#allocation266_spill] sm:$0xff] %v9626_v61  ;;  %v9634_v60 = vpop.eup %6403  ;;  %v5003_v44 = vadd.f32 %v4995_v15, %v4987_v42  ;;  %v1908_v50 = vmul.f32 %v9626_v61, %v13846_v16  ;;  %6421 = vpow2.f32 %v2733_v58  ;;  %v3636_v32 = vsub.f32 %v13847_v35, %v13843_v30  ;;  %v13851_v15 = vld [vmem:[#allocation113_spill] sm:$0xff]  ;;  %v13854_v35 = vld [vmem:[#allocation234_spill] sm:$0xff] }
 0x380   :  { %13845 = vst [vmem:[#allocation271_spill] sm:$0xff] %v9634_v60  ;;  %v1900_v0 = vadd.f32 %v1892_v54, %v1884_v24  ;;  %v1924_v53 = vmul.f32 %v9634_v60, %v13848_v14  ;;  %v2757_v41 = vmul.f32 1.442695, %v2748_v55  ;;  %v3621_v39 = vmul.f32 1.442695, %v3612_v43  ;;  %v13853_v54 = vld [vmem:[#allocation227_spill] sm:$0xff] }
 0x381   :  { %v9642_v8 = vadd.f32 %v5011_v19, %v5003_v44  ;;  %v3645_v46 = vmul.f32 1.442695, %v3636_v32  ;;  %v3660_v48 = vsub.f32 %v13850_v38, %v13843_v30  ;;  %v3684_v42 = vsub.f32 %v13851_v15, %v13843_v30  ;;  %v13856_v19 = vld [vmem:[#allocation174_spill] sm:$0xff]  ;;  %v9660_v15 = vpop.f32.mrf.mxu1 }
 0x382   :  { %v9648_v61 = vpop.eup %6405  ;;  %v1916_v58 = vadd.f32 %v1908_v50, %v1900_v0  ;;  %6423 = vpow2.f32 %v2757_v41  ;;  %v3708_v24 = vsub.f32 %v13853_v54, %v13843_v30  ;;  %v3732_v55 = vsub.f32 %v13854_v35, %v13843_v30  ;;  %v13858_v41 = vld [vmem:[#allocation175_spill] sm:$0xff] }
 0x383   :  { %13849 = vst [vmem:[#allocation272_spill] sm:$0xff] %v9642_v8  ;;  %13852 = vst [vmem:[#allocation273_spill] sm:$0xff] %v9648_v61  ;;  %v9654_v43 = vpop.eup %6407  ;;  %v1940_v44 = vmul.f32 %v9648_v61, %v13856_v19  ;;  %6425 = vpow2.f32 %v3621_v39  ;;  %v3669_v32 = vmul.f32 1.442695, %v3660_v48  ;;  %v3693_v38 = vmul.f32 1.442695, %v3684_v42 }
 0x384   :  { %13855 = vst [vmem:[#allocation274_spill] sm:$0xff] %v9654_v43  ;;  %v9658_v8 = vpop.eup %6409  ;;  %v1932_v0 = vadd.f32 %v1924_v53, %v1916_v58  ;;  %v1956_v50 = vmul.f32 %v9654_v43, %v13858_v41  ;;  %6427 = vpow2.f32 %v3645_v46  ;;  %v3717_v54 = vmul.f32 1.442695, %v3708_v24  ;;  %v13860_v39 = vld [vmem:[#allocation281_spill] sm:$0xff]  ;;  %v13862_v58 = vld [vmem:[#allocation110_spill] sm:$0xff] }
 0x385   :  { %13857 = vst [vmem:[#allocation107_spill] sm:$0xff] %v9658_v8  ;;  %v9664_v60 = vpop.eup %6411  ;;  %v1972_v35 = vmul.f32 %v9658_v8, %v9660_v15  ;;  %6429 = vpow2.f32 %v3669_v32  ;;  %v3741_v61 = vmul.f32 1.442695, %v3732_v55  ;;  %v3756_v48 = vsub.f32 %v13860_v39, %v13843_v30  ;;  %v13863_v46 = vld [vmem:[#allocation45_spill] sm:$0xff]  ;;  %v13864_v55 = vld [vmem:[#allocation50_spill] sm:$0xff] }
 0x386   :  { %13859 = vst [vmem:[#allocation42_spill] sm:$0xff] %v9664_v60  ;;  %v9670_v42 = vpop.eup %6413  ;;  %v1948_v59 = vadd.f32 %v1940_v44, %v1932_v0  ;;  %v2892_v53 = vmul.f32 %v9664_v60, %v13839_v51  ;;  %6431 = vpow2.f32 %v3693_v38  ;;  %v4620_v24 = vsub.f32 %v13863_v46, %v13862_v58  ;;  %v13866_v0 = vld [vmem:[#allocation102_spill] sm:$0xff] }
 0x387   :  { %13861 = vst [vmem:[#allocation47_spill] sm:$0xff] %v9670_v42  ;;  %v2900_v43 = vmul.f32 %v9670_v42, %v13841_v56  ;;  %6433 = vpow2.f32 %v3717_v54  ;;  %v3765_v8 = vmul.f32 1.442695, %v3756_v48  ;;  %v4644_v32 = vsub.f32 %v13864_v55, %v13862_v58 }
 0x388   :  { %v9680_v49 = vpop.eup %6415  ;;  %v1964_v39 = vadd.f32 %v1956_v50, %v1948_v59  ;;  %6435 = vpow2.f32 %v3741_v61  ;;  %v4629_v44 = vmul.f32 1.442695, %v4620_v24  ;;  %v4668_v60 = vsub.f32 %v13866_v0, %v13862_v58  ;;  %v13869_v24 = vld [vmem:[#allocation114_spill] sm:$0xff] }
 0x389   :  { %13865 = vst [vmem:[#allocation99_spill] sm:$0xff] %v9680_v49  ;;  %v9684_v38 = vpop.eup %6417  ;;  %v2908_v52 = vadd.f32 %v2900_v43, %v2892_v53  ;;  %v2916_v46 = vmul.f32 %v9680_v49, %v13846_v16  ;;  %6437 = vpow2.f32 %v3765_v8  ;;  %v4653_v54 = vmul.f32 1.442695, %v4644_v32  ;;  %v13870_v43 = vld [vmem:[#allocation228_spill] sm:$0xff] }
 0x38a   :  { %13867 = vst [vmem:[#allocation111_spill] sm:$0xff] %v9684_v38  ;;  %v9688_v48 = vadd.f32 %v1972_v35, %v1964_v39  ;;  %v2932_v55 = vmul.f32 %v9684_v38, %v13848_v14  ;;  %6439 = vpow2.f32 %v4629_v44  ;;  %v4677_v59 = vmul.f32 1.442695, %v4668_v60  ;;  %v13872_v35 = vld [vmem:[#allocation235_spill] sm:$0xff]  ;;  %v13873_v60 = vld [vmem:[#allocation282_spill] sm:$0xff] }
 0x38b   :  { %v9692_v61 = vpop.eup %6419  ;;  %v2924_v50 = vadd.f32 %v2916_v46, %v2908_v52  ;;  %6441 = vpow2.f32 %v4653_v54  ;;  %v4692_v0 = vsub.f32 %v13869_v24, %v13862_v58  ;;  %v4716_v53 = vsub.f32 %v13870_v43, %v13862_v58  ;;  %v13874_v38 = vld [vmem:[#allocation287_spill] sm:$0xff] }
 0x38c   :  { %13868 = vst [vmem:[#allocation225_spill] sm:$0xff] %v9692_v61  ;;  %v9698_v49 = vpop.eup %6421  ;;  %v2948_v8 = vmul.f32 %v9692_v61, %v13856_v19  ;;  %6443 = vpow2.f32 %v4677_v59  ;;  %v4740_v32 = vsub.f32 %v13872_v35, %v13862_v58  ;;  %v4764_v39 = vsub.f32 %v13873_v60, %v13862_v58  ;;  %v13875_v61 = vld [vmem:[#allocation288_spill] sm:$0xff]  ;;  %v13877_v60 = vld [vmem:[#allocation289_spill] sm:$0xff] }
 0x38d   :  { %13871 = vst [vmem:[#allocation232_spill] sm:$0xff] %v9698_v49  ;;  %v2940_v52 = vadd.f32 %v2932_v55, %v2924_v50  ;;  %v2964_v44 = vmul.f32 %v9698_v49, %v13858_v41  ;;  %v4701_v46 = vmul.f32 1.442695, %v4692_v0  ;;  %v4725_v54 = vmul.f32 1.442695, %v4716_v53  ;;  %v13878_v50 = vld [vmem:[#allocation290_spill] sm:$0xff] }
 0x38e   :  { %v4749_v24 = vmul.f32 1.442695, %v4740_v32  ;;  %v4773_v43 = vmul.f32 1.442695, %v4764_v39  ;;  %v1764_v42 = vsub.f32 %v13874_v38, %v13803_v47  ;;  %v2772_v59 = vsub.f32 %v13875_v61, %v13821_v20 }
 0x38f   :  { %v9712_v29 = vpop.eup %6423  ;;  %v2956_v35 = vadd.f32 %v2948_v8, %v2940_v52  ;;  %6445 = vpow2.f32 %v4701_v46  ;;  %v3780_v55 = vsub.f32 %v13877_v60, %v13843_v30  ;;  %v4788_v49 = vsub.f32 %v13878_v50, %v13862_v58  ;;  %v13882_v52 = vld [vmem:[#allocation54_spill] sm:$0xff] }
 0x390   :  { %13876 = vst [vmem:[#allocation279_spill] sm:$0xff] %v9712_v29  ;;  %v9718_v0 = vpop.eup %6425  ;;  %v2980_v53 = vmul.f32 %v9712_v29, %v9660_v15  ;;  %6447 = vpow2.f32 %v4725_v54  ;;  %v1773_v47 = vmul.f32 1.442695, %v1764_v42  ;;  %v2781_v38 = vmul.f32 1.442695, %v2772_v59 }
 0x391   :  { %13879 = vst [vmem:[#allocation108_spill] sm:$0xff] %v9718_v0  ;;  %v9722_v32 = vpop.eup %6427  ;;  %v2972_v20 = vadd.f32 %v2964_v44, %v2956_v35  ;;  %v3900_v61 = vmul.f32 %v9718_v0, %v13839_v51  ;;  %6449 = vpow2.f32 %v4749_v24  ;;  %v3789_v8 = vmul.f32 1.442695, %v3780_v55  ;;  %v13884_v24 = vld [vmem:[#allocation59_spill] sm:$0xff] }
 0x392   :  { %13880 = vst [vmem:[#allocation43_spill] sm:$0xff] %v9722_v32  ;;  %v9726_v30 = vpop.eup %6429  ;;  %v3908_v58 = vmul.f32 %v9722_v32, %v13841_v56  ;;  %6451 = vpow2.f32 %v4773_v43  ;;  %v4797_v39 = vmul.f32 1.442695, %v4788_v49  ;;  %v1597_v46 = vsub.f32 %v13882_v52, %v9214_v22 }
 0x393   :  { %13881 = vst [vmem:[#allocation48_spill] sm:$0xff] %v9726_v30  ;;  %v9732_v42 = vpop.eup %6431  ;;  %v9734_v54 = vadd.f32 %v2980_v53, %v2972_v20  ;;  %v3924_v44 = vmul.f32 %v9726_v30, %v13846_v16  ;;  %6453 = vpow2.f32 %v1773_v47  ;;  %v1621_v59 = vsub.f32 %v13884_v24, %v9214_v22  ;;  %v13887_v47 = vld [vmem:[#allocation119_spill] sm:$0xff] }
 0x394   :  { %13883 = vst [vmem:[#allocation100_spill] sm:$0xff] %v9732_v42  ;;  %v9740_v35 = vpop.eup %6433  ;;  %v3916_v60 = vadd.f32 %v3908_v58, %v3900_v61  ;;  %v3940_v49 = vmul.f32 %v9732_v42, %v13848_v14  ;;  %6455 = vpow2.f32 %v2781_v38  ;;  %v1607_v43 = vmul.f32 1.442695, %v1597_v46  ;;  %v13889_v38 = vld [vmem:[#allocation131_spill] sm:$0xff] }
 0x395   :  { %13885 = vst [vmem:[#allocation112_spill] sm:$0xff] %v9740_v35  ;;  %v9744_v55 = vpop.eup %6435  ;;  %v3956_v50 = vmul.f32 %v9740_v35, %v13856_v19  ;;  %6457 = vpow2.f32 %v3789_v8  ;;  %v1631_v53 = vmul.f32 1.442695, %v1621_v59  ;;  %v1645_v20 = vsub.f32 %v13887_v47, %v9214_v22  ;;  %v13891_v59 = vld [vmem:[#allocation237_spill] sm:$0xff] }
 0x396   :  { %13886 = vst [vmem:[#allocation226_spill] sm:$0xff] %v9744_v55  ;;  %v9750_v52 = vpop.eup %6437  ;;  %v3932_v24 = vadd.f32 %v3924_v44, %v3916_v60  ;;  %v3972_v61 = vmul.f32 %v9744_v55, %v13858_v41  ;;  %6459 = vpow2.f32 %v4797_v39  ;;  %v1669_v58 = vsub.f32 %v13889_v38, %v9214_v22 }
 0x397   :  { %13888 = vst [vmem:[#allocation233_spill] sm:$0xff] %v9750_v52  ;;  %v9756_v46 = vpop.eup %6439  ;;  %v3988_v35 = vmul.f32 %v9750_v52, %v9660_v15  ;;  %6461 = vpow2.f32 %v1607_v43  ;;  %v1655_v8 = vmul.f32 1.442695, %v1645_v20  ;;  %v1693_v47 = vsub.f32 %v13891_v59, %v9214_v22  ;;  %v13894_v43 = vld [vmem:[#allocation130_spill] sm:$0xff] }
 0x398   :  { %13890 = vst [vmem:[#allocation149_spill] sm:$0xff] %v9756_v46  ;;  %v9762_v42 = vpop.eup %6441  ;;  %v3948_v44 = vadd.f32 %v3940_v49, %v3932_v24  ;;  %v4908_v60 = vmul.f32 %v9756_v46, %v13839_v51  ;;  %6463 = vpow2.f32 %v1631_v53  ;;  %v1679_v39 = vmul.f32 1.442695, %v1669_v58  ;;  %v13895_v49 = vld [vmem:[#allocation189_spill] sm:$0xff]  ;;  %v13896_v58 = vld [vmem:[#allocation55_spill] sm:$0xff] }
 0x399   :  { %13892 = vst [vmem:[#allocation150_spill] sm:$0xff] %v9762_v42  ;;  %v9766_v55 = vpop.eup %6443  ;;  %v4916_v38 = vmul.f32 %v9762_v42, %v13841_v56  ;;  %6465 = vpow2.f32 %v1655_v8  ;;  %v1703_v52 = vmul.f32 1.442695, %v1693_v47  ;;  %v1717_v20 = vsub.f32 %v13894_v43, %v9214_v22  ;;  %v13898_v43 = vld [vmem:[#allocation60_spill] sm:$0xff] }
 0x39a   :  { %13893 = vst [vmem:[#allocation280_spill] sm:$0xff] %v9766_v55  ;;  %v3964_v30 = vadd.f32 %v3956_v50, %v3948_v44  ;;  %v4932_v59 = vmul.f32 %v9766_v55, %v13846_v16  ;;  %6467 = vpow2.f32 %v1679_v39  ;;  %v1741_v51 = vsub.f32 %v13895_v49, %v9214_v22  ;;  %v13899_v44 = vld [vmem:[#allocation120_spill] sm:$0xff] }
 0x39b   :  { %v4924_v53 = vadd.f32 %v4916_v38, %v4908_v60  ;;  %6469 = vpow2.f32 %v1703_v52  ;;  %v1727_v24 = vmul.f32 1.442695, %v1717_v20  ;;  %v2605_v32 = vsub.f32 %v13896_v58, %v9219_v12 }
 0x39c   :  { %v9778_v56 = vpop.eup %6445  ;;  %v3980_v8 = vadd.f32 %v3972_v61, %v3964_v30  ;;  %v1751_v47 = vmul.f32 1.442695, %v1741_v51  ;;  %v2629_v50 = vsub.f32 %v13898_v43, %v9219_v12  ;;  %v2653_v16 = vsub.f32 %v13899_v44, %v9219_v12  ;;  %v13907_v43 = vld [vmem:[#allocation241_spill] sm:$0xff] }
 0x39d   :  { %13897 = vst [vmem:[#allocation109_spill] sm:$0xff] %v9778_v56  ;;  %v9784_v39 = vpop.eup %6447  ;;  %v4940_v0 = vadd.f32 %v4932_v59, %v4924_v53  ;;  %v4948_v52 = vmul.f32 %v9778_v56, %v13848_v14  ;;  %6471 = vpow2.f32 %v1727_v24  ;;  %v2615_v60 = vmul.f32 1.442695, %v2605_v32  ;;  %v774_v32 = vpop.f32.mrf.mxu1  ;;  %v13905_v24 = vld [vmem:[#allocation238_spill] sm:$0xff] }
 0x39e   :  { %13900 = vst [vmem:[#allocation44_spill] sm:$0xff] %v9784_v39  ;;  %v9788_v38 = vpop.eup %6449  ;;  %v3996_v20 = vadd.f32 %v3988_v35, %v3980_v8  ;;  %v4964_v30 = vmul.f32 %v9784_v39, %v13856_v19  ;;  %6473 = vpow2.f32 %v1751_v47  ;;  %v2639_v61 = vmul.f32 1.442695, %v2629_v50  ;;  %v13904_v35 = vld [vmem:[#allocation132_spill] sm:$0xff] }
 0x39f   :  { %13901 = vst [vmem:[#allocation218_spill] sm:$0xff] %v9788_v38  ;;  %v9792_v49 = vpop.eup %6451  ;;  %v4956_v51 = vadd.f32 %v4948_v52, %v4940_v0  ;;  %v4980_v58 = vmul.f32 %v9788_v38, %v13858_v41  ;;  %6475 = vpow2.f32 %v2615_v60  ;;  %v2663_v59 = vmul.f32 1.442695, %v2653_v16  ;;  %v13909_v60 = vld [vmem:[#allocation190_spill] sm:$0xff] }
 0x3a0   :  { %13902 = vst [vmem:[#allocation49_spill] sm:$0xff] %v9792_v49  ;;  %v9796_v53 = vpop.eup %6453  ;;  %v4996_v14 = vmul.f32 %v9792_v49, %v9660_v15  ;;  %6477 = vpow2.f32 %v2639_v61  ;;  %v2677_v19 = vsub.f32 %v13904_v35, %v9219_v12  ;;  %v2701_v8 = vsub.f32 %v13905_v24, %v9219_v12 }
 0x3a1   :  { %13903 = vst [vmem:[#allocation219_spill] sm:$0xff] %v9796_v53  ;;  %v9804_v47 = vpop.eup %6455  ;;  %v4972_v0 = vadd.f32 %v4964_v30, %v4956_v51  ;;  %v1988_v41 = vmul.f32 %v9796_v53, %v774_v32  ;;  %6479 = vpow2.f32 %v2663_v59  ;;  %v2725_v50 = vsub.f32 %v13907_v43, %v9219_v12 }
 0x3a2   :  { %13906 = vst [vmem:[#allocation101_spill] sm:$0xff] %v9804_v47  ;;  %v9809_v44 = vpop.eup %6457  ;;  %v2996_v15 = vmul.f32 %v9804_v47, %v774_v32  ;;  %v2687_v16 = vmul.f32 1.442695, %v2677_v19  ;;  %v2711_v52 = vmul.f32 1.442695, %v2701_v8  ;;  %v2749_v61 = vsub.f32 %v13909_v60, %v9219_v12 }
 0x3a3   :  { %13908 = vst [vmem:[#allocation113_spill] sm:$0xff] %v9809_v44  ;;  %v9814_v35 = vpop.eup %6459  ;;  %v4988_v24 = vadd.f32 %v4980_v58, %v4972_v0  ;;  %v9817_v30 = vadd.f32 %v1988_v41, %v9688_v48  ;;  %v4004_v51 = vmul.f32 %v9809_v44, %v774_v32  ;;  %v2735_v59 = vmul.f32 1.442695, %v2725_v50  ;;  %v13914_v58 = vld [vmem:[#allocation159_spill] sm:$0xff]  ;;  %v13916_v41 = vld [vmem:[#allocation161_spill] sm:$0xff] }
 0x3a4   :  { %13910 = vst [vmem:[#allocation227_spill] sm:$0xff] %v9814_v35  ;;  %v9820_v53 = vpop.eup %6461  ;;  %v9823_v43 = vadd.f32 %v2996_v15, %v9734_v54  ;;  %v5012_v19 = vmul.f32 %v9814_v35, %v774_v32  ;;  %6481 = vpow2.f32 %v2687_v16  ;;  %v2759_v8 = vmul.f32 1.442695, %v2749_v61  ;;  %v13917_v54 = vld [vmem:[#allocation56_spill] sm:$0xff]  ;;  %v13918_v15 = vld [vmem:[#allocation61_spill] sm:$0xff] }
 0x3a5   :  { %13911 = vst [vmem:[#allocation234_spill] sm:$0xff] %v9820_v53  ;;  %v9826_v49 = vpop.eup %6463  ;;  %v5004_v60 = vadd.f32 %v4996_v14, %v4988_v24  ;;  %v9828_v47 = vadd.f32 %v4004_v51, %v3996_v20  ;;  %v1885_v48 = vmul.f32 %v9820_v53, %v13914_v58  ;;  %6483 = vpow2.f32 %v2711_v52  ;;  %v13921_v14 = vld [vmem:[#allocation224_spill] sm:$0xff]  ;;  %v13922_v52 = vld [vmem:[#allocation121_spill] sm:$0xff] }
 0x3a6   :  { %13912 = vst [vmem:[#allocation174_spill] sm:$0xff] %v9823_v43  ;;  %13913 = vst [vmem:[#allocation175_spill] sm:$0xff] %v9826_v49  ;;  %v9832_v0 = vpop.eup %6465  ;;  %v1893_v50 = vmul.f32 %v9826_v49, %v13916_v41  ;;  %6485 = vpow2.f32 %v2735_v59  ;;  %v3613_v32 = vsub.f32 %v13917_v54, %v9232_v5  ;;  %v3637_v16 = vsub.f32 %v13918_v15, %v9232_v5  ;;  %v13924_v35 = vld [vmem:[#allocation229_spill] sm:$0xff]  ;;  %v13925_v15 = vld [vmem:[#allocation334_spill] sm:$0xff] }
 0x3a7   :  { %13915 = vst [vmem:[#allocation281_spill] sm:$0xff] %v9832_v0  ;;  %v9840_v61 = vpop.eup %6467  ;;  %v9842_v20 = vadd.f32 %v5012_v19, %v5004_v60  ;;  %v1909_v24 = vmul.f32 %v9832_v0, %v13921_v14  ;;  %6487 = vpow2.f32 %v2759_v8  ;;  %v3661_v51 = vsub.f32 %v13922_v52, %v9232_v5  ;;  %v13926_v60 = vld [vmem:[#allocation133_spill] sm:$0xff]  ;;  %v13927_v8 = vld [vmem:[#allocation239_spill] sm:$0xff] }
 0x3a8   :  { %13919 = vst [vmem:[#allocation110_spill] sm:$0xff] %v9840_v61  ;;  %v9848_v44 = vpop.eup %6469  ;;  %v1901_v59 = vadd.f32 %v1893_v50, %v1885_v48  ;;  %v1925_v54 = vmul.f32 %v9840_v61, %v13924_v35  ;;  %v3623_v38 = vmul.f32 1.442695, %v3613_v32  ;;  %v3647_v29 = vmul.f32 1.442695, %v3637_v16  ;;  %v13929_v48 = vld [vmem:[#allocation242_spill] sm:$0xff] }
 0x3a9   :  { %13920 = vst [vmem:[#allocation45_spill] sm:$0xff] %v9842_v20  ;;  %13923 = vst [vmem:[#allocation50_spill] sm:$0xff] %v9848_v44  ;;  %v1941_v39 = vmul.f32 %v9848_v44, %v13925_v15  ;;  %v3671_v19 = vmul.f32 1.442695, %v3661_v51  ;;  %v3685_v56 = vsub.f32 %v13926_v60, %v9232_v5  ;;  %v3709_v55 = vsub.f32 %v13927_v8, %v9232_v5  ;;  %v13930_v32 = vld [vmem:[#allocation191_spill] sm:$0xff]  ;;  %v9866_v44 = vpop.f32.mrf.mxu1 }
 0x3aa   :  { %v9858_v20 = vpop.eup %6471  ;;  %v1917_v52 = vadd.f32 %v1909_v24, %v1901_v59  ;;  %6489 = vpow2.f32 %v3623_v38  ;;  %v3733_v50 = vsub.f32 %v13929_v48, %v9232_v5  ;;  %v3757_v16 = vsub.f32 %v13930_v32, %v9232_v5  ;;  %v13932_v51 = vld [vmem:[#allocation335_spill] sm:$0xff] }
 0x3ab   :  { %13928 = vst [vmem:[#allocation102_spill] sm:$0xff] %v9858_v20  ;;  %v9864_v61 = vpop.eup %6473  ;;  %v1957_v60 = vmul.f32 %v9858_v20, %v13932_v51  ;;  %6491 = vpow2.f32 %v3647_v29  ;;  %v3695_v42 = vmul.f32 1.442695, %v3685_v56  ;;  %v3719_v8 = vmul.f32 1.442695, %v3709_v55  ;;  %v13935_v20 = vld [vmem:[#allocation57_spill] sm:$0xff] }
 0x3ac   :  { %13931 = vst [vmem:[#allocation114_spill] sm:$0xff] %v9864_v61  ;;  %v9870_v46 = vpop.eup %6475  ;;  %v1933_v24 = vadd.f32 %v1925_v54, %v1917_v52  ;;  %v1973_v38 = vmul.f32 %v9864_v61, %v9866_v44  ;;  %6493 = vpow2.f32 %v3671_v19  ;;  %v3743_v59 = vmul.f32 1.442695, %v3733_v50  ;;  %v13937_v19 = vld [vmem:[#allocation62_spill] sm:$0xff] }
 0x3ad   :  { %13933 = vst [vmem:[#allocation228_spill] sm:$0xff] %v9870_v46  ;;  %v9874_v48 = vpop.eup %6477  ;;  %v2893_v32 = vmul.f32 %v9870_v46, %v13914_v58  ;;  %6495 = vpow2.f32 %v3695_v42  ;;  %v3767_v0 = vmul.f32 1.442695, %v3757_v16  ;;  %v4621_v29 = vsub.f32 %v13935_v20, %v9240_v33  ;;  %v13938_v42 = vld [vmem:[#allocation122_spill] sm:$0xff] }
 0x3ae   :  { %13934 = vst [vmem:[#allocation235_spill] sm:$0xff] %v9874_v48  ;;  %v9880_v56 = vpop.eup %6479  ;;  %v1949_v55 = vadd.f32 %v1941_v39, %v1933_v24  ;;  %v2901_v54 = vmul.f32 %v9874_v48, %v13916_v41  ;;  %6497 = vpow2.f32 %v3719_v8  ;;  %v4645_v52 = vsub.f32 %v13937_v19, %v9240_v33  ;;  %v13940_v8 = vld [vmem:[#allocation134_spill] sm:$0xff]  ;;  %v13941_v19 = vld [vmem:[#allocation240_spill] sm:$0xff] }
 0x3af   :  { %13936 = vst [vmem:[#allocation282_spill] sm:$0xff] %v9880_v56  ;;  %v2917_v50 = vmul.f32 %v9880_v56, %v13921_v14  ;;  %6499 = vpow2.f32 %v3743_v59  ;;  %v4631_v61 = vmul.f32 1.442695, %v4621_v29  ;;  %v4669_v16 = vsub.f32 %v13938_v42, %v9240_v33  ;;  %v13946_v42 = vld [vmem:[#allocation192_spill] sm:$0xff] }
 0x3b0   :  { %v1965_v43 = vadd.f32 %v1957_v60, %v1949_v55  ;;  %v2909_v20 = vadd.f32 %v2901_v54, %v2893_v32  ;;  %6501 = vpow2.f32 %v3767_v0  ;;  %v4655_v49 = vmul.f32 1.442695, %v4645_v52 }
 0x3b1   :  { %v9890_v39 = vpop.eup %6481  ;;  %6503 = vpow2.f32 %v4631_v61  ;;  %v4679_v24 = vmul.f32 1.442695, %v4669_v16  ;;  %v4693_v53 = vsub.f32 %v13940_v8, %v9240_v33  ;;  %v4717_v48 = vsub.f32 %v13941_v19, %v9240_v33 }
 0x3b2   :  { %13939 = vst [vmem:[#allocation287_spill] sm:$0xff] %v9890_v39  ;;  %v9896_v56 = vpop.eup %6483  ;;  %v9898_v59 = vadd.f32 %v1973_v38, %v1965_v43  ;;  %v2925_v29 = vadd.f32 %v2917_v50, %v2909_v20  ;;  %v2933_v60 = vmul.f32 %v9890_v39, %v13924_v35  ;;  %6505 = vpow2.f32 %v4655_v49  ;;  %v13945_v38 = vld [vmem:[#allocation243_spill] sm:$0xff]  ;;  %v13947_v20 = vld [vmem:[#allocation26_spill] sm:$0xff] }
 0x3b3   :  { %13942 = vst [vmem:[#allocation288_spill] sm:$0xff] %v9896_v56  ;;  %v9902_v0 = vpop.eup %6485  ;;  %v2949_v61 = vmul.f32 %v9896_v56, %v13925_v15  ;;  %6507 = vpow2.f32 %v4679_v24  ;;  %v4703_v32 = vmul.f32 1.442695, %v4693_v53  ;;  %v4727_v55 = vmul.f32 1.442695, %v4717_v48  ;;  %v13948_v48 = vld [vmem:[#allocation27_spill] sm:$0xff] }
 0x3b4   :  { %13943 = vst [vmem:[#allocation289_spill] sm:$0xff] %v9902_v0  ;;  %v9906_v54 = vpop.eup %6487  ;;  %v2941_v52 = vadd.f32 %v2933_v60, %v2925_v29  ;;  %v2965_v43 = vmul.f32 %v9902_v0, %v13932_v51  ;;  %v4741_v50 = vsub.f32 %v13945_v38, %v9240_v33  ;;  %v4765_v49 = vsub.f32 %v13946_v42, %v9240_v33 }
 0x3b5   :  { %13944 = vst [vmem:[#allocation290_spill] sm:$0xff] %v9906_v54  ;;  %v2981_v16 = vmul.f32 %v9906_v54, %v9866_v44  ;;  %6509 = vpow2.f32 %v4703_v32  ;;  %v1765_v53 = vsub.f32 %v13947_v20, %v9214_v22  ;;  %v2773_v24 = vsub.f32 %v13948_v48, %v9219_v12 }
 0x3b6   :  { %v2957_v8 = vadd.f32 %v2949_v61, %v2941_v52  ;;  %6511 = vpow2.f32 %v4727_v55  ;;  %v4751_v19 = vmul.f32 1.442695, %v4741_v50  ;;  %v4775_v29 = vmul.f32 1.442695, %v4765_v49  ;;  %v13951_v61 = vld [vmem:[#allocation5_spill] sm:$0xff] }
 0x3b7   :  { %v9920_v60 = vpop.eup %6489  ;;  %v1775_v38 = vmul.f32 1.442695, %v1765_v53  ;;  %v2783_v0 = vmul.f32 1.442695, %v2773_v24  ;;  %v3781_v42 = vsub.f32 %v13689_v1, %v9232_v5  ;;  %v4789_v32 = vsub.f32 %v13693_v9, %v9240_v33  ;;  %v13952_v55 = vld [vmem:[#allocation65_spill] sm:$0xff] }
 0x3b8   :  { %13949 = vst [vmem:[#allocation54_spill] sm:$0xff] %v9920_v60  ;;  %v9926_v54 = vpop.eup %6491  ;;  %v2973_v22 = vadd.f32 %v2965_v43, %v2957_v8  ;;  %v3901_v12 = vmul.f32 %v9920_v60, %v13914_v58  ;;  %6513 = vpow2.f32 %v4751_v19  ;;  %v1598_v52 = vsub.f32 %v13952_v55, %v13951_v61  ;;  %v13956_v8 = vld [vmem:[#allocation71_spill] sm:$0xff] }
 0x3b9   :  { %13950 = vst [vmem:[#allocation59_spill] sm:$0xff] %v9926_v54  ;;  %v9932_v50 = vpop.eup %6493  ;;  %v3909_v49 = vmul.f32 %v9926_v54, %v13916_v41  ;;  %6515 = vpow2.f32 %v4775_v29  ;;  %v3791_v1 = vmul.f32 1.442695, %v3781_v42  ;;  %v4799_v5 = vmul.f32 1.442695, %v4789_v32  ;;  %v13958_v42 = vld [vmem:[#allocation139_spill] sm:$0xff] }
 0x3ba   :  { %13953 = vst [vmem:[#allocation119_spill] sm:$0xff] %v9932_v50  ;;  %v9936_v20 = vpop.eup %6495  ;;  %v9938_v33 = vadd.f32 %v2981_v16, %v2973_v22  ;;  %v3925_v9 = vmul.f32 %v9932_v50, %v13921_v14  ;;  %6517 = vpow2.f32 %v1775_v38  ;;  %v1609_v43 = vmul.f32 1.442695, %v1598_v52  ;;  %v13959_v32 = vld [vmem:[#allocation151_spill] sm:$0xff]  ;;  %v13968_v54 = vld [vmem:[#allocation14_spill] sm:$0xff] }
 0x3bb   :  { %13954 = vst [vmem:[#allocation131_spill] sm:$0xff] %v9936_v20  ;;  %v9942_v53 = vpop.eup %6497  ;;  %v3917_v48 = vadd.f32 %v3909_v49, %v3901_v12  ;;  %v3941_v24 = vmul.f32 %v9936_v20, %v13924_v35  ;;  %6519 = vpow2.f32 %v2783_v0  ;;  %v1622_v19 = vsub.f32 %v13956_v8, %v13951_v61 }
 0x3bc   :  { %13955 = vst [vmem:[#allocation237_spill] sm:$0xff] %v9942_v53  ;;  %v9948_v29 = vpop.eup %6499  ;;  %v3957_v16 = vmul.f32 %v9942_v53, %v13925_v15  ;;  %6521 = vpow2.f32 %v3791_v1  ;;  %v1646_v38 = vsub.f32 %v13958_v42, %v13951_v61  ;;  %v1670_v22 = vsub.f32 %v13959_v32, %v13951_v61 }
 0x3bd   :  { %13957 = vst [vmem:[#allocation130_spill] sm:$0xff] %v9948_v29  ;;  %v9956_v12 = vpop.eup %6501  ;;  %v3933_v55 = vadd.f32 %v3925_v9, %v3917_v48  ;;  %v3973_v0 = vmul.f32 %v9948_v29, %v13932_v51  ;;  %6523 = vpow2.f32 %v4799_v5  ;;  %v1633_v52 = vmul.f32 1.442695, %v1622_v19  ;;  %v13963_v9 = vld [vmem:[#allocation245_spill] sm:$0xff] }
 0x3be   :  { %13960 = vst [vmem:[#allocation189_spill] sm:$0xff] %v9956_v12  ;;  %v9960_v49 = vpop.eup %6503  ;;  %v3989_v8 = vmul.f32 %v9956_v12, %v9866_v44  ;;  %6525 = vpow2.f32 %v1609_v43  ;;  %v1657_v1 = vmul.f32 1.442695, %v1646_v38  ;;  %v1681_v53 = vmul.f32 1.442695, %v1670_v22  ;;  %v13965_v43 = vld [vmem:[#allocation252_spill] sm:$0xff] }
 0x3bf   :  { %13961 = vst [vmem:[#allocation55_spill] sm:$0xff] %v9960_v49  ;;  %v9964_v42 = vpop.eup %6505  ;;  %v3949_v20 = vadd.f32 %v3941_v24, %v3933_v55  ;;  %v4909_v32 = vmul.f32 %v9960_v49, %v13914_v58  ;;  %6527 = vpow2.f32 %v1633_v52  ;;  %v1694_v48 = vsub.f32 %v13963_v9, %v13951_v61  ;;  %v13966_v22 = vld [vmem:[#allocation204_spill] sm:$0xff] }
 0x3c0   :  { %13962 = vst [vmem:[#allocation60_spill] sm:$0xff] %v9964_v42  ;;  %v9970_v5 = vpop.eup %6507  ;;  %v4917_v19 = vmul.f32 %v9964_v42, %v13916_v41  ;;  %6529 = vpow2.f32 %v1657_v1  ;;  %v1718_v38 = vsub.f32 %v13965_v43, %v13951_v61  ;;  %v1742_v12 = vsub.f32 %v13966_v22, %v13951_v61  ;;  %v13969_v41 = vld [vmem:[#allocation66_spill] sm:$0xff] }
 0x3c1   :  { %13964 = vst [vmem:[#allocation120_spill] sm:$0xff] %v9970_v5  ;;  %v3965_v24 = vadd.f32 %v3957_v16, %v3949_v20  ;;  %v4933_v58 = vmul.f32 %v9970_v5, %v13921_v14  ;;  %6531 = vpow2.f32 %v1681_v53  ;;  %v1705_v55 = vmul.f32 1.442695, %v1694_v48  ;;  %v13971_v20 = vld [vmem:[#allocation72_spill] sm:$0xff]  ;;  %v13998_v5 = vld [vmem:[#allocation153_spill] sm:$0xff] }
 0x3c2   :  { %v9980_v52 = vpop.eup %6509  ;;  %v4925_v9 = vadd.f32 %v4917_v19, %v4909_v32  ;;  %v1729_v29 = vmul.f32 1.442695, %v1718_v38  ;;  %v1753_v50 = vmul.f32 1.442695, %v1742_v12  ;;  %v2606_v1 = vsub.f32 %v13969_v41, %v13968_v54  ;;  %v13977_v41 = vld [vmem:[#allocation246_spill] sm:$0xff] }
 0x3c3   :  { %13967 = vst [vmem:[#allocation132_spill] sm:$0xff] %v9980_v52  ;;  %v9984_v60 = vpop.eup %6511  ;;  %v3981_v43 = vadd.f32 %v3973_v0, %v3965_v24  ;;  %v4949_v22 = vmul.f32 %v9980_v52, %v13924_v35  ;;  %6533 = vpow2.f32 %v1705_v55  ;;  %v2630_v14 = vsub.f32 %v13971_v20, %v13968_v54  ;;  %v13973_v0 = vld [vmem:[#allocation140_spill] sm:$0xff] }
 0x3c4   :  { %13970 = vst [vmem:[#allocation238_spill] sm:$0xff] %v9984_v60  ;;  %v4941_v53 = vadd.f32 %v4933_v58, %v4925_v9  ;;  %v4965_v16 = vmul.f32 %v9984_v60, %v13925_v15  ;;  %6535 = vpow2.f32 %v1729_v29  ;;  %v2617_v32 = vmul.f32 1.442695, %v2606_v1  ;;  %v13975_v58 = vld [vmem:[#allocation152_spill] sm:$0xff] }
 0x3c5   :  { %v9992_v12 = vpop.eup %6513  ;;  %v3997_v48 = vadd.f32 %v3989_v8, %v3981_v43  ;;  %6537 = vpow2.f32 %v1753_v50  ;;  %v2641_v19 = vmul.f32 1.442695, %v2630_v14  ;;  %v2654_v38 = vsub.f32 %v13973_v0, %v13968_v54  ;;  %v780_v50 = vpop.f32.mrf.mxu1  ;;  %v13979_v14 = vld [vmem:[#allocation253_spill] sm:$0xff] }
 0x3c6   :  { %13972 = vst [vmem:[#allocation241_spill] sm:$0xff] %v9992_v12  ;;  %v9996_v24 = vpop.eup %6515  ;;  %v4957_v35 = vadd.f32 %v4949_v22, %v4941_v53  ;;  %v4981_v55 = vmul.f32 %v9992_v12, %v13932_v51  ;;  %6539 = vpow2.f32 %v2617_v32  ;;  %v2678_v15 = vsub.f32 %v13975_v58, %v13968_v54 }
 0x3c7   :  { %13974 = vst [vmem:[#allocation190_spill] sm:$0xff] %v9996_v24  ;;  %v10002_v29 = vpop.eup %6517  ;;  %v4997_v8 = vmul.f32 %v9996_v24, %v9866_v44  ;;  %6541 = vpow2.f32 %v2641_v19  ;;  %v2665_v9 = vmul.f32 1.442695, %v2654_v38  ;;  %v2702_v1 = vsub.f32 %v13977_v41, %v13968_v54  ;;  %v13981_v19 = vld [vmem:[#allocation205_spill] sm:$0xff]  ;;  %v10070_v49 = vpop.f32.mrf.mxu1 }
 0x3c8   :  { %13976 = vst [vmem:[#allocation159_spill] sm:$0xff] %v10002_v29  ;;  %v10008_v43 = vpop.eup %6519  ;;  %v4973_v22 = vadd.f32 %v4965_v16, %v4957_v35  ;;  %v1989_v51 = vmul.f32 %v10002_v29, %v780_v50  ;;  %v2689_v20 = vmul.f32 1.442695, %v2678_v15  ;;  %v2726_v53 = vsub.f32 %v13979_v14, %v13968_v54 }
 0x3c9   :  { %13978 = vst [vmem:[#allocation161_spill] sm:$0xff] %v10008_v43  ;;  %v10013_v32 = vpop.eup %6521  ;;  %v2997_v0 = vmul.f32 %v10008_v43, %v780_v50  ;;  %6543 = vpow2.f32 %v2665_v9  ;;  %v2713_v44 = vmul.f32 1.442695, %v2702_v1  ;;  %v2750_v38 = vsub.f32 %v13981_v19, %v13968_v54  ;;  %v13996_v43 = vld [vmem:[#allocation231_spill] sm:$0xff] }
 0x3ca   :  { %13980 = vst [vmem:[#allocation56_spill] sm:$0xff] %v10013_v32  ;;  %v10018_v58 = vpop.eup %6523  ;;  %v4989_v41 = vadd.f32 %v4981_v55, %v4973_v22  ;;  %v10021_v16 = vadd.f32 %v1989_v51, %v9898_v59  ;;  %v4005_v35 = vmul.f32 %v10013_v32, %v780_v50  ;;  %6545 = vpow2.f32 %v2689_v20  ;;  %v13986_v55 = vld [vmem:[#allocation162_spill] sm:$0xff]  ;;  %v13988_v20 = vld [vmem:[#allocation163_spill] sm:$0xff] }
 0x3cb   :  { %13982 = vst [vmem:[#allocation61_spill] sm:$0xff] %v10018_v58  ;;  %v10024_v15 = vpop.eup %6525  ;;  %v10027_v14 = vadd.f32 %v2997_v0, %v9938_v33  ;;  %v5013_v9 = vmul.f32 %v10018_v58, %v780_v50  ;;  %6547 = vpow2.f32 %v2713_v44  ;;  %v2737_v1 = vmul.f32 1.442695, %v2726_v53  ;;  %v13989_v33 = vld [vmem:[#allocation46_spill] sm:$0xff]  ;;  %v13990_v0 = vld [vmem:[#allocation67_spill] sm:$0xff]  ;;  %v13991_v53 = vld [vmem:[#allocation73_spill] sm:$0xff] }
 0x3cc   :  { %13983 = vst [vmem:[#allocation224_spill] sm:$0xff] %v10024_v15  ;;  %v10030_v29 = vpop.eup %6527  ;;  %v5005_v19 = vadd.f32 %v4997_v8, %v4989_v41  ;;  %v10032_v24 = vadd.f32 %v4005_v35, %v3997_v48  ;;  %v1886_v59 = vmul.f32 %v10024_v15, %v13986_v55  ;;  %v2761_v22 = vmul.f32 1.442695, %v2750_v38  ;;  %v13994_v8 = vld [vmem:[#allocation230_spill] sm:$0xff]  ;;  %v13995_v38 = vld [vmem:[#allocation141_spill] sm:$0xff] }
 0x3cd   :  { %13984 = vst [vmem:[#allocation121_spill] sm:$0xff] %v10027_v14  ;;  %13985 = vst [vmem:[#allocation229_spill] sm:$0xff] %v10030_v29  ;;  %v10036_v51 = vpop.eup %6529  ;;  %v1894_v32 = vmul.f32 %v10030_v29, %v13988_v20  ;;  %6549 = vpow2.f32 %v2737_v1  ;;  %v3614_v50 = vsub.f32 %v13990_v0, %v13989_v33  ;;  %v3638_v44 = vsub.f32 %v13991_v53, %v13989_v33 }
 0x3ce   :  { %13987 = vst [vmem:[#allocation334_spill] sm:$0xff] %v10036_v51  ;;  %v10044_v58 = vpop.eup %6531  ;;  %v10046_v48 = vadd.f32 %v5013_v9, %v5005_v19  ;;  %v1910_v41 = vmul.f32 %v10036_v51, %v13994_v8  ;;  %6551 = vpow2.f32 %v2761_v22  ;;  %v3662_v35 = vsub.f32 %v13995_v38, %v13989_v33  ;;  %v13999_v19 = vld [vmem:[#allocation247_spill] sm:$0xff]  ;;  %v14000_v22 = vld [vmem:[#allocation254_spill] sm:$0xff] }
 0x3cf   :  { %13992 = vst [vmem:[#allocation133_spill] sm:$0xff] %v10044_v58  ;;  %v1902_v12 = vadd.f32 %v1894_v32, %v1886_v59  ;;  %v1926_v1 = vmul.f32 %v10044_v58, %v13996_v43  ;;  %v3625_v60 = vmul.f32 1.442695, %v3614_v50  ;;  %v3649_v0 = vmul.f32 1.442695, %v3638_v44  ;;  %v14002_v59 = vld [vmem:[#allocation336_spill] sm:$0xff] }
 0x3d0   :  { %13993 = vst [vmem:[#allocation239_spill] sm:$0xff] %v10046_v48  ;;  %v10054_v52 = vpop.eup %6533  ;;  %v3673_v53 = vmul.f32 1.442695, %v3662_v35  ;;  %v3686_v9 = vsub.f32 %v13998_v5, %v13989_v33  ;;  %v3710_v48 = vsub.f32 %v13999_v19, %v13989_v33  ;;  %v3734_v56 = vsub.f32 %v14000_v22, %v13989_v33  ;;  %v14003_v50 = vld [vmem:[#allocation206_spill] sm:$0xff]  ;;  %v14005_v5 = vld [vmem:[#allocation337_spill] sm:$0xff]  ;;  %v14008_v58 = vld [vmem:[#allocation83_spill] sm:$0xff] }
 0x3d1   :  { %13997 = vst [vmem:[#allocation242_spill] sm:$0xff] %v10054_v52  ;;  %v10062_v42 = vpop.eup %6535  ;;  %v1918_v32 = vadd.f32 %v1910_v41, %v1902_v12  ;;  %v1942_v38 = vmul.f32 %v10054_v52, %v14002_v59  ;;  %6553 = vpow2.f32 %v3625_v60  ;;  %v3758_v44 = vsub.f32 %v14003_v50, %v13989_v33 }
 0x3d2   :  { %14001 = vst [vmem:[#allocation191_spill] sm:$0xff] %v10062_v42  ;;  %v10068_v35 = vpop.eup %6537  ;;  %v1958_v19 = vmul.f32 %v10062_v42, %v14005_v5  ;;  %6555 = vpow2.f32 %v3649_v0  ;;  %v3697_v14 = vmul.f32 1.442695, %v3686_v9  ;;  %v3721_v22 = vmul.f32 1.442695, %v3710_v48  ;;  %v14009_v42 = vld [vmem:[#allocation68_spill] sm:$0xff] }
 0x3d3   :  { %14004 = vst [vmem:[#allocation335_spill] sm:$0xff] %v10068_v35  ;;  %v10074_v39 = vpop.eup %6539  ;;  %v1934_v12 = vadd.f32 %v1926_v1, %v1918_v32  ;;  %v1974_v41 = vmul.f32 %v10068_v35, %v10070_v49  ;;  %6557 = vpow2.f32 %v3673_v53  ;;  %v3745_v60 = vmul.f32 1.442695, %v3734_v56  ;;  %v14010_v1 = vld [vmem:[#allocation74_spill] sm:$0xff] }
 0x3d4   :  { %14006 = vst [vmem:[#allocation57_spill] sm:$0xff] %v10074_v39  ;;  %v10078_v52 = vpop.eup %6541  ;;  %v2894_v50 = vmul.f32 %v10074_v39, %v13986_v55  ;;  %6559 = vpow2.f32 %v3697_v14  ;;  %v3769_v46 = vmul.f32 1.442695, %v3758_v44  ;;  %v4622_v0 = vsub.f32 %v14009_v42, %v14008_v58  ;;  %v14012_v35 = vld [vmem:[#allocation142_spill] sm:$0xff] }
 0x3d5   :  { %14007 = vst [vmem:[#allocation62_spill] sm:$0xff] %v10078_v52  ;;  %v1950_v9 = vadd.f32 %v1942_v38, %v1934_v12  ;;  %v2902_v48 = vmul.f32 %v10078_v52, %v13988_v20  ;;  %6561 = vpow2.f32 %v3721_v22  ;;  %v4646_v32 = vsub.f32 %v14010_v1, %v14008_v58  ;;  %v14013_v14 = vld [vmem:[#allocation154_spill] sm:$0xff] }
 0x3d6   :  { %v10088_v53 = vpop.eup %6543  ;;  %6563 = vpow2.f32 %v3745_v60  ;;  %v4633_v56 = vmul.f32 1.442695, %v4622_v0  ;;  %v4670_v51 = vsub.f32 %v14012_v35, %v14008_v58  ;;  %v4694_v44 = vsub.f32 %v14013_v14, %v14008_v58 }
 0x3d7   :  { %14011 = vst [vmem:[#allocation122_spill] sm:$0xff] %v10088_v53  ;;  %v10094_v29 = vpop.eup %6545  ;;  %v1966_v42 = vadd.f32 %v1958_v19, %v1950_v9  ;;  %v2910_v38 = vadd.f32 %v2902_v48, %v2894_v50  ;;  %v2918_v22 = vmul.f32 %v10088_v53, %v13994_v8  ;;  %6565 = vpow2.f32 %v3769_v46  ;;  %v14017_v46 = vld [vmem:[#allocation248_spill] sm:$0xff]  ;;  %v14018_v48 = vld [vmem:[#allocation255_spill] sm:$0xff] }
 0x3d8   :  { %14014 = vst [vmem:[#allocation134_spill] sm:$0xff] %v10094_v29  ;;  %v10098_v12 = vpop.eup %6547  ;;  %v2934_v60 = vmul.f32 %v10094_v29, %v13996_v43  ;;  %6567 = vpow2.f32 %v4633_v56  ;;  %v4657_v0 = vmul.f32 1.442695, %v4646_v32  ;;  %v4681_v1 = vmul.f32 1.442695, %v4670_v51  ;;  %v14019_v56 = vld [vmem:[#allocation207_spill] sm:$0xff] }
 0x3d9   :  { %14015 = vst [vmem:[#allocation240_spill] sm:$0xff] %v10098_v12  ;;  %v10102_v35 = vadd.f32 %v1974_v41, %v1966_v42  ;;  %v2926_v15 = vadd.f32 %v2918_v22, %v2910_v38  ;;  %v2950_v14 = vmul.f32 %v10098_v12, %v14002_v59  ;;  %v4705_v19 = vmul.f32 1.442695, %v4694_v44  ;;  %v14021_v44 = vld [vmem:[#allocation315_spill] sm:$0xff] }
 0x3da   :  { %v10106_v50 = vpop.eup %6549  ;;  %6569 = vpow2.f32 %v4657_v0  ;;  %v4718_v9 = vsub.f32 %v14017_v46, %v14008_v58  ;;  %v4742_v53 = vsub.f32 %v14018_v48, %v14008_v58  ;;  %v4766_v32 = vsub.f32 %v14019_v56, %v14008_v58  ;;  %v14022_v56 = vld [vmem:[#allocation316_spill] sm:$0xff] }
 0x3db   :  { %14016 = vst [vmem:[#allocation243_spill] sm:$0xff] %v10106_v50  ;;  %v10114_v51 = vpop.eup %6551  ;;  %v2942_v41 = vadd.f32 %v2934_v60, %v2926_v15  ;;  %v2966_v42 = vmul.f32 %v10106_v50, %v14005_v5  ;;  %6571 = vpow2.f32 %v4681_v1  ;;  %v1766_v38 = vsub.f32 %v14021_v44, %v13951_v61  ;;  %v14024_v60 = vld [vmem:[#allocation317_spill] sm:$0xff]  ;;  %v14025_v61 = vld [vmem:[#allocation318_spill] sm:$0xff] }
 0x3dc   :  { %14020 = vst [vmem:[#allocation192_spill] sm:$0xff] %v10114_v51  ;;  %v2982_v22 = vmul.f32 %v10114_v51, %v10070_v49  ;;  %6573 = vpow2.f32 %v4705_v19  ;;  %v4729_v0 = vmul.f32 1.442695, %v4718_v9  ;;  %v4753_v46 = vmul.f32 1.442695, %v4742_v53  ;;  %v14026_v51 = vld [vmem:[#allocation75_spill] sm:$0xff] }
 0x3dd   :  { %v2958_v48 = vadd.f32 %v2950_v14, %v2942_v41  ;;  %v4777_v12 = vmul.f32 1.442695, %v4766_v32  ;;  %v1777_v29 = vmul.f32 1.442695, %v1766_v38  ;;  %v2774_v52 = vsub.f32 %v14022_v56, %v13968_v54 }
 0x3de   :  { %v10124_v15 = vpop.eup %6553  ;;  %6575 = vpow2.f32 %v4729_v0  ;;  %v3782_v1 = vsub.f32 %v14024_v60, %v13989_v33  ;;  %v4790_v44 = vsub.f32 %v14025_v61, %v14008_v58  ;;  %v1599_v19 = vsub.f32 %v14026_v51, %v9285_v23  ;;  %v14034_v61 = vld [vmem:[#allocation164_spill] sm:$0xff] }
 0x3df   :  { %14023 = vst [vmem:[#allocation26_spill] sm:$0xff] %v10124_v15  ;;  %v10132_v9 = vpop.eup %6555  ;;  %v2974_v53 = vadd.f32 %v2966_v42, %v2958_v48  ;;  %v3902_v14 = vmul.f32 %v10124_v15, %v13986_v55  ;;  %6577 = vpow2.f32 %v4753_v46  ;;  %v2785_v54 = vmul.f32 1.442695, %v2774_v52 }
 0x3e0   :  { %14027 = vst [vmem:[#allocation27_spill] sm:$0xff] %v10132_v9  ;;  %v10136_v32 = vpop.eup %6557  ;;  %v3910_v41 = vmul.f32 %v10132_v9, %v13988_v20  ;;  %6579 = vpow2.f32 %v4777_v12  ;;  %v3793_v33 = vmul.f32 1.442695, %v3782_v1  ;;  %v4801_v38 = vmul.f32 1.442695, %v4790_v44  ;;  %v14031_v12 = vld [vmem:[#allocation87_spill] sm:$0xff] }
 0x3e1   :  { %14028 = vst [vmem:[#allocation5_spill] sm:$0xff] %v10136_v32  ;;  %v10140_v58 = vpop.eup %6559  ;;  %v10142_v0 = vadd.f32 %v2982_v22, %v2974_v53  ;;  %v3926_v51 = vmul.f32 %v10136_v32, %v13994_v8  ;;  %6581 = vpow2.f32 %v1777_v29  ;;  %v1611_v42 = vmul.f32 1.442695, %v1599_v19  ;;  %v14033_v1 = vld [vmem:[#allocation155_spill] sm:$0xff] }
 0x3e2   :  { %14029 = vst [vmem:[#allocation65_spill] sm:$0xff] %v10140_v58  ;;  %v10146_v48 = vpop.eup %6561  ;;  %v3918_v52 = vadd.f32 %v3910_v41, %v3902_v14  ;;  %v3942_v46 = vmul.f32 %v10140_v58, %v13996_v43  ;;  %6583 = vpow2.f32 %v2785_v54  ;;  %v1623_v56 = vsub.f32 %v14031_v12, %v9285_v23 }
 0x3e3   :  { %14030 = vst [vmem:[#allocation71_spill] sm:$0xff] %v10146_v48  ;;  %v10152_v60 = vpop.eup %6563  ;;  %v3958_v22 = vmul.f32 %v10146_v48, %v14002_v59  ;;  %6585 = vpow2.f32 %v3793_v33  ;;  %v1647_v29 = vsub.f32 %v14033_v1, %v9285_v23  ;;  %v1671_v44 = vsub.f32 %v14034_v61, %v9285_v23 }
 0x3e4   :  { %14032 = vst [vmem:[#allocation139_spill] sm:$0xff] %v10152_v60  ;;  %v10160_v19 = vpop.eup %6565  ;;  %v3934_v53 = vadd.f32 %v3926_v51, %v3918_v52  ;;  %v3974_v14 = vmul.f32 %v10152_v60, %v14005_v5  ;;  %6587 = vpow2.f32 %v4801_v38  ;;  %v1635_v54 = vmul.f32 1.442695, %v1623_v56  ;;  %v14037_v51 = vld [vmem:[#allocation256_spill] sm:$0xff]  ;;  %v14039_v38 = vld [vmem:[#allocation267_spill] sm:$0xff] }
 0x3e5   :  { %14035 = vst [vmem:[#allocation151_spill] sm:$0xff] %v10160_v19  ;;  %v10164_v41 = vpop.eup %6567  ;;  %v3990_v12 = vmul.f32 %v10160_v19, %v10070_v49  ;;  %6589 = vpow2.f32 %v1611_v42  ;;  %v1659_v33 = vmul.f32 1.442695, %v1647_v29  ;;  %v1683_v48 = vmul.f32 1.442695, %v1671_v44  ;;  %v14040_v60 = vld [vmem:[#allocation319_spill] sm:$0xff] }
 0x3e6   :  { %14036 = vst [vmem:[#allocation245_spill] sm:$0xff] %v10164_v41  ;;  %v3950_v1 = vadd.f32 %v3942_v46, %v3934_v53  ;;  %v4910_v61 = vmul.f32 %v10164_v41, %v13986_v55  ;;  %6591 = vpow2.f32 %v1635_v54  ;;  %v1695_v52 = vsub.f32 %v14037_v51, %v9285_v23  ;;  %v14041_v42 = vld [vmem:[#allocation76_spill] sm:$0xff] }
 0x3e7   :  { %v10172_v58 = vpop.eup %6569  ;;  %6593 = vpow2.f32 %v1659_v33  ;;  %v1719_v56 = vsub.f32 %v14039_v38, %v9285_v23  ;;  %v1743_v19 = vsub.f32 %v14040_v60, %v9285_v23  ;;  %v2607_v29 = vsub.f32 %v14041_v42, %v9294_v34  ;;  %v14074_v41 = vld [vmem:[#allocation4_spill] sm:$0xff] }
 0x3e8   :  { %14038 = vst [vmem:[#allocation252_spill] sm:$0xff] %v10172_v58  ;;  %v10180_v46 = vpop.eup %6571  ;;  %v3966_v44 = vadd.f32 %v3958_v22, %v3950_v1  ;;  %v4918_v55 = vmul.f32 %v10172_v58, %v13988_v20  ;;  %6595 = vpow2.f32 %v1683_v48  ;;  %v1707_v53 = vmul.f32 1.442695, %v1695_v52  ;;  %v14045_v20 = vld [vmem:[#allocation88_spill] sm:$0xff] }
 0x3e9   :  { %14042 = vst [vmem:[#allocation204_spill] sm:$0xff] %v10180_v46  ;;  %v10184_v54 = vpop.eup %6573  ;;  %v4934_v33 = vmul.f32 %v10180_v46, %v13994_v8  ;;  %v1731_v51 = vmul.f32 1.442695, %v1719_v56  ;;  %v1755_v38 = vmul.f32 1.442695, %v1743_v19  ;;  %v2631_v48 = vsub.f32 %v14045_v20, %v9294_v34  ;;  %v14046_v1 = vld [vmem:[#allocation156_spill] sm:$0xff] }
 0x3ea   :  { %14043 = vst [vmem:[#allocation14_spill] sm:$0xff] %v10184_v54  ;;  %v2619_v32 = vmul.f32 1.442695, %v2607_v29  ;;  %v3982_v60 = vadd.f32 %v3974_v14, %v3966_v44  ;;  %v4926_v50 = vadd.f32 %v4918_v55, %v4910_v61  ;;  %v4950_v42 = vmul.f32 %v10184_v54, %v13996_v43  ;;  %v14047_v8 = vld [vmem:[#allocation165_spill] sm:$0xff] }
 0x3eb   :  { %6597 = vpow2.f32 %v1707_v53  ;;  %v10190_v22 = vpop.eup %6575  ;;  %v2655_v52 = vsub.f32 %v14046_v1, %v9294_v34  ;;  %v2679_v56 = vsub.f32 %v14047_v8, %v9294_v34  ;;  %v2643_v55 = vmul.f32 1.442695, %v2631_v48  ;;  %v14054_v48 = vld [vmem:[#allocation320_spill] sm:$0xff] }
 0x3ec   :  { %14044 = vst [vmem:[#allocation66_spill] sm:$0xff] %v10190_v22  ;;  %6599 = vpow2.f32 %v1731_v51  ;;  %v10198_v19 = vpop.eup %6577  ;;  %v3998_v14 = vadd.f32 %v3990_v12, %v3982_v60  ;;  %v4942_v61 = vadd.f32 %v4934_v33, %v4926_v50  ;;  %v4966_v43 = vmul.f32 %v10190_v22, %v14002_v59  ;;  %v786_v12 = vpop.f32.mrf.mxu1  ;;  %v14051_v33 = vld [vmem:[#allocation257_spill] sm:$0xff] }
 0x3ed   :  { %14048 = vst [vmem:[#allocation72_spill] sm:$0xff] %v10198_v19  ;;  %6601 = vpow2.f32 %v1755_v38  ;;  %v10202_v29 = vpop.eup %6579  ;;  %v4982_v44 = vmul.f32 %v10198_v19, %v14005_v5  ;;  %v2667_v53 = vmul.f32 1.442695, %v2655_v52  ;;  %v2691_v50 = vmul.f32 1.442695, %v2679_v56  ;;  %v14053_v5 = vld [vmem:[#allocation268_spill] sm:$0xff] }
 0x3ee   :  { %14049 = vst [vmem:[#allocation140_spill] sm:$0xff] %v10202_v29  ;;  %6603 = vpow2.f32 %v2619_v32  ;;  %v10206_v51 = vpop.eup %6581  ;;  %v4958_v20 = vadd.f32 %v4950_v42, %v4942_v61  ;;  %v4998_v1 = vmul.f32 %v10202_v29, %v10070_v49  ;;  %v2703_v59 = vsub.f32 %v14051_v33, %v9294_v34  ;;  %v14070_v19 = vld [vmem:[#allocation127_spill] sm:$0xff] }
 0x3ef   :  { %14050 = vst [vmem:[#allocation152_spill] sm:$0xff] %v10206_v51  ;;  %v10212_v38 = vpop.eup %6583  ;;  %v1990_v60 = vmul.f32 %v10206_v51, %v786_v12  ;;  %6605 = vpow2.f32 %v2643_v55  ;;  %v2727_v32 = vsub.f32 %v14053_v5, %v9294_v34  ;;  %v2751_v52 = vsub.f32 %v14054_v48, %v9294_v34 }
 0x3f0   :  { %14052 = vst [vmem:[#allocation246_spill] sm:$0xff] %v10212_v38  ;;  %v10219_v42 = vpop.eup %6585  ;;  %v4974_v8 = vadd.f32 %v4966_v43, %v4958_v20  ;;  %v2998_v49 = vmul.f32 %v10212_v38, %v786_v12  ;;  %6607 = vpow2.f32 %v2667_v53  ;;  %v2715_v56 = vmul.f32 1.442695, %v2703_v59  ;;  %v14060_v59 = vld [vmem:[#allocation172_spill] sm:$0xff] }
 0x3f1   :  { %14055 = vst [vmem:[#allocation253_spill] sm:$0xff] %v10219_v42  ;;  %v10222_v61 = vpop.eup %6587  ;;  %v10225_v33 = vadd.f32 %v1990_v60, %v10102_v35  ;;  %v4006_v55 = vmul.f32 %v10219_v42, %v786_v12  ;;  %6609 = vpow2.f32 %v2691_v50  ;;  %v2739_v51 = vmul.f32 1.442695, %v2727_v32  ;;  %v14062_v42 = vld [vmem:[#allocation177_spill] sm:$0xff] }
 0x3f2   :  { %14056 = vst [vmem:[#allocation205_spill] sm:$0xff] %v10222_v61  ;;  %v10228_v5 = vpop.eup %6589  ;;  %v4990_v29 = vadd.f32 %v4982_v44, %v4974_v8  ;;  %v10231_v48 = vadd.f32 %v2998_v49, %v10142_v0  ;;  %v5014_v43 = vmul.f32 %v10222_v61, %v786_v12  ;;  %6611 = vpow2.f32 %v2715_v56  ;;  %v14063_v0 = vld [vmem:[#allocation77_spill] sm:$0xff] }
 0x3f3   :  { %14057 = vst [vmem:[#allocation162_spill] sm:$0xff] %v10228_v5  ;;  %v10234_v53 = vpop.eup %6591  ;;  %v10236_v20 = vadd.f32 %v4006_v55, %v3998_v14  ;;  %v1887_v35 = vmul.f32 %v10228_v5, %v14060_v59  ;;  %6613 = vpow2.f32 %v2739_v51  ;;  %v2763_v60 = vmul.f32 1.442695, %v2751_v52  ;;  %v14064_v12 = vld [vmem:[#allocation89_spill] sm:$0xff]  ;;  %v14066_v14 = vld [vmem:[#allocation236_spill] sm:$0xff] }
 0x3f4   :  { %14058 = vst [vmem:[#allocation163_spill] sm:$0xff] %v10231_v48  ;;  %14059 = vst [vmem:[#allocation46_spill] sm:$0xff] %v10234_v53  ;;  %v10240_v50 = vpop.eup %6593  ;;  %v5006_v32 = vadd.f32 %v4998_v1, %v4990_v29  ;;  %v1895_v44 = vmul.f32 %v10234_v53, %v14062_v42  ;;  %v3615_v8 = vsub.f32 %v14063_v0, %v9304_v62  ;;  %v14067_v51 = vld [vmem:[#allocation157_spill] sm:$0xff]  ;;  %v14068_v29 = vld [vmem:[#allocation166_spill] sm:$0xff] }
 0x3f5   :  { %14061 = vst [vmem:[#allocation67_spill] sm:$0xff] %v10240_v50  ;;  %v3639_v49 = vsub.f32 %v14064_v12, %v9304_v62  ;;  %v10248_v56 = vpop.eup %6595  ;;  %v1911_v55 = vmul.f32 %v10240_v50, %v14066_v14  ;;  %6615 = vpow2.f32 %v2763_v60  ;;  %v3663_v52 = vsub.f32 %v14067_v51, %v9304_v62  ;;  %v14072_v60 = vld [vmem:[#allocation258_spill] sm:$0xff] }
 0x3f6   :  { %14065 = vst [vmem:[#allocation73_spill] sm:$0xff] %v10248_v56  ;;  %v3687_v1 = vsub.f32 %v14068_v29, %v9304_v62  ;;  %v10256_v61 = vadd.f32 %v5014_v43, %v5006_v32  ;;  %v1903_v38 = vadd.f32 %v1895_v44, %v1887_v35  ;;  %v1927_v0 = vmul.f32 %v10248_v56, %v14070_v19  ;;  %v14075_v35 = vld [vmem:[#allocation269_spill] sm:$0xff] }
 0x3f7   :  { %v3627_v22 = vmul.f32 1.442695, %v3615_v8  ;;  %v3651_v9 = vmul.f32 1.442695, %v3639_v49  ;;  %v3675_v15 = vmul.f32 1.442695, %v3663_v52  ;;  %v3711_v46 = vsub.f32 %v14072_v60, %v9304_v62  ;;  %v10272_v8 = vpop.f32.mrf.mxu1 }
 0x3f8   :  { %14069 = vst [vmem:[#allocation230_spill] sm:$0xff] %v10256_v61  ;;  %v10260_v12 = vpop.eup %6597  ;;  %v3699_v54 = vmul.f32 1.442695, %v3687_v1  ;;  %v1919_v51 = vadd.f32 %v1911_v55, %v1903_v38  ;;  %v3735_v32 = vsub.f32 %v14075_v35, %v9304_v62  ;;  %v14077_v49 = vld [vmem:[#allocation6_spill] sm:$0xff]  ;;  %v14078_v1 = vld [vmem:[#allocation321_spill] sm:$0xff] }
 0x3f9   :  { %14071 = vst [vmem:[#allocation141_spill] sm:$0xff] %v10260_v12  ;;  %v10264_v58 = vpop.eup %6599  ;;  %v1943_v43 = vmul.f32 %v10260_v12, %v14074_v41  ;;  %6617 = vpow2.f32 %v3627_v22  ;;  %v3723_v29 = vmul.f32 1.442695, %v3711_v46  ;;  %v3759_v60 = vsub.f32 %v14078_v1, %v9304_v62  ;;  %v14082_v1 = vld [vmem:[#allocation90_spill] sm:$0xff] }
 0x3fa   :  { %14073 = vst [vmem:[#allocation231_spill] sm:$0xff] %v10264_v58  ;;  %v10270_v44 = vpop.eup %6601  ;;  %v1959_v52 = vmul.f32 %v10264_v58, %v14077_v49  ;;  %6619 = vpow2.f32 %v3651_v9  ;;  %v1935_v55 = vadd.f32 %v1927_v0, %v1919_v51  ;;  %v3747_v35 = vmul.f32 1.442695, %v3735_v32  ;;  %v14080_v58 = vld [vmem:[#allocation78_spill] sm:$0xff] }
 0x3fb   :  { %14076 = vst [vmem:[#allocation153_spill] sm:$0xff] %v10270_v44  ;;  %v10278_v38 = vpop.eup %6603  ;;  %v1975_v22 = vmul.f32 %v10270_v44, %v10272_v8  ;;  %6621 = vpow2.f32 %v3675_v15  ;;  %v3771_v61 = vmul.f32 1.442695, %v3759_v60  ;;  %v4623_v9 = vsub.f32 %v14080_v58, %v9312_v27  ;;  %v14083_v51 = vld [vmem:[#allocation158_spill] sm:$0xff]  ;;  %v14085_v60 = vld [vmem:[#allocation167_spill] sm:$0xff] }
 0x3fc   :  { %14079 = vst [vmem:[#allocation247_spill] sm:$0xff] %v10278_v38  ;;  %v2895_v12 = vmul.f32 %v10278_v38, %v14060_v59  ;;  %6623 = vpow2.f32 %v3699_v54  ;;  %v10286_v46 = vpop.eup %6605  ;;  %v1951_v56 = vadd.f32 %v1943_v43, %v1935_v55  ;;  %v4647_v0 = vsub.f32 %v14082_v1, %v9312_v27 }
 0x3fd   :  { %14081 = vst [vmem:[#allocation254_spill] sm:$0xff] %v10286_v46  ;;  %6625 = vpow2.f32 %v3723_v29  ;;  %v4671_v44 = vsub.f32 %v14083_v51, %v9312_v27  ;;  %v10292_v15 = vpop.eup %6607  ;;  %v2903_v32 = vmul.f32 %v10286_v46, %v14062_v42  ;;  %v4635_v54 = vmul.f32 1.442695, %v4623_v9  ;;  %v14246_v46 = vld [vmem:[#allocation16_spill] sm:$0xff] }
 0x3fe   :  { %14084 = vst [vmem:[#allocation336_spill] sm:$0xff] %v10292_v15  ;;  %6627 = vpow2.f32 %v3747_v35  ;;  %v4695_v58 = vsub.f32 %v14085_v60, %v9312_v27  ;;  %v10298_v48 = vpop.eup %6609  ;;  %v1967_v43 = vadd.f32 %v1959_v52, %v1951_v56  ;;  %v2919_v29 = vmul.f32 %v10292_v15, %v14066_v14  ;;  %v14170_v15 = vld [vmem:[#allocation85_spill] sm:$0xff] }
 0x3ff   :  { %14086 = vst [vmem:[#allocation206_spill] sm:$0xff] %v10298_v48  ;;  %6629 = vpow2.f32 %v3771_v61  ;;  %v4659_v55 = vmul.f32 1.442695, %v4647_v0  ;;  %v10302_v1 = vpop.eup %6611  ;;  %v2911_v51 = vadd.f32 %v2903_v32, %v2895_v12  ;;  %v2935_v50 = vmul.f32 %v10298_v48, %v14070_v19  ;;  %v14089_v12 = vld [vmem:[#allocation259_spill] sm:$0xff] }
 0x400   :  { %14087 = vst [vmem:[#allocation337_spill] sm:$0xff] %v10302_v1  ;;  %6631 = vpow2.f32 %v4635_v54  ;;  %v4683_v35 = vmul.f32 1.442695, %v4671_v44  ;;  %v10306_v9 = vpop.eup %6613  ;;  %v10308_v39 = vadd.f32 %v1975_v22, %v1967_v43  ;;  %v2951_v56 = vmul.f32 %v10302_v1, %v14074_v41  ;;  %v14091_v44 = vld [vmem:[#allocation270_spill] sm:$0xff] }
 0x401   :  { %14088 = vst [vmem:[#allocation83_spill] sm:$0xff] %v10306_v9  ;;  %6633 = vpow2.f32 %v4659_v55  ;;  %v4707_v52 = vmul.f32 1.442695, %v4695_v58  ;;  %v2927_v60 = vadd.f32 %v2919_v29, %v2911_v51  ;;  %v2967_v61 = vmul.f32 %v10306_v9, %v14077_v49  ;;  %v14092_v54 = vld [vmem:[#allocation322_spill] sm:$0xff] }
 0x402   :  { %6635 = vpow2.f32 %v4683_v35  ;;  %v4719_v0 = vsub.f32 %v14089_v12, %v9312_v27  ;;  %v10316_v32 = vpop.eup %6615  ;;  %v4743_v22 = vsub.f32 %v14091_v44, %v9312_v27  ;;  %v4767_v43 = vsub.f32 %v14092_v54, %v9312_v27  ;;  %v6254_v12 = vpop.f32.mrf.mxu0  ;;  %v14163_v1 = vld [vmem:[#allocation278_spill] sm:$0xff] }
 0x403   :  { %14090 = vst [vmem:[#allocation68_spill] sm:$0xff] %v10316_v32  ;;  %6637 = vpow2.f32 %v4707_v52  ;;  %v1767_v58 = vsub.f32 %v13709_v6, %v9285_v23  ;;  %v2943_v29 = vadd.f32 %v2935_v50, %v2927_v60  ;;  %v2983_v55 = vmul.f32 %v10316_v32, %v10272_v8  ;;  %v14095_v60 = vld [vmem:[#allocation25_spill] sm:$0xff] }
 0x404   :  { %v4731_v51 = vmul.f32 1.442695, %v4719_v0  ;;  %v2775_v35 = vsub.f32 %v13713_v63, %v9294_v34  ;;  %v4755_v53 = vmul.f32 1.442695, %v4743_v22  ;;  %v4779_v52 = vmul.f32 1.442695, %v4767_v43 }
 0x405   :  { %v1779_v5 = vmul.f32 1.442695, %v1767_v58  ;;  %v3783_v44 = vsub.f32 %v13718_v40, %v9304_v62  ;;  %v2959_v54 = vadd.f32 %v2951_v56, %v2943_v29  ;;  %v4791_v23 = vsub.f32 %v13722_v36, %v9312_v27 }
 0x406   :  { %v10330_v9 = vpop.eup %6617  ;;  %6639 = vpow2.f32 %v4731_v51  ;;  %v2787_v6 = vmul.f32 1.442695, %v2775_v35  ;;  %v2004_v0 = vmul.f32 %v14095_v60, %v6254_v12 }
 0x407   :  { %14093 = vst [vmem:[#allocation74_spill] sm:$0xff] %v10330_v9  ;;  %v10334_v50 = vpop.eup %6619  ;;  %v3903_v63 = vmul.f32 %v10330_v9, %v14060_v59  ;;  %6641 = vpow2.f32 %v4755_v53  ;;  %v3795_v34 = vmul.f32 1.442695, %v3783_v44  ;;  %v2975_v40 = vadd.f32 %v2967_v61, %v2959_v54  ;;  %v14099_v53 = vld [vmem:[#allocation28_spill] sm:$0xff]  ;;  %v14104_v54 = vld [vmem:[#allocation41_spill] sm:$0xff] }
 0x408   :  { %14094 = vst [vmem:[#allocation142_spill] sm:$0xff] %v10334_v50  ;;  %v10339_v22 = vpop.eup %6621  ;;  %v3911_v62 = vmul.f32 %v10334_v50, %v14062_v42  ;;  %6643 = vpow2.f32 %v4779_v52  ;;  %v4803_v56 = vmul.f32 1.442695, %v4791_v23  ;;  %v10348_v27 = vadd.f32 %v2004_v0, %v9817_v30  ;;  %v14103_v30 = vld [vmem:[#allocation15_spill] sm:$0xff] }
 0x409   :  { %14096 = vst [vmem:[#allocation154_spill] sm:$0xff] %v10339_v22  ;;  %v10343_v43 = vpop.eup %6623  ;;  %v3927_v36 = vmul.f32 %v10339_v22, %v14066_v14  ;;  %6645 = vpow2.f32 %v1779_v5  ;;  %v10351_v58 = vmul.f32 %v14099_v53, %v6254_v12  ;;  %v10355_v61 = vadd.f32 %v2983_v55, %v2975_v40  ;;  %v14113_v53 = vld [vmem:[#allocation180_spill] sm:$0xff] }
 0x40a   :  { %14097 = vst [vmem:[#allocation248_spill] sm:$0xff] %v10343_v43  ;;  %14098 = vst [vmem:[#allocation255_spill] sm:$0xff] %v10348_v27  ;;  %v10353_v29 = vpop.eup %6625  ;;  %v3919_v51 = vadd.f32 %v3911_v62, %v3903_v63  ;;  %v3943_v35 = vmul.f32 %v10343_v43, %v14070_v19  ;;  %6647 = vpow2.f32 %v2787_v6  ;;  %v4020_v44 = vmul.f32 %v14103_v30, %v6254_v12  ;;  %v14107_v6 = vld [vmem:[#allocation95_spill] sm:$0xff] }
 0x40b   :  { %14100 = vst [vmem:[#allocation207_spill] sm:$0xff] %v10351_v58  ;;  %14101 = vst [vmem:[#allocation315_spill] sm:$0xff] %v10353_v29  ;;  %v10359_v52 = vpop.eup %6627  ;;  %v3959_v5 = vmul.f32 %v10353_v29, %v14074_v41  ;;  %6649 = vpow2.f32 %v3795_v34  ;;  %v10365_v23 = vmul.f32 %v14104_v54, %v6254_v12  ;;  %v1600_v40 = vsub.f32 %v14107_v6, %v9245_v18  ;;  %v14110_v12 = vld [vmem:[#allocation103_spill] sm:$0xff] }
 0x40c   :  { %14102 = vst [vmem:[#allocation316_spill] sm:$0xff] %v10359_v52  ;;  %v10367_v0 = vpop.eup %6629  ;;  %v3935_v55 = vadd.f32 %v3927_v36, %v3919_v51  ;;  %v3975_v63 = vmul.f32 %v10359_v52, %v14077_v49  ;;  %6651 = vpow2.f32 %v4803_v56  ;;  %v10378_v27 = vadd.f32 %v4020_v44, %v9828_v47  ;;  %v14111_v36 = vld [vmem:[#allocation168_spill] sm:$0xff] }
 0x40d   :  { %14105 = vst [vmem:[#allocation317_spill] sm:$0xff] %v10365_v23  ;;  %14106 = vst [vmem:[#allocation318_spill] sm:$0xff] %v10367_v0  ;;  %v10373_v62 = vpop.eup %6631  ;;  %v3991_v34 = vmul.f32 %v10367_v0, %v10272_v8  ;;  %v1624_v30 = vsub.f32 %v14110_v12, %v9245_v18  ;;  %v1648_v51 = vsub.f32 %v14111_v36, %v9245_v18  ;;  %v1613_v54 = vmul.f32 1.442695, %v1600_v40 }
 0x40e   :  { %14108 = vst [vmem:[#allocation75_spill] sm:$0xff] %v10373_v62  ;;  %14109 = vst [vmem:[#allocation87_spill] sm:$0xff] %v10378_v27  ;;  %v10384_v60 = vpop.eup %6633  ;;  %v3951_v56 = vadd.f32 %v3943_v35, %v3935_v55  ;;  %v4911_v6 = vmul.f32 %v10373_v62, %v14060_v59  ;;  %v1672_v23 = vsub.f32 %v14113_v53, %v9245_v18  ;;  %v14115_v27 = vld [vmem:[#allocation275_spill] sm:$0xff] }
 0x40f   :  { %14112 = vst [vmem:[#allocation155_spill] sm:$0xff] %v10384_v60  ;;  %v10390_v58 = vpop.eup %6635  ;;  %v4919_v47 = vmul.f32 %v10384_v60, %v14062_v42  ;;  %v1637_v44 = vmul.f32 1.442695, %v1624_v30  ;;  %v1661_v12 = vmul.f32 1.442695, %v1648_v51  ;;  %v1696_v36 = vsub.f32 %v14115_v27, %v9245_v18  ;;  %v14117_v30 = vld [vmem:[#allocation283_spill] sm:$0xff] }
 0x410   :  { %14114 = vst [vmem:[#allocation164_spill] sm:$0xff] %v10390_v58  ;;  %v10396_v0 = vpop.eup %6637  ;;  %v3967_v35 = vadd.f32 %v3959_v5, %v3951_v56  ;;  %v4935_v59 = vmul.f32 %v10390_v58, %v14066_v14  ;;  %6653 = vpow2.f32 %v1613_v54  ;;  %v1685_v55 = vmul.f32 1.442695, %v1672_v23  ;;  %v14118_v27 = vld [vmem:[#allocation326_spill] sm:$0xff]  ;;  %v14120_v14 = vld [vmem:[#allocation96_spill] sm:$0xff] }
 0x411   :  { %14116 = vst [vmem:[#allocation256_spill] sm:$0xff] %v10396_v0  ;;  %v4927_v40 = vadd.f32 %v4919_v47, %v4911_v6  ;;  %v4951_v53 = vmul.f32 %v10396_v0, %v14070_v19  ;;  %6655 = vpow2.f32 %v1637_v44  ;;  %v1709_v52 = vmul.f32 1.442695, %v1696_v36  ;;  %v14121_v23 = vld [vmem:[#allocation104_spill] sm:$0xff] }
 0x412   :  { %v3983_v42 = vadd.f32 %v3975_v63, %v3967_v35  ;;  %6657 = vpow2.f32 %v1661_v12  ;;  %v1720_v51 = vsub.f32 %v14117_v30, %v9245_v18  ;;  %v1744_v29 = vsub.f32 %v14118_v27, %v9245_v18  ;;  %v792_v27 = vpop.f32.mrf.mxu1 }
 0x413   :  { %v10406_v5 = vpop.eup %6639  ;;  %v4943_v56 = vadd.f32 %v4935_v59, %v4927_v40  ;;  %6659 = vpow2.f32 %v1685_v55  ;;  %v2608_v54 = vsub.f32 %v14120_v14, %v9252_v57  ;;  %v2632_v19 = vsub.f32 %v14121_v23, %v9252_v57 }
 0x414   :  { %14119 = vst [vmem:[#allocation267_spill] sm:$0xff] %v10406_v5  ;;  %v10412_v6 = vpop.eup %6641  ;;  %v3999_v63 = vadd.f32 %v3991_v34, %v3983_v42  ;;  %v4967_v47 = vmul.f32 %v10406_v5, %v14074_v41  ;;  %6661 = vpow2.f32 %v1709_v52  ;;  %v1733_v44 = vmul.f32 1.442695, %v1720_v51  ;;  %v14125_v41 = vld [vmem:[#allocation169_spill] sm:$0xff]  ;;  %v14150_v5 = vld [vmem:[#allocation8_spill] sm:$0xff] }
 0x415   :  { %14122 = vst [vmem:[#allocation319_spill] sm:$0xff] %v10412_v6  ;;  %v10416_v12 = vpop.eup %6643  ;;  %v4959_v36 = vadd.f32 %v4951_v53, %v4943_v56  ;;  %v4983_v35 = vmul.f32 %v10412_v6, %v14077_v49  ;;  %v1757_v59 = vmul.f32 1.442695, %v1744_v29  ;;  %v2621_v55 = vmul.f32 1.442695, %v2608_v54  ;;  %v14127_v49 = vld [vmem:[#allocation181_spill] sm:$0xff] }
 0x416   :  { %14123 = vst [vmem:[#allocation76_spill] sm:$0xff] %v10416_v12  ;;  %v10420_v40 = vpop.eup %6645  ;;  %v4999_v30 = vmul.f32 %v10416_v12, %v10272_v8  ;;  %6663 = vpow2.f32 %v1733_v44  ;;  %v2645_v34 = vmul.f32 1.442695, %v2632_v19  ;;  %v2656_v52 = vsub.f32 %v14125_v41, %v9252_v57  ;;  %v14129_v54 = vld [vmem:[#allocation276_spill] sm:$0xff] }
 0x417   :  { %14124 = vst [vmem:[#allocation88_spill] sm:$0xff] %v10420_v40  ;;  %v10426_v42 = vpop.eup %6647  ;;  %v4975_v51 = vadd.f32 %v4967_v47, %v4959_v36  ;;  %v1991_v53 = vmul.f32 %v10420_v40, %v792_v27  ;;  %6665 = vpow2.f32 %v1757_v59  ;;  %v2680_v29 = vsub.f32 %v14127_v49, %v9252_v57  ;;  %v14132_v40 = vld [vmem:[#allocation284_spill] sm:$0xff] }
 0x418   :  { %14126 = vst [vmem:[#allocation156_spill] sm:$0xff] %v10426_v42  ;;  %v10431_v56 = vpop.eup %6649  ;;  %v2999_v14 = vmul.f32 %v10426_v42, %v792_v27  ;;  %6667 = vpow2.f32 %v2621_v55  ;;  %v2669_v8 = vmul.f32 1.442695, %v2656_v52  ;;  %v2704_v23 = vsub.f32 %v14129_v54, %v9252_v57  ;;  %v14153_v42 = vld [vmem:[#allocation39_spill] sm:$0xff] }
 0x419   :  { %14128 = vst [vmem:[#allocation165_spill] sm:$0xff] %v10431_v56  ;;  %v10436_v19 = vpop.eup %6651  ;;  %v4991_v44 = vadd.f32 %v4983_v35, %v4975_v51  ;;  %v10439_v47 = vadd.f32 %v1991_v53, %v10308_v39  ;;  %v4007_v36 = vmul.f32 %v10431_v56, %v792_v27  ;;  %6669 = vpow2.f32 %v2645_v34  ;;  %v14133_v39 = vld [vmem:[#allocation327_spill] sm:$0xff]  ;;  %v14134_v34 = vld [vmem:[#allocation97_spill] sm:$0xff] }
 0x41a   :  { %14130 = vst [vmem:[#allocation257_spill] sm:$0xff] %v10436_v19  ;;  %v10443_v59 = vadd.f32 %v2999_v14, %v10355_v61  ;;  %v5015_v41 = vmul.f32 %v10436_v19, %v792_v27  ;;  %6671 = vpow2.f32 %v2669_v8  ;;  %v2693_v55 = vmul.f32 1.442695, %v2680_v29  ;;  %v14135_v61 = vld [vmem:[#allocation105_spill] sm:$0xff] }
 0x41b   :  { %v5007_v52 = vadd.f32 %v4999_v30, %v4991_v44  ;;  %v10446_v49 = vadd.f32 %v4007_v36, %v3999_v63  ;;  %v2717_v54 = vmul.f32 1.442695, %v2704_v23  ;;  %v2728_v35 = vsub.f32 %v14132_v40, %v9252_v57  ;;  %v14138_v30 = vld [vmem:[#allocation170_spill] sm:$0xff] }
 0x41c   :  { %14131 = vst [vmem:[#allocation268_spill] sm:$0xff] %v10443_v59  ;;  %6673 = vpow2.f32 %v2693_v55  ;;  %v2752_v51 = vsub.f32 %v14133_v39, %v9252_v57  ;;  %v3616_v53 = vsub.f32 %v14134_v34, %v9265_v10  ;;  %v3640_v14 = vsub.f32 %v14135_v61, %v9265_v10  ;;  %v14140_v23 = vld [vmem:[#allocation178_spill] sm:$0xff]  ;;  %v14142_v61 = vld [vmem:[#allocation179_spill] sm:$0xff] }
 0x41d   :  { %v10456_v27 = vpop.eup %6653  ;;  %v10458_v29 = vadd.f32 %v5015_v41, %v5007_v52  ;;  %6675 = vpow2.f32 %v2717_v54  ;;  %v2741_v63 = vmul.f32 1.442695, %v2728_v35  ;;  %v3664_v8 = vsub.f32 %v14138_v30, %v9265_v10  ;;  %v14143_v52 = vld [vmem:[#allocation182_spill] sm:$0xff]  ;;  %v14145_v30 = vld [vmem:[#allocation128_spill] sm:$0xff] }
 0x41e   :  { %14136 = vst [vmem:[#allocation320_spill] sm:$0xff] %v10456_v27  ;;  %v10462_v40 = vpop.eup %6655  ;;  %v1888_v44 = vmul.f32 %v10456_v27, %v14140_v23  ;;  %v2765_v36 = vmul.f32 1.442695, %v2752_v51  ;;  %v3629_v55 = vmul.f32 1.442695, %v3616_v53  ;;  %v3688_v54 = vsub.f32 %v14143_v52, %v9265_v10  ;;  %v14146_v51 = vld [vmem:[#allocation277_spill] sm:$0xff] }
 0x41f   :  { %14137 = vst [vmem:[#allocation172_spill] sm:$0xff] %v10458_v29  ;;  %14139 = vst [vmem:[#allocation177_spill] sm:$0xff] %v10462_v40  ;;  %v3653_v39 = vmul.f32 1.442695, %v3640_v14  ;;  %v10466_v34 = vpop.eup %6657  ;;  %v1896_v56 = vmul.f32 %v10462_v40, %v14142_v61  ;;  %6677 = vpow2.f32 %v2741_v63  ;;  %v3677_v41 = vmul.f32 1.442695, %v3664_v8 }
 0x420   :  { %14141 = vst [vmem:[#allocation77_spill] sm:$0xff] %v10466_v34  ;;  %v10472_v35 = vpop.eup %6659  ;;  %v1912_v19 = vmul.f32 %v10466_v34, %v14145_v30  ;;  %6679 = vpow2.f32 %v2765_v36  ;;  %v3712_v53 = vsub.f32 %v14146_v51, %v9265_v10  ;;  %v14147_v14 = vld [vmem:[#allocation285_spill] sm:$0xff]  ;;  %v3701_v52 = vmul.f32 1.442695, %v3688_v54  ;;  %v14156_v54 = vld [vmem:[#allocation10_spill] sm:$0xff] }
 0x421   :  { %14144 = vst [vmem:[#allocation89_spill] sm:$0xff] %v10472_v35  ;;  %v3736_v12 = vsub.f32 %v14147_v14, %v9265_v10  ;;  %v10480_v6 = vpop.eup %6661  ;;  %v1904_v43 = vadd.f32 %v1896_v56, %v1888_v44  ;;  %v14149_v63 = vld [vmem:[#allocation129_spill] sm:$0xff]  ;;  %6681 = vpow2.f32 %v3629_v55  ;;  %v14152_v14 = vld [vmem:[#allocation328_spill] sm:$0xff]  ;;  %v14154_v56 = vld [vmem:[#allocation98_spill] sm:$0xff]  ;;  %v10494_v55 = vpop.f32.mrf.mxu1 }
 0x422   :  { %14148 = vst [vmem:[#allocation236_spill] sm:$0xff] %v10480_v6  ;;  %v1928_v8 = vmul.f32 %v10472_v35, %v14149_v63  ;;  %v1944_v22 = vmul.f32 %v10480_v6, %v14150_v5  ;;  %6683 = vpow2.f32 %v3653_v39  ;;  %v3725_v0 = vmul.f32 1.442695, %v3712_v53 }
 0x423   :  { %v3749_v36 = vmul.f32 1.442695, %v3736_v12  ;;  %v10486_v50 = vpop.eup %6663  ;;  %v1920_v51 = vadd.f32 %v1912_v19, %v1904_v43  ;;  %6685 = vpow2.f32 %v3677_v41  ;;  %v3760_v9 = vsub.f32 %v14152_v14, %v9265_v10  ;;  %v14157_v12 = vld [vmem:[#allocation106_spill] sm:$0xff]  ;;  %v14158_v43 = vld [vmem:[#allocation171_spill] sm:$0xff] }
 0x424   :  { %14151 = vst [vmem:[#allocation157_spill] sm:$0xff] %v10486_v50  ;;  %v4624_v44 = vsub.f32 %v14154_v56, %v14153_v42  ;;  %v10492_v58 = vpop.eup %6665  ;;  %v1960_v29 = vmul.f32 %v10486_v50, %v14156_v54  ;;  %6687 = vpow2.f32 %v3701_v52  ;;  %v4648_v39 = vsub.f32 %v14157_v12, %v14153_v42 }
 0x425   :  { %14155 = vst [vmem:[#allocation166_spill] sm:$0xff] %v10492_v58  ;;  %v4672_v19 = vsub.f32 %v14158_v43, %v14153_v42  ;;  %v10502_v41 = vpop.eup %6667  ;;  %v1936_v53 = vadd.f32 %v1928_v8, %v1920_v51  ;;  %v1976_v14 = vmul.f32 %v10492_v58, %v10494_v55  ;;  %6689 = vpow2.f32 %v3725_v0 }
 0x426   :  { %14159 = vst [vmem:[#allocation127_spill] sm:$0xff] %v10502_v41  ;;  %v3773_v56 = vmul.f32 1.442695, %v3760_v9  ;;  %v10506_v32 = vpop.eup %6669  ;;  %v2896_v60 = vmul.f32 %v10502_v41, %v14140_v23  ;;  %6691 = vpow2.f32 %v3749_v36  ;;  %v4637_v52 = vmul.f32 1.442695, %v4624_v44  ;;  %v14162_v9 = vld [vmem:[#allocation183_spill] sm:$0xff] }
 0x427   :  { %14160 = vst [vmem:[#allocation258_spill] sm:$0xff] %v10506_v32  ;;  %v4661_v62 = vmul.f32 1.442695, %v4648_v39  ;;  %v10510_v12 = vpop.eup %6671  ;;  %v1952_v59 = vadd.f32 %v1944_v22, %v1936_v53  ;;  %v2904_v43 = vmul.f32 %v10506_v32, %v14142_v61  ;;  %v4685_v8 = vmul.f32 1.442695, %v4672_v19  ;;  %v14165_v22 = vld [vmem:[#allocation286_spill] sm:$0xff] }
 0x428   :  { %14161 = vst [vmem:[#allocation4_spill] sm:$0xff] %v10510_v12  ;;  %6693 = vpow2.f32 %v3773_v56  ;;  %v2920_v0 = vmul.f32 %v10510_v12, %v14145_v30  ;;  %v4696_v51 = vsub.f32 %v14162_v9, %v14153_v42  ;;  %v4720_v36 = vsub.f32 %v14163_v1, %v14153_v42  ;;  %v988_v56 = vpop.f32.mrf.mxu0 }
 0x429   :  { %6695 = vpow2.f32 %v4637_v52  ;;  %v10520_v44 = vpop.eup %6673  ;;  %v1968_v39 = vadd.f32 %v1960_v29, %v1952_v59  ;;  %v2912_v58 = vadd.f32 %v2904_v43, %v2896_v60  ;;  %v4744_v53 = vsub.f32 %v14165_v22, %v14153_v42  ;;  %v14168_v29 = vld [vmem:[#allocation329_spill] sm:$0xff]  ;;  %v14169_v22 = vld [vmem:[#allocation84_spill] sm:$0xff] }
 0x42a   :  { %14164 = vst [vmem:[#allocation269_spill] sm:$0xff] %v10520_v44  ;;  %6697 = vpow2.f32 %v4661_v62  ;;  %v10524_v19 = vpop.eup %6675  ;;  %v2936_v52 = vmul.f32 %v10520_v44, %v14149_v63  ;;  %v4709_v50 = vmul.f32 1.442695, %v4696_v51  ;;  %v4733_v9 = vmul.f32 1.442695, %v4720_v36 }
 0x42b   :  { %14166 = vst [vmem:[#allocation6_spill] sm:$0xff] %v10524_v19  ;;  %6699 = vpow2.f32 %v4685_v8  ;;  %v10528_v48 = vadd.f32 %v1976_v14, %v1968_v39  ;;  %v2928_v1 = vadd.f32 %v2920_v0, %v2912_v58  ;;  %v2952_v59 = vmul.f32 %v10524_v19, %v14150_v5  ;;  %v14173_v0 = vld [vmem:[#allocation86_spill] sm:$0xff] }
 0x42c   :  { %v4757_v60 = vmul.f32 1.442695, %v4744_v53  ;;  %v10532_v62 = vpop.eup %6677  ;;  %6701 = vpow2.f32 %v4709_v50  ;;  %v4768_v43 = vsub.f32 %v14168_v29, %v14153_v42  ;;  %v2003_v6 = vmul.f32 %v14169_v22, %v988_v56 }
 0x42d   :  { %14167 = vst [vmem:[#allocation321_spill] sm:$0xff] %v10532_v62  ;;  %v10538_v35 = vmul.f32 %v14170_v15, %v988_v56  ;;  %v10540_v8 = vpop.eup %6679  ;;  %v2944_v14 = vadd.f32 %v2936_v52, %v2928_v1  ;;  %v2968_v58 = vmul.f32 %v10532_v62, %v14156_v54  ;;  %6703 = vpow2.f32 %v4733_v9  ;;  %v14178_v1 = vld [vmem:[#allocation311_spill] sm:$0xff]  ;;  %v14243_v62 = vld [vmem:[#allocation13_spill] sm:$0xff] }
 0x42e   :  { %14172 = vst [vmem:[#allocation90_spill] sm:$0xff] %v10540_v8  ;;  %v4019_v51 = vmul.f32 %v14173_v0, %v988_v56  ;;  %v10545_v36 = vpop.eup %6681  ;;  %v2984_v50 = vmul.f32 %v10540_v8, %v10494_v55  ;;  %6705 = vpow2.f32 %v4757_v60  ;;  %v4781_v39 = vmul.f32 1.442695, %v4768_v43 }
 0x42f   :  { %14171 = vst [vmem:[#allocation78_spill] sm:$0xff] %v10538_v35  ;;  %14174 = vst [vmem:[#allocation158_spill] sm:$0xff] %v10545_v36  ;;  %v10550_v53 = vadd.f32 %v2003_v6, %v9612_v2  ;;  %v10552_v29 = vpop.eup %6683  ;;  %v2960_v22 = vadd.f32 %v2952_v59, %v2944_v14  ;;  %v3904_v52 = vmul.f32 %v10545_v36, %v14140_v23  ;;  %v14181_v2 = vld [vmem:[#allocation176_spill] sm:$0xff]  ;;  %v14182_v59 = vld [vmem:[#allocation23_spill] sm:$0xff] }
 0x430   :  { %14176 = vst [vmem:[#allocation259_spill] sm:$0xff] %v10552_v29  ;;  %v10557_v9 = vadd.f32 %v4019_v51, %v9622_v17  ;;  %v10560_v0 = vmul.f32 %v14178_v1, %v988_v56  ;;  %v10562_v15 = vpop.eup %6685  ;;  %v3912_v60 = vmul.f32 %v10552_v29, %v14142_v61  ;;  %6707 = vpow2.f32 %v4781_v39  ;;  %v14184_v56 = vld [vmem:[#allocation24_spill] sm:$0xff] }
 0x431   :  { %14175 = vst [vmem:[#allocation167_spill] sm:$0xff] %v10550_v53  ;;  %14180 = vst [vmem:[#allocation95_spill] sm:$0xff] %v10562_v15  ;;  %v1768_v6 = vsub.f32 %v14181_v2, %v9245_v18  ;;  %v2776_v43 = vsub.f32 %v14182_v59, %v9252_v57  ;;  %v10570_v14 = vpop.eup %6687  ;;  %v2976_v53 = vadd.f32 %v2968_v58, %v2960_v22 }
 0x432   :  { %14177 = vst [vmem:[#allocation270_spill] sm:$0xff] %v10557_v9  ;;  %14179 = vst [vmem:[#allocation322_spill] sm:$0xff] %v10560_v0  ;;  %v3928_v17 = vmul.f32 %v10562_v15, %v14145_v30  ;;  %v3784_v51 = vsub.f32 %v14184_v56, %v9265_v10  ;;  %v14185_v9 = vld [vmem:[#allocation63_spill] sm:$0xff]  ;;  %v6257_v0 = vpop.f32.mrf.mxu0  ;;  %v10578_v39 = vpop.eup %6689  ;;  %v3920_v35 = vadd.f32 %v3912_v60, %v3904_v52 }
 0x433   :  { %14183 = vst [vmem:[#allocation103_spill] sm:$0xff] %v10570_v14  ;;  %v4792_v1 = vsub.f32 %v14185_v9, %v14153_v42  ;;  %14186 = vst [vmem:[#allocation168_spill] sm:$0xff] %v10578_v39  ;;  %v3944_v18 = vmul.f32 %v10570_v14, %v14149_v63  ;;  %v1781_v57 = vmul.f32 1.442695, %v1768_v6  ;;  %v2789_v2 = vmul.f32 1.442695, %v2776_v43  ;;  %v10582_v59 = vpop.eup %6691 }
 0x434   :  { %14187 = vst [vmem:[#allocation180_spill] sm:$0xff] %v10582_v59  ;;  %v10584_v22 = vadd.f32 %v2984_v50, %v2976_v53  ;;  %v3960_v58 = vmul.f32 %v10578_v39, %v14150_v5  ;;  %v3797_v10 = vmul.f32 1.442695, %v3784_v51  ;;  %v3936_v42 = vadd.f32 %v3928_v17, %v3920_v35  ;;  %v14189_v9 = vld [vmem:[#allocation312_spill] sm:$0xff]  ;;  %v14191_v53 = vld [vmem:[#allocation11_spill] sm:$0xff]  ;;  %v14240_v14 = vld [vmem:[#allocation249_spill] sm:$0xff]  ;;  %v998_v36 = vpop.f32.mrf.mxu0 }
 0x435   :  { %v4805_v56 = vmul.f32 1.442695, %v4792_v1  ;;  %v10588_v8 = vpop.eup %6693  ;;  %v3976_v52 = vmul.f32 %v10582_v59, %v14156_v54  ;;  %6709 = vpow2.f32 %v1781_v57  ;;  %v2006_v60 = vmul.f32 %v14189_v9, %v6257_v0  ;;  %v14193_v51 = vld [vmem:[#allocation12_spill] sm:$0xff] }
 0x436   :  { %14188 = vst [vmem:[#allocation275_spill] sm:$0xff] %v10588_v8  ;;  %v10593_v6 = vpop.eup %6695  ;;  %v3992_v50 = vmul.f32 %v10588_v8, %v10494_v55  ;;  %6711 = vpow2.f32 %v2789_v2  ;;  %v10598_v43 = vmul.f32 %v14191_v53, %v6257_v0  ;;  %v4022_v1 = vmul.f32 %v14193_v51, %v6257_v0  ;;  %v14198_v51 = vld [vmem:[#allocation313_spill] sm:$0xff] }
 0x437   :  { %14190 = vst [vmem:[#allocation283_spill] sm:$0xff] %v10593_v6  ;;  %v10601_v39 = vpop.eup %6697  ;;  %v3952_v35 = vadd.f32 %v3944_v18, %v3936_v42  ;;  %v4912_v17 = vmul.f32 %v10593_v6, %v14140_v23  ;;  %6713 = vpow2.f32 %v3797_v10  ;;  %v10606_v57 = vadd.f32 %v2006_v60, %v10225_v33  ;;  %v14200_v10 = vld [vmem:[#allocation115_spill] sm:$0xff] }
 0x438   :  { %14192 = vst [vmem:[#allocation326_spill] sm:$0xff] %v10598_v43  ;;  %14194 = vst [vmem:[#allocation96_spill] sm:$0xff] %v10601_v39  ;;  %v10608_v9 = vpop.eup %6699  ;;  %v4920_v2 = vmul.f32 %v10601_v39, %v14142_v61  ;;  %6715 = vpow2.f32 %v4805_v56  ;;  %v10613_v53 = vadd.f32 %v4022_v1, %v10236_v20  ;;  %v10616_v43 = vmul.f32 %v14198_v51, %v6257_v0  ;;  %v14201_v42 = vld [vmem:[#allocation123_spill] sm:$0xff]  ;;  %v14203_v56 = vld [vmem:[#allocation184_spill] sm:$0xff] }
 0x439   :  { %14195 = vst [vmem:[#allocation104_spill] sm:$0xff] %v10606_v57  ;;  %14196 = vst [vmem:[#allocation169_spill] sm:$0xff] %v10608_v9  ;;  %v3968_v18 = vadd.f32 %v3960_v58, %v3952_v35  ;;  %v4936_v23 = vmul.f32 %v10608_v9, %v14145_v30  ;;  %v1601_v33 = vsub.f32 %v14200_v10, %v9360_v37  ;;  %v10624_v57 = vpop.eup %6701  ;;  %v14204_v1 = vld [vmem:[#allocation196_spill] sm:$0xff]  ;;  %v14205_v58 = vld [vmem:[#allocation291_spill] sm:$0xff] }
 0x43a   :  { %14197 = vst [vmem:[#allocation181_spill] sm:$0xff] %v10613_v53  ;;  %14199 = vst [vmem:[#allocation276_spill] sm:$0xff] %v10616_v43  ;;  %v1625_v60 = vsub.f32 %v14201_v42, %v9360_v37  ;;  %v4928_v61 = vadd.f32 %v4920_v2, %v4912_v17  ;;  %v1649_v20 = vsub.f32 %v14203_v56, %v9360_v37  ;;  %v10632_v53 = vpop.eup %6703 }
 0x43b   :  { %14202 = vst [vmem:[#allocation284_spill] sm:$0xff] %v10624_v57  ;;  %v1673_v0 = vsub.f32 %v14204_v1, %v9360_v37  ;;  %v1697_v35 = vsub.f32 %v14205_v58, %v9360_v37  ;;  %14206 = vst [vmem:[#allocation327_spill] sm:$0xff] %v10632_v53  ;;  %v3984_v30 = vadd.f32 %v3976_v52, %v3968_v18  ;;  %v1615_v51 = vmul.f32 1.442695, %v1601_v33  ;;  %v10636_v43 = vpop.eup %6705 }
 0x43c   :  { %v4952_v10 = vmul.f32 %v10624_v57, %v14149_v63  ;;  %v1639_v42 = vmul.f32 1.442695, %v1625_v60  ;;  %14207 = vst [vmem:[#allocation97_spill] sm:$0xff] %v10636_v43  ;;  %v4944_v17 = vadd.f32 %v4936_v23, %v4928_v61  ;;  %v4968_v2 = vmul.f32 %v10632_v53, %v14150_v5  ;;  %v14209_v63 = vld [vmem:[#allocation295_spill] sm:$0xff]  ;;  %v14210_v23 = vld [vmem:[#allocation64_spill] sm:$0xff] }
 0x43d   :  { %v1663_v56 = vmul.f32 1.442695, %v1649_v20  ;;  %v1687_v8 = vmul.f32 1.442695, %v1673_v0  ;;  %v4000_v1 = vadd.f32 %v3992_v50, %v3984_v30  ;;  %v4984_v58 = vmul.f32 %v10636_v43, %v14156_v54  ;;  %v10642_v52 = vpop.eup %6707  ;;  %v14211_v50 = vld [vmem:[#allocation116_spill] sm:$0xff] }
 0x43e   :  { %6717 = vpow2.f32 %v1615_v51  ;;  %v1711_v59 = vmul.f32 1.442695, %v1697_v35  ;;  %14208 = vst [vmem:[#allocation105_spill] sm:$0xff] %v10642_v52  ;;  %v4960_v18 = vadd.f32 %v4952_v10, %v4944_v17  ;;  %v1721_v33 = vsub.f32 %v14209_v63, %v9360_v37  ;;  %v14212_v54 = vld [vmem:[#allocation124_spill] sm:$0xff] }
 0x43f   :  { %6719 = vpow2.f32 %v1639_v42  ;;  %v1745_v60 = vsub.f32 %v14210_v23, %v9360_v37  ;;  %v5000_v5 = vmul.f32 %v10642_v52, %v10494_v55  ;;  %v2609_v61 = vsub.f32 %v14211_v50, %v9374_v25  ;;  %v14213_v42 = vld [vmem:[#allocation185_spill] sm:$0xff] }
 0x440   :  { %6721 = vpow2.f32 %v1663_v56  ;;  %v2633_v51 = vsub.f32 %v14212_v54, %v9374_v25  ;;  %v4976_v20 = vadd.f32 %v4968_v2, %v4960_v18  ;;  %v1735_v0 = vmul.f32 1.442695, %v1721_v33  ;;  %v798_v56 = vpop.f32.mrf.mxu1  ;;  %v14215_v23 = vld [vmem:[#allocation197_spill] sm:$0xff]  ;;  %v14216_v54 = vld [vmem:[#allocation292_spill] sm:$0xff] }
 0x441   :  { %6723 = vpow2.f32 %v1687_v8  ;;  %v1759_v35 = vmul.f32 1.442695, %v1745_v60  ;;  %v2623_v30 = vmul.f32 1.442695, %v2609_v61  ;;  %v2657_v17 = vsub.f32 %v14213_v42, %v9374_v25  ;;  %v14218_v33 = vld [vmem:[#allocation296_spill] sm:$0xff] }
 0x442   :  { %6725 = vpow2.f32 %v1711_v59  ;;  %v2647_v10 = vmul.f32 1.442695, %v2633_v51  ;;  %v10656_v63 = vpop.eup %6709  ;;  %v4992_v55 = vadd.f32 %v4984_v58, %v4976_v20  ;;  %v2681_v50 = vsub.f32 %v14215_v23, %v9374_v25 }
 0x443   :  { %14214 = vst [vmem:[#allocation170_spill] sm:$0xff] %v10656_v63  ;;  %6727 = vpow2.f32 %v1735_v0  ;;  %v2705_v2 = vsub.f32 %v14216_v54, %v9374_v25  ;;  %v10662_v8 = vpop.eup %6711  ;;  %v1992_v59 = vmul.f32 %v10656_v63, %v798_v56  ;;  %v2671_v18 = vmul.f32 1.442695, %v2657_v17 }
 0x444   :  { %14217 = vst [vmem:[#allocation178_spill] sm:$0xff] %v10662_v8  ;;  %6729 = vpow2.f32 %v1759_v35  ;;  %v2729_v60 = vsub.f32 %v14218_v33, %v9374_v25  ;;  %v10667_v61 = vpop.eup %6713  ;;  %v5008_v58 = vadd.f32 %v5000_v5, %v4992_v55  ;;  %v3000_v51 = vmul.f32 %v10662_v8, %v798_v56 }
 0x445   :  { %14219 = vst [vmem:[#allocation179_spill] sm:$0xff] %v10667_v61  ;;  %6731 = vpow2.f32 %v2623_v30  ;;  %v2695_v20 = vmul.f32 1.442695, %v2681_v50  ;;  %v10670_v0 = vpop.eup %6715  ;;  %v10673_v42 = vadd.f32 %v1992_v59, %v10528_v48  ;;  %v4008_v23 = vmul.f32 %v10667_v61, %v798_v56  ;;  %v14222_v30 = vld [vmem:[#allocation331_spill] sm:$0xff]  ;;  %v14223_v48 = vld [vmem:[#allocation117_spill] sm:$0xff]  ;;  %v14232_v61 = vld [vmem:[#allocation188_spill] sm:$0xff] }
 0x446   :  { %14220 = vst [vmem:[#allocation182_spill] sm:$0xff] %v10670_v0  ;;  %6733 = vpow2.f32 %v2647_v10  ;;  %v2719_v35 = vmul.f32 1.442695, %v2705_v2  ;;  %v10677_v17 = vadd.f32 %v3000_v51, %v10584_v22  ;;  %v5016_v54 = vmul.f32 %v10670_v0, %v798_v56  ;;  %v14225_v10 = vld [vmem:[#allocation125_spill] sm:$0xff]  ;;  %v14226_v2 = vld [vmem:[#allocation186_spill] sm:$0xff] }
 0x447   :  { %6735 = vpow2.f32 %v2671_v18  ;;  %v2743_v5 = vmul.f32 1.442695, %v2729_v60  ;;  %v10680_v55 = vadd.f32 %v4008_v23, %v4000_v1  ;;  %v2753_v50 = vsub.f32 %v14222_v30, %v9374_v25  ;;  %v14227_v60 = vld [vmem:[#allocation198_spill] sm:$0xff] }
 0x448   :  { %14221 = vst [vmem:[#allocation128_spill] sm:$0xff] %v10677_v17  ;;  %6737 = vpow2.f32 %v2695_v20  ;;  %v3617_v59 = vsub.f32 %v14223_v48, %v9386_v11  ;;  %v10686_v33 = vadd.f32 %v5016_v54, %v5008_v58  ;;  %v3641_v22 = vsub.f32 %v14225_v10, %v9386_v11  ;;  %v14229_v58 = vld [vmem:[#allocation293_spill] sm:$0xff] }
 0x449   :  { %6739 = vpow2.f32 %v2719_v35  ;;  %v3665_v56 = vsub.f32 %v14226_v2, %v9386_v11  ;;  %v2767_v18 = vmul.f32 1.442695, %v2753_v50  ;;  %v3689_v51 = vsub.f32 %v14227_v60, %v9386_v11  ;;  %v14230_v35 = vld [vmem:[#allocation297_spill] sm:$0xff] }
 0x44a   :  { %14224 = vst [vmem:[#allocation277_spill] sm:$0xff] %v10686_v33  ;;  %6741 = vpow2.f32 %v2743_v5  ;;  %v3631_v1 = vmul.f32 1.442695, %v3617_v59  ;;  %v3655_v23 = vmul.f32 1.442695, %v3641_v22  ;;  %v3713_v54 = vsub.f32 %v14229_v58, %v9386_v11  ;;  %v14233_v59 = vld [vmem:[#allocation332_spill] sm:$0xff] }
 0x44b   :  { %v10694_v20 = vpop.eup %6717  ;;  %v3679_v30 = vmul.f32 1.442695, %v3665_v56  ;;  %v3737_v48 = vsub.f32 %v14230_v35, %v9386_v11  ;;  %6743 = vpow2.f32 %v2767_v18  ;;  %v3703_v50 = vmul.f32 1.442695, %v3689_v51  ;;  %v14235_v22 = vld [vmem:[#allocation193_spill] sm:$0xff]  ;;  %v14237_v35 = vld [vmem:[#allocation244_spill] sm:$0xff] }
 0x44c   :  { %14228 = vst [vmem:[#allocation285_spill] sm:$0xff] %v10694_v20  ;;  %v10700_v10 = vpop.eup %6719  ;;  %v1889_v5 = vmul.f32 %v10694_v20, %v14232_v61  ;;  %v3761_v2 = vsub.f32 %v14233_v59, %v9386_v11  ;;  %6745 = vpow2.f32 %v3631_v1  ;;  %v3727_v58 = vmul.f32 1.442695, %v3713_v54  ;;  %v14238_v18 = vld [vmem:[#allocation118_spill] sm:$0xff] }
 0x44d   :  { %14231 = vst [vmem:[#allocation129_spill] sm:$0xff] %v10700_v10  ;;  %v10706_v60 = vpop.eup %6721  ;;  %v1897_v56 = vmul.f32 %v10700_v10, %v14235_v22  ;;  %v3751_v63 = vmul.f32 1.442695, %v3737_v48  ;;  %6747 = vpow2.f32 %v3655_v23  ;;  %v4625_v51 = vsub.f32 %v14238_v18, %v9398_v13  ;;  %v14241_v1 = vld [vmem:[#allocation126_spill] sm:$0xff] }
 0x44e   :  { %14234 = vst [vmem:[#allocation8_spill] sm:$0xff] %v10706_v60  ;;  %v10710_v0 = vpop.eup %6723  ;;  %v1913_v52 = vmul.f32 %v10706_v60, %v14237_v35  ;;  %v3775_v8 = vmul.f32 1.442695, %v3761_v2  ;;  %6749 = vpow2.f32 %v3679_v30  ;;  %v4649_v54 = vsub.f32 %v14241_v1, %v9398_v13  ;;  %v14244_v2 = vld [vmem:[#allocation187_spill] sm:$0xff] }
 0x44f   :  { %14236 = vst [vmem:[#allocation328_spill] sm:$0xff] %v10710_v0  ;;  %v10716_v43 = vpop.eup %6725  ;;  %v1905_v59 = vadd.f32 %v1897_v56, %v1889_v5  ;;  %v1929_v53 = vmul.f32 %v10710_v0, %v14240_v14  ;;  %6751 = vpow2.f32 %v3703_v50  ;;  %v4639_v23 = vmul.f32 1.442695, %v4625_v51  ;;  %v10730_v5 = vpop.f32.mrf.mxu1  ;;  %v14247_v51 = vld [vmem:[#allocation199_spill] sm:$0xff] }
 0x450   :  { %14239 = vst [vmem:[#allocation39_spill] sm:$0xff] %v10716_v43  ;;  %v10722_v48 = vpop.eup %6727  ;;  %v1945_v15 = vmul.f32 %v10716_v43, %v14243_v62  ;;  %v4673_v18 = vsub.f32 %v14244_v2, %v9398_v13  ;;  %6753 = vpow2.f32 %v3727_v58  ;;  %v4663_v1 = vmul.f32 1.442695, %v4649_v54  ;;  %v14248_v58 = vld [vmem:[#allocation294_spill] sm:$0xff] }
 0x451   :  { %14242 = vst [vmem:[#allocation98_spill] sm:$0xff] %v10722_v48  ;;  %v10728_v57 = vpop.eup %6729  ;;  %v1921_v56 = vadd.f32 %v1913_v52, %v1905_v59  ;;  %v1961_v30 = vmul.f32 %v10722_v48, %v14246_v46  ;;  %6755 = vpow2.f32 %v3751_v63  ;;  %v4697_v2 = vsub.f32 %v14247_v51, %v9398_v13 }
 0x452   :  { %14245 = vst [vmem:[#allocation10_spill] sm:$0xff] %v10728_v57  ;;  %v10734_v38 = vpop.eup %6731  ;;  %v1977_v34 = vmul.f32 %v10728_v57, %v10730_v5  ;;  %v4687_v50 = vmul.f32 1.442695, %v4673_v18  ;;  %6757 = vpow2.f32 %v3775_v8  ;;  %v4721_v59 = vsub.f32 %v14248_v58, %v9398_v13  ;;  %v14249_v18 = vld [vmem:[#allocation298_spill] sm:$0xff] }
 0x453   :  { %v10740_v19 = vpop.eup %6733  ;;  %v1937_v29 = vadd.f32 %v1929_v53, %v1921_v56  ;;  %v2897_v52 = vmul.f32 %v10734_v38, %v14232_v61  ;;  %6759 = vpow2.f32 %v4639_v23  ;;  %v4711_v63 = vmul.f32 1.442695, %v4697_v2 }
 0x454   :  { %v10746_v54 = vpop.eup %6735  ;;  %v2905_v57 = vmul.f32 %v10740_v19, %v14235_v22  ;;  %v4745_v51 = vsub.f32 %v14249_v18, %v9398_v13  ;;  %6761 = vpow2.f32 %v4663_v1  ;;  %v4735_v8 = vmul.f32 1.442695, %v4721_v59 }
 0x455   :  { %v10752_v48 = vpop.eup %6737  ;;  %v1953_v53 = vadd.f32 %v1945_v15, %v1937_v29  ;;  %v2921_v56 = vmul.f32 %v10746_v54, %v14237_v35  ;;  %6763 = vpow2.f32 %v4687_v50  ;;  %v14251_v29 = vld [vmem:[#allocation333_spill] sm:$0xff] }
 0x456   :  { %v10756_v58 = vpop.eup %6739  ;;  %v2913_v9 = vadd.f32 %v2905_v57, %v2897_v52  ;;  %v2937_v40 = vmul.f32 %v10752_v48, %v14240_v14  ;;  %v4759_v23 = vmul.f32 1.442695, %v4745_v51  ;;  %6765 = vpow2.f32 %v4711_v63  ;;  %v14252_v57 = vld [vmem:[#allocation314_spill] sm:$0xff]  ;;  %v14254_v51 = vld [vmem:[#allocation40_spill] sm:$0xff] }
 0x457   :  { %v10760_v2 = vpop.eup %6741  ;;  %v1969_v18 = vadd.f32 %v1961_v30, %v1953_v53  ;;  %v2953_v15 = vmul.f32 %v10756_v58, %v14243_v62  ;;  %v4769_v1 = vsub.f32 %v14251_v29, %v9398_v13  ;;  %6767 = vpow2.f32 %v4735_v8  ;;  %v14258_v8 = vld [vmem:[#allocation21_spill] sm:$0xff] }
 0x458   :  { %14250 = vst [vmem:[#allocation106_spill] sm:$0xff] %v10760_v2  ;;  %v2929_v59 = vadd.f32 %v2921_v56, %v2913_v9  ;;  %v2969_v27 = vmul.f32 %v10760_v2, %v14246_v46  ;;  %v2005_v52 = vmul.f32 %v14252_v57, %v998_v36  ;;  %v10769_v44 = vpop.eup %6743  ;;  %6769 = vpow2.f32 %v4759_v23  ;;  %v14260_v23 = vld [vmem:[#allocation53_spill] sm:$0xff] }
 0x459   :  { %14253 = vst [vmem:[#allocation171_spill] sm:$0xff] %v10769_v44  ;;  %v10771_v50 = vadd.f32 %v1977_v34, %v1969_v18  ;;  %v4783_v30 = vmul.f32 1.442695, %v4769_v1  ;;  %v10774_v53 = vmul.f32 %v14254_v51, %v998_v36  ;;  %v10776_v63 = vpop.eup %6745  ;;  %v2985_v9 = vmul.f32 %v10769_v44, %v10730_v5  ;;  %v14273_v51 = vld [vmem:[#allocation135_spill] sm:$0xff] }
 0x45a   :  { %14256 = vst [vmem:[#allocation278_spill] sm:$0xff] %v10776_v63  ;;  %v2945_v43 = vadd.f32 %v2937_v40, %v2929_v59  ;;  %v10781_v56 = vadd.f32 %v2005_v52, %v10021_v16  ;;  %v4021_v29 = vmul.f32 %v14258_v8, %v998_v36  ;;  %v10784_v57 = vpop.eup %6747  ;;  %v3905_v34 = vmul.f32 %v10776_v63, %v14232_v61 }
 0x45b   :  { %14255 = vst [vmem:[#allocation183_spill] sm:$0xff] %v10774_v53  ;;  %14259 = vst [vmem:[#allocation329_spill] sm:$0xff] %v10784_v57  ;;  %6771 = vpow2.f32 %v4783_v30  ;;  %v10789_v18 = vmul.f32 %v14260_v23, %v998_v36  ;;  %v1769_v40 = vsub.f32 %v9039_v21, %v9360_v37  ;;  %v10793_v1 = vpop.eup %6749  ;;  %v3913_v16 = vmul.f32 %v10784_v57, %v14235_v22  ;;  %v14320_v57 = vld [vmem:[#allocation17_spill] sm:$0xff] }
 0x45c   :  { %14257 = vst [vmem:[#allocation286_spill] sm:$0xff] %v10781_v56  ;;  %14262 = vst [vmem:[#allocation23_spill] sm:$0xff] %v10793_v1  ;;  %v2961_v59 = vadd.f32 %v2953_v15, %v2945_v43  ;;  %v10798_v52 = vadd.f32 %v4021_v29, %v10032_v24  ;;  %v2777_v56 = vsub.f32 %v9041_v4, %v9374_v25  ;;  %v10802_v8 = vpop.eup %6751  ;;  %v6260_v25 = vpop.f32.mrf.mxu0 }
 0x45d   :  { %14261 = vst [vmem:[#allocation176_spill] sm:$0xff] %v10789_v18  ;;  %14264 = vst [vmem:[#allocation63_spill] sm:$0xff] %v10802_v8  ;;  %v3929_v36 = vmul.f32 %v10793_v1, %v14237_v35  ;;  %v1783_v30 = vmul.f32 1.442695, %v1769_v40  ;;  %v3785_v21 = vsub.f32 %v9043_v26, %v9386_v11  ;;  %v4793_v37 = vsub.f32 %v13751_v28, %v9398_v13  ;;  %v10810_v43 = vpop.eup %6753 }
 0x45e   :  { %14263 = vst [vmem:[#allocation24_spill] sm:$0xff] %v10798_v52  ;;  %14265 = vst [vmem:[#allocation115_spill] sm:$0xff] %v10810_v43  ;;  %v2977_v15 = vadd.f32 %v2969_v27, %v2961_v59  ;;  %v3921_v24 = vadd.f32 %v3913_v16, %v3905_v34  ;;  %v3945_v29 = vmul.f32 %v10802_v8, %v14240_v14  ;;  %v2791_v4 = vmul.f32 1.442695, %v2777_v56  ;;  %v10814_v52 = vpop.eup %6755  ;;  %v14268_v59 = vld [vmem:[#allocation58_spill] sm:$0xff] }
 0x45f   :  { %14266 = vst [vmem:[#allocation123_spill] sm:$0xff] %v10814_v52  ;;  %v3961_v40 = vmul.f32 %v10810_v43, %v14243_v62  ;;  %6773 = vpow2.f32 %v1783_v30  ;;  %v3799_v23 = vmul.f32 1.442695, %v3785_v21  ;;  %v4807_v26 = vmul.f32 1.442695, %v4793_v37  ;;  %v10818_v11 = vpop.eup %6757 }
 0x460   :  { %14267 = vst [vmem:[#allocation184_spill] sm:$0xff] %v10818_v11  ;;  %v10820_v28 = vadd.f32 %v2985_v9, %v2977_v15  ;;  %v3937_v13 = vadd.f32 %v3929_v36, %v3921_v24  ;;  %v3977_v27 = vmul.f32 %v10814_v52, %v14246_v46  ;;  %6775 = vpow2.f32 %v2791_v4  ;;  %v10824_v34 = vpop.eup %6759  ;;  %v14305_v52 = vld [vmem:[#allocation250_spill] sm:$0xff] }
 0x461   :  { %v3993_v56 = vmul.f32 %v10818_v11, %v10730_v5  ;;  %6777 = vpow2.f32 %v3799_v23  ;;  %v2008_v16 = vmul.f32 %v14268_v59, %v6260_v25  ;;  %v10830_v30 = vmul.f32 %v9306_v3, %v6260_v25  ;;  %v10832_v21 = vpop.eup %6761 }
 0x462   :  { %v3953_v9 = vadd.f32 %v3945_v29, %v3937_v13  ;;  %v4913_v36 = vmul.f32 %v10824_v34, %v14232_v61  ;;  %6779 = vpow2.f32 %v4807_v26  ;;  %v4024_v37 = vmul.f32 %v9327_v45, %v6260_v25  ;;  %v10837_v15 = vpop.eup %6763 }
 0x463   :  { %14269 = vst [vmem:[#allocation196_spill] sm:$0xff] %v10830_v30  ;;  %14270 = vst [vmem:[#allocation291_spill] sm:$0xff] %v10837_v15  ;;  %v4921_v24 = vmul.f32 %v10832_v21, %v14235_v22  ;;  %v10842_v23 = vadd.f32 %v2008_v16, %v10673_v42  ;;  %v10845_v4 = vmul.f32 %v9330_v31, %v6260_v25  ;;  %v10849_v13 = vpop.eup %6765  ;;  %v14276_v22 = vld [vmem:[#allocation143_spill] sm:$0xff] }
 0x464   :  { %v1602_v29 = vsub.f32 %v14273_v51, %v9317_v7  ;;  %14274 = vst [vmem:[#allocation116_spill] sm:$0xff] %v10849_v13  ;;  %v3969_v61 = vadd.f32 %v3961_v40, %v3953_v9  ;;  %v4937_v26 = vmul.f32 %v10837_v15, %v14237_v35  ;;  %v10854_v18 = vadd.f32 %v4024_v37, %v10680_v55  ;;  %v10858_v42 = vpop.eup %6767  ;;  %v14278_v51 = vld [vmem:[#allocation200_spill] sm:$0xff]  ;;  %v14340_v15 = vld [vmem:[#allocation262_spill] sm:$0xff] }
 0x465   :  { %14271 = vst [vmem:[#allocation295_spill] sm:$0xff] %v10842_v23  ;;  %14272 = vst [vmem:[#allocation64_spill] sm:$0xff] %v10845_v4  ;;  %v1626_v53 = vsub.f32 %v14276_v22, %v9317_v7  ;;  %v4929_v16 = vadd.f32 %v4921_v24, %v4913_v36  ;;  %v4953_v25 = vmul.f32 %v10849_v13, %v14240_v14  ;;  %v10864_v40 = vpop.eup %6769  ;;  %v14280_v37 = vld [vmem:[#allocation208_spill] sm:$0xff] }
 0x466   :  { %14275 = vst [vmem:[#allocation124_spill] sm:$0xff] %v10854_v18  ;;  %14277 = vst [vmem:[#allocation185_spill] sm:$0xff] %v10858_v42  ;;  %v1617_v23 = vmul.f32 1.442695, %v1602_v29  ;;  %v1650_v45 = vsub.f32 %v14278_v51, %v9317_v7  ;;  %v3985_v9 = vadd.f32 %v3977_v27, %v3969_v61  ;;  %v4969_v55 = vmul.f32 %v10858_v42, %v14243_v62  ;;  %v14282_v27 = vld [vmem:[#allocation303_spill] sm:$0xff]  ;;  %v1008_v42 = vpop.f32.mrf.mxu0 }
 0x467   :  { %14279 = vst [vmem:[#allocation197_spill] sm:$0xff] %v10864_v40  ;;  %v1641_v35 = vmul.f32 1.442695, %v1626_v53  ;;  %v1674_v22 = vsub.f32 %v14280_v37, %v9317_v7  ;;  %v4945_v18 = vadd.f32 %v4937_v26, %v4929_v16  ;;  %v4985_v36 = vmul.f32 %v10864_v40, %v14246_v46  ;;  %v14283_v53 = vld [vmem:[#allocation307_spill] sm:$0xff]  ;;  %v14285_v16 = vld [vmem:[#allocation300_spill] sm:$0xff] }
 0x468   :  { %6781 = vpow2.f32 %v1617_v23  ;;  %v1665_v14 = vmul.f32 1.442695, %v1650_v45  ;;  %v10872_v24 = vpop.eup %6771  ;;  %v4001_v29 = vadd.f32 %v3993_v56, %v3985_v9  ;;  %v1698_v61 = vsub.f32 %v14282_v27, %v9317_v7  ;;  %v14284_v45 = vld [vmem:[#allocation339_spill] sm:$0xff]  ;;  %v14286_v56 = vld [vmem:[#allocation136_spill] sm:$0xff]  ;;  %v804_v27 = vpop.f32.mrf.mxu1 }
 0x469   :  { %14281 = vst [vmem:[#allocation292_spill] sm:$0xff] %v10872_v24  ;;  %6783 = vpow2.f32 %v1641_v35  ;;  %v1689_v51 = vmul.f32 1.442695, %v1674_v22  ;;  %v4961_v59 = vadd.f32 %v4953_v25, %v4945_v18  ;;  %v5001_v62 = vmul.f32 %v10872_v24, %v10730_v5  ;;  %v14287_v22 = vld [vmem:[#allocation144_spill] sm:$0xff]  ;;  %v14288_v25 = vld [vmem:[#allocation201_spill] sm:$0xff]  ;;  %v14308_v24 = vld [vmem:[#allocation251_spill] sm:$0xff]  ;;  %v6263_v13 = vpop.f32.mrf.mxu0 }
 0x46a   :  { %6785 = vpow2.f32 %v1665_v14  ;;  %v1722_v26 = vsub.f32 %v14283_v53, %v9317_v7  ;;  %v1713_v46 = vmul.f32 1.442695, %v1698_v61  ;;  %v1746_v23 = vsub.f32 %v14284_v45, %v9317_v7  ;;  %v14290_v53 = vld [vmem:[#allocation209_spill] sm:$0xff]  ;;  %v10960_v12 = vpop.f32.mrf.mxu1 }
 0x46b   :  { %6787 = vpow2.f32 %v1689_v51  ;;  %v2610_v9 = vsub.f32 %v14286_v56, %v14285_v16  ;;  %v4977_v35 = vadd.f32 %v4969_v55, %v4961_v59  ;;  %v2634_v18 = vsub.f32 %v14287_v22, %v14285_v16 }
 0x46c   :  { %v1737_v37 = vmul.f32 1.442695, %v1722_v26  ;;  %v2658_v5 = vsub.f32 %v14288_v25, %v14285_v16  ;;  %v10888_v14 = vpop.eup %6773  ;;  %6789 = vpow2.f32 %v1713_v46  ;;  %v1761_v51 = vmul.f32 1.442695, %v1746_v23 }
 0x46d   :  { %14289 = vst [vmem:[#allocation296_spill] sm:$0xff] %v10888_v14  ;;  %v2625_v61 = vmul.f32 1.442695, %v2610_v9  ;;  %v2682_v45 = vsub.f32 %v14290_v53, %v14285_v16  ;;  %v10892_v31 = vpop.eup %6775  ;;  %v4993_v56 = vadd.f32 %v4985_v36, %v4977_v35  ;;  %v1993_v59 = vmul.f32 %v10888_v14, %v804_v27 }
 0x46e   :  { %14291 = vst [vmem:[#allocation331_spill] sm:$0xff] %v10892_v31  ;;  %6791 = vpow2.f32 %v1737_v37  ;;  %v2649_v55 = vmul.f32 1.442695, %v2634_v18  ;;  %v10895_v26 = vpop.eup %6777  ;;  %v3001_v22 = vmul.f32 %v10892_v31, %v804_v27  ;;  %v2673_v25 = vmul.f32 1.442695, %v2658_v5  ;;  %v14294_v37 = vld [vmem:[#allocation304_spill] sm:$0xff] }
 0x46f   :  { %14292 = vst [vmem:[#allocation117_spill] sm:$0xff] %v10895_v26  ;;  %6793 = vpow2.f32 %v1761_v51  ;;  %v2697_v3 = vmul.f32 1.442695, %v2682_v45  ;;  %v10898_v46 = vpop.eup %6779  ;;  %v5009_v23 = vadd.f32 %v5001_v62, %v4993_v56  ;;  %v10901_v9 = vadd.f32 %v1993_v59, %v10771_v50  ;;  %v14295_v62 = vld [vmem:[#allocation308_spill] sm:$0xff]  ;;  %v14298_v59 = vld [vmem:[#allocation137_spill] sm:$0xff] }
 0x470   :  { %14293 = vst [vmem:[#allocation125_spill] sm:$0xff] %v10898_v46  ;;  %v4009_v53 = vmul.f32 %v10895_v26, %v804_v27  ;;  %6795 = vpow2.f32 %v2625_v61  ;;  %v10905_v36 = vadd.f32 %v3001_v22, %v10820_v28  ;;  %v5017_v35 = vmul.f32 %v10898_v46, %v804_v27  ;;  %v14296_v50 = vld [vmem:[#allocation340_spill] sm:$0xff]  ;;  %v14297_v61 = vld [vmem:[#allocation302_spill] sm:$0xff]  ;;  %v14306_v46 = vld [vmem:[#allocation309_spill] sm:$0xff] }
 0x471   :  { %6797 = vpow2.f32 %v2649_v55  ;;  %v2706_v18 = vsub.f32 %v14294_v37, %v14285_v16  ;;  %v2730_v51 = vsub.f32 %v14295_v62, %v14285_v16  ;;  %v2754_v45 = vsub.f32 %v14296_v50, %v14285_v16  ;;  %v14299_v37 = vld [vmem:[#allocation145_spill] sm:$0xff] }
 0x472   :  { %v10910_v5 = vadd.f32 %v4009_v53, %v4001_v29  ;;  %6799 = vpow2.f32 %v2673_v25  ;;  %v10916_v56 = vadd.f32 %v5017_v35, %v5009_v23  ;;  %v3618_v27 = vsub.f32 %v14298_v59, %v14297_v61  ;;  %v14300_v25 = vld [vmem:[#allocation202_spill] sm:$0xff] }
 0x473   :  { %6801 = vpow2.f32 %v2697_v3  ;;  %v2721_v28 = vmul.f32 1.442695, %v2706_v18  ;;  %v2745_v55 = vmul.f32 1.442695, %v2730_v51  ;;  %v2769_v22 = vmul.f32 1.442695, %v2754_v45 }
 0x474   :  { %v3642_v29 = vsub.f32 %v14299_v37, %v14297_v61  ;;  %v3666_v53 = vsub.f32 %v14300_v25, %v14297_v61  ;;  %v3633_v62 = vmul.f32 1.442695, %v3618_v27  ;;  %v14301_v23 = vld [vmem:[#allocation210_spill] sm:$0xff]  ;;  %v14302_v3 = vld [vmem:[#allocation305_spill] sm:$0xff]  ;;  %v14304_v25 = vld [vmem:[#allocation195_spill] sm:$0xff]  ;;  %v3738_v43 = vsub.f32 %v14306_v46, %v14297_v61 }
 0x475   :  { %v10924_v26 = vpop.eup %6781  ;;  %6803 = vpow2.f32 %v2721_v28  ;;  %v3690_v35 = vsub.f32 %v14301_v23, %v14297_v61  ;;  %v3714_v18 = vsub.f32 %v14302_v3, %v14297_v61  ;;  %v14303_v51 = vld [vmem:[#allocation194_spill] sm:$0xff]  ;;  %v2007_v63 = vmul.f32 %v14320_v57, %v1008_v42 }
 0x476   :  { %v10930_v50 = vpop.eup %6783  ;;  %v1890_v45 = vmul.f32 %v10924_v26, %v14303_v51  ;;  %6805 = vpow2.f32 %v2745_v55  ;;  %v3657_v59 = vmul.f32 1.442695, %v3642_v29  ;;  %v3681_v37 = vmul.f32 1.442695, %v3666_v53  ;;  %v14307_v55 = vld [vmem:[#allocation341_spill] sm:$0xff] }
 0x477   :  { %v10934_v14 = vpop.eup %6785  ;;  %v1898_v28 = vmul.f32 %v10930_v50, %v14304_v25  ;;  %6807 = vpow2.f32 %v2769_v22  ;;  %v3705_v27 = vmul.f32 1.442695, %v3690_v35  ;;  %v3729_v11 = vmul.f32 1.442695, %v3714_v18  ;;  %v14309_v22 = vld [vmem:[#allocation70_spill] sm:$0xff] }
 0x478   :  { %v10938_v23 = vpop.eup %6787  ;;  %v1914_v3 = vmul.f32 %v10934_v14, %v14305_v52  ;;  %6809 = vpow2.f32 %v3633_v62  ;;  %v3762_v29 = vsub.f32 %v14307_v55, %v14297_v61  ;;  %v14310_v35 = vld [vmem:[#allocation138_spill] sm:$0xff]  ;;  %v3753_v39 = vmul.f32 1.442695, %v3738_v43  ;;  %v14312_v55 = vld [vmem:[#allocation19_spill] sm:$0xff] }
 0x479   :  { %v1906_v53 = vadd.f32 %v1898_v28, %v1890_v45  ;;  %v1930_v4 = vmul.f32 %v10938_v23, %v14308_v24  ;;  %6811 = vpow2.f32 %v3657_v59  ;;  %v4626_v18 = vsub.f32 %v14310_v35, %v14309_v22  ;;  %v10950_v33 = vpop.eup %6789  ;;  %v14311_v62 = vld [vmem:[#allocation146_spill] sm:$0xff] }
 0x47a   :  { %6813 = vpow2.f32 %v3681_v37  ;;  %v3777_v6 = vmul.f32 1.442695, %v3762_v29  ;;  %v4650_v8 = vsub.f32 %v14311_v62, %v14309_v22  ;;  %v1946_v45 = vmul.f32 %v10950_v33, %v14312_v55  ;;  %v14314_v35 = vld [vmem:[#allocation22_spill] sm:$0xff]  ;;  %v14315_v29 = vld [vmem:[#allocation203_spill] sm:$0xff] }
 0x47b   :  { %v10954_v46 = vpop.eup %6791  ;;  %v1922_v40 = vadd.f32 %v1914_v3, %v1906_v53  ;;  %6815 = vpow2.f32 %v3705_v27  ;;  %v4641_v28 = vmul.f32 1.442695, %v4626_v18  ;;  %v4674_v62 = vsub.f32 %v14315_v29, %v14309_v22  ;;  %v14316_v27 = vld [vmem:[#allocation211_spill] sm:$0xff] }
 0x47c   :  { %v10958_v59 = vpop.eup %6793  ;;  %v1962_v37 = vmul.f32 %v10954_v46, %v14314_v35  ;;  %6817 = vpow2.f32 %v3729_v11  ;;  %v4665_v43 = vmul.f32 1.442695, %v4650_v8  ;;  %v4698_v18 = vsub.f32 %v14316_v27, %v14309_v22  ;;  %v14317_v11 = vld [vmem:[#allocation306_spill] sm:$0xff] }
 0x47d   :  { %14313 = vst [vmem:[#allocation186_spill] sm:$0xff] %v10958_v59  ;;  %v10966_v0 = vpop.eup %6795  ;;  %v1938_v3 = vadd.f32 %v1930_v4, %v1922_v40  ;;  %v1978_v53 = vmul.f32 %v10958_v59, %v10960_v12  ;;  %6819 = vpow2.f32 %v3753_v39  ;;  %v4689_v8 = vmul.f32 1.442695, %v4674_v62  ;;  %v14318_v62 = vld [vmem:[#allocation310_spill] sm:$0xff] }
 0x47e   :  { %v10972_v30 = vpop.eup %6797  ;;  %v2898_v17 = vmul.f32 %v10966_v0, %v14303_v51  ;;  %6821 = vpow2.f32 %v3777_v6  ;;  %v4722_v29 = vsub.f32 %v14317_v11, %v14309_v22  ;;  %v4713_v39 = vmul.f32 1.442695, %v4698_v18  ;;  %v14319_v18 = vld [vmem:[#allocation342_spill] sm:$0xff] }
 0x47f   :  { %v10978_v1 = vpop.eup %6799  ;;  %v1954_v4 = vadd.f32 %v1946_v45, %v1938_v3  ;;  %v2906_v40 = vmul.f32 %v10972_v30, %v14304_v25  ;;  %6823 = vpow2.f32 %v4641_v28  ;;  %v4746_v41 = vsub.f32 %v14318_v62, %v14309_v22 }
 0x480   :  { %v10982_v27 = vpop.eup %6801  ;;  %v2922_v32 = vmul.f32 %v10978_v1, %v14305_v52  ;;  %6825 = vpow2.f32 %v4665_v43  ;;  %v4737_v6 = vmul.f32 1.442695, %v4722_v29  ;;  %v4770_v31 = vsub.f32 %v14319_v18, %v14309_v22 }
 0x481   :  { %v1970_v11 = vadd.f32 %v1962_v37, %v1954_v4  ;;  %v2914_v60 = vadd.f32 %v2906_v40, %v2898_v17  ;;  %v2938_v45 = vmul.f32 %v10982_v27, %v14308_v24  ;;  %6827 = vpow2.f32 %v4689_v8 }
 0x482   :  { %v10990_v3 = vpop.eup %6803  ;;  %6829 = vpow2.f32 %v4713_v39  ;;  %v4761_v28 = vmul.f32 1.442695, %v4746_v41  ;;  %v4785_v41 = vmul.f32 1.442695, %v4770_v31  ;;  %v11006_v4 = vadd.f32 %v2007_v63, %v10439_v47  ;;  %v14325_v31 = vld [vmem:[#allocation52_spill] sm:$0xff]  ;;  %v14327_v63 = vld [vmem:[#allocation7_spill] sm:$0xff] }
 0x483   :  { %v10995_v43 = vpop.eup %6805  ;;  %v10997_v29 = vadd.f32 %v1978_v53, %v1970_v11  ;;  %v2930_v62 = vadd.f32 %v2922_v32, %v2914_v60  ;;  %v2954_v17 = vmul.f32 %v10990_v3, %v14312_v55  ;;  %6831 = vpow2.f32 %v4737_v6  ;;  %v14322_v60 = vld [vmem:[#allocation18_spill] sm:$0xff]  ;;  %v14324_v6 = vld [vmem:[#allocation51_spill] sm:$0xff] }
 0x484   :  { %v11001_v37 = vpop.eup %6807  ;;  %v2970_v8 = vmul.f32 %v10995_v43, %v14314_v35  ;;  %6833 = vpow2.f32 %v4761_v28  ;;  %14321 = vst [vmem:[#allocation198_spill] sm:$0xff] %v11006_v4  ;;  %v11013_v53 = vmul.f32 %v14322_v60, %v1008_v42  ;;  %v4023_v11 = vmul.f32 %v14324_v6, %v1008_v42  ;;  %v14329_v60 = vld [vmem:[#allocation9_spill] sm:$0xff] }
 0x485   :  { %v11008_v40 = vpop.eup %6809  ;;  %v2946_v39 = vadd.f32 %v2938_v45, %v2930_v62  ;;  %v2986_v32 = vmul.f32 %v11001_v37, %v10960_v12  ;;  %6835 = vpow2.f32 %v4785_v41  ;;  %v11021_v47 = vmul.f32 %v14325_v31, %v1008_v42 }
 0x486   :  { %14323 = vst [vmem:[#allocation293_spill] sm:$0xff] %v11013_v53  ;;  %v11016_v18 = vpop.eup %6811  ;;  %v3906_v28 = vmul.f32 %v11008_v40, %v14303_v51  ;;  %v1770_v45 = vsub.f32 %v14327_v63, %v9317_v7  ;;  %v11030_v6 = vadd.f32 %v4023_v11, %v10446_v49  ;;  %v2778_v53 = vsub.f32 %v14329_v60, %v14285_v16  ;;  %v14330_v7 = vld [vmem:[#allocation29_spill] sm:$0xff] }
 0x487   :  { %14326 = vst [vmem:[#allocation297_spill] sm:$0xff] %v11021_v47  ;;  %v11025_v62 = vpop.eup %6813  ;;  %v2962_v4 = vadd.f32 %v2954_v17, %v2946_v39  ;;  %v3914_v57 = vmul.f32 %v11016_v18, %v14304_v25  ;;  %v3786_v63 = vsub.f32 %v14330_v7, %v14297_v61  ;;  %v14331_v17 = vld [vmem:[#allocation30_spill] sm:$0xff]  ;;  %v11070_v2 = vmul.f32 %v14340_v15, %v6263_v13 }
 0x488   :  { %14328 = vst [vmem:[#allocation188_spill] sm:$0xff] %v11030_v6  ;;  %v11034_v41 = vpop.eup %6815  ;;  %v3930_v42 = vmul.f32 %v11025_v62, %v14305_v52  ;;  %v1785_v31 = vmul.f32 1.442695, %v1770_v45  ;;  %v4794_v39 = vsub.f32 %v14331_v17, %v14309_v22  ;;  %v2793_v60 = vmul.f32 1.442695, %v2778_v53 }
 0x489   :  { %v11042_v47 = vpop.eup %6817  ;;  %v2978_v49 = vadd.f32 %v2970_v8, %v2962_v4  ;;  %v3922_v11 = vadd.f32 %v3914_v57, %v3906_v28  ;;  %v3946_v16 = vmul.f32 %v11034_v41, %v14308_v24  ;;  %v3801_v45 = vmul.f32 1.442695, %v3786_v63  ;;  %v1018_v8 = vpop.f32.mrf.mxu0  ;;  %v14334_v28 = vld [vmem:[#allocation260_spill] sm:$0xff] }
 0x48a   :  { %v11046_v6 = vpop.eup %6819  ;;  %v3962_v10 = vmul.f32 %v11042_v47, %v14312_v55  ;;  %6837 = vpow2.f32 %v1785_v31  ;;  %v4809_v20 = vmul.f32 1.442695, %v4794_v39  ;;  %v11059_v17 = vmul.f32 %v14334_v28, %v6263_v13  ;;  %v14336_v31 = vld [vmem:[#allocation20_spill] sm:$0xff] }
 0x48b   :  { %14332 = vst [vmem:[#allocation332_spill] sm:$0xff] %v11046_v6  ;;  %v11050_v61 = vpop.eup %6821  ;;  %v11052_v7 = vadd.f32 %v2986_v32, %v2978_v49  ;;  %v3938_v22 = vadd.f32 %v3930_v42, %v3922_v11  ;;  %v3978_v57 = vmul.f32 %v11046_v6, %v14314_v35  ;;  %6839 = vpow2.f32 %v2793_v60  ;;  %v14338_v49 = vld [vmem:[#allocation261_spill] sm:$0xff] }
 0x48c   :  { %14333 = vst [vmem:[#allocation193_spill] sm:$0xff] %v11050_v61  ;;  %v6824_v4 = vpop.eup %6823  ;;  %v3994_v53 = vmul.f32 %v11050_v61, %v10960_v12  ;;  %6841 = vpow2.f32 %v3801_v45  ;;  %14335 = vst [vmem:[#allocation244_spill] sm:$0xff] %v11059_v17  ;;  %v11062_v63 = vmul.f32 %v14336_v31, %v6263_v13  ;;  %v11066_v11 = vmul.f32 %v14338_v49, %v6263_v13  ;;  %v14341_v45 = vld [vmem:[#allocation35_spill] sm:$0xff]  ;;  %v14342_v61 = vld [vmem:[#allocation213_spill] sm:$0xff] }
 0x48d   :  { %v6826_v39 = vpop.eup %6825  ;;  %v3954_v32 = vadd.f32 %v3946_v16, %v3938_v22  ;;  %v4914_v42 = vmul.f32 %v6824_v4, %v14303_v51  ;;  %6843 = vpow2.f32 %v4809_v20  ;;  %v2009_v28 = vmul.f32 %v14341_v45, %v1018_v8  ;;  %v14343_v22 = vld [vmem:[#allocation263_spill] sm:$0xff]  ;;  %v14344_v20 = vld [vmem:[#allocation36_spill] sm:$0xff] }
 0x48e   :  { %14337 = vst [vmem:[#allocation118_spill] sm:$0xff] %v11062_v63  ;;  %14339 = vst [vmem:[#allocation249_spill] sm:$0xff] %v11066_v11  ;;  %v6828_v60 = vpop.eup %6827  ;;  %v4922_v44 = vmul.f32 %v6826_v39, %v14304_v25  ;;  %v3017_v59 = vmul.f32 %v14342_v61, %v1018_v8  ;;  %v4025_v51 = vmul.f32 %v14343_v22, %v1018_v8 }
 0x48f   :  { %v6830_v31 = vpop.eup %6829  ;;  %v3970_v63 = vadd.f32 %v3962_v10, %v3954_v32  ;;  %v4938_v16 = vmul.f32 %v6828_v60, %v14305_v52  ;;  %v5033_v6 = vmul.f32 %v14344_v20, %v1018_v8  ;;  %v11079_v25 = vadd.f32 %v2009_v28, %v10901_v9 }
 0x490   :  { %v6832_v49 = vpop.eup %6831  ;;  %v4930_v11 = vadd.f32 %v4922_v44, %v4914_v42  ;;  %v4954_v17 = vmul.f32 %v6830_v31, %v14308_v24  ;;  %v2826_v13 = vadd.f32 %v10972_v30, %v10966_v0  ;;  %v11085_v52 = vadd.f32 %v4025_v51, %v10910_v5 }
 0x491   :  { %v6834_v45 = vpop.eup %6833  ;;  %v3986_v61 = vadd.f32 %v3978_v57, %v3970_v63  ;;  %v4970_v10 = vmul.f32 %v6832_v49, %v14312_v55  ;;  %v4842_v32 = vadd.f32 %v6826_v39, %v6824_v4  ;;  %v1818_v24 = vadd.f32 %v10930_v50, %v10924_v26 }
 0x492   :  { %v4946_v22 = vadd.f32 %v4938_v16, %v4930_v11  ;;  %v4986_v8 = vmul.f32 %v6834_v45, %v14314_v35  ;;  %v2834_v44 = vadd.f32 %v10978_v1, %v2826_v13  ;;  %v6836_v9 = vpop.eup %6835  ;;  %v3834_v0 = vadd.f32 %v11016_v18, %v11008_v40  ;;  %v810_v1 = vpop.f32.mrf.mxu1 }
 0x493   :  { %v4002_v28 = vadd.f32 %v3994_v53, %v3986_v61  ;;  %v4850_v42 = vadd.f32 %v6828_v60, %v4842_v32  ;;  %v2825_v30 = vadd.f32 %v10740_v19, %v10734_v38  ;;  %v5002_v55 = vmul.f32 %v6836_v9, %v10960_v12  ;;  %v14345_v16 = vld [vmem:[#allocation244_spill] sm:$0xff]  ;;  %v14348_v32 = vld [vmem:[#allocation186_spill] sm:$0xff] }
 0x494   :  { %v4962_v5 = vadd.f32 %v4954_v17, %v4946_v22  ;;  %v2842_v57 = vadd.f32 %v10982_v27, %v2834_v44  ;;  %v1826_v35 = vadd.f32 %v10934_v14, %v1818_v24  ;;  %v3842_v26 = vadd.f32 %v11025_v62, %v3834_v0  ;;  %v14346_v22 = vld [vmem:[#allocation332_spill] sm:$0xff] }
 0x495   :  { %v4858_v4 = vadd.f32 %v6830_v31, %v4850_v42  ;;  %v2833_v50 = vadd.f32 %v10746_v54, %v2825_v30  ;;  %v11101_v61 = vadd.f32 %v3017_v59, %v10905_v36  ;;  %v4841_v12 = vadd.f32 %v10832_v21, %v10824_v34  ;;  %v14347_v13 = vld [vmem:[#allocation118_spill] sm:$0xff]  ;;  %v14350_v44 = vld [vmem:[#allocation20_spill] sm:$0xff] }
 0x496   :  { %v4978_v40 = vadd.f32 %v4970_v10, %v4962_v5  ;;  %v2850_v18 = vadd.f32 %v10990_v3, %v2842_v57  ;;  %v1834_v38 = vadd.f32 %v10938_v23, %v1826_v35  ;;  %v3850_v14 = vadd.f32 %v11034_v41, %v3842_v26  ;;  %v14355_v26 = vld [vmem:[#allocation285_spill] sm:$0xff] }
 0x497   :  { %v6838_v19 = vpop.eup %6837  ;;  %v4866_v27 = vadd.f32 %v6832_v49, %v4858_v4  ;;  %v2841_v53 = vadd.f32 %v10752_v48, %v2833_v50  ;;  %v11110_v62 = vadd.f32 %v5033_v6, %v10916_v56  ;;  %v14356_v50 = vld [vmem:[#allocation129_spill] sm:$0xff] }
 0x498   :  { %v6840_v54 = vpop.eup %6839  ;;  %v4994_v36 = vadd.f32 %v4986_v8, %v4978_v40  ;;  %v1994_v59 = vmul.f32 %v6838_v19, %v810_v1  ;;  %v2858_v17 = vadd.f32 %v10995_v43, %v2850_v18  ;;  %v1842_v3 = vadd.f32 %v10950_v33, %v1834_v38  ;;  %v14349_v8 = vld [vmem:[#allocation249_spill] sm:$0xff]  ;;  %v14357_v18 = vld [vmem:[#allocation260_spill] sm:$0xff] }
 0x499   :  { %v6842_v23 = vpop.eup %6841  ;;  %v3002_v31 = vmul.f32 %v6840_v54, %v810_v1  ;;  %v4874_v63 = vadd.f32 %v6834_v45, %v4866_v27  ;;  %v3858_v34 = vadd.f32 %v11042_v47, %v3850_v14  ;;  %v2849_v21 = vadd.f32 %v10756_v58, %v2841_v53  ;;  %v14358_v27 = vld [vmem:[#allocation116_spill] sm:$0xff]  ;;  %v14359_v53 = vld [vmem:[#allocation278_spill] sm:$0xff] }
 0x49a   :  { %v6844_v41 = vpop.eup %6843  ;;  %v5010_v39 = vadd.f32 %v5002_v55, %v4994_v36  ;;  %v2002_v48 = vadd.f32 %v1994_v59, %v10997_v29  ;;  %v4010_v56 = vmul.f32 %v6842_v23, %v810_v1  ;;  %v2866_v6 = vadd.f32 %v11001_v37, %v2858_v17  ;;  %v14353_v55 = vld [vmem:[#allocation291_spill] sm:$0xff] }
 0x49b   :  { %v3010_v49 = vadd.f32 %v3002_v31, %v11052_v7  ;;  %v5018_v11 = vmul.f32 %v6844_v41, %v810_v1  ;;  %v4882_v43 = vadd.f32 %v6836_v9, %v4874_v63  ;;  %v1850_v33 = vadd.f32 %v10954_v46, %v1842_v3  ;;  %v14351_v46 = vld [vmem:[#allocation193_spill] sm:$0xff]  ;;  %v14354_v1 = vld [vmem:[#allocation171_spill] sm:$0xff] }
 0x49c   :  { %v4018_v60 = vadd.f32 %v4010_v56, %v4002_v28  ;;  %v11121_v45 = vadd.f32 %v14345_v16, %v2002_v48  ;;  %v2874_v47 = vadd.f32 %v6840_v54, %v2866_v6  ;;  %v3866_v58 = vadd.f32 %v14346_v22, %v3858_v34  ;;  %v14352_v28 = vld [vmem:[#allocation106_spill] sm:$0xff]  ;;  %v14364_v3 = vld [vmem:[#allocation127_spill] sm:$0xff]  ;;  %v14366_v63 = vld [vmem:[#allocation185_spill] sm:$0xff] }
 0x49d   :  { %v5026_v51 = vadd.f32 %v5018_v11, %v5010_v39  ;;  %v11125_v10 = vadd.f32 %v14347_v13, %v3010_v49  ;;  %v4890_v29 = vadd.f32 %v6844_v41, %v4882_v43  ;;  %v1858_v37 = vadd.f32 %v14348_v32, %v1850_v33  ;;  %v14368_v39 = vld [vmem:[#allocation128_spill] sm:$0xff]  ;;  %v14370_v6 = vld [vmem:[#allocation213_spill] sm:$0xff]  ;;  %v14374_v22 = vld [vmem:[#allocation63_spill] sm:$0xff] }
 0x49e   :  { %v11129_v7 = vadd.f32 %v14349_v8, %v4018_v60  ;;  %v2882_v24 = vadd.f32 %v14350_v44, %v2874_v47  ;;  %v3874_v9 = vadd.f32 %v14351_v46, %v3866_v58  ;;  %v2857_v42 = vadd.f32 %v14352_v28, %v2849_v21  ;;  %v14367_v21 = vld [vmem:[#allocation23_spill] sm:$0xff]  ;;  %v14369_v48 = vld [vmem:[#allocation196_spill] sm:$0xff]  ;;  %v14373_v16 = vld [vmem:[#allocation197_spill] sm:$0xff] }
 0x49f   :  { %v4898_v0 = vadd.f32 %v14340_v15, %v4890_v29  ;;  %v11136_v30 = vadd.f32 %v11070_v2, %v5026_v51  ;;  %v1866_v5 = vadd.f32 %v6838_v19, %v1858_v37  ;;  %v4849_v57 = vadd.f32 %v14353_v55, %v4841_v12  ;;  %v14360_v15 = vld [vmem:[#allocation329_spill] sm:$0xff]  ;;  %v14362_v19 = vld [vmem:[#allocation331_spill] sm:$0xff]  ;;  %v14363_v12 = vld [vmem:[#allocation8_spill] sm:$0xff] }
 0x4a0   :  { %6845 = vrcp.f32 %v2882_v24  ;;  %v3882_v35 = vadd.f32 %v6842_v23, %v3874_v9  ;;  %v2865_v4 = vadd.f32 %v14354_v1, %v2857_v42  ;;  %v1817_v40 = vadd.f32 %v14356_v50, %v14355_v26  ;;  %v14361_v2 = vld [vmem:[#allocation261_spill] sm:$0xff]  ;;  %v14365_v23 = vld [vmem:[#allocation258_spill] sm:$0xff]  ;;  %v14371_v11 = vld [vmem:[#allocation328_spill] sm:$0xff] }
 0x4a1   :  { %6847 = vrcp.f32 %v4898_v0  ;;  %v1874_v38 = vadd.f32 %v14357_v18, %v1866_v5  ;;  %v4857_v14 = vadd.f32 %v14358_v27, %v4849_v57  ;;  %v3833_v54 = vadd.f32 %v14360_v15, %v14359_v53  ;;  %v14372_v33 = vld [vmem:[#allocation4_spill] sm:$0xff]  ;;  %v14375_v51 = vld [vmem:[#allocation283_spill] sm:$0xff]  ;;  %v14377_v32 = vld [vmem:[#allocation277_spill] sm:$0xff] }
 0x4a2   :  { %v3890_v36 = vadd.f32 %v14361_v2, %v3882_v35  ;;  %v2873_v59 = vadd.f32 %v14362_v19, %v2865_v4  ;;  %v1825_v17 = vadd.f32 %v14363_v12, %v1817_v40  ;;  %v2824_v31 = vadd.f32 %v14365_v23, %v14364_v3  ;;  %v14376_v13 = vld [vmem:[#allocation96_spill] sm:$0xff]  ;;  %v14379_v44 = vld [vmem:[#allocation39_spill] sm:$0xff]  ;;  %v14380_v46 = vld [vmem:[#allocation269_spill] sm:$0xff] }
 0x4a3   :  { %6849 = vrcp.f32 %v1874_v38  ;;  %v4865_v34 = vadd.f32 %v14366_v63, %v4857_v14  ;;  %v3841_v41 = vadd.f32 %v14367_v21, %v3833_v54  ;;  %v11155_v56 = vadd.f32 %v14369_v48, %v14368_v39  ;;  %v14378_v37 = vld [vmem:[#allocation64_spill] sm:$0xff]  ;;  %v14382_v42 = vld [vmem:[#allocation177_spill] sm:$0xff]  ;;  %v14384_v57 = vld [vmem:[#allocation115_spill] sm:$0xff] }
 0x4a4   :  { %6851 = vrcp.f32 %v3890_v36  ;;  %v2881_v49 = vadd.f32 %v14370_v6, %v2873_v59  ;;  %v1833_v43 = vadd.f32 %v14371_v11, %v1825_v17  ;;  %v2832_v60 = vadd.f32 %v14372_v33, %v2824_v31  ;;  %v14381_v28 = vld [vmem:[#allocation320_spill] sm:$0xff]  ;;  %v14385_v1 = vld [vmem:[#allocation169_spill] sm:$0xff]  ;;  %v14386_v26 = vld [vmem:[#allocation158_spill] sm:$0xff] }
 0x4a5   :  { %v4873_v47 = vadd.f32 %v14373_v16, %v4865_v34  ;;  %v3849_v58 = vadd.f32 %v14374_v22, %v3841_v41  ;;  %v4840_v29 = vadd.f32 %v14376_v13, %v14375_v51  ;;  %v11166_v8 = vadd.f32 %v14378_v37, %v14377_v32  ;;  %v14383_v5 = vld [vmem:[#allocation292_spill] sm:$0xff]  ;;  %v14387_v50 = vld [vmem:[#allocation259_spill] sm:$0xff]  ;;  %v14388_v18 = vld [vmem:[#allocation98_spill] sm:$0xff] }
 0x4a6   :  { %6853 = vrcp.f32 %v2881_v49  ;;  %v1841_v24 = vadd.f32 %v14379_v44, %v1833_v43  ;;  %v2840_v9 = vadd.f32 %v14380_v46, %v2832_v60  ;;  %v1816_v0 = vadd.f32 %v14382_v42, %v14381_v28  ;;  %v14389_v27 = vld [vmem:[#allocation6_spill] sm:$0xff]  ;;  %v14390_v53 = vld [vmem:[#allocation77_spill] sm:$0xff]  ;;  %v14391_v54 = vld [vmem:[#allocation247_spill] sm:$0xff] }
 0x4a7   :  { %v4881_v55 = vadd.f32 %v14383_v5, %v4873_v47  ;;  %v3857_v35 = vadd.f32 %v14384_v57, %v3849_v58  ;;  %v4848_v4 = vadd.f32 %v14385_v1, %v4840_v29  ;;  %v3832_v40 = vadd.f32 %v14387_v50, %v14386_v26  ;;  %v14392_v2 = vld [vmem:[#allocation254_spill] sm:$0xff]  ;;  %v14393_v19 = vld [vmem:[#allocation125_spill] sm:$0xff]  ;;  %v14394_v12 = vld [vmem:[#allocation123_spill] sm:$0xff] }
 0x4a8   :  { %v1849_v38 = vadd.f32 %v14388_v18, %v1841_v24  ;;  %v2848_v14 = vadd.f32 %v14389_v27, %v2840_v9  ;;  %v1824_v15 = vadd.f32 %v14390_v53, %v1816_v0  ;;  %v2823_v36 = vadd.f32 %v14392_v2, %v14391_v54  ;;  %v14395_v3 = vld [vmem:[#allocation284_spill] sm:$0xff]  ;;  %v14396_v31 = vld [vmem:[#allocation95_spill] sm:$0xff]  ;;  %v14397_v34 = vld [vmem:[#allocation10_spill] sm:$0xff] }
 0x4a9   :  { %v4889_v59 = vadd.f32 %v14393_v19, %v4881_v55  ;;  %v3865_v17 = vadd.f32 %v14394_v12, %v3857_v35  ;;  %v4856_v23 = vadd.f32 %v14395_v3, %v4848_v4  ;;  %v3840_v63 = vadd.f32 %v14396_v31, %v3832_v40  ;;  %v14398_v41 = vld [vmem:[#allocation321_spill] sm:$0xff]  ;;  %v14400_v49 = vld [vmem:[#allocation336_spill] sm:$0xff]  ;;  %v14402_v16 = vld [vmem:[#allocation327_spill] sm:$0xff] }
 0x4aa   :  { %v1857_v21 = vadd.f32 %v14397_v34, %v1849_v38  ;;  %v2856_v39 = vadd.f32 %v14398_v41, %v2848_v14  ;;  %v14399_v48 = vld [vmem:[#allocation89_spill] sm:$0xff]  ;;  %v2831_v11 = vadd.f32 %v14400_v49, %v2823_v36  ;;  %v14401_v33 = vld [vmem:[#allocation184_spill] sm:$0xff]  ;;  %v14403_v22 = vld [vmem:[#allocation103_spill] sm:$0xff] }
 0x4ab   :  { %v1832_v6 = vadd.f32 %v14399_v48, %v1824_v15  ;;  %v4897_v43 = vadd.f32 %v14344_v20, %v4889_v59  ;;  %v3873_v60 = vadd.f32 %v14401_v33, %v3865_v17  ;;  %v4864_v47 = vadd.f32 %v14402_v16, %v4856_v23  ;;  %v14404_v51 = vld [vmem:[#allocation296_spill] sm:$0xff]  ;;  %v14405_v29 = vld [vmem:[#allocation90_spill] sm:$0xff]  ;;  %v14408_v28 = vld [vmem:[#allocation117_spill] sm:$0xff] }
 0x4ac   :  { %v3848_v58 = vadd.f32 %v14403_v22, %v3840_v63  ;;  %v1865_v13 = vadd.f32 %v14404_v51, %v1857_v21  ;;  %v2864_v32 = vadd.f32 %v14405_v29, %v2856_v39  ;;  %v14406_v37 = vld [vmem:[#allocation236_spill] sm:$0xff]  ;;  %v14407_v24 = vld [vmem:[#allocation206_spill] sm:$0xff]  ;;  %v14409_v0 = vld [vmem:[#allocation97_spill] sm:$0xff] }
 0x4ad   :  { %v1840_v44 = vadd.f32 %v14406_v37, %v1832_v6  ;;  %v2839_v46 = vadd.f32 %v14407_v24, %v2831_v11  ;;  %v6846_v9 = vpop.eup %6845  ;;  %6855 = vrcp.f32 %v4897_v43  ;;  %v3881_v42 = vadd.f32 %v14408_v28, %v3873_v60  ;;  %v14410_v5 = vld [vmem:[#allocation168_spill] sm:$0xff]  ;;  %v14411_v1 = vld [vmem:[#allocation35_spill] sm:$0xff]  ;;  %v14412_v26 = vld [vmem:[#allocation178_spill] sm:$0xff] }
 0x4ae   :  { %v4872_v20 = vadd.f32 %v14409_v0, %v4864_v47  ;;  %v3856_v55 = vadd.f32 %v14410_v5, %v3848_v58  ;;  %v6848_v57 = vpop.eup %6847  ;;  %v3034_v35 = vmul.f32 %v6846_v9, %v11125_v10  ;;  %v1873_v4 = vadd.f32 %v14411_v1, %v1865_v13  ;;  %v14413_v40 = vld [vmem:[#allocation157_spill] sm:$0xff]  ;;  %v14414_v27 = vld [vmem:[#allocation263_spill] sm:$0xff]  ;;  %v14416_v54 = vld [vmem:[#allocation180_spill] sm:$0xff] }
 0x4af   :  { %v2872_v50 = vadd.f32 %v14412_v26, %v2864_v32  ;;  %v1848_v18 = vadd.f32 %v14413_v40, %v1840_v44  ;;  %v5050_v38 = vmul.f32 %v6848_v57, %v11136_v30  ;;  %v3889_v14 = vadd.f32 %v14414_v27, %v3881_v42  ;;  %v14415_v53 = vld [vmem:[#allocation105_spill] sm:$0xff]  ;;  %v14417_v19 = vld [vmem:[#allocation299_spill] sm:$0xff]  ;;  %v14418_v10 = vld [vmem:[#allocation166_spill] sm:$0xff] }
 0x4b0   :  { %v4880_v15 = vadd.f32 %v14415_v53, %v4872_v20  ;;  %v3864_v2 = vadd.f32 %v14416_v54, %v3856_v55  ;;  %v6850_v36 = vpop.eup %6849  ;;  %5176 = vmatprep.subr.mxu1 %v3034_v35  ;;  %6857 = vrcp.f32 %v1873_v4  ;;  %v14419_v17 = vld [vmem:[#allocation337_spill] sm:$0xff]  ;;  %v14420_v30 = vld [vmem:[#allocation182_spill] sm:$0xff]  ;;  %v14421_v34 = vld [vmem:[#allocation275_spill] sm:$0xff] }
 0x4b1   :  { %v2880_v59 = vadd.f32 %v14417_v19, %v2872_v50  ;;  %v1856_v12 = vadd.f32 %v14418_v10, %v1848_v18  ;;  %v2847_v3 = vadd.f32 %v14419_v17, %v2839_v46  ;;  %v6852_v23 = vpop.eup %6851  ;;  %5343 = vmatprep.subr.mxu0 %v5050_v38  ;;  %v2026_v31 = vmul.f32 %v6850_v36, %v11121_v45  ;;  %v14422_v39 = vld [vmem:[#allocation170_spill] sm:$0xff]  ;;  %v14423_v6 = vld [vmem:[#allocation83_spill] sm:$0xff]  ;;  %v14424_v43 = vld [vmem:[#allocation69_spill] sm:$0xff] }
 0x4b2   :  { %6859 = vrcp.f32 %v3889_v14  ;;  %v4888_v63 = vadd.f32 %v14420_v30, %v4880_v15  ;;  %v3872_v21 = vadd.f32 %v14421_v34, %v3864_v2  ;;  %v4042_v41 = vmul.f32 %v6852_v23, %v11129_v7  ;;  %v14425_v60 = vld [vmem:[#allocation179_spill] sm:$0xff]  ;;  %v14426_v47 = vld [vmem:[#allocation268_spill] sm:$0xff]  ;;  %v14427_v45 = vld [vmem:[#allocation293_spill] sm:$0xff] }
 0x4b3   :  { %6861 = vrcp.f32 %v2880_v59  ;;  %v1864_v48 = vadd.f32 %v14422_v39, %v1856_v12  ;;  %v2855_v49 = vadd.f32 %v14423_v6, %v2847_v3  ;;  %v6854_v11 = vpop.eup %6853  ;;  %5177 = vmatpush1.msra.mxu1 %v2026_v31  ;;  %v11222_v22 = vadd.f32 %v14427_v45, %v14426_v47  ;;  %v14428_v58 = vld [vmem:[#allocation75_spill] sm:$0xff]  ;;  %v14430_v29 = vld [vmem:[#allocation58_spill] sm:$0xff]  ;;  %v14431_v37 = vld [vmem:[#allocation68_spill] sm:$0xff] }
 0x4b4   :  { %v4896_v33 = vadd.f32 %v14424_v43, %v4888_v63  ;;  %v3880_v16 = vadd.f32 %v14425_v60, %v3872_v21  ;;  %v14429_v51 = vld [vmem:[#allocation155_spill] sm:$0xff]  ;;  %5344 = vmatpush1.msra.mxu0 %v4042_v41  ;;  %v3033_v7 = vmul.f32 %v6854_v11, %v11101_v61  ;;  %v14432_v24 = vld [vmem:[#allocation172_spill] sm:$0xff]  ;;  %v14433_v46 = vld [vmem:[#allocation297_spill] sm:$0xff] }
 0x4b5   :  { %v4839_v13 = vadd.f32 %v14429_v51, %v14428_v58  ;;  %v1872_v32 = vadd.f32 %v14430_v29, %v1864_v48  ;;  %v2863_v44 = vadd.f32 %v14431_v37, %v2855_v49  ;;  %v11231_v9 = vadd.f32 %v14433_v46, %v14432_v24  ;;  %v14434_v28 = vld [vmem:[#allocation301_spill] sm:$0xff]  ;;  %v14435_v0 = vld [vmem:[#allocation164_spill] sm:$0xff]  ;;  %v14436_v5 = vld [vmem:[#allocation162_spill] sm:$0xff] }
 0x4b6   :  { %6863 = vrcp.f32 %v4896_v33  ;;  %v3888_v42 = vadd.f32 %v14434_v28, %v3880_v16  ;;  %v14437_v55 = vld [vmem:[#allocation46_spill] sm:$0xff]  ;;  %5178 = vmatprep.subr.mxu1 %v3033_v7  ;;  %v14438_v35 = vld [vmem:[#allocation156_spill] sm:$0xff]  ;;  %v14441_v50 = vld [vmem:[#allocation57_spill] sm:$0xff] }
 0x4b7   :  { %v4847_v20 = vadd.f32 %v14435_v0, %v4839_v13  ;;  %v1815_v57 = vadd.f32 %v14437_v55, %v14436_v5  ;;  %6865 = vrcp.f32 %v1872_v32  ;;  %v2871_v61 = vadd.f32 %v14438_v35, %v2863_v44  ;;  %v14439_v1 = vld [vmem:[#allocation74_spill] sm:$0xff]  ;;  %v14443_v38 = vld [vmem:[#allocation256_spill] sm:$0xff]  ;;  %v14444_v14 = vld [vmem:[#allocation67_spill] sm:$0xff] }
 0x4b8   :  { %v14440_v4 = vld [vmem:[#allocation142_spill] sm:$0xff]  ;;  %6867 = vrcp.f32 %v3888_v42  ;;  %v14445_v15 = vld [vmem:[#allocation163_spill] sm:$0xff]  ;;  %v14450_v3 = vld [vmem:[#allocation245_spill] sm:$0xff] }
 0x4b9   :  { %v3831_v26 = vadd.f32 %v14440_v4, %v14439_v1  ;;  %v14442_v40 = vld [vmem:[#allocation62_spill] sm:$0xff]  ;;  %v4855_v27 = vadd.f32 %v14443_v38, %v4847_v20  ;;  %v1823_v53 = vadd.f32 %v14444_v14, %v1815_v57  ;;  %v14451_v23 = vld [vmem:[#allocation252_spill] sm:$0xff]  ;;  %v14452_v30 = vld [vmem:[#allocation267_spill] sm:$0xff] }
 0x4ba   :  { %v2822_v18 = vadd.f32 %v14442_v40, %v14441_v50  ;;  %v14446_v54 = vld [vmem:[#allocation326_spill] sm:$0xff]  ;;  %v4838_v31 = vadd.f32 %v14451_v23, %v14450_v3  ;;  %v14453_v34 = vld [vmem:[#allocation73_spill] sm:$0xff]  ;;  %v14455_v39 = vld [vmem:[#allocation276_spill] sm:$0xff]  ;;  %v6856_v43 = vpop.eup %6855 }
 0x4bb   :  { %v11246_v2 = vadd.f32 %v14446_v54, %v14445_v15  ;;  %v14447_v36 = vld [vmem:[#allocation18_spill] sm:$0xff]  ;;  %v4863_v63 = vadd.f32 %v14452_v30, %v4855_v27  ;;  %v1831_v21 = vadd.f32 %v14453_v34, %v1823_v53  ;;  %v14456_v6 = vld [vmem:[#allocation224_spill] sm:$0xff]  ;;  %v14457_v49 = vld [vmem:[#allocation229_spill] sm:$0xff]  ;;  %v5049_v51 = vmul.f32 %v6856_v43, %v11110_v62 }
 0x4bc   :  { %v2879_v19 = vadd.f32 %v14447_v36, %v2871_v61  ;;  %v14448_v59 = vld [vmem:[#allocation154_spill] sm:$0xff]  ;;  %v1814_v11 = vadd.f32 %v14457_v49, %v14456_v6  ;;  %v14458_v33 = vld [vmem:[#allocation248_spill] sm:$0xff]  ;;  %v14461_v13 = vld [vmem:[#allocation319_spill] sm:$0xff] }
 0x4bd   :  { %v3839_v10 = vadd.f32 %v14448_v59, %v3831_v26  ;;  %v14449_v12 = vld [vmem:[#allocation122_spill] sm:$0xff]  ;;  %v14460_v45 = vld [vmem:[#allocation204_spill] sm:$0xff]  ;;  %v4871_v7 = vadd.f32 %v14461_v13, %v4863_v63  ;;  %v14462_v29 = vld [vmem:[#allocation141_spill] sm:$0xff]  ;;  %v6858_v35 = vpop.eup %6857  ;;  %5345 = vmatprep.subr.mxu0 %v5049_v51 }
 0x4be   :  { %v2830_v17 = vadd.f32 %v14449_v12, %v2822_v18  ;;  %v14454_v41 = vld [vmem:[#allocation230_spill] sm:$0xff]  ;;  %6869 = vrcp.f32 %v2879_v19  ;;  %v4846_v58 = vadd.f32 %v14460_v45, %v4838_v31  ;;  %v1839_v32 = vadd.f32 %v14462_v29, %v1831_v21  ;;  %v14464_v24 = vld [vmem:[#allocation315_spill] sm:$0xff]  ;;  %v14465_v28 = vld [vmem:[#allocation240_spill] sm:$0xff] }
 0x4bf   :  { %v11257_v48 = vadd.f32 %v14455_v39, %v14454_v41  ;;  %v3847_v60 = vadd.f32 %v14458_v33, %v3839_v10  ;;  %v14459_v16 = vld [vmem:[#allocation134_spill] sm:$0xff]  ;;  %v14468_v55 = vld [vmem:[#allocation27_spill] sm:$0xff]  ;;  %v14469_v61 = vld [vmem:[#allocation76_spill] sm:$0xff]  ;;  %v6860_v27 = vpop.eup %6859  ;;  %v2025_v14 = vmul.f32 %v6858_v35, %v11079_v25 }
 0x4c0   :  { %v2838_v47 = vadd.f32 %v14459_v16, %v2830_v17  ;;  %v14463_v37 = vld [vmem:[#allocation334_spill] sm:$0xff]  ;;  %v4879_v1 = vadd.f32 %v14469_v61, %v4871_v7  ;;  %v14470_v62 = vld [vmem:[#allocation231_spill] sm:$0xff]  ;;  %v14471_v26 = vld [vmem:[#allocation133_spill] sm:$0xff]  ;;  %v6862_v10 = vpop.eup %6861  ;;  %v4041_v12 = vmul.f32 %v6860_v27, %v11085_v52 }
 0x4c1   :  { %v1822_v44 = vadd.f32 %v14463_v37, %v1814_v11  ;;  %v3855_v46 = vadd.f32 %v14464_v24, %v3847_v60  ;;  %v14466_v0 = vld [vmem:[#allocation14_spill] sm:$0xff]  ;;  %v1847_v4 = vadd.f32 %v14470_v62, %v1839_v32  ;;  %v14472_v40 = vld [vmem:[#allocation228_spill] sm:$0xff]  ;;  %v14473_v18 = vld [vmem:[#allocation235_spill] sm:$0xff]  ;;  %5179 = vmatpush1.msra.mxu1 %v2025_v14  ;;  %v3032_v34 = vmul.f32 %v6862_v10, %v11155_v56 }
 0x4c2   :  { %v2846_v42 = vadd.f32 %v14465_v28, %v2838_v47  ;;  %v4854_v20 = vadd.f32 %v14466_v0, %v4846_v58  ;;  %v14467_v5 = vld [vmem:[#allocation26_spill] sm:$0xff]  ;;  %v2821_v38 = vadd.f32 %v14473_v18, %v14472_v40  ;;  %v14474_v53 = vld [vmem:[#allocation316_spill] sm:$0xff]  ;;  %v14475_v54 = vld [vmem:[#allocation243_spill] sm:$0xff]  ;;  %5346 = vmatpush1.msra.mxu0 %v4041_v12 }
 0x4c3   :  { %v3830_v57 = vadd.f32 %v14468_v55, %v14467_v5  ;;  %v1830_v50 = vadd.f32 %v14471_v26, %v1822_v44  ;;  %v3863_v15 = vadd.f32 %v14474_v53, %v3855_v46  ;;  %v14476_v19 = vld [vmem:[#allocation66_spill] sm:$0xff]  ;;  %v14477_v17 = vld [vmem:[#allocation257_spill] sm:$0xff]  ;;  %v14481_v41 = vld [vmem:[#allocation192_spill] sm:$0xff]  ;;  %v6864_v58 = vpop.eup %6863  ;;  %5180 = vmatprep.subr.mxu1 %v3032_v34 }
 0x4c4   :  { %v2854_v36 = vadd.f32 %v14475_v54, %v2846_v42  ;;  %v4862_v59 = vadd.f32 %v14476_v19, %v4854_v20  ;;  %v4887_v3 = vadd.f32 %v14477_v17, %v4879_v1  ;;  %v14478_v23 = vld [vmem:[#allocation153_spill] sm:$0xff]  ;;  %v14479_v30 = vld [vmem:[#allocation242_spill] sm:$0xff]  ;;  %v14482_v6 = vld [vmem:[#allocation72_spill] sm:$0xff]  ;;  %v6866_v24 = vpop.eup %6865  ;;  %v5048_v46 = vmul.f32 %v6864_v58, %v11166_v8 }
 0x4c5   :  { %v1855_v31 = vadd.f32 %v14478_v23, %v1847_v4  ;;  %v1838_v63 = vadd.f32 %v14479_v30, %v1830_v50  ;;  %v14480_v21 = vld [vmem:[#allocation318_spill] sm:$0xff]  ;;  %v14483_v11 = vld [vmem:[#allocation52_spill] sm:$0xff]  ;;  %v14485_v60 = vld [vmem:[#allocation191_spill] sm:$0xff]  ;;  %v6868_v5 = vpop.eup %6867 }
 0x4c6   :  { %v3871_v25 = vadd.f32 %v14480_v21, %v3863_v15  ;;  %v2862_v39 = vadd.f32 %v14481_v41, %v2854_v36  ;;  %v4870_v49 = vadd.f32 %v14482_v6, %v4862_v59  ;;  %v4895_v43 = vadd.f32 %v14483_v11, %v4887_v3  ;;  %v14484_v33 = vld [vmem:[#allocation88_spill] sm:$0xff]  ;;  %v14486_v47 = vld [vmem:[#allocation5_spill] sm:$0xff]  ;;  %v14488_v56 = vld [vmem:[#allocation246_spill] sm:$0xff]  ;;  %5347 = vmatprep.subr.mxu0 %v5048_v46 }
 0x4c7   :  { %v1863_v52 = vadd.f32 %v14484_v33, %v1855_v31  ;;  %v1846_v16 = vadd.f32 %v14485_v60, %v1838_v63  ;;  %v3838_v45 = vadd.f32 %v14486_v47, %v3830_v57  ;;  %v14487_v51 = vld [vmem:[#allocation165_spill] sm:$0xff]  ;;  %v14489_v29 = vld [vmem:[#allocation140_spill] sm:$0xff]  ;;  %v14490_v37 = vld [vmem:[#allocation282_spill] sm:$0xff] }
 0x4c8   :  { %v3879_v13 = vadd.f32 %v14487_v51, %v3871_v25  ;;  %v2870_v7 = vadd.f32 %v14488_v56, %v2862_v39  ;;  %v4878_v32 = vadd.f32 %v14489_v29, %v4870_v49  ;;  %v2829_v44 = vadd.f32 %v14490_v37, %v2821_v38  ;;  %v14491_v28 = vld [vmem:[#allocation17_spill] sm:$0xff]  ;;  %v14492_v0 = vld [vmem:[#allocation335_spill] sm:$0xff]  ;;  %v14497_v50 = vld [vmem:[#allocation124_spill] sm:$0xff] }
 0x4c9   :  { %6871 = vrcp.f32 %v4895_v43  ;;  %v1871_v42 = vadd.f32 %v14491_v28, %v1863_v52  ;;  %v1854_v20 = vadd.f32 %v14492_v0, %v1846_v16  ;;  %v14493_v55 = vld [vmem:[#allocation295_spill] sm:$0xff]  ;;  %v14496_v4 = vld [vmem:[#allocation205_spill] sm:$0xff]  ;;  %v4040_v40 = vmul.f32 %v6868_v5, %v14497_v50  ;;  %v14498_v18 = vld [vmem:[#allocation152_spill] sm:$0xff] }
 0x4ca   :  { %v2024_v57 = vmul.f32 %v6866_v24, %v14493_v55  ;;  %v14494_v35 = vld [vmem:[#allocation51_spill] sm:$0xff]  ;;  %v4886_v26 = vadd.f32 %v14496_v4, %v4878_v32  ;;  %v14499_v38 = vld [vmem:[#allocation65_spill] sm:$0xff]  ;;  %v14504_v12 = vld [vmem:[#allocation312_spill] sm:$0xff] }
 0x4cb   :  { %v3887_v61 = vadd.f32 %v14494_v35, %v3879_v13  ;;  %v14495_v1 = vld [vmem:[#allocation11_spill] sm:$0xff]  ;;  %6873 = vrcp.f32 %v1871_v42  ;;  %v1862_v8 = vadd.f32 %v14498_v18, %v1854_v20  ;;  %v3846_v27 = vadd.f32 %v14499_v38, %v3838_v45  ;;  %v14500_v14 = vld [vmem:[#allocation313_spill] sm:$0xff]  ;;  %v6870_v10 = vpop.eup %6869  ;;  %5348 = vmatpush1.msra.mxu0 %v4040_v40  ;;  %v14507_v30 = vld [vmem:[#allocation60_spill] sm:$0xff] }
 0x4cc   :  { %v2878_v62 = vadd.f32 %v14495_v1, %v2870_v7  ;;  %5181 = vmatpush1.msra.mxu1 %v2024_v57  ;;  %v4894_v53 = vadd.f32 %v14500_v14, %v4886_v26  ;;  %v14501_v15 = vld [vmem:[#allocation287_spill] sm:$0xff]  ;;  %v14502_v36 = vld [vmem:[#allocation121_spill] sm:$0xff]  ;;  %v3031_v34 = vmul.f32 %v6870_v10, %v11222_v22  ;;  %v14508_v21 = vld [vmem:[#allocation288_spill] sm:$0xff] }
 0x4cd   :  { %6875 = vrcp.f32 %v3887_v61  ;;  %v2837_v54 = vadd.f32 %v14501_v15, %v2829_v44  ;;  %v14503_v19 = vld [vmem:[#allocation183_spill] sm:$0xff]  ;;  %v1870_v17 = vadd.f32 %v14504_v12, %v1862_v8  ;;  %v14510_v39 = vld [vmem:[#allocation176_spill] sm:$0xff]  ;;  %v14513_v52 = vld [vmem:[#allocation234_spill] sm:$0xff] }
 0x4ce   :  { %v11312_v59 = vadd.f32 %v14503_v19, %v14502_v36  ;;  %6877 = vrcp.f32 %v2878_v62  ;;  %v14505_v3 = vld [vmem:[#allocation71_spill] sm:$0xff]  ;;  %v14512_v43 = vld [vmem:[#allocation120_spill] sm:$0xff]  ;;  %5182 = vmatprep.subr.mxu1 %v3031_v34  ;;  %v14515_v47 = vld [vmem:[#allocation289_spill] sm:$0xff] }
 0x4cf   :  { %v3854_v23 = vadd.f32 %v14505_v3, %v3846_v27  ;;  %v14506_v31 = vld [vmem:[#allocation55_spill] sm:$0xff]  ;;  %6879 = vrcp.f32 %v4894_v53  ;;  %v2845_v25 = vadd.f32 %v14508_v21, %v2837_v54  ;;  %v14516_v58 = vld [vmem:[#allocation54_spill] sm:$0xff]  ;;  %v14523_v46 = vld [vmem:[#allocation132_spill] sm:$0xff] }
 0x4d0   :  { %v4837_v63 = vadd.f32 %v14507_v30, %v14506_v31  ;;  %v14509_v41 = vld [vmem:[#allocation239_spill] sm:$0xff]  ;;  %6881 = vrcp.f32 %v1870_v17  ;;  %v14518_v13 = vld [vmem:[#allocation42_spill] sm:$0xff]  ;;  %v14524_v42 = vld [vmem:[#allocation281_spill] sm:$0xff] }
 0x4d1   :  { %v11322_v6 = vadd.f32 %v14510_v39, %v14509_v41  ;;  %v14511_v49 = vld [vmem:[#allocation139_spill] sm:$0xff]  ;;  %v2853_v45 = vadd.f32 %v14515_v47, %v2845_v25  ;;  %v14520_v29 = vld [vmem:[#allocation174_spill] sm:$0xff]  ;;  %v14525_v20 = vld [vmem:[#allocation149_spill] sm:$0xff] }
 0x4d2   :  { %v3862_v11 = vadd.f32 %v14511_v49, %v3854_v23  ;;  %v4845_v33 = vadd.f32 %v14512_v43, %v4837_v63  ;;  %v14514_v60 = vld [vmem:[#allocation175_spill] sm:$0xff]  ;;  %v14526_v5 = vld [vmem:[#allocation150_spill] sm:$0xff]  ;;  %v14530_v26 = vld [vmem:[#allocation45_spill] sm:$0xff] }
 0x4d3   :  { %v1813_v16 = vadd.f32 %v14514_v60, %v14513_v52  ;;  %v14517_v22 = vld [vmem:[#allocation59_spill] sm:$0xff]  ;;  %v4836_v55 = vadd.f32 %v14526_v5, %v14525_v20  ;;  %v14527_v57 = vld [vmem:[#allocation290_spill] sm:$0xff]  ;;  %v14531_v50 = vld [vmem:[#allocation317_spill] sm:$0xff] }
 0x4d4   :  { %v3829_v51 = vadd.f32 %v14517_v22, %v14516_v58  ;;  %v14519_v56 = vld [vmem:[#allocation47_spill] sm:$0xff]  ;;  %v4853_v28 = vadd.f32 %v14523_v46, %v4845_v33  ;;  %v2861_v35 = vadd.f32 %v14527_v57, %v2853_v45  ;;  %v11347_v40 = vadd.f32 %v14531_v50, %v14530_v26  ;;  %v14532_v18 = vld [vmem:[#allocation253_spill] sm:$0xff]  ;;  %v14533_v38 = vld [vmem:[#allocation238_spill] sm:$0xff] }
 0x4d5   :  { %v2820_v7 = vadd.f32 %v14519_v56, %v14518_v13  ;;  %v14521_v32 = vld [vmem:[#allocation207_spill] sm:$0xff]  ;;  %v1821_v0 = vadd.f32 %v14524_v42, %v1813_v16  ;;  %v14534_v14 = vld [vmem:[#allocation110_spill] sm:$0xff]  ;;  %v14535_v15 = vld [vmem:[#allocation280_spill] sm:$0xff] }
 0x4d6   :  { %v11335_v37 = vadd.f32 %v14521_v32, %v14520_v29  ;;  %v14522_v44 = vld [vmem:[#allocation151_spill] sm:$0xff]  ;;  %v4861_v27 = vadd.f32 %v14533_v38, %v4853_v28  ;;  %v4844_v54 = vadd.f32 %v14535_v15, %v4836_v55  ;;  %v14536_v36 = vld [vmem:[#allocation161_spill] sm:$0xff]  ;;  %v14539_v23 = vld [vmem:[#allocation94_spill] sm:$0xff]  ;;  %v6872_v43 = vpop.eup %6871 }
 0x4d7   :  { %v3870_v24 = vadd.f32 %v14522_v44, %v3862_v11  ;;  %v14528_v61 = vld [vmem:[#allocation119_spill] sm:$0xff]  ;;  %v1829_v53 = vadd.f32 %v14534_v14, %v1821_v0  ;;  %v2869_v19 = vadd.f32 %v14536_v36, %v2861_v35  ;;  %v14541_v63 = vld [vmem:[#allocation12_spill] sm:$0xff]  ;;  %v14542_v21 = vld [vmem:[#allocation241_spill] sm:$0xff] }
 0x4d8   :  { %v3837_v1 = vadd.f32 %v14528_v61, %v3829_v51  ;;  %v14529_v62 = vld [vmem:[#allocation99_spill] sm:$0xff]  ;;  %v4869_v25 = vadd.f32 %v14542_v21, %v4861_v27  ;;  %v14543_v41 = vld [vmem:[#allocation50_spill] sm:$0xff]  ;;  %v14544_v49 = vld [vmem:[#allocation109_spill] sm:$0xff]  ;;  %v5047_v51 = vmul.f32 %v6872_v43, %v11231_v9  ;;  %v6874_v32 = vpop.eup %6873 }
 0x4d9   :  { %v2828_v4 = vadd.f32 %v14529_v62, %v2820_v7  ;;  %v3878_v8 = vadd.f32 %v14532_v18, %v3870_v24  ;;  %v14537_v10 = vld [vmem:[#allocation131_spill] sm:$0xff]  ;;  %v1837_v39 = vadd.f32 %v14543_v41, %v1829_v53  ;;  %v4852_v11 = vadd.f32 %v14544_v49, %v4844_v54  ;;  %v14545_v33 = vld [vmem:[#allocation40_spill] sm:$0xff]  ;;  %v14546_v60 = vld [vmem:[#allocation237_spill] sm:$0xff] }
 0x4da   :  { %v3845_v12 = vadd.f32 %v14537_v10, %v3837_v1  ;;  %v14538_v17 = vld [vmem:[#allocation111_spill] sm:$0xff]  ;;  %v2877_v52 = vadd.f32 %v14545_v33, %v2869_v19  ;;  %v14547_v47 = vld [vmem:[#allocation225_spill] sm:$0xff]  ;;  %v14548_v58 = vld [vmem:[#allocation266_spill] sm:$0xff]  ;;  %v6876_v20 = vpop.eup %6875  ;;  %5349 = vmatprep.subr.mxu0 %v5047_v51 }
 0x4db   :  { %v2836_v3 = vadd.f32 %v14538_v17, %v2828_v4  ;;  %v14540_v31 = vld [vmem:[#allocation223_spill] sm:$0xff]  ;;  %v3886_v34 = vadd.f32 %v14541_v63, %v3878_v8  ;;  %v14549_v13 = vld [vmem:[#allocation190_spill] sm:$0xff]  ;;  %v14552_v46 = vld [vmem:[#allocation232_spill] sm:$0xff]  ;;  %v6878_v4 = vpop.eup %6877 }
 0x4dc   :  { %v1812_v30 = vadd.f32 %v14540_v31, %v14539_v23  ;;  %v3853_v16 = vadd.f32 %v14546_v60, %v3845_v12  ;;  %v4877_v56 = vadd.f32 %v14549_v13, %v4869_v25  ;;  %v14550_v7 = vld [vmem:[#allocation102_spill] sm:$0xff]  ;;  %v14553_v42 = vld [vmem:[#allocation44_spill] sm:$0xff]  ;;  %v14555_v57 = vld [vmem:[#allocation61_spill] sm:$0xff]  ;;  %v6880_v15 = vpop.eup %6879  ;;  %v3030_v54 = vmul.f32 %v6878_v4, %v11246_v2 }
 0x4dd   :  { %v2844_v45 = vadd.f32 %v14547_v47, %v2836_v3  ;;  %6883 = vrcp.f32 %v3886_v34  ;;  %v1845_v29 = vadd.f32 %v14550_v7, %v1837_v39  ;;  %v14551_v44 = vld [vmem:[#allocation130_spill] sm:$0xff]  ;;  %v4860_v0 = vadd.f32 %v14553_v42, %v4852_v11  ;;  %v14557_v1 = vld [vmem:[#allocation271_spill] sm:$0xff]  ;;  %v14558_v26 = vld [vmem:[#allocation188_spill] sm:$0xff]  ;;  %v6882_v23 = vpop.eup %6881 }
 0x4de   :  { %v1820_v22 = vadd.f32 %v14548_v58, %v1812_v30  ;;  %6885 = vrcp.f32 %v2877_v52  ;;  %v3861_v24 = vadd.f32 %v14551_v44, %v3853_v16  ;;  %v14554_v5 = vld [vmem:[#allocation198_spill] sm:$0xff]  ;;  %v4885_v35 = vadd.f32 %v14555_v57, %v4877_v56  ;;  %v14559_v18 = vld [vmem:[#allocation189_spill] sm:$0xff]  ;;  %v14560_v38 = vld [vmem:[#allocation279_spill] sm:$0xff] }
 0x4df   :  { %v2852_v28 = vadd.f32 %v14552_v46, %v2844_v45  ;;  %v2023_v55 = vmul.f32 %v6874_v32, %v14554_v5  ;;  %v14556_v9 = vld [vmem:[#allocation114_spill] sm:$0xff]  ;;  %v4039_v50 = vmul.f32 %v6876_v20, %v14558_v26  ;;  %v14562_v36 = vld [vmem:[#allocation53_spill] sm:$0xff]  ;;  %v14563_v10 = vld [vmem:[#allocation159_spill] sm:$0xff]  ;;  %v5046_v31 = vmul.f32 %v6880_v15, %v11257_v48 }
 0x4e0   :  { %v1853_v61 = vadd.f32 %v14556_v9, %v1845_v29  ;;  %v1828_v62 = vadd.f32 %v14557_v1, %v1820_v22  ;;  %v3869_v8 = vadd.f32 %v14559_v18, %v3861_v24  ;;  %v14561_v14 = vld [vmem:[#allocation218_spill] sm:$0xff]  ;;  %v4893_v19 = vadd.f32 %v14562_v36, %v4885_v35  ;;  %v14564_v17 = vld [vmem:[#allocation273_spill] sm:$0xff]  ;;  %v14565_v30 = vld [vmem:[#allocation56_spill] sm:$0xff] }
 0x4e1   :  { %v2860_v27 = vadd.f32 %v14560_v38, %v2852_v28  ;;  %v4868_v53 = vadd.f32 %v14561_v14, %v4860_v0  ;;  %5183 = vmatpush1.msra.mxu1 %v2023_v55  ;;  %5350 = vmatpush1.msra.mxu0 %v4039_v50  ;;  %v14566_v34 = vld [vmem:[#allocation101_spill] sm:$0xff]  ;;  %v14568_v39 = vld [vmem:[#allocation104_spill] sm:$0xff]  ;;  %v14569_v2 = vld [vmem:[#allocation314_spill] sm:$0xff] }
 0x4e2   :  { %v1861_v12 = vadd.f32 %v14563_v10, %v1853_v61  ;;  %v1836_v3 = vadd.f32 %v14564_v17, %v1828_v62  ;;  %v3877_v63 = vadd.f32 %v14565_v30, %v3869_v8  ;;  %v14567_v25 = vld [vmem:[#allocation49_spill] sm:$0xff]  ;;  %5184 = vmatprep.subr.mxu1 %v3030_v54  ;;  %v2022_v49 = vmul.f32 %v6882_v23, %v14568_v39  ;;  %v14570_v43 = vld [vmem:[#allocation274_spill] sm:$0xff]  ;;  %v14572_v16 = vld [vmem:[#allocation28_spill] sm:$0xff] }
 0x4e3   :  { %v2868_v21 = vadd.f32 %v14566_v34, %v2860_v27  ;;  %v4876_v41 = vadd.f32 %v14567_v25, %v4868_v53  ;;  %6887 = vrcp.f32 %v4893_v19  ;;  %5351 = vmatprep.subr.mxu0 %v5046_v31  ;;  %v14571_v52 = vld [vmem:[#allocation21_spill] sm:$0xff]  ;;  %v14573_v48 = vld [vmem:[#allocation227_spill] sm:$0xff]  ;;  %v14574_v58 = vld [vmem:[#allocation108_spill] sm:$0xff] }
 0x4e4   :  { %v1869_v11 = vadd.f32 %v14569_v2, %v1861_v12  ;;  %v1844_v33 = vadd.f32 %v14570_v43, %v1836_v3  ;;  %v3885_v60 = vadd.f32 %v14571_v52, %v3877_v63  ;;  %v14575_v22 = vld [vmem:[#allocation43_spill] sm:$0xff]  ;;  %5185 = vmatpush1.msra.mxu1 %v2022_v49  ;;  %v14577_v7 = vld [vmem:[#allocation220_spill] sm:$0xff]  ;;  %v14580_v24 = vld [vmem:[#allocation78_spill] sm:$0xff] }
 0x4e5   :  { %v2876_v47 = vadd.f32 %v14572_v16, %v2868_v21  ;;  %v4884_v45 = vadd.f32 %v14573_v48, %v4876_v41  ;;  %v3828_v51 = vadd.f32 %v14575_v22, %v14574_v58  ;;  %v14576_v13 = vld [vmem:[#allocation107_spill] sm:$0xff]  ;;  %v14578_v29 = vld [vmem:[#allocation32_spill] sm:$0xff]  ;;  %v14581_v28 = vld [vmem:[#allocation41_spill] sm:$0xff] }
 0x4e6   :  { %6889 = vrcp.f32 %v1869_v11  ;;  %v1852_v56 = vadd.f32 %v14576_v13, %v1844_v33  ;;  %v2819_v32 = vadd.f32 %v14578_v29, %v14577_v7  ;;  %v14579_v44 = vld [vmem:[#allocation216_spill] sm:$0xff]  ;;  %v14583_v5 = vld [vmem:[#allocation215_spill] sm:$0xff]  ;;  %v14586_v61 = vld [vmem:[#allocation338_spill] sm:$0xff] }
 0x4e7   :  { %v11401_v46 = vadd.f32 %v14580_v24, %v14579_v44  ;;  %6891 = vrcp.f32 %v3885_v60  ;;  %v4892_v42 = vadd.f32 %v14581_v28, %v4884_v45  ;;  %v14582_v0 = vld [vmem:[#allocation48_spill] sm:$0xff]  ;;  %v14585_v35 = vld [vmem:[#allocation219_spill] sm:$0xff]  ;;  %v14588_v4 = vld [vmem:[#allocation322_spill] sm:$0xff] }
 0x4e8   :  { %v3836_v20 = vadd.f32 %v14582_v0, %v3828_v51  ;;  %v14584_v55 = vld [vmem:[#allocation212_spill] sm:$0xff]  ;;  %6893 = vrcp.f32 %v2876_v47  ;;  %v1860_v9 = vadd.f32 %v14585_v35, %v1852_v56  ;;  %v2827_v1 = vadd.f32 %v14586_v61, %v2819_v32  ;;  %v14590_v8 = vld [vmem:[#allocation222_spill] sm:$0xff]  ;;  %v14591_v27 = vld [vmem:[#allocation323_spill] sm:$0xff] }
 0x4e9   :  { %v4835_v57 = vadd.f32 %v14584_v55, %v14583_v5  ;;  %v14587_v62 = vld [vmem:[#allocation272_spill] sm:$0xff]  ;;  %6895 = vrcp.f32 %v4892_v42  ;;  %v14593_v15 = vld [vmem:[#allocation25_spill] sm:$0xff]  ;;  %v14596_v12 = vld [vmem:[#allocation147_spill] sm:$0xff] }
 0x4ea   :  { %v11411_v26 = vadd.f32 %v14588_v4, %v14587_v62  ;;  %v14589_v50 = vld [vmem:[#allocation100_spill] sm:$0xff]  ;;  %v1868_v54 = vadd.f32 %v14593_v15, %v1860_v9  ;;  %v6884_v3 = vpop.eup %6883  ;;  %v14598_v30 = vld [vmem:[#allocation217_spill] sm:$0xff]  ;;  %v14603_v52 = vld [vmem:[#allocation226_spill] sm:$0xff] }
 0x4eb   :  { %v3844_v18 = vadd.f32 %v14589_v50, %v3836_v20  ;;  %v4843_v38 = vadd.f32 %v14590_v8, %v4835_v57  ;;  %v14592_v14 = vld [vmem:[#allocation324_spill] sm:$0xff]  ;;  %v6886_v25 = vpop.eup %6885  ;;  %v14600_v41 = vld [vmem:[#allocation181_spill] sm:$0xff]  ;;  %v14606_v58 = vld [vmem:[#allocation214_spill] sm:$0xff] }
 0x4ec   :  { %v1811_v53 = vadd.f32 %v14592_v14, %v14591_v27  ;;  %v14594_v36 = vld [vmem:[#allocation80_spill] sm:$0xff]  ;;  %v4038_v39 = vmul.f32 %v6884_v3, %v14600_v41  ;;  %6897 = vrcp.f32 %v1868_v54  ;;  %v14602_v11 = vld [vmem:[#allocation33_spill] sm:$0xff]  ;;  %v3029_v33 = vmul.f32 %v6886_v25, %v11312_v59  ;;  %v14609_v29 = vld [vmem:[#allocation330_spill] sm:$0xff] }
 0x4ed   :  { %v2835_v19 = vadd.f32 %v14594_v36, %v2827_v1  ;;  %v14595_v10 = vld [vmem:[#allocation264_spill] sm:$0xff]  ;;  %v4851_v63 = vadd.f32 %v14598_v30, %v4843_v38  ;;  %v14604_v16 = vld [vmem:[#allocation265_spill] sm:$0xff]  ;;  %v14610_v44 = vld [vmem:[#allocation31_spill] sm:$0xff] }
 0x4ee   :  { %v3827_v17 = vadd.f32 %v14596_v12, %v14595_v10  ;;  %v14597_v23 = vld [vmem:[#allocation112_spill] sm:$0xff]  ;;  %v14605_v48 = vld [vmem:[#allocation325_spill] sm:$0xff]  ;;  %5352 = vmatpush1.msra.mxu0 %v4038_v39  ;;  %5186 = vmatprep.subr.mxu1 %v3029_v33  ;;  %v14614_v57 = vld [vmem:[#allocation3_spill] sm:$0xff] }
 0x4ef   :  { %v3852_v31 = vadd.f32 %v14597_v23, %v3844_v18  ;;  %v14599_v34 = vld [vmem:[#allocation160_spill] sm:$0xff]  ;;  %v4859_v47 = vadd.f32 %v14604_v16, %v4851_v63  ;;  %v14607_v51 = vld [vmem:[#allocation37_spill] sm:$0xff]  ;;  %v14615_v9 = vld [vmem:[#allocation79_spill] sm:$0xff] }
 0x4f0   :  { %v1819_v21 = vadd.f32 %v14599_v34, %v1811_v53  ;;  %v14601_v49 = vld [vmem:[#allocation92_spill] sm:$0xff]  ;;  %v3835_v43 = vadd.f32 %v14602_v11, %v3827_v17  ;;  %v14608_v56 = vld [vmem:[#allocation233_spill] sm:$0xff]  ;;  %v6888_v20 = vpop.eup %6887  ;;  %v14616_v62 = vld [vmem:[#allocation38_spill] sm:$0xff] }
 0x4f1   :  { %v2843_v2 = vadd.f32 %v14601_v49, %v2835_v19  ;;  %v3860_v60 = vadd.f32 %v14603_v52, %v3852_v31  ;;  %v4867_v32 = vadd.f32 %v14609_v29, %v4859_v47  ;;  %v14611_v28 = vld [vmem:[#allocation221_spill] sm:$0xff]  ;;  %v14612_v42 = vld [vmem:[#allocation148_spill] sm:$0xff]  ;;  %v5045_v1 = vmul.f32 %v6888_v20, %v11322_v6  ;;  %v14618_v38 = vld [vmem:[#allocation15_spill] sm:$0xff] }
 0x4f2   :  { %v1827_v45 = vadd.f32 %v14605_v48, %v1819_v21  ;;  %v3843_v13 = vadd.f32 %v14607_v51, %v3835_v43  ;;  %v14613_v5 = vld [vmem:[#allocation113_spill] sm:$0xff]  ;;  %v14619_v14 = vld [vmem:[#allocation82_spill] sm:$0xff]  ;;  %v14620_v15 = vld [vmem:[#allocation91_spill] sm:$0xff] }
 0x4f3   :  { %v2851_v22 = vadd.f32 %v14606_v58, %v2843_v2  ;;  %v3868_v7 = vadd.f32 %v14608_v56, %v3860_v60  ;;  %v4875_v35 = vadd.f32 %v14614_v57, %v4867_v32  ;;  %v14617_v50 = vld [vmem:[#allocation81_spill] sm:$0xff]  ;;  %v6890_v8 = vpop.eup %6889  ;;  %5353 = vmatprep.subr.mxu0 %v5045_v1  ;;  %v14621_v19 = vld [vmem:[#allocation286_spill] sm:$0xff]  ;;  %v14624_v31 = vld [vmem:[#allocation24_spill] sm:$0xff] }
 0x4f4   :  { %v1835_v24 = vadd.f32 %v14610_v44, %v1827_v45  ;;  %v3851_v0 = vadd.f32 %v14612_v42, %v3843_v13  ;;  %v6892_v36 = vpop.eup %6891  ;;  %v2021_v10 = vmul.f32 %v6890_v8, %v14621_v19  ;;  %v14622_v12 = vld [vmem:[#allocation85_spill] sm:$0xff]  ;;  %v14625_v63 = vld [vmem:[#allocation311_spill] sm:$0xff]  ;;  %v14626_v21 = vld [vmem:[#allocation34_spill] sm:$0xff] }
 0x4f5   :  { %v2859_v59 = vadd.f32 %v14611_v28, %v2851_v22  ;;  %v3876_v55 = vadd.f32 %v14613_v5, %v3868_v7  ;;  %v4883_v53 = vadd.f32 %v14619_v14, %v4875_v35  ;;  %v14623_v3 = vld [vmem:[#allocation93_spill] sm:$0xff]  ;;  %v6894_v6 = vpop.eup %6893  ;;  %v4037_v30 = vmul.f32 %v6892_v36, %v14624_v31  ;;  %v14628_v43 = vld [vmem:[#allocation84_spill] sm:$0xff]  ;;  %v14629_v52 = vld [vmem:[#allocation86_spill] sm:$0xff] }
 0x4f6   :  { %v1843_v61 = vadd.f32 %v14615_v9, %v1835_v24  ;;  %v3859_v18 = vadd.f32 %v14617_v50, %v3851_v0  ;;  %v6896_v41 = vpop.eup %6895  ;;  %5187 = vmatpush1.msra.mxu1 %v2021_v10  ;;  %v3028_v39 = vmul.f32 %v6894_v6, %v11335_v37  ;;  %v14627_v49 = vld [vmem:[#allocation173_spill] sm:$0xff]  ;;  %v14630_v47 = vld [vmem:[#allocation255_spill] sm:$0xff]  ;;  %v14633_v24 = vld [vmem:[#allocation270_spill] sm:$0xff] }
 0x4f7   :  { %v2867_v4 = vadd.f32 %v14616_v62, %v2859_v59  ;;  %v3884_v27 = vadd.f32 %v14618_v38, %v3876_v55  ;;  %v4891_v34 = vadd.f32 %v14625_v63, %v4883_v53  ;;  %5354 = vmatpush1.msra.mxu0 %v4037_v30  ;;  %v5044_v11 = vmul.f32 %v6896_v41, %v11347_v40  ;;  %v14631_v58 = vld [vmem:[#allocation87_spill] sm:$0xff]  ;;  %v5061_v59 = vld [vmem:[%s12029_s4 + $0x10] sm:$0xff]  ;;  %v5062_v42 = vld [vmem:[%s12029_s4 + $0x18] sm:$0xff] }
 0x4f8   :  { %v1851_v54 = vadd.f32 %v14620_v15, %v1843_v61  ;;  %v3867_v23 = vadd.f32 %v14623_v3, %v3859_v18  ;;  %5188 = vmatprep.subr.mxu1 %v3028_v39  ;;  %v14632_v29 = vld [vmem:[#allocation167_spill] sm:$0xff]  ;;  %v5064_v20 = vld [vmem:[%s12029_s4 + $0x28] sm:$0xff]  ;;  %v5065_v5 = vld [vmem:[%s12029_s4 + $0x30] sm:$0xff] }
 0x4f9   :  { %v2875_v17 = vadd.f32 %v14622_v12, %v2867_v4  ;;  %6899 = vrcp.f32 %v3884_v27  ;;  %v6898_v16 = vpop.eup %6897  ;;  %5355 = vmatprep.subr.mxu0 %v5044_v11  ;;  %v5059_v44 = vld [vmem:[%s12029_s4] sm:$0xff]  ;;  %v5066_v55 = vld [vmem:[%s12029_s4 + $0x38] sm:$0xff]  ;;  %v5068_v35 = vld [vmem:[%s12029_s4 + $0x48] sm:$0xff] }
 0x4fa   :  { %v1859_v25 = vadd.f32 %v14626_v21, %v1851_v54  ;;  %v3875_v2 = vadd.f32 %v14627_v49, %v3867_v23  ;;  %v2020_v48 = vmul.f32 %v6898_v16, %v14630_v47  ;;  %v5063_v0 = vld [vmem:[%s12029_s4 + $0x20] sm:$0xff]  ;;  %v5069_v9 = vld [vmem:[%s12029_s4 + $0x50] sm:$0xff]  ;;  %v5070_v61 = vld [vmem:[%s12029_s4 + $0x58] sm:$0xff] }
 0x4fb   :  { %6901 = vrcp.f32 %v2875_v17  ;;  %v5067_v57 = vld [vmem:[%s12029_s4 + $0x40] sm:$0xff]  ;;  %v5072_v62 = vld [vmem:[%s12029_s4 + $0x68] sm:$0xff]  ;;  %v5073_v4 = vld [vmem:[%s12029_s4 + $0x70] sm:$0xff] }
 0x4fc   :  { %6903 = vrcp.f32 %v4891_v34  ;;  %v1867_v33 = vadd.f32 %v14628_v43, %v1859_v25  ;;  %v3883_v60 = vadd.f32 %v14629_v52, %v3875_v2  ;;  %5189 = vmatpush1.msra.mxu1 %v2020_v48  ;;  %v5071_v1 = vld [vmem:[%s12029_s4 + $0x60] sm:$0xff]  ;;  %v5074_v50 = vld [vmem:[%s12029_s4 + $0x78] sm:$0xff] }
 0x4fd   :  { %v5075_v18 = vld [vmem:[%s12029_s4 + $0x80] sm:$0xff] }
 0x4fe   :  { %6905 = vrcp.f32 %v1867_v33 }
 0x4ff   :  { %6907 = vrcp.f32 %v3883_v60 }
 0x506   :  { %v6900_v37 = vpop.eup %6899 }
 0x507   :  { %v4036_v22 = vmul.f32 %v6900_v37, %v14631_v58 }
 0x508   :  { %v6902_v45 = vpop.eup %6901 }
 0x509   :  { %v6904_v51 = vpop.eup %6903  ;;  %v3027_v40 = vmul.f32 %v6902_v45, %v11401_v46  ;;  %5356 = vmatpush1.msra.mxu0 %v4036_v22  ;;  %v14634_v46 = vmov 0.0  }
 0x50a   :  { %v5043_v13 = vmul.f32 %v6904_v51, %v11411_v26  ;;  %v5060_v26 = vld [vmem:[%s12029_s4 + $0x8] sm:$0xff] }
 0x50b   :  { %v6906_v56 = vpop.eup %6905  ;;  %5190 = vmatprep.subr.mxu1 %v3027_v40 }
 0x50c   :  { %v6908_v7 = vpop.eup %6907  ;;  %5357 = vmatprep.subr.mxu0 %v5043_v13  ;;  %v2019_v32 = vmul.f32 %v6906_v56, %v14632_v29 }
 0x50d   :  { %v4035_v28 = vmul.f32 %v6908_v7, %v14633_v24 }
 0x50e   :  { %5191 = vmatpush1.msra.mxu1 %v2019_v32 }
 0x50f   :  { %5358 = vmatpush1.msra.mxu0 %v4035_v28  ;;  %6183 = vmatmul.mubr.msk.f32.vlgmr.msra.gmra.mxu1 %vm5108_vm4, %v5059_v44 }
 0x510   :  { %5230 = vmatprep.mubr.f32.mxu1 %v14634_v46  ;;  %6200 = vmatmul.mubr.msk.f32.vlgmr.msra.gmra.mxu0 %vm5108_vm4, %v5059_v44 }
 0x511   :  { %5397 = vmatprep.mubr.f32.mxu0 %v14634_v46 }
 0x513   :  { %6184 = vmatmul.mubr.msk.f32.gmra.mxu1 %vm5108_vm4, %v5060_v26 }
 0x514   :  { %5236 = vmatprep.mubr.f32.mxu1 %v14634_v46  ;;  %6201 = vmatmul.mubr.msk.f32.gmra.mxu0 %vm5108_vm4, %v5060_v26 }
 0x515   :  { %5403 = vmatprep.mubr.f32.mxu0 %v14634_v46 }
 0x517   :  { %6185 = vmatmul.mubr.msk.f32.gmra.mxu1 %vm5108_vm4, %v5061_v59 }
 0x518   :  { %5242 = vmatprep.mubr.f32.mxu1 %v14634_v46  ;;  %6202 = vmatmul.mubr.msk.f32.gmra.mxu0 %vm5108_vm4, %v5061_v59 }
 0x519   :  { %5409 = vmatprep.mubr.f32.mxu0 %v14634_v46 }
 0x51b   :  { %6186 = vmatmul.mubr.msk.f32.gmra.mxu1 %vm5108_vm4, %v5062_v42 }
 0x51c   :  { %5248 = vmatprep.mubr.f32.mxu1 %v14634_v46  ;;  %6203 = vmatmul.mubr.msk.f32.gmra.mxu0 %vm5108_vm4, %v5062_v42 }
 0x51d   :  { %5415 = vmatprep.mubr.f32.mxu0 %v14634_v46 }
 0x51f   :  { %6187 = vmatmul.mubr.msk.f32.gmra.mxu1 %vm5108_vm4, %v5063_v0 }
 0x520   :  { %5254 = vmatprep.mubr.f32.mxu1 %v14634_v46  ;;  %6204 = vmatmul.mubr.msk.f32.gmra.mxu0 %vm5108_vm4, %v5063_v0 }
 0x521   :  { %5421 = vmatprep.mubr.f32.mxu0 %v14634_v46 }
 0x523   :  { %6188 = vmatmul.mubr.msk.f32.gmra.mxu1 %vm5108_vm4, %v5064_v20 }
 0x524   :  { %5260 = vmatprep.mubr.f32.mxu1 %v14634_v46  ;;  %6205 = vmatmul.mubr.msk.f32.gmra.mxu0 %vm5108_vm4, %v5064_v20 }
 0x525   :  { %5427 = vmatprep.mubr.f32.mxu0 %v14634_v46 }
 0x527   :  { %6189 = vmatmul.mubr.msk.f32.gmra.mxu1 %vm5108_vm4, %v5065_v5 }
 0x528   :  { %5266 = vmatprep.mubr.f32.mxu1 %v14634_v46  ;;  %6206 = vmatmul.mubr.msk.f32.gmra.mxu0 %vm5108_vm4, %v5065_v5 }
 0x529   :  { %5433 = vmatprep.mubr.f32.mxu0 %v14634_v46 }
 0x52b   :  { %6190 = vmatmul.mubr.msk.f32.gmra.mxu1 %vm5108_vm4, %v5066_v55 }
 0x52c   :  { %5272 = vmatprep.mubr.f32.mxu1 %v14634_v46  ;;  %6207 = vmatmul.mubr.msk.f32.gmra.mxu0 %vm5108_vm4, %v5066_v55 }
 0x52d   :  { %5439 = vmatprep.mubr.f32.mxu0 %v14634_v46 }
 0x52f   :  { %6191 = vmatmul.mubr.msk.f32.gmra.mxu1 %vm5108_vm4, %v5067_v57 }
 0x530   :  { %5278 = vmatprep.mubr.f32.mxu1 %v14634_v46  ;;  %6208 = vmatmul.mubr.msk.f32.gmra.mxu0 %vm5108_vm4, %v5067_v57 }
 0x531   :  { %5445 = vmatprep.mubr.f32.mxu0 %v14634_v46 }
 0x533   :  { %6192 = vmatmul.mubr.msk.f32.gmra.mxu1 %vm5108_vm4, %v5068_v35 }
 0x534   :  { %5284 = vmatprep.mubr.f32.mxu1 %v14634_v46  ;;  %6209 = vmatmul.mubr.msk.f32.gmra.mxu0 %vm5108_vm4, %v5068_v35 }
 0x535   :  { %5451 = vmatprep.mubr.f32.mxu0 %v14634_v46 }
 0x537   :  { %6193 = vmatmul.mubr.msk.f32.gmra.mxu1 %vm5108_vm4, %v5069_v9 }
 0x538   :  { %5290 = vmatprep.mubr.f32.mxu1 %v14634_v46  ;;  %6210 = vmatmul.mubr.msk.f32.gmra.mxu0 %vm5108_vm4, %v5069_v9 }
 0x539   :  { %5457 = vmatprep.mubr.f32.mxu0 %v14634_v46 }
 0x53b   :  { %6194 = vmatmul.mubr.msk.f32.gmra.mxu1 %vm5108_vm4, %v5070_v61 }
 0x53c   :  { %6211 = vmatmul.mubr.msk.f32.gmra.mxu0 %vm5108_vm4, %v5070_v61  ;;  %5296 = vmatprep.mubr.f32.mxu1 %v14634_v46 }
 0x53d   :  { %5463 = vmatprep.mubr.f32.mxu0 %v14634_v46 }
 0x53f   :  { %6195 = vmatmul.mubr.msk.f32.gmra.mxu1 %vm5108_vm4, %v5071_v1 }
 0x540   :  { %5302 = vmatprep.mubr.f32.mxu1 %v14634_v46  ;;  %6212 = vmatmul.mubr.msk.f32.gmra.mxu0 %vm5108_vm4, %v5071_v1 }
 0x541   :  { %5469 = vmatprep.mubr.f32.mxu0 %v14634_v46 }
 0x543   :  { %6196 = vmatmul.mubr.msk.f32.gmra.mxu1 %vm5108_vm4, %v5072_v62 }
 0x544   :  { %5308 = vmatprep.mubr.f32.mxu1 %v14634_v46  ;;  %6213 = vmatmul.mubr.msk.f32.gmra.mxu0 %vm5108_vm4, %v5072_v62 }
 0x545   :  { %5475 = vmatprep.mubr.f32.mxu0 %v14634_v46 }
 0x547   :  { %6197 = vmatmul.mubr.msk.f32.gmra.mxu1 %vm5108_vm4, %v5073_v4 }
 0x548   :  { %5314 = vmatprep.mubr.f32.mxu1 %v14634_v46  ;;  %6214 = vmatmul.mubr.msk.f32.gmra.mxu0 %vm5108_vm4, %v5073_v4 }
 0x549   :  { %5481 = vmatprep.mubr.f32.mxu0 %v14634_v46 }
 0x54b   :  { %6198 = vmatmul.mubr.msk.f32.gmra.mxu1 %vm5108_vm4, %v5074_v50 }
 0x54c   :  { %5320 = vmatprep.mubr.f32.mxu1 %v14634_v46  ;;  %6215 = vmatmul.mubr.msk.f32.gmra.mxu0 %vm5108_vm4, %v5074_v50 }
 0x54d   :  { %5487 = vmatprep.mubr.f32.mxu0 %v14634_v46 }
 0x54f   :  { %6199 = vmatmul.mubr.msk.f32.gmra.mxu1 %vm5108_vm4, %v5075_v18 }
 0x550   :  { %6216 = vmatmul.mubr.msk.f32.gmra.mxu0 %vm5108_vm4, %v5075_v18 }
 0x5cf   :  { %v5226_v8 = vpop.f32.mrf.mxu1 }
 0x5d0   :  { %v5393_v38 = vpop.f32.mrf.mxu0 }
 0x5d1   :  { %v5228_v27 = vpop.f32.mrf.mxu1 }
 0x5d2   :  { %v5395_v14 = vpop.f32.mrf.mxu0 }
 0x5d3   :  { %v11581_v53 = vpop.f32.mrf.mxu1 }
 0x5d4   :  { %v11583_v15 = vpop.f32.mrf.mxu0 }
 0x5d5   :  { %v11585_v54 = vpop.f32.mrf.mxu1 }
 0x5d6   :  { %v11587_v36 = vpop.f32.mrf.mxu0 }
 0x5d7   :  { %v11589_v19 = vpop.f32.mrf.mxu1 }
 0x5d8   :  { %v11591_v10 = vpop.f32.mrf.mxu0 }
 0x5d9   :  { %v11593_v12 = vpop.f32.mrf.mxu1 }
 0x5da   :  { %v11595_v17 = vpop.f32.mrf.mxu0 }
 0x5db   :  { %v11597_v3 = vpop.f32.mrf.mxu1 }
 0x5dc   :  { %v11599_v23 = vpop.f32.mrf.mxu0 }
 0x5dd   :  { %v11601_v6 = vpop.f32.mrf.mxu1 }
 0x5de   :  { %v11603_v31 = vpop.f32.mrf.mxu0 }
 0x5df   :  { %v11605_v30 = vpop.f32.mrf.mxu1 }
 0x5e0   :  { %v11607_v63 = vpop.f32.mrf.mxu0 }
 0x5e1   :  { %14635 = vst [vmem:[#allocation126_spill] sm:$0xff] %v11607_v63  ;;  %v11609_v34 = vpop.f32.mrf.mxu1 }
 0x5e2   :  { %14636 = vst [vmem:[#allocation13_spill] sm:$0xff] %v11609_v34  ;;  %v11611_v21 = vpop.f32.mrf.mxu0 }
 0x5e3   :  { %14637 = vst [vmem:[#allocation187_spill] sm:$0xff] %v11611_v21  ;;  %v11613_v25 = vpop.f32.mrf.mxu1 }
 0x5e4   :  { %14638 = vst [vmem:[#allocation16_spill] sm:$0xff] %v11613_v25  ;;  %v11615_v41 = vpop.f32.mrf.mxu0 }
 0x5e5   :  { %14639 = vst [vmem:[#allocation199_spill] sm:$0xff] %v11615_v41  ;;  %v11617_v39 = vpop.f32.mrf.mxu1 }
 0x5e6   :  { %14640 = vst [vmem:[#allocation294_spill] sm:$0xff] %v11617_v39  ;;  %v11619_v49 = vpop.f32.mrf.mxu0 }
 0x5e7   :  { %14641 = vst [vmem:[#allocation298_spill] sm:$0xff] %v11619_v49  ;;  %v11621_v2 = vpop.f32.mrf.mxu1 }
 0x5e8   :  { %14642 = vst [vmem:[#allocation333_spill] sm:$0xff] %v11621_v2  ;;  %v11623_v11 = vpop.f32.mrf.mxu0 }
 0x5e9   :  { %14643 = vst [vmem:[#allocation135_spill] sm:$0xff] %v11623_v11  ;;  %v11625_v43 = vpop.f32.mrf.mxu1 }
 0x5ea   :  { %14644 = vst [vmem:[#allocation143_spill] sm:$0xff] %v11625_v43  ;;  %v11629_v52 = vpop.f32.mrf.mxu0 }
 0x5eb   :  { %v11627_v33 = vpop.f32.mrf.mxu1  ;;  %14646 = vst [vmem:[#allocation208_spill] sm:$0xff] %v11629_v52 }
 0x5ec   :  { %14645 = vst [vmem:[#allocation200_spill] sm:$0xff] %v11627_v33  ;;  %v11633_v16 = vpop.f32.mrf.mxu0 }
 0x5ed   :  { %v11631_v60 = vpop.f32.mrf.mxu1  ;;  %14648 = vst [vmem:[#allocation307_spill] sm:$0xff] %v11633_v16 }
 0x5ee   :  { %14647 = vst [vmem:[#allocation303_spill] sm:$0xff] %v11631_v60  ;;  %v11635_v48 = vpop.f32.mrf.mxu0 }
 0x5ef   :  { %v5274_v47 = vpop.f32.mrf.mxu1  ;;  %14649 = vst [vmem:[#allocation339_spill] sm:$0xff] %v11635_v48 }
 0x5f0   :  { %v5441_v45 = vpop.f32.mrf.mxu0  ;;  %v5494_v13 = vmul.f32 %v5274_v47, %v5226_v8  ;;  %v5627_v56 = vmul.f32 %v5274_v47, %v5228_v27  ;;  %v5764_v7 = vmul.f32 %v5393_v38, %v5274_v47  ;;  %v5901_v32 = vmul.f32 %v5395_v14, %v5274_v47 }
 0x5f1   :  { %v5276_v37 = vpop.f32.mrf.mxu1  ;;  %v5496_v44 = vmul.f32 %v5441_v45, %v5393_v38  ;;  %v5629_v24 = vmul.f32 %v5441_v45, %v5395_v14  ;;  %v5762_v28 = vmul.f32 %v5441_v45, %v5226_v8  ;;  %v5899_v42 = vmul.f32 %v5441_v45, %v5228_v27 }
 0x5f2   :  { %v5443_v22 = vpop.f32.mrf.mxu0  ;;  %v5495_v46 = vmul.f32 %v5276_v37, %v5228_v27  ;;  %v5628_v26 = vmul.f32 %v5393_v38, %v5276_v37  ;;  %v5765_v59 = vmul.f32 %v5395_v14, %v5276_v37  ;;  %v5898_v0 = vmul.f32 %v5276_v37, %v5226_v8 }
 0x5f3   :  { %v5280_v58 = vpop.f32.mrf.mxu1  ;;  %v11637_v20 = vmul.f32 %v5443_v22, %v5395_v14  ;;  %v11639_v5 = vmul.f32 %v5443_v22, %v5226_v8  ;;  %v11641_v55 = vmul.f32 %v5443_v22, %v5228_v27  ;;  %v11646_v1 = vmul.f32 %v5443_v22, %v5393_v38 }
 0x5f4   :  { %v5447_v40 = vpop.f32.mrf.mxu0  ;;  %v5498_v35 = vmul.f32 %v5280_v58, %v11581_v53  ;;  %v5631_v9 = vmul.f32 %v5280_v58, %v11585_v54  ;;  %v5768_v61 = vmul.f32 %v11583_v15, %v5280_v58  ;;  %v5905_v4 = vmul.f32 %v11587_v36, %v5280_v58 }
 0x5f5   :  { %v5282_v51 = vpop.f32.mrf.mxu1  ;;  %v5500_v45 = vmul.f32 %v5447_v40, %v11583_v15  ;;  %v5633_v58 = vmul.f32 %v5447_v40, %v11587_v36  ;;  %v5766_v22 = vmul.f32 %v5447_v40, %v11581_v53 }
 0x5f6   :  { %v5449_v57 = vpop.f32.mrf.mxu0  ;;  %v5499_v50 = vmul.f32 %v5282_v51, %v11585_v54  ;;  %v5632_v18 = vmul.f32 %v11583_v15, %v5282_v51  ;;  %v5769_v8 = vmul.f32 %v11587_v36, %v5282_v51  ;;  %v5902_v27 = vmul.f32 %v5282_v51, %v11581_v53 }
 0x5f7   :  { %v5286_v29 = vpop.f32.mrf.mxu1  ;;  %v5526_v16 = vadd.f32 %v5498_v35, %v5494_v13  ;;  %v5667_v52 = vadd.f32 %v5631_v9, %v5627_v56  ;;  %v5812_v11 = vadd.f32 %v5768_v61, %v5764_v7  ;;  %v5903_v51 = vmul.f32 %v5447_v40, %v11585_v54 }
 0x5f8   :  { %v5502_v14 = vmul.f32 %v5286_v29, %v11589_v19  ;;  %v5635_v47 = vmul.f32 %v5286_v29, %v11593_v12  ;;  %v5772_v37 = vmul.f32 %v11591_v10, %v5286_v29  ;;  %v5909_v38 = vmul.f32 %v11595_v17, %v5286_v29  ;;  %v5453_v48 = vpop.f32.mrf.mxu0 }
 0x5f9   :  { %v5288_v62 = vpop.f32.mrf.mxu1  ;;  %v5957_v33 = vadd.f32 %v5905_v4, %v5901_v32  ;;  %v5535_v43 = vadd.f32 %v5499_v50, %v5495_v46  ;;  %v5676_v2 = vadd.f32 %v5632_v18, %v5628_v26  ;;  %v5821_v49 = vadd.f32 %v5769_v8, %v5765_v59 }
 0x5fa   :  { %v5930_v41 = vadd.f32 %v5902_v27, %v5898_v0  ;;  %v5527_v39 = vadd.f32 %v5526_v16, %v5502_v14  ;;  %v5668_v29 = vadd.f32 %v5667_v52, %v5635_v47  ;;  %v5813_v25 = vadd.f32 %v5812_v11, %v5772_v37  ;;  %v11664_v56 = vpop.f32.mrf.mxu0 }
 0x5fb   :  { %v5292_v60 = vpop.f32.mrf.mxu1  ;;  %v5958_v21 = vadd.f32 %v5957_v33, %v5909_v38  ;;  %v5503_v63 = vmul.f32 %v5288_v62, %v11593_v12  ;;  %v5544_v7 = vadd.f32 %v5500_v45, %v5496_v44  ;;  %v5685_v40 = vadd.f32 %v5633_v58, %v5629_v24 }
 0x5fc   :  { %v5506_v34 = vmul.f32 %v5292_v60, %v11597_v3  ;;  %v5913_v13 = vmul.f32 %v11603_v31, %v5292_v60  ;;  %v5636_v32 = vmul.f32 %v11591_v10, %v5288_v62  ;;  %v5773_v46 = vmul.f32 %v11595_v17, %v5288_v62  ;;  %v5459_v50 = vpop.f32.mrf.mxu0 }
 0x5fd   :  { %v5906_v26 = vmul.f32 %v5288_v62, %v11589_v19  ;;  %v5501_v52 = vmul.f32 %v5449_v57, %v11587_v36  ;;  %v5639_v11 = vmul.f32 %v5292_v60, %v11601_v6  ;;  %v5776_v33 = vmul.f32 %v11599_v23, %v5292_v60  ;;  %v5294_v16 = vpop.f32.mrf.mxu1 }
 0x5fe   :  { %v5794_v59 = vadd.f32 %v5766_v22, %v5762_v28  ;;  %v5939_v0 = vadd.f32 %v5903_v51, %v5899_v42  ;;  %v5630_v35 = vmul.f32 %v5449_v57, %v11581_v53  ;;  %v5767_v44 = vmul.f32 %v5449_v57, %v11585_v54 }
 0x5ff   :  { %v5536_v24 = vadd.f32 %v5535_v43, %v5503_v63  ;;  %v5904_v9 = vmul.f32 %v5449_v57, %v11583_v15  ;;  %v5528_v61 = vadd.f32 %v5527_v39, %v5506_v34  ;;  %v5959_v4 = vadd.f32 %v5958_v21, %v5913_v13  ;;  %v11684_v21 = vpop.f32.mrf.mxu1 }
 0x600   :  { %v5677_v62 = vadd.f32 %v5676_v2, %v5636_v32  ;;  %v5822_v18 = vadd.f32 %v5821_v49, %v5773_v46  ;;  %v5907_v36 = vmul.f32 %v5453_v48, %v11593_v12  ;;  %v5910_v8 = vmul.f32 %v5294_v16, %v11597_v3 }
 0x601   :  { %v5931_v60 = vadd.f32 %v5930_v41, %v5906_v26  ;;  %v11678_v28 = vadd.f32 %v5501_v52, %v11637_v20  ;;  %v5669_v42 = vadd.f32 %v5668_v29, %v5639_v11  ;;  %v5814_v53 = vadd.f32 %v5813_v25, %v5776_v33  ;;  %v11693_v58 = vpop.f32.mrf.mxu1  ;;  %v5461_v29 = vpop.f32.mrf.mxu0 }
 0x602   :  { %v5658_v54 = vadd.f32 %v5630_v35, %v11639_v5  ;;  %v5504_v63 = vmul.f32 %v5453_v48, %v11591_v10  ;;  %v5637_v15 = vmul.f32 %v5453_v48, %v11595_v17  ;;  %v5911_v34 = vmul.f32 %v5459_v50, %v11601_v6 }
 0x603   :  { %v5803_v39 = vadd.f32 %v5767_v44, %v11641_v55  ;;  %v5529_v49 = vrot.slane %v5528_v61, 4  ;;  %v5960_v2 = vrot.slane %v5959_v4, 4  ;;  %v5770_v41 = vmul.f32 %v5453_v48, %v11589_v19  ;;  %v5304_v35 = vpop.f32.mrf.mxu1 }
 0x604   :  { %v5948_v43 = vadd.f32 %v5904_v9, %v11646_v1  ;;  %v5940_v20 = vadd.f32 %v5939_v0, %v5907_v36  ;;  %v5777_v25 = vmul.f32 %v11603_v31, %v5294_v16  ;;  %v5932_v5 = vadd.f32 %v5931_v60, %v5910_v8 }
 0x605   :  { %v5670_v57 = vrot.slane %v5669_v42, 4  ;;  %v5815_v27 = vrot.slane %v5814_v53, 4  ;;  %v5507_v14 = vmul.f32 %v5294_v16, %v11601_v6  ;;  %v5640_v47 = vmul.f32 %v11599_v23, %v5294_v16 }
 0x606   :  { %v5545_v37 = vadd.f32 %v5544_v7, %v5504_v63  ;;  %v5686_v38 = vadd.f32 %v5685_v40, %v5637_v15  ;;  %v5774_v55 = vmul.f32 %v5459_v50, %v11597_v3  ;;  %v5941_v45 = vadd.f32 %v5940_v20, %v5911_v34  ;;  %v11714_v15 = vpop.f32.mrf.mxu1 }
 0x607   :  { %v11695_v48 = vadd.f32 %v5529_v49, %v5528_v61  ;;  %v5961_v1 = vadd.f32 %v5960_v2, %v5959_v4  ;;  %v5795_v22 = vadd.f32 %v5794_v59, %v5770_v41  ;;  %v5641_v51 = vmul.f32 %v5459_v50, %v11603_v31 }
 0x608   :  { %v5823_v13 = vadd.f32 %v5822_v18, %v5777_v25  ;;  %v5933_v32 = vrot.slane %v5932_v5, 4  ;;  %v5771_v46 = vmul.f32 %v11664_v56, %v11593_v12  ;;  %v5908_v7 = vmul.f32 %v11664_v56, %v11591_v10 }
 0x609   :  { %v11702_v40 = vadd.f32 %v5670_v57, %v5669_v42  ;;  %v5816_v26 = vadd.f32 %v5815_v27, %v5814_v53  ;;  %v11704_v52 = vadd.f32 %v5536_v24, %v5507_v14  ;;  %v5678_v11 = vadd.f32 %v5677_v62, %v5640_v47  ;;  %v5310_v57 = vpop.f32.mrf.mxu1 }
 0x60a   :  { %v5796_v33 = vadd.f32 %v5795_v22, %v5774_v55  ;;  %v5942_v16 = vrot.slane %v5941_v45, 4  ;;  %v5775_v59 = vmul.f32 %v5461_v29, %v11601_v6  ;;  %v5912_v0 = vmul.f32 %v5461_v29, %v11599_v23  ;;  %v14655_v22 = vld [vmem:[#allocation126_spill] sm:$0xff] }
 0x60b   :  { %v5962_v44 = vrot.slane %v5961_v1, 2  ;;  %v5634_v12 = vmul.f32 %v11664_v56, %v11589_v19  ;;  %v5508_v9 = vmul.f32 %v5459_v50, %v11599_v23  ;;  %v5687_v10 = vadd.f32 %v5686_v38, %v5641_v51 }
 0x60c   :  { %v5824_v61 = vrot.slane %v5823_v13, 4  ;;  %v5934_v4 = vadd.f32 %v5933_v32, %v5932_v5  ;;  %v5804_v18 = vadd.f32 %v5803_v39, %v5771_v46  ;;  %v5949_v24 = vadd.f32 %v5948_v43, %v5908_v7  ;;  %v5465_v46 = vpop.f32.mrf.mxu0 }
 0x60d   :  { %v5817_v36 = vrot.slane %v5816_v26, 2  ;;  %v5679_v62 = vrot.slane %v5678_v11, 4  ;;  %v5505_v8 = vmul.f32 %v11664_v56, %v11595_v17  ;;  %v5638_v6 = vmul.f32 %v5461_v29, %v11597_v3 }
 0x60e   :  { %v5797_v60 = vrot.slane %v5796_v33, 4  ;;  %v5943_v42 = vadd.f32 %v5942_v16, %v5941_v45  ;;  %v5805_v53 = vadd.f32 %v5804_v18, %v5775_v59  ;;  %v5950_v63 = vadd.f32 %v5949_v24, %v5912_v0  ;;  %v14654_v45 = vld [vmem:[#allocation13_spill] sm:$0xff]  ;;  %v11748_v16 = vpop.f32.mrf.mxu1  ;;  %v14663_v24 = vld [vmem:[#allocation298_spill] sm:$0xff]  ;;  %v14671_v0 = vld [vmem:[#allocation135_spill] sm:$0xff] }
 0x60f   :  { %v11716_v19 = vadd.f32 %v5962_v44, %v5961_v1  ;;  %v5659_v23 = vadd.f32 %v5658_v54, %v5634_v12  ;;  %v5546_v50 = vadd.f32 %v5545_v37, %v5508_v9  ;;  %v5688_v34 = vrot.slane %v5687_v10, 4  ;;  %v14660_v12 = vld [vmem:[#allocation16_spill] sm:$0xff] }
 0x610   :  { %v11719_v49 = vadd.f32 %v5824_v61, %v5823_v13  ;;  %v5935_v2 = vrot.slane %v5934_v4, 2  ;;  %v5509_v17 = vmul.f32 %v5461_v29, %v11603_v31  ;;  %v11722_v56 = vadd.f32 %v5817_v36, %v5816_v26  ;;  %v14656_v29 = vld [vmem:[#allocation187_spill] sm:$0xff]  ;;  %v14672_v31 = vld [vmem:[#allocation208_spill] sm:$0xff] }
 0x611   :  { %14650 = vst [vmem:[#allocation300_spill] sm:$0xff] %v11716_v19  ;;  %v5554_v41 = vadd.f32 %v11678_v28, %v5505_v8  ;;  %v5660_v43 = vadd.f32 %v5659_v23, %v5638_v6  ;;  %v5798_v20 = vadd.f32 %v5797_v60, %v5796_v33  ;;  %v5944_v25 = vrot.slane %v5943_v42, 2 }
 0x612   :  { %v5806_v5 = vrot.slane %v5805_v53, 4  ;;  %v5951_v54 = vrot.slane %v5950_v63, 4  ;;  %v11727_v14 = vadd.f32 %v5679_v62, %v5678_v11  ;;  %v5547_v47 = vrot.slane %v5546_v50, 4 }
 0x613   :  { %v11729_v37 = vadd.f32 %v5688_v34, %v5687_v10  ;;  %v11732_v38 = vadd.f32 %v5935_v2, %v5934_v4  ;;  %v5510_v28 = vmul.f32 %v11684_v21, %v11605_v30  ;;  %v11736_v55 = vadd.f32 %v5554_v41, %v5509_v17  ;;  %v14661_v10 = vld [vmem:[#allocation294_spill] sm:$0xff]  ;;  %v14662_v4 = vld [vmem:[#allocation199_spill] sm:$0xff]  ;;  %v14666_v41 = vld [vmem:[#allocation333_spill] sm:$0xff] }
 0x614   :  { %v5643_v1 = vmul.f32 %v11684_v21, %v14654_v45  ;;  %v5780_v51 = vmul.f32 %v14655_v22, %v11684_v21  ;;  %v5917_v13 = vmul.f32 %v14656_v29, %v11684_v21  ;;  %v5661_v32 = vrot.slane %v5660_v43, 4 }
 0x615   :  { %14651 = vst [vmem:[#allocation136_spill] sm:$0xff] %v11729_v37  ;;  %14652 = vst [vmem:[#allocation144_spill] sm:$0xff] %v11732_v38  ;;  %v5799_v7 = vrot.slane %v5798_v20, 2  ;;  %v11744_v26 = vadd.f32 %v5944_v25, %v5943_v42  ;;  %v11746_v11 = vadd.f32 %v5806_v5, %v5805_v53  ;;  %v5952_v33 = vadd.f32 %v5951_v54, %v5950_v63  ;;  %v5467_v42 = vpop.f32.mrf.mxu0  ;;  %v14667_v54 = vld [vmem:[#allocation143_spill] sm:$0xff] }
 0x616   :  { %14653 = vst [vmem:[#allocation201_spill] sm:$0xff] %v11736_v55  ;;  %v11750_v59 = vadd.f32 %v5547_v47, %v5546_v50  ;;  %v5511_v44 = vmul.f32 %v11693_v58, %v14654_v45  ;;  %v5514_v9 = vmul.f32 %v5304_v35, %v14660_v12  ;;  %v5647_v61 = vmul.f32 %v5304_v35, %v14661_v10 }
 0x617   :  { %14657 = vst [vmem:[#allocation209_spill] sm:$0xff] %v11744_v26  ;;  %14658 = vst [vmem:[#allocation304_spill] sm:$0xff] %v11746_v11  ;;  %v5784_v18 = vmul.f32 %v14662_v4, %v5304_v35  ;;  %v5921_v36 = vmul.f32 %v14663_v24, %v5304_v35  ;;  %v11760_v62 = vadd.f32 %v5661_v32, %v5660_v43  ;;  %v5953_v50 = vrot.slane %v5952_v33, 2  ;;  %v5316_v35 = vpop.f32.mrf.mxu1  ;;  %v5471_v23 = vpop.f32.mrf.mxu0 }
 0x618   :  { %14659 = vst [vmem:[#allocation308_spill] sm:$0xff] %v11750_v59  ;;  %v5644_v8 = vmul.f32 %v14655_v22, %v11693_v58  ;;  %v5781_v6 = vmul.f32 %v14656_v29, %v11693_v58  ;;  %v5914_v60 = vmul.f32 %v11693_v58, %v11605_v30  ;;  %v11768_v53 = vadd.f32 %v5799_v7, %v5798_v20 }
 0x619   :  { %14664 = vst [vmem:[#allocation340_spill] sm:$0xff] %v11760_v62  ;;  %v5562_v34 = vadd.f32 %v5514_v9, %v5510_v28  ;;  %v5512_v2 = vmul.f32 %v5465_v46, %v14655_v22  ;;  %v5515_v17 = vmul.f32 %v11714_v15, %v14661_v10  ;;  %v5518_v43 = vmul.f32 %v5310_v57, %v14666_v41  ;;  %v14668_v28 = vld [vmem:[#allocation200_spill] sm:$0xff]  ;;  %v14673_v62 = vld [vmem:[#allocation307_spill] sm:$0xff] }
 0x61a   :  { %14665 = vst [vmem:[#allocation302_spill] sm:$0xff] %v11768_v53  ;;  %v5703_v25 = vadd.f32 %v5647_v61, %v5643_v1  ;;  %v5848_v5 = vadd.f32 %v5784_v18, %v5780_v51  ;;  %v5993_v58 = vadd.f32 %v5921_v36, %v5917_v13  ;;  %v5651_v20 = vmul.f32 %v5310_v57, %v14667_v54  ;;  %v14670_v51 = vld [vmem:[#allocation303_spill] sm:$0xff] }
 0x61b   :  { %v5645_v47 = vmul.f32 %v5465_v46, %v14656_v29  ;;  %v5778_v32 = vmul.f32 %v5465_v46, %v11605_v30  ;;  %v5915_v7 = vmul.f32 %v5465_v46, %v14654_v45  ;;  %v5522_v9 = vmul.f32 %v5316_v35, %v14668_v28 }
 0x61c   :  { %v11781_v21 = vadd.f32 %v5953_v50, %v5952_v33  ;;  %v5648_v63 = vmul.f32 %v14662_v4, %v11714_v15  ;;  %v5785_v1 = vmul.f32 %v14663_v24, %v11714_v15  ;;  %v5655_v13 = vmul.f32 %v5316_v35, %v14670_v51 }
 0x61d   :  { %v5571_v61 = vadd.f32 %v5515_v17, %v5511_v44  ;;  %v5918_v18 = vmul.f32 %v11714_v15, %v14660_v12  ;;  %v5563_v36 = vadd.f32 %v5562_v34, %v5518_v43  ;;  %v5788_v46 = vmul.f32 %v14671_v0, %v5310_v57 }
 0x61e   :  { %14669 = vst [vmem:[#allocation137_spill] sm:$0xff] %v11781_v21  ;;  %v5704_v27 = vadd.f32 %v5703_v25, %v5651_v20  ;;  %v5925_v39 = vmul.f32 %v14672_v31, %v5310_v57  ;;  %v5516_v33 = vmul.f32 %v5471_v23, %v14662_v4  ;;  %v5649_v50 = vmul.f32 %v5471_v23, %v14663_v24 }
 0x61f   :  { %v5782_v3 = vmul.f32 %v5471_v23, %v14660_v12  ;;  %v5919_v21 = vmul.f32 %v5471_v23, %v14661_v10  ;;  %v5564_v11 = vadd.f32 %v5563_v36, %v5522_v9  ;;  %v5792_v44 = vmul.f32 %v14673_v62, %v5316_v35  ;;  %v5473_v23 = vpop.f32.mrf.mxu0 }
 0x620   :  { %v5513_v17 = vmul.f32 %v5467_v42, %v14656_v29  ;;  %v5642_v15 = vmul.f32 %v5467_v42, %v11605_v30  ;;  %v5779_v34 = vmul.f32 %v5467_v42, %v14654_v45  ;;  %v5705_v43 = vadd.f32 %v5704_v27, %v5655_v13  ;;  %v5318_v29 = vpop.f32.mrf.mxu1 }
 0x621   :  { %v5712_v25 = vadd.f32 %v5648_v63, %v5644_v8  ;;  %v5857_v57 = vadd.f32 %v5785_v1, %v5781_v6  ;;  %v5966_v20 = vadd.f32 %v5918_v18, %v5914_v60  ;;  %v5849_v55 = vadd.f32 %v5848_v5, %v5788_v46 }
 0x622   :  { %v5916_v26 = vmul.f32 %v5467_v42, %v14655_v22  ;;  %v5994_v53 = vadd.f32 %v5993_v58, %v5925_v39  ;;  %v5580_v37 = vadd.f32 %v5516_v33, %v5512_v2  ;;  %v5721_v59 = vadd.f32 %v5649_v50, %v5645_v47  ;;  %v5477_v58 = vpop.f32.mrf.mxu0 }
 0x623   :  { %v5830_v9 = vadd.f32 %v5782_v3, %v5778_v32  ;;  %v5975_v36 = vadd.f32 %v5919_v21, %v5915_v7  ;;  %v5565_v38 = vrot.slane %v5564_v11, 4  ;;  %v5850_v19 = vadd.f32 %v5849_v55, %v5792_v44  ;;  %v14674_v21 = vld [vmem:[#allocation339_spill] sm:$0xff] }
 0x624   :  { %v5519_v30 = vmul.f32 %v11748_v16, %v14667_v54  ;;  %v5652_v27 = vmul.f32 %v14671_v0, %v11748_v16  ;;  %v5789_v45 = vmul.f32 %v14672_v31, %v11748_v16  ;;  %v5706_v8 = vrot.slane %v5705_v43, 4 }
 0x625   :  { %v5922_v39 = vmul.f32 %v11748_v16, %v14666_v41  ;;  %v5517_v22 = vmul.f32 %v5473_v23, %v14663_v24  ;;  %v5646_v3 = vmul.f32 %v5473_v23, %v14660_v12  ;;  %v5929_v55 = vmul.f32 %v14674_v21, %v5316_v35 }
 0x626   :  { %v5783_v6 = vmul.f32 %v5473_v23, %v14661_v10  ;;  %v5920_v60 = vmul.f32 %v5473_v23, %v14662_v4  ;;  %v5523_v42 = vmul.f32 %v5318_v29, %v14670_v51  ;;  %v5656_v63 = vmul.f32 %v14673_v62, %v5318_v29 }
 0x627   :  { %v5566_v2 = vadd.f32 %v5565_v38, %v5564_v11  ;;  %v5851_v5 = vrot.slane %v5850_v19, 4  ;;  %v5793_v47 = vmul.f32 %v14674_v21, %v5318_v29  ;;  %v5926_v16 = vmul.f32 %v5318_v29, %v14668_v28 }
 0x628   :  { %v5572_v24 = vadd.f32 %v5571_v61, %v5519_v30  ;;  %v5713_v32 = vadd.f32 %v5712_v25, %v5652_v27  ;;  %v5707_v12 = vadd.f32 %v5706_v8, %v5705_v43  ;;  %v5531_v35 = vrot.slane %v11695_v48, 2 }
 0x629   :  { %v5858_v7 = vadd.f32 %v5857_v57, %v5789_v45  ;;  %v5967_v10 = vadd.f32 %v5966_v20, %v5922_v39  ;;  %v5589_v1 = vadd.f32 %v5517_v22, %v5513_v17  ;;  %v5995_v4 = vadd.f32 %v5994_v53, %v5929_v55  ;;  %v5479_v45 = vpop.f32.mrf.mxu0 }
 0x62a   :  { %v5520_v13 = vmul.f32 %v5477_v58, %v14671_v0  ;;  %v5653_v18 = vmul.f32 %v5477_v58, %v14672_v31  ;;  %v5573_v38 = vadd.f32 %v5572_v24, %v5523_v42  ;;  %v5714_v11 = vadd.f32 %v5713_v32, %v5656_v63 }
 0x62b   :  { %v5567_v46 = vrot.slane %v5566_v2, 2  ;;  %v5852_v33 = vadd.f32 %v5851_v5, %v5850_v19  ;;  %v5859_v50 = vadd.f32 %v5858_v7, %v5793_v47  ;;  %v5968_v44 = vadd.f32 %v5967_v10, %v5926_v16 }
 0x62c   :  { %v5694_v23 = vadd.f32 %v5646_v3, %v5642_v15  ;;  %v5708_v61 = vrot.slane %v5707_v12, 2  ;;  %v5786_v43 = vmul.f32 %v5477_v58, %v14666_v41  ;;  %v5532_v25 = vadd.f32 %v5531_v35, %v11695_v48 }
 0x62d   :  { %v5839_v57 = vadd.f32 %v5783_v6, %v5779_v34  ;;  %v11823_v20 = vadd.f32 %v5920_v60, %v5916_v26  ;;  %v5996_v53 = vrot.slane %v5995_v4, 4  ;;  %v5923_v17 = vmul.f32 %v5477_v58, %v14667_v54 }
 0x62e   :  { %v11826_v29 = vadd.f32 %v5580_v37, %v5520_v13  ;;  %v11828_v30 = vadd.f32 %v5721_v59, %v5653_v18  ;;  %v5574_v27 = vrot.slane %v5573_v38, 4  ;;  %v5715_v19 = vrot.slane %v5714_v11, 4 }
 0x62f   :  { %v5568_v8 = vadd.f32 %v5567_v46, %v5566_v2  ;;  %v5853_v15 = vrot.slane %v5852_v33, 2  ;;  %v5860_v39 = vrot.slane %v5859_v50, 4  ;;  %v5969_v22 = vrot.slane %v5968_v44, 4 }
 0x630   :  { %v5709_v3 = vadd.f32 %v5708_v61, %v5707_v12  ;;  %v11830_v55 = vadd.f32 %v5830_v9, %v5786_v43  ;;  %v5533_v48 = vrot.slane %v5532_v25, 1  ;;  %v14675_v26 = vrot.slane %v11704_v52, 4 }
 0x631   :  { %v11835_v6 = vadd.f32 %v5996_v53, %v5995_v4  ;;  %v11837_v37 = vadd.f32 %v5975_v36, %v5923_v17  ;;  %v5521_v59 = vmul.f32 %v5479_v45, %v14672_v31  ;;  %v14676_v60 = vrot.slane %v11702_v40, 2 }
 0x632   :  { %v5539_v34 = vadd.f32 %v14675_v26, %v11704_v52  ;;  %v5575_v63 = vadd.f32 %v5574_v27, %v5573_v38  ;;  %v5716_v2 = vadd.f32 %v5715_v19, %v5714_v11  ;;  %v5681_v9 = vrot.slane %v11727_v14, 2 }
 0x633   :  { %v5673_v42 = vadd.f32 %v14676_v60, %v11702_v40  ;;  %v5569_v58 = vrot.slane %v5568_v8, 1  ;;  %v11844_v47 = vadd.f32 %v5853_v15, %v5852_v33  ;;  %v11846_v16 = vadd.f32 %v5860_v39, %v5859_v50  ;;  %v14678_v39 = vld [vmem:[#allocation300_spill] sm:$0xff] }
 0x634   :  { %v5540_v5 = vrot.slane %v5539_v34, 2  ;;  %v5970_v52 = vadd.f32 %v5969_v22, %v5968_v44  ;;  %v5710_v24 = vrot.slane %v5709_v3, 1  ;;  %v5534_v36 = vadd.f32 %v5533_v48, %v5532_v25  ;;  %v11880_v48 = vld [vmem:[%s12025_s0 + $0x20] sm:$0x3] }
 0x635   :  { %v5682_v31 = vadd.f32 %v5681_v9, %v11727_v14  ;;  %v5650_v12 = vmul.f32 %v5479_v45, %v14666_v41  ;;  %v5787_v40 = vmul.f32 %v5479_v45, %v14667_v54  ;;  %v5674_v35 = vrot.slane %v5673_v42, 1 }
 0x636   :  { %v5541_v32 = vadd.f32 %v5540_v5, %v5539_v34  ;;  %v14677_v7 = vrot.slane %v11719_v49, 2  ;;  %v5576_v4 = vrot.slane %v5575_v63, 2  ;;  %v5717_v13 = vrot.slane %v5716_v2, 2  ;;  %v11887_v34 = vld [vmem:[%s12025_s0 + $0x28] sm:$0x3] }
 0x637   :  { %v5683_v38 = vrot.slane %v5682_v31, 1  ;;  %v11854_v11 = vadd.f32 %v5569_v58, %v5568_v8  ;;  %v5862_v46 = vrot.slane %v11846_v16, 2  ;;  %v5971_v33 = vrot.slane %v5970_v52, 2  ;;  %v11894_v58 = vpop.f32.mrf.mxu1 }
 0x638   :  { %v5827_v10 = vadd.f32 %v14677_v7, %v11719_v49  ;;  %v5542_v18 = vrot.slane %v5541_v32, 1  ;;  %v11857_v50 = vadd.f32 %v5589_v1, %v5521_v59  ;;  %v11859_v14 = vadd.f32 %v5710_v24, %v5709_v3  ;;  %v5483_v3 = vpop.f32.mrf.mxu0 }
 0x639   :  { %v5598_v41 = vand.u32 2147483647, %v5534_v36  ;;  %v5819_v54 = vrot.slane %v11722_v56, 1  ;;  %v5695_v61 = vadd.f32 %v5694_v23, %v5650_v12  ;;  %v5675_v43 = vadd.f32 %v5674_v35, %v5673_v42  ;;  %v14681_v12 = vld [vmem:[#allocation308_spill] sm:$0xff] }
 0x63a   :  { %v5543_v44 = vadd.f32 %v5542_v18, %v5541_v32  ;;  %v5684_v49 = vadd.f32 %v5683_v38, %v5682_v31  ;;  %v5828_v25 = vrot.slane %v5827_v10, 1  ;;  %v11862_v53 = vadd.f32 %v5576_v4, %v5575_v63  ;;  %v11899_v31 = vpop.f32.mrf.mxu0  ;;  %v14682_v4 = vld [vmem:[#allocation136_spill] sm:$0xff] }
 0x63b   :  { %v11864_v17 = vadd.f32 %v5717_v13, %v5716_v2  ;;  %v11866_v27 = vadd.f32 %v5839_v57, %v5787_v40  ;;  %v5602_v1 = vand.u32 2147483647, %v11854_v11  ;;  %v11869_v8 = vadd.f32 %v5971_v33, %v5970_v52  ;;  %v11910_v33 = vld [vmem:[%s12025_s0 + $0x30] sm:$0x3] }
 0x63c   :  { %v5599_v19 = vand.u32 2147483647, %v5543_v44  ;;  %v11872_v15 = vmul.f32 %v5479_v45, %v14671_v0  ;;  %v14679_v23 = vrot.slane %v14678_v39, 1  ;;  %v5606_v57 = vmul.f32 %v11880_v48, %v5598_v41  ;;  %v14680_v45 = vld [vmem:[#allocation144_spill] sm:$0xff] }
 0x63d   :  { %v5820_v26 = vadd.f32 %v5819_v54, %v11722_v56  ;;  %v5937_v59 = vrot.slane %v14680_v45, 1  ;;  %v5735_v60 = vand.u32 2147483647, %v11859_v14  ;;  %v5731_v42 = vand.u32 2147483647, %v5675_v43 }
 0x63e   :  { %v5965_v22 = vadd.f32 %v14679_v23, %v14678_v39  ;;  %v5607_v0 = vmul.f32 %v11887_v34, %v5599_v19  ;;  %v5732_v63 = vand.u32 2147483647, %v5684_v49  ;;  %v5829_v2 = vadd.f32 %v5828_v25, %v5827_v10  ;;  %v11918_v25 = vpop.f32.mrf.mxu1  ;;  %v11925_v23 = vld [vmem:[%s12025_s0 + $0x38] sm:$0x3] }
 0x63f   :  { %v5578_v5 = vrot.slane %v11862_v53, 1  ;;  %v5719_v9 = vrot.slane %v11864_v17, 1  ;;  %v5524_v56 = vmul.f32 %v5483_v3, %v14673_v62  ;;  %v5657_v52 = vmul.f32 %v5483_v3, %v14674_v21 }
 0x640   :  { %v5973_v24 = vrot.slane %v11869_v8, 1  ;;  %v6005_v36 = vand.u32 2147483647, %v5965_v22  ;;  %v5615_v32 = vrot.slane %v5607_v0, 1  ;;  %v5549_v40 = vrot.slane %v14681_v12, 2 }
 0x641   :  { %v5614_v35 = vrot.slane %v5606_v57, 1  ;;  %v5868_v7 = vand.u32 2147483647, %v5820_v26  ;;  %v5938_v10 = vadd.f32 %v5937_v59, %v14680_v45  ;;  %v14683_v13 = vrot.slane %v14682_v4, 2 }
 0x642   :  { %v5739_v38 = vmul.f32 %v11887_v34, %v5731_v42  ;;  %v5740_v41 = vmul.f32 %v11910_v33, %v5732_v63  ;;  %v5869_v54 = vand.u32 2147483647, %v5829_v2  ;;  %v5550_v44 = vadd.f32 %v5549_v40, %v14681_v12 }
 0x643   :  { %v5691_v18 = vadd.f32 %v14683_v13, %v14682_v4  ;;  %v5582_v43 = vadd.f32 %v11826_v29, %v5524_v56  ;;  %v11916_v49 = vadd.f32 %v11828_v30, %v5657_v52  ;;  %v5654_v19 = vmul.f32 %v11899_v31, %v14668_v28 }
 0x644   :  { %v6013_v22 = vmul.f32 %v11925_v23, %v6005_v36  ;;  %v5790_v57 = vmul.f32 %v5483_v3, %v14668_v28  ;;  %v5623_v29 = vadd.f32 %v5615_v32, %v11918_v25  ;;  %v5551_v26 = vrot.slane %v5550_v44, 1  ;;  %v14684_v28 = vld [vmem:[#allocation302_spill] sm:$0xff] }
 0x645   :  { %v5692_v39 = vrot.slane %v5691_v18, 1  ;;  %v5622_v30 = vadd.f32 %v5614_v35, %v11894_v58  ;;  %v5876_v0 = vmul.f32 %v11910_v33, %v5868_v7  ;;  %v6002_v45 = vand.u32 2147483647, %v5938_v10 }
 0x646   :  { %v5747_v42 = vrot.slane %v5739_v38, 1  ;;  %v5748_v63 = vrot.slane %v5740_v41, 1  ;;  %v5877_v2 = vmul.f32 %v11925_v23, %v5869_v54  ;;  %v5552_v56 = vadd.f32 %v5551_v26, %v5550_v44 }
 0x647   :  { %v5693_v59 = vadd.f32 %v5692_v39, %v5691_v18  ;;  %v5696_v52 = vadd.f32 %v5695_v61, %v5654_v19  ;;  %v5791_v36 = vmul.f32 %v11899_v31, %v14670_v51  ;;  %v5801_v40 = vrot.slane %v14684_v28, 1 }
 0x648   :  { %v5583_v32 = vrot.slane %v5582_v43, 4  ;;  %v5832_v4 = vadd.f32 %v11830_v55, %v5790_v57  ;;  %v5755_v35 = vadd.f32 %v5748_v63, %v5623_v29  ;;  %v5600_v13 = vand.u32 2147483647, %v5552_v56  ;;  %v11943_v55 = vpop.f32.mrf.mxu0  ;;  %v14685_v57 = vld [vmem:[#allocation209_spill] sm:$0xff] }
 0x649   :  { %v5733_v12 = vand.u32 2147483647, %v5693_v59  ;;  %v5754_v7 = vadd.f32 %v5747_v42, %v5622_v30  ;;  %v6021_v10 = vrot.slane %v6013_v22, 1  ;;  %v5927_v18 = vmul.f32 %v5483_v3, %v14670_v51 }
 0x64a   :  { %v6010_v38 = vmul.f32 %v11880_v48, %v6002_v45  ;;  %v5885_v41 = vrot.slane %v5877_v2, 1  ;;  %v5608_v61 = vmul.f32 %v11910_v33, %v5600_v13  ;;  %v5802_v44 = vadd.f32 %v5801_v40, %v14684_v28 }
 0x64b   :  { %v5741_v54 = vmul.f32 %v11925_v23, %v5733_v12  ;;  %v5884_v19 = vrot.slane %v5876_v0, 1  ;;  %v5697_v39 = vrot.slane %v5696_v52, 4  ;;  %v5841_v26 = vadd.f32 %v11866_v27, %v5791_v36 }
 0x64c   :  { %v14686_v22 = vrot.slane %v14685_v57, 1  ;;  %v5833_v51 = vrot.slane %v5832_v4, 4  ;;  %v5891_v3 = vadd.f32 %v5885_v41, %v5755_v35  ;;  %v5616_v30 = vrot.slane %v5608_v61, 1 }
 0x64d   :  { %v5866_v45 = vand.u32 2147483647, %v5802_v44  ;;  %v5890_v59 = vadd.f32 %v5884_v19, %v5754_v7  ;;  %v5977_v42 = vadd.f32 %v11837_v37, %v5927_v18  ;;  %v5525_v63 = vmul.f32 %v11899_v31, %v14674_v21 }
 0x64e   :  { %v5947_v29 = vadd.f32 %v14686_v22, %v14685_v57  ;;  %v6018_v2 = vrot.slane %v6010_v38, 1  ;;  %v5624_v27 = vadd.f32 %v5616_v30, %v11943_v55  ;;  %v5749_v56 = vrot.slane %v5741_v54, 1  ;;  %v14689_v57 = vld [vmem:[#allocation340_spill] sm:$0xff] }
 0x64f   :  { %v5874_v36 = vmul.f32 %v11880_v48, %v5866_v45  ;;  %v5584_v12 = vadd.f32 %v5583_v32, %v5582_v43  ;;  %v5698_v28 = vadd.f32 %v5697_v39, %v5696_v52  ;;  %v5842_v40 = vrot.slane %v5841_v26, 4  ;;  %v14687_v32 = vld [vmem:[#allocation201_spill] sm:$0xff] }
 0x650   :  { %v6003_v0 = vand.u32 2147483647, %v5947_v29  ;;  %v5928_v35 = vmul.f32 %v11899_v31, %v14673_v62  ;;  %v11955_v13 = vadd.f32 %v6018_v2, %v5891_v3  ;;  %v5756_v7 = vadd.f32 %v5749_v56, %v5624_v27 }
 0x651   :  { %v5882_v37 = vrot.slane %v5874_v36, 1  ;;  %v5985_v21 = vadd.f32 %v11823_v20, %v11872_v15  ;;  %v5724_v38 = vrot.slane %v11916_v49, 4  ;;  %v5834_v41 = vadd.f32 %v5833_v51, %v5832_v4 }
 0x652   :  { %v6011_v18 = vmul.f32 %v11887_v34, %v6003_v0  ;;  %v5978_v61 = vrot.slane %v5977_v42, 4  ;;  %v11961_v54 = vadd.f32 %v6021_v10, %v5890_v59  ;;  %v5591_v43 = vadd.f32 %v11857_v50, %v5525_v63  ;;  %v14690_v50 = vld [vmem:[#allocation304_spill] sm:$0xff] }
 0x653   :  { %v5892_v52 = vadd.f32 %v5882_v37, %v5756_v7  ;;  %v14688_v62 = vrot.slane %v14687_v32, 4  ;;  %v5585_v44 = vrot.slane %v5584_v12, 2  ;;  %v5699_v19 = vrot.slane %v5698_v28, 2 }
 0x654   :  { %v5843_v39 = vadd.f32 %v5842_v40, %v5841_v26  ;;  %v5663_v22 = vrot.slane %v14689_v57, 2  ;;  %v6040_v20 = vmul.f32 1.442695, %v11955_v13  ;;  %v5986_v15 = vadd.f32 %v5985_v21, %v5928_v35 }
 0x655   :  { %v5557_v31 = vadd.f32 %v14688_v62, %v14687_v32  ;;  %v6019_v29 = vrot.slane %v6011_v18, 1  ;;  %v5835_v51 = vrot.slane %v5834_v41, 2  ;;  %v5979_v10 = vadd.f32 %v5978_v61, %v5977_v42  ;;  %v14692_v62 = vld [vmem:[#allocation137_spill] sm:$0xff] }
 0x656   :  { %v5664_v3 = vadd.f32 %v5663_v22, %v14689_v57  ;;  %v14691_v30 = vrot.slane %v14690_v50, 2  ;;  %v6038_v59 = vmul.f32 1.442695, %v11961_v54  ;;  %v5592_v63 = vrot.slane %v5591_v43, 4 }
 0x657   :  { %v5558_v4 = vrot.slane %v5557_v31, 2  ;;  %v11974_v0 = vadd.f32 %v6019_v29, %v5892_v52  ;;  %v5700_v2 = vadd.f32 %v5699_v19, %v5698_v28  ;;  %v5844_v27 = vrot.slane %v5843_v39, 2 }
 0x658   :  { %v5809_v45 = vadd.f32 %v14691_v30, %v14690_v50  ;;  %v5665_v56 = vrot.slane %v5664_v3, 1  ;;  %v5586_v40 = vadd.f32 %v5585_v44, %v5584_v12  ;;  %6909 = vpow2.f32 %v6040_v20 }
 0x659   :  { %v5559_v26 = vadd.f32 %v5558_v4, %v5557_v31  ;;  %v5987_v35 = vrot.slane %v5986_v15, 4  ;;  %v5836_v7 = vadd.f32 %v5835_v51, %v5834_v41  ;;  %v5980_v37 = vrot.slane %v5979_v10, 2 }
 0x65a   :  { %v5810_v36 = vrot.slane %v5809_v45, 1  ;;  %v5666_v18 = vadd.f32 %v5665_v56, %v5664_v3  ;;  %6911 = vpow2.f32 %v6038_v59  ;;  %v6042_v61 = vmul.f32 1.442695, %v11974_v0  ;;  %v11985_v59 = vpop.f32.mrf.mxu0 }
 0x65b   :  { %v5560_v42 = vrot.slane %v5559_v26, 1  ;;  %v5955_v52 = vrot.slane %v14692_v62, 1  ;;  %v5593_v57 = vadd.f32 %v5592_v63, %v5591_v43  ;;  %v5701_v31 = vrot.slane %v5700_v2, 1 }
 0x65c   :  { %v5811_v21 = vadd.f32 %v5810_v36, %v5809_v45  ;;  %v5845_v28 = vadd.f32 %v5844_v27, %v5843_v39  ;;  %v5730_v19 = vand.u32 2147483647, %v5666_v18  ;;  %v5988_v22 = vadd.f32 %v5987_v35, %v5986_v15 }
 0x65d   :  { %v5561_v32 = vadd.f32 %v5560_v42, %v5559_v26  ;;  %v5956_v44 = vadd.f32 %v5955_v52, %v14692_v62  ;;  %v5579_v41 = vadd.f32 %v5578_v5, %v11862_v53  ;;  %v5725_v20 = vadd.f32 %v5724_v38, %v11916_v49 }
 0x65e   :  { %v5867_v12 = vand.u32 2147483647, %v5811_v21  ;;  %v5837_v4 = vrot.slane %v5836_v7, 1  ;;  %v5981_v51 = vadd.f32 %v5980_v37, %v5979_v10  ;;  %6913 = vpow2.f32 %v6042_v61 }
 0x65f   :  { %v5601_v29 = vand.u32 2147483647, %v5561_v32  ;;  %v5738_v43 = vmul.f32 %v11880_v48, %v5730_v19  ;;  %v6004_v39 = vand.u32 2147483647, %v5956_v44  ;;  %v5587_v50 = vrot.slane %v5586_v40, 1 }
 0x660   :  { %v5594_v15 = vrot.slane %v5593_v57, 2  ;;  %v5702_v30 = vadd.f32 %v5701_v31, %v5700_v2  ;;  %v5846_v45 = vrot.slane %v5845_v28, 1  ;;  %v11990_v53 = vadd.f32 %v5973_v24, %v11869_v8 }
 0x661   :  { %v5609_v3 = vmul.f32 %v11925_v23, %v5601_v29  ;;  %v5989_v5 = vrot.slane %v5988_v22, 2  ;;  %v5875_v38 = vmul.f32 %v11887_v34, %v5867_v12  ;;  %v5603_v10 = vand.u32 2147483647, %v5579_v41 }
 0x662   :  { %v5726_v23 = vrot.slane %v5725_v20, 2  ;;  %v5838_v63 = vadd.f32 %v5837_v4, %v5836_v7  ;;  %v5982_v48 = vrot.slane %v5981_v51, 1  ;;  %v5720_v26 = vadd.f32 %v5719_v9, %v11864_v17 }
 0x663   :  { %v5617_v49 = vrot.slane %v5609_v3, 1  ;;  %v5746_v27 = vrot.slane %v5738_v43, 1  ;;  %v6012_v56 = vmul.f32 %v11910_v33, %v6004_v39  ;;  %v5595_v36 = vadd.f32 %v5594_v15, %v5593_v57 }
 0x664   :  { %v5734_v8 = vand.u32 2147483647, %v5702_v30  ;;  %v5847_v24 = vadd.f32 %v5846_v45, %v5845_v28  ;;  %v5588_v35 = vadd.f32 %v5587_v50, %v5586_v40  ;;  %v5855_v42 = vrot.slane %v11844_v47, 1 }
 0x665   :  { %v5625_v2 = vadd.f32 %v5617_v49, %v11985_v59  ;;  %v5990_v34 = vadd.f32 %v5989_v5, %v5988_v22  ;;  %v5883_v18 = vrot.slane %v5875_v38, 1  ;;  %v6910_v7 = vpop.eup %6909  ;;  %v5727_v21 = vadd.f32 %v5726_v23, %v5725_v20 }
 0x666   :  { %v5870_v61 = vand.u32 2147483647, %v5838_v63  ;;  %v5983_v32 = vadd.f32 %v5982_v48, %v5981_v51  ;;  %v5759_v17 = vadd.f32 %v5735_v60, %v5603_v10  ;;  %vm6034_vm5 = vcmp.gt.f32.partialorder %v11961_v54, 0.0 }
 0x667   :  { %v5757_v37 = vadd.f32 %v5746_v27, %v5625_v2  ;;  %v5736_v9 = vand.u32 2147483647, %v5720_v26  ;;  %v6020_v62 = vrot.slane %v6012_v56, 1  ;;  %v6912_v52 = vpop.eup %6911  ;;  %v5871_v57 = vand.u32 2147483647, %v5847_v24 }
 0x668   :  { %v5604_v40 = vand.u32 2147483647, %v5588_v35  ;;  %v5758_v31 = vadd.f32 %v5734_v8, %v5602_v1  ;;  %v5596_v28 = vrot.slane %v5595_v36, 1  ;;  %v6218_v19 = vadd.f32 -1.0, %v6910_v7 }
 0x669   :  { %v5893_v33 = vadd.f32 %v5883_v18, %v5757_v37  ;;  %v5856_v22 = vadd.f32 %v5855_v42, %v11844_v47  ;;  %v5991_v29 = vrot.slane %v5990_v34, 1  ;;  %v5895_v44 = vadd.f32 %v5871_v57, %v5759_v17 }
 0x66a   :  { %v5728_v14 = vrot.slane %v5727_v21, 1  ;;  %v5863_v60 = vadd.f32 %v5862_v46, %v11846_v16  ;;  %v5998_v41 = vrot.slane %v11835_v6, 2  ;;  %vm6035_vm6 = vcmp.gt.f32.partialorder %v11955_v13, 0.0 }
 0x66b   :  { %v6029_v12 = vadd.f32 %v6020_v62, %v5893_v33  ;;  %v5760_v20 = vadd.f32 %v5736_v9, %v5604_v40  ;;  %v6217_v4 = vadd.f32 -1.0, %v6912_v52  ;;  %v6914_v1 = vpop.eup %6913  ;;  %v5894_v51 = vadd.f32 %v5870_v61, %v5758_v31 }
 0x66c   :  { %v6006_v3 = vand.u32 2147483647, %v11990_v53  ;;  %v6007_v47 = vand.u32 2147483647, %v5983_v32  ;;  %v5597_v43 = vadd.f32 %v5596_v28, %v5595_v36  ;;  %v6051_v39 = vsel %vm6035_vm6, %v11955_v13, %v6218_v19 }
 0x66d   :  { %v6044_v11 = vmul.f32 1.442695, %v6029_v12  ;;  %v5872_v50 = vand.u32 2147483647, %v5856_v22  ;;  %v5992_v15 = vadd.f32 %v5991_v29, %v5990_v34  ;;  %v5729_v16 = vadd.f32 %v5728_v14, %v5727_v21 }
 0x66e   :  { %v6031_v30 = vadd.f32 %v6007_v47, %v5895_v44  ;;  %v5864_v46 = vrot.slane %v5863_v60, 1  ;;  %v5999_v45 = vadd.f32 %v5998_v41, %v11835_v6  ;;  %v6219_v5 = vadd.f32 -1.0, %v6914_v1 }
 0x66f   :  { %6915 = vpow2.f32 %v6044_v11  ;;  %v6050_v49 = vsel %vm6034_vm5, %v11961_v54, %v6217_v4  ;;  %v5896_v38 = vadd.f32 %v5872_v50, %v5760_v20  ;;  %v6030_v10 = vadd.f32 %v6006_v3, %v5894_v51 }
 0x670   :  { %v6055_v53 = vmul.f32 %v6051_v39, %v6031_v30  ;;  %v5605_v23 = vand.u32 2147483647, %v5597_v43  ;;  %v6008_v63 = vand.u32 2147483647, %v5992_v15  ;;  %vm6036_vm7 = vcmp.gt.f32.partialorder %v11974_v0, 0.0 }
 0x671   :  { %v6054_v13 = vmul.f32 %v6050_v49, %v6030_v10  ;;  %v5737_v48 = vand.u32 2147483647, %v5729_v16  ;;  %v5865_v26 = vadd.f32 %v5864_v46, %v5863_v60  ;;  %v6000_v2 = vrot.slane %v5999_v45, 1 }
 0x672   :  { %v6052_v27 = vsel %vm6036_vm7, %v11974_v0, %v6219_v5  ;;  %v6032_v56 = vadd.f32 %v6008_v63, %v5896_v38  ;;  %v6063_v6 = vrot.slane %v6055_v53, 7  ;;  %vm6037_vm8 = vcmp.gt.f32.partialorder %v6029_v12, 0.0 }
 0x673   :  { %v5761_v36 = vadd.f32 %v5737_v48, %v5605_v23  ;;  %v6062_v24 = vrot.slane %v6054_v13, 7  ;;  %v5873_v35 = vand.u32 2147483647, %v5865_v26  ;;  %v6001_v54 = vadd.f32 %v6000_v2, %v5999_v45 }
 0x674   :  { %v6056_v8 = vmul.f32 %v6052_v27, %v6032_v56  ;;  %v6071_v42 = vadd.f32 %v6063_v6, %v11918_v25 }
 0x675   :  { %v5897_v34 = vadd.f32 %v5873_v35, %v5761_v36  ;;  %v6070_v7 = vadd.f32 %v6062_v24, %v11894_v58  ;;  %v6009_v21 = vand.u32 2147483647, %v6001_v54 }
 0x676   :  { %v6064_v18 = vrot.slane %v6056_v8, 7 }
 0x677   :  { %v6074_v32 = vadd.f32 %v6071_v42, %v6070_v7  ;;  %v6033_v17 = vadd.f32 %v6009_v21, %v5897_v34 }
 0x678   :  { %v6072_v9 = vadd.f32 %v6064_v18, %v11943_v55 }
 0x67a   :  { %v6075_v62 = vadd.f32 %v6074_v32, %v6072_v9 }
 0x67c   :  { %v6916_v37 = vpop.eup %6915 }
 0x67d   :  { %v6220_v61 = vadd.f32 -1.0, %v6916_v37 }
 0x67f   :  { %v6053_v0 = vsel %vm6037_vm8, %v6029_v12, %v6220_v61 }
 0x680   :  { %v6057_v33 = vmul.f32 %v6053_v0, %v6033_v17 }
 0x682   :  { %v6065_v52 = vrot.slane %v6057_v33, 7 }
 0x684   :  { %v6073_v57 = vadd.f32 %v6065_v52, %v11985_v59 }
 0x686   :  { %v6076_v40 = vadd.f32 %v6075_v62, %v6073_v57 }
 0x688   :  { %6077 = vst [vmem:[%s12030_s5 - $0x1] sm:$0x2] %v6076_v40 }

</bundles_post_ra>
